<compile_context>
chip_gen: v5e
topology: v5e:2x2
jax: 0.10.0
libtpu: 0.0.40
codegen_flags: <defaults>
</compile_context>

<pallas_src>
import functools

import jax
import jax.numpy as jnp
from jax.experimental import pallas as pl
from jax.experimental.pallas import tpu as pltpu


def _residual_block_kernel(xpad_ref, xres_ref, w_ref, bias_ref, out_ref,
                           col_scratch, pad_scratch, *, NB, H, W, C):
    """One batch-block (NB images) per grid step.

    xpad_ref   : (NB, H+2, W+2, C) f32   zero-padded input, NHWC
    xres_ref   : (NB, H,   W,   C) f32   unpadded input (residual branch)
    w_ref      : (9*C, Cout)       bf16  im2col weight, BN scale folded in
    bias_ref   : (1, Cout)         f32   folded BN bias
    out_ref    : (NB, H, W, Cout)  f32
    col_scratch: (NB*H*W, 9*C)     bf16  im2col operand (reused by both convs)
    pad_scratch: (NB, H+2, W+2, C) f32   zero-padded intermediate activation
    """
    M = NB * H * W
    w = w_ref[...]        # (9*C, Cout) bf16, hoisted
    bias = bias_ref[...]  # (1, Cout)   f32,  hoisted

    # Number of 3x3 taps packed per col_scratch store so that most stores are
    # full 128-lane unmasked vst (4 taps when C == 32).
    group = 128 // C if (C <= 128 and 128 % C == 0) else 1

    def conv_bn_relu(src_ref):
        # src_ref: (NB, H+2, W+2, C) f32, zero-padded activation (NHWC).
        # im2col: 9 shifted patches side by side, then ONE K = 9*C bf16 MXU
        # matmul with f32 accumulation.
        patches = [src_ref[:, ky:ky + H, kx:kx + W, :].reshape(M, C)
                   for ky in range(3) for kx in range(3)]
        t = 0
        while t < 9:
            g = min(group, 9 - t)
            blk = patches[t] if g == 1 else jnp.concatenate(
                patches[t:t + g], axis=1)
            col_scratch[:, t * C:(t + g) * C] = blk.astype(jnp.bfloat16)
            t += g
        acc = jnp.dot(col_scratch[...], w, preferred_element_type=jnp.float32)
        return jnp.maximum(acc + bias, 0.0)          # (M, Cout) f32

    # ---- first Conv + BN + ReLU ----
    y1 = conv_bn_relu(xpad_ref)

    # Zero-pad y1 into pad_scratch: two border-row stores plus one wide store
    # of the W-padded interior (no width-1 strided column stores).
    zrow = jnp.zeros((NB, 1, W + 2, C), jnp.float32)
    zcol = jnp.zeros((NB, H, 1, C), jnp.float32)
    pad_scratch[:, 0:1, :, :] = zrow
    pad_scratch[:, H + 1:H + 2, :, :] = zrow
    pad_scratch[:, 1:H + 1, :, :] = jnp.concatenate(
        [zcol, y1.reshape(NB, H, W, C), zcol], axis=2)

    # ---- second Conv + BN + ReLU (shared weights) + residual add ----
    y2 = conv_bn_relu(pad_scratch)
    out_ref[...] = y2.reshape(NB, H, W, C) + xres_ref[...]


def _num_batch_blocks(n):
    """2 grid steps only on 2-TensorCore chips (v4/v5p/v7x), else 1."""
    try:
        kind = jax.devices()[0].device_kind.lower()
    except Exception:  # pragma: no cover
        kind = ""
    two_core = any(tag in kind for tag in ("v4", "v5p", "v7", "7x"))
    return 2 if (two_core and n >= 2) else 1


def residual_block(x_nchw, weight_oihw, gamma, beta, run_mean, run_var,
                   eps=1e-5):
    """ResidualBlock forward. x_nchw: (N, C, H, W) float32, NCHW."""
    N, C, H, W = x_nchw.shape
    Cout = weight_oihw.shape[0]
    assert Cout == C, "residual add requires in_channels == out_channels"

    n_blocks = _num_batch_blocks(N)
    n_pad = pl.cdiv(N, n_blocks) * n_blocks   # pad batch for odd N on 2-TC parts
    NB = n_pad // n_blocks
    M = NB * H * W

    # NCHW -> NHWC; residual copy + zero spatial padding for the first conv.
    x_nhwc = jnp.transpose(x_nchw, (0, 2, 3, 1)).astype(jnp.float32)
    if n_pad != N:
        x_nhwc = jnp.pad(x_nhwc, ((0, n_pad - N), (0, 0), (0, 0), (0, 0)))
    xpad = jnp.pad(x_nhwc, ((0, 0), (1, 1), (1, 1), (0, 0)))

    # Fold eval-mode BatchNorm into per-channel scale/bias; fold the scale
    # into the im2col weight (bf16 MXU operand); bias stays f32.
    inv_std = 1.0 / jnp.sqrt(run_var + eps)
    scale = (gamma * inv_std).astype(jnp.float32)                       # (Cout,)
    bias = (beta - run_mean * gamma * inv_std).reshape(1, Cout)
    bias = bias.astype(jnp.float32)

    # (Cout, Cin, 3, 3) -> (3, 3, Cin, Cout) -> (9*Cin, Cout); row
    # (ky*3+kx)*C + ci matches im2col column (ky*3+kx)*C + ci.
    w_col = jnp.transpose(weight_oihw, (2, 3, 1, 0)).reshape(9 * C, Cout)
    w_col = (w_col * scale[None, :]).astype(jnp.bfloat16)

    kernel = functools.partial(_residual_block_kernel, NB=NB, H=H, W=W, C=C)

    out_nhwc = pl.pallas_call(
        kernel,
        out_shape=jax.ShapeDtypeStruct((n_pad, H, W, Cout), jnp.float32),
        grid_spec=pltpu.PrefetchScalarGridSpec(
            num_scalar_prefetch=0,
            grid=(n_blocks,),
            in_specs=[
                pl.BlockSpec((NB, H + 2, W + 2, C), lambda b: (b, 0, 0, 0)),
                pl.BlockSpec((NB, H, W, C), lambda b: (b, 0, 0, 0)),
                pl.BlockSpec((9 * C, Cout), lambda b: (0, 0)),
                pl.BlockSpec((1, Cout), lambda b: (0, 0)),
            ],
            out_specs=pl.BlockSpec((NB, H, W, Cout), lambda b: (b, 0, 0, 0)),
            scratch_shapes=[
                pltpu.VMEM((M, 9 * C), jnp.bfloat16),            # im2col operand
                pltpu.VMEM((NB, H + 2, W + 2, C), jnp.float32),  # padded y1
            ],
        ),
        compiler_params=pltpu.CompilerParams(
            dimension_semantics=("parallel",)),
    )(xpad, x_nhwc, w_col, bias)

    return jnp.transpose(out_nhwc[:N], (0, 3, 1, 2))


def _reference(x, weight, gamma, beta, mean, var, eps=1e-5):
    """Pure-JAX reference (eval-mode BatchNorm), highest precision."""
    inv_std = 1.0 / jnp.sqrt(var + eps)
    s = (gamma * inv_std).reshape(1, -1, 1, 1)
    b = (beta - mean * gamma * inv_std).reshape(1, -1, 1, 1)

    def conv_bn_relu(inp):
        y = jax.lax.conv_general_dilated(
            inp, weight, window_strides=(1, 1), padding=((1, 1), (1, 1)),
            dimension_numbers=("NCHW", "OIHW", "NCHW"),
            precision=jax.lax.Precision.HIGHEST)
        return jnp.maximum(y * s + b, 0.0)

    out = conv_bn_relu(x)
    out = conv_bn_relu(out)   # net2 is net1 (shared weights)
    return out + x


if __name__ == "__main__":
    # Module defaults: in_channels = out_channels = 32, kernel 3x3, pad 1.
    N, C, H, W = 2, 32, 16, 16
    key = jax.random.PRNGKey(0)
    k_x, k_w, k_g, k_b, k_m, k_v = jax.random.split(key, 6)

    x = jax.random.normal(k_x, (N, C, H, W), dtype=jnp.float32)
    weight = 0.1 * jax.random.normal(k_w, (C, C, 3, 3), dtype=jnp.float32)
    gamma = 1.0 + 0.1 * jax.random.normal(k_g, (C,), dtype=jnp.float32)
    beta = 0.05 * jax.random.normal(k_b, (C,), dtype=jnp.float32)
    run_mean = 0.01 * jax.random.normal(k_m, (C,), dtype=jnp.float32)
    run_var = 0.5 + jnp.abs(jax.random.normal(k_v, (C,), dtype=jnp.float32))

    out = residual_block(x, weight, gamma, beta, run_mean, run_var)
    out = jax.block_until_ready(out)

    ref = _reference(x, weight, gamma, beta, run_mean, run_var)
    assert out.shape == (N, C, H, W)
    # bf16 MXU operands (f32 accumulation) across two chained 3x3 convs:
    # tolerance is looser than the previous all-f32 version.
    assert jnp.allclose(out, ref, atol=3e-2, rtol=3e-2), (
        "mismatch vs reference: max abs diff = "
        f"{jnp.max(jnp.abs(out - ref))}")

    print("KERNEL_OK")
</pallas_src>

<mosaic_0001>
module attributes {stable_mosaic.version = 11 : i64} {
  func.func @_residual_block_kernel(%arg0: i32, %arg1: memref<2x18x18x32xf32, #tpu.memory_space<vmem>>, %arg2: memref<2x16x16x32xf32, #tpu.memory_space<vmem>>, %arg3: memref<288x32xbf16, #tpu.memory_space<vmem>>, %arg4: memref<1x32xf32, #tpu.memory_space<vmem>>, %arg5: memref<2x16x16x32xf32, #tpu.memory_space<vmem>>, %arg6: memref<512x288xbf16, #tpu.memory_space<vmem>>, %arg7: memref<2x18x18x32xf32, #tpu.memory_space<vmem>>) attributes {dimension_semantics = [#tpu.dimension_semantics<parallel>], iteration_bounds = array<i64: 1>, scalar_prefetch = 0 : i64, scratch_operands = 2 : i64, tpu.core_type = #tpu.core_type<tc>, window_params = [{transform_indices = @transform_0, window_bounds = array<i64: 2, 18, 18, 32>}, {transform_indices = @transform_1, window_bounds = array<i64: 2, 16, 16, 32>}, {pipeline_mode = #tpu.pipeline_mode<synchronous>, transform_indices = @transform_2, window_bounds = array<i64: 288, 32>}, {pipeline_mode = #tpu.pipeline_mode<synchronous>, transform_indices = @transform_3, window_bounds = array<i64: 1, 32>}, {transform_indices = @transform_4, window_bounds = array<i64: 2, 16, 16, 32>}]} {
    %c0 = arith.constant 0 : index
    %c0_0 = arith.constant 0 : index
    %0 = vector.load %arg3[%c0, %c0_0] : memref<288x32xbf16, #tpu.memory_space<vmem>>, vector<288x32xbf16>
    %c0_1 = arith.constant 0 : index
    %c0_2 = arith.constant 0 : index
    %1 = vector.load %arg4[%c0_1, %c0_2] : memref<1x32xf32, #tpu.memory_space<vmem>>, vector<1x32xf32>
    %c0_3 = arith.constant 0 : index
    %c0_4 = arith.constant 0 : index
    %c0_5 = arith.constant 0 : index
    %c0_6 = arith.constant 0 : index
    %2 = vector.load %arg1[%c0_3, %c0_4, %c0_5, %c0_6] : memref<2x18x18x32xf32, #tpu.memory_space<vmem>>, vector<2x16x16x32xf32>
    %3 = vector.shape_cast %2 : vector<2x16x16x32xf32> to vector<512x32xf32>
    %c0_7 = arith.constant 0 : index
    %c0_8 = arith.constant 0 : index
    %c1 = arith.constant 1 : index
    %c0_9 = arith.constant 0 : index
    %4 = vector.load %arg1[%c0_7, %c0_8, %c1, %c0_9] : memref<2x18x18x32xf32, #tpu.memory_space<vmem>>, vector<2x16x16x32xf32>
    %5 = vector.shape_cast %4 : vector<2x16x16x32xf32> to vector<512x32xf32>
    %c0_10 = arith.constant 0 : index
    %c0_11 = arith.constant 0 : index
    %c2 = arith.constant 2 : index
    %c0_12 = arith.constant 0 : index
    %6 = vector.load %arg1[%c0_10, %c0_11, %c2, %c0_12] : memref<2x18x18x32xf32, #tpu.memory_space<vmem>>, vector<2x16x16x32xf32>
    %7 = vector.shape_cast %6 : vector<2x16x16x32xf32> to vector<512x32xf32>
    %c0_13 = arith.constant 0 : index
    %c1_14 = arith.constant 1 : index
    %c0_15 = arith.constant 0 : index
    %c0_16 = arith.constant 0 : index
    %8 = vector.load %arg1[%c0_13, %c1_14, %c0_15, %c0_16] : memref<2x18x18x32xf32, #tpu.memory_space<vmem>>, vector<2x16x16x32xf32>
    %9 = vector.shape_cast %8 : vector<2x16x16x32xf32> to vector<512x32xf32>
    %c0_17 = arith.constant 0 : index
    %c1_18 = arith.constant 1 : index
    %c1_19 = arith.constant 1 : index
    %c0_20 = arith.constant 0 : index
    %10 = vector.load %arg1[%c0_17, %c1_18, %c1_19, %c0_20] : memref<2x18x18x32xf32, #tpu.memory_space<vmem>>, vector<2x16x16x32xf32>
    %11 = vector.shape_cast %10 : vector<2x16x16x32xf32> to vector<512x32xf32>
    %c0_21 = arith.constant 0 : index
    %c1_22 = arith.constant 1 : index
    %c2_23 = arith.constant 2 : index
    %c0_24 = arith.constant 0 : index
    %12 = vector.load %arg1[%c0_21, %c1_22, %c2_23, %c0_24] : memref<2x18x18x32xf32, #tpu.memory_space<vmem>>, vector<2x16x16x32xf32>
    %13 = vector.shape_cast %12 : vector<2x16x16x32xf32> to vector<512x32xf32>
    %c0_25 = arith.constant 0 : index
    %c2_26 = arith.constant 2 : index
    %c0_27 = arith.constant 0 : index
    %c0_28 = arith.constant 0 : index
    %14 = vector.load %arg1[%c0_25, %c2_26, %c0_27, %c0_28] : memref<2x18x18x32xf32, #tpu.memory_space<vmem>>, vector<2x16x16x32xf32>
    %15 = vector.shape_cast %14 : vector<2x16x16x32xf32> to vector<512x32xf32>
    %c0_29 = arith.constant 0 : index
    %c2_30 = arith.constant 2 : index
    %c1_31 = arith.constant 1 : index
    %c0_32 = arith.constant 0 : index
    %16 = vector.load %arg1[%c0_29, %c2_30, %c1_31, %c0_32] : memref<2x18x18x32xf32, #tpu.memory_space<vmem>>, vector<2x16x16x32xf32>
    %17 = vector.shape_cast %16 : vector<2x16x16x32xf32> to vector<512x32xf32>
    %c0_33 = arith.constant 0 : index
    %c2_34 = arith.constant 2 : index
    %c2_35 = arith.constant 2 : index
    %c0_36 = arith.constant 0 : index
    %18 = vector.load %arg1[%c0_33, %c2_34, %c2_35, %c0_36] : memref<2x18x18x32xf32, #tpu.memory_space<vmem>>, vector<2x16x16x32xf32>
    %19 = vector.shape_cast %18 : vector<2x16x16x32xf32> to vector<512x32xf32>
    %20 = tpu.concatenate %3, %5, %7, %9 in 1 : vector<512x32xf32>, vector<512x32xf32>, vector<512x32xf32>, vector<512x32xf32> -> vector<512x128xf32>
    %21 = arith.truncf %20 : vector<512x128xf32> to vector<512x128xbf16>
    %c0_37 = arith.constant 0 : index
    %c0_38 = arith.constant 0 : index
    %22 = vector.load %arg6[%c0_37, %c0_38] : memref<512x288xbf16, #tpu.memory_space<vmem>>, vector<512x128xbf16>
    tpu.vector_store %arg6[%c0_37, %c0_38], %21 {strides = array<i32>} : memref<512x288xbf16, #tpu.memory_space<vmem>>, vector<512x128xbf16>,
    %23 = tpu.concatenate %11, %13, %15, %17 in 1 : vector<512x32xf32>, vector<512x32xf32>, vector<512x32xf32>, vector<512x32xf32> -> vector<512x128xf32>
    %24 = arith.truncf %23 : vector<512x128xf32> to vector<512x128xbf16>
    %c0_39 = arith.constant 0 : index
    %c128 = arith.constant 128 : index
    %25 = vector.load %arg6[%c0_39, %c128] : memref<512x288xbf16, #tpu.memory_space<vmem>>, vector<512x128xbf16>
    tpu.vector_store %arg6[%c0_39, %c128], %24 {strides = array<i32>} : memref<512x288xbf16, #tpu.memory_space<vmem>>, vector<512x128xbf16>,
    %26 = arith.truncf %19 : vector<512x32xf32> to vector<512x32xbf16>
    %c0_40 = arith.constant 0 : index
    %c256 = arith.constant 256 : index
    %27 = vector.load %arg6[%c0_40, %c256] : memref<512x288xbf16, #tpu.memory_space<vmem>>, vector<512x32xbf16>
    tpu.vector_store %arg6[%c0_40, %c256], %26 {strides = array<i32>} : memref<512x288xbf16, #tpu.memory_space<vmem>>, vector<512x32xbf16>,
    %c0_41 = arith.constant 0 : index
    %c0_42 = arith.constant 0 : index
    %28 = vector.load %arg6[%c0_41, %c0_42] : memref<512x288xbf16, #tpu.memory_space<vmem>>, vector<512x288xbf16>
    %cst = arith.constant dense<0.000000e+00> : vector<512x32xf32>
    %29 = tpu.matmul %28, %0, %cst {dimension_numbers = #tpu.dot_dimension_numbers<[1], [0], [0], [1], [0, 0, 1, 1], [], []>} : vector<512x288xbf16>, vector<288x32xbf16>, vector<512x32xf32> -> vector<512x32xf32>
    %30 = vector.broadcast %1 : vector<1x32xf32> to vector<512x32xf32>
    %31 = arith.addf %29, %30 : vector<512x32xf32>
    %cst_43 = arith.constant 0.000000e+00 : f32
    %32 = vector.broadcast %cst_43 : f32 to vector<512x32xf32>
    %33 = arith.maximumf %31, %32 : vector<512x32xf32>
    %cst_44 = arith.constant 0.000000e+00 : f32
    %34 = vector.broadcast %cst_44 : f32 to vector<2x1x18x32xf32>
    %cst_45 = arith.constant 0.000000e+00 : f32
    %35 = vector.broadcast %cst_45 : f32 to vector<2x16x1x32xf32>
    %c0_46 = arith.constant 0 : index
    %c0_47 = arith.constant 0 : index
    %c0_48 = arith.constant 0 : index
    %c0_49 = arith.constant 0 : index
    %36 = vector.load %arg7[%c0_46, %c0_47, %c0_48, %c0_49] : memref<2x18x18x32xf32, #tpu.memory_space<vmem>>, vector<2x1x18x32xf32>
    tpu.vector_store %arg7[%c0_46, %c0_47, %c0_48, %c0_49], %34 {strides = array<i32>} : memref<2x18x18x32xf32, #tpu.memory_space<vmem>>, vector<2x1x18x32xf32>,
    %c0_50 = arith.constant 0 : index
    %c17 = arith.constant 17 : index
    %c0_51 = arith.constant 0 : index
    %c0_52 = arith.constant 0 : index
    %37 = vector.load %arg7[%c0_50, %c17, %c0_51, %c0_52] : memref<2x18x18x32xf32, #tpu.memory_space<vmem>>, vector<2x1x18x32xf32>
    tpu.vector_store %arg7[%c0_50, %c17, %c0_51, %c0_52], %34 {strides = array<i32>} : memref<2x18x18x32xf32, #tpu.memory_space<vmem>>, vector<2x1x18x32xf32>,
    %38 = vector.shape_cast %33 : vector<512x32xf32> to vector<2x16x16x32xf32>
    %39 = tpu.concatenate %35, %38, %35 in 2 : vector<2x16x1x32xf32>, vector<2x16x16x32xf32>, vector<2x16x1x32xf32> -> vector<2x16x18x32xf32>
    %c0_53 = arith.constant 0 : index
    %c1_54 = arith.constant 1 : index
    %c0_55 = arith.constant 0 : index
    %c0_56 = arith.constant 0 : index
    %40 = vector.load %arg7[%c0_53, %c1_54, %c0_55, %c0_56] : memref<2x18x18x32xf32, #tpu.memory_space<vmem>>, vector<2x16x18x32xf32>
    tpu.vector_store %arg7[%c0_53, %c1_54, %c0_55, %c0_56], %39 {strides = array<i32>} : memref<2x18x18x32xf32, #tpu.memory_space<vmem>>, vector<2x16x18x32xf32>,
    %c0_57 = arith.constant 0 : index
    %c0_58 = arith.constant 0 : index
    %c0_59 = arith.constant 0 : index
    %c0_60 = arith.constant 0 : index
    %41 = vector.load %arg7[%c0_57, %c0_58, %c0_59, %c0_60] : memref<2x18x18x32xf32, #tpu.memory_space<vmem>>, vector<2x16x16x32xf32>
    %42 = vector.shape_cast %41 : vector<2x16x16x32xf32> to vector<512x32xf32>
    %c0_61 = arith.constant 0 : index
    %c0_62 = arith.constant 0 : index
    %c1_63 = arith.constant 1 : index
    %c0_64 = arith.constant 0 : index
    %43 = vector.load %arg7[%c0_61, %c0_62, %c1_63, %c0_64] : memref<2x18x18x32xf32, #tpu.memory_space<vmem>>, vector<2x16x16x32xf32>
    %44 = vector.shape_cast %43 : vector<2x16x16x32xf32> to vector<512x32xf32>
    %c0_65 = arith.constant 0 : index
    %c0_66 = arith.constant 0 : index
    %c2_67 = arith.constant 2 : index
    %c0_68 = arith.constant 0 : index
    %45 = vector.load %arg7[%c0_65, %c0_66, %c2_67, %c0_68] : memref<2x18x18x32xf32, #tpu.memory_space<vmem>>, vector<2x16x16x32xf32>
    %46 = vector.shape_cast %45 : vector<2x16x16x32xf32> to vector<512x32xf32>
    %c0_69 = arith.constant 0 : index
    %c1_70 = arith.constant 1 : index
    %c0_71 = arith.constant 0 : index
    %c0_72 = arith.constant 0 : index
    %47 = vector.load %arg7[%c0_69, %c1_70, %c0_71, %c0_72] : memref<2x18x18x32xf32, #tpu.memory_space<vmem>>, vector<2x16x16x32xf32>
    %48 = vector.shape_cast %47 : vector<2x16x16x32xf32> to vector<512x32xf32>
    %c0_73 = arith.constant 0 : index
    %c1_74 = arith.constant 1 : index
    %c1_75 = arith.constant 1 : index
    %c0_76 = arith.constant 0 : index
    %49 = vector.load %arg7[%c0_73, %c1_74, %c1_75, %c0_76] : memref<2x18x18x32xf32, #tpu.memory_space<vmem>>, vector<2x16x16x32xf32>
    %50 = vector.shape_cast %49 : vector<2x16x16x32xf32> to vector<512x32xf32>
    %c0_77 = arith.constant 0 : index
    %c1_78 = arith.constant 1 : index
    %c2_79 = arith.constant 2 : index
    %c0_80 = arith.constant 0 : index
    %51 = vector.load %arg7[%c0_77, %c1_78, %c2_79, %c0_80] : memref<2x18x18x32xf32, #tpu.memory_space<vmem>>, vector<2x16x16x32xf32>
    %52 = vector.shape_cast %51 : vector<2x16x16x32xf32> to vector<512x32xf32>
    %c0_81 = arith.constant 0 : index
    %c2_82 = arith.constant 2 : index
    %c0_83 = arith.constant 0 : index
    %c0_84 = arith.constant 0 : index
    %53 = vector.load %arg7[%c0_81, %c2_82, %c0_83, %c0_84] : memref<2x18x18x32xf32, #tpu.memory_space<vmem>>, vector<2x16x16x32xf32>
    %54 = vector.shape_cast %53 : vector<2x16x16x32xf32> to vector<512x32xf32>
    %c0_85 = arith.constant 0 : index
    %c2_86 = arith.constant 2 : index
    %c1_87 = arith.constant 1 : index
    %c0_88 = arith.constant 0 : index
    %55 = vector.load %arg7[%c0_85, %c2_86, %c1_87, %c0_88] : memref<2x18x18x32xf32, #tpu.memory_space<vmem>>, vector<2x16x16x32xf32>
    %56 = vector.shape_cast %55 : vector<2x16x16x32xf32> to vector<512x32xf32>
    %c0_89 = arith.constant 0 : index
    %c2_90 = arith.constant 2 : index
    %c2_91 = arith.constant 2 : index
    %c0_92 = arith.constant 0 : index
    %57 = vector.load %arg7[%c0_89, %c2_90, %c2_91, %c0_92] : memref<2x18x18x32xf32, #tpu.memory_space<vmem>>, vector<2x16x16x32xf32>
    %58 = vector.shape_cast %57 : vector<2x16x16x32xf32> to vector<512x32xf32>
    %59 = tpu.concatenate %42, %44, %46, %48 in 1 : vector<512x32xf32>, vector<512x32xf32>, vector<512x32xf32>, vector<512x32xf32> -> vector<512x128xf32>
    %60 = arith.truncf %59 : vector<512x128xf32> to vector<512x128xbf16>
    %c0_93 = arith.constant 0 : index
    %c0_94 = arith.constant 0 : index
    %61 = vector.load %arg6[%c0_93, %c0_94] : memref<512x288xbf16, #tpu.memory_space<vmem>>, vector<512x128xbf16>
    tpu.vector_store %arg6[%c0_93, %c0_94], %60 {strides = array<i32>} : memref<512x288xbf16, #tpu.memory_space<vmem>>, vector<512x128xbf16>,
    %62 = tpu.concatenate %50, %52, %54, %56 in 1 : vector<512x32xf32>, vector<512x32xf32>, vector<512x32xf32>, vector<512x32xf32> -> vector<512x128xf32>
    %63 = arith.truncf %62 : vector<512x128xf32> to vector<512x128xbf16>
    %c0_95 = arith.constant 0 : index
    %c128_96 = arith.constant 128 : index
    %64 = vector.load %arg6[%c0_95, %c128_96] : memref<512x288xbf16, #tpu.memory_space<vmem>>, vector<512x128xbf16>
    tpu.vector_store %arg6[%c0_95, %c128_96], %63 {strides = array<i32>} : memref<512x288xbf16, #tpu.memory_space<vmem>>, vector<512x128xbf16>,
    %65 = arith.truncf %58 : vector<512x32xf32> to vector<512x32xbf16>
    %c0_97 = arith.constant 0 : index
    %c256_98 = arith.constant 256 : index
    %66 = vector.load %arg6[%c0_97, %c256_98] : memref<512x288xbf16, #tpu.memory_space<vmem>>, vector<512x32xbf16>
    tpu.vector_store %arg6[%c0_97, %c256_98], %65 {strides = array<i32>} : memref<512x288xbf16, #tpu.memory_space<vmem>>, vector<512x32xbf16>,
    %c0_99 = arith.constant 0 : index
    %c0_100 = arith.constant 0 : index
    %67 = vector.load %arg6[%c0_99, %c0_100] : memref<512x288xbf16, #tpu.memory_space<vmem>>, vector<512x288xbf16>
    %cst_101 = arith.constant dense<0.000000e+00> : vector<512x32xf32>
    %68 = tpu.matmul %67, %0, %cst_101 {dimension_numbers = #tpu.dot_dimension_numbers<[1], [0], [0], [1], [0, 0, 1, 1], [], []>} : vector<512x288xbf16>, vector<288x32xbf16>, vector<512x32xf32> -> vector<512x32xf32>
    %69 = vector.broadcast %1 : vector<1x32xf32> to vector<512x32xf32>
    %70 = arith.addf %68, %69 : vector<512x32xf32>
    %cst_102 = arith.constant 0.000000e+00 : f32
    %71 = vector.broadcast %cst_102 : f32 to vector<512x32xf32>
    %72 = arith.maximumf %70, %71 : vector<512x32xf32>
    %73 = vector.shape_cast %72 : vector<512x32xf32> to vector<2x16x16x32xf32>
    %c0_103 = arith.constant 0 : index
    %c0_104 = arith.constant 0 : index
    %c0_105 = arith.constant 0 : index
    %c0_106 = arith.constant 0 : index
    %74 = vector.load %arg2[%c0_103, %c0_104, %c0_105, %c0_106] : memref<2x16x16x32xf32, #tpu.memory_space<vmem>>, vector<2x16x16x32xf32>
    %75 = arith.addf %73, %74 : vector<2x16x16x32xf32>
    %c0_107 = arith.constant 0 : index
    %c0_108 = arith.constant 0 : index
    %c0_109 = arith.constant 0 : index
    %c0_110 = arith.constant 0 : index
    %76 = vector.load %arg5[%c0_107, %c0_108, %c0_109, %c0_110] : memref<2x16x16x32xf32, #tpu.memory_space<vmem>>, vector<2x16x16x32xf32>
    tpu.vector_store %arg5[%c0_107, %c0_108, %c0_109, %c0_110], %75 {strides = array<i32>} : memref<2x16x16x32xf32, #tpu.memory_space<vmem>>, vector<2x16x16x32xf32>,
    return
  }
  func.func @transform_0(%arg0: i32) -> (i32, i32, i32, i32) {
    %c0_i32 = arith.constant 0 : i32
    %c0_i32_0 = arith.constant 0 : i32
    %c0_i32_1 = arith.constant 0 : i32
    %c0_i32_2 = arith.constant 0 : i32
    return %arg0, %c0_i32, %c0_i32_0, %c0_i32_1 : i32, i32, i32, i32
  }
  func.func @transform_1(%arg0: i32) -> (i32, i32, i32, i32) {
    %c0_i32 = arith.constant 0 : i32
    %c0_i32_0 = arith.constant 0 : i32
    %c0_i32_1 = arith.constant 0 : i32
    %c0_i32_2 = arith.constant 0 : i32
    return %arg0, %c0_i32, %c0_i32_0, %c0_i32_1 : i32, i32, i32, i32
  }
  func.func @transform_2(%arg0: i32) -> (i32, i32) {
    %c0_i32 = arith.constant 0 : i32
    %c0_i32_0 = arith.constant 0 : i32
    %c0_i32_1 = arith.constant 0 : i32
    return %c0_i32, %c0_i32_0 : i32, i32
  }
  func.func @transform_3(%arg0: i32) -> (i32, i32) {
    %c0_i32 = arith.constant 0 : i32
    %c0_i32_0 = arith.constant 0 : i32
    %c0_i32_1 = arith.constant 0 : i32
    return %c0_i32, %c0_i32_0 : i32, i32
  }
  func.func @transform_4(%arg0: i32) -> (i32, i32, i32, i32) {
    %c0_i32 = arith.constant 0 : i32
    %c0_i32_0 = arith.constant 0 : i32
    %c0_i32_1 = arith.constant 0 : i32
    %c0_i32_2 = arith.constant 0 : i32
    return %arg0, %c0_i32, %c0_i32_0, %c0_i32_1 : i32, i32, i32, i32
  }
}

</mosaic_0001>

<bundles_post_ra>
// kernel: tpu_custom_call.1
= control target key start
LH: loop header
LB: loop body
LE: loop exit
PB: predicated region body
PF: predicated region fallthrough
CT: control target
= control target key end

     0   :  { %s12640_s27 = smov 32   ;;  %s18977_s0 = inlined_call_operand.vmem [shape: f32[2,18,18,32], index: 0, kind: input, shape index: {}]   ;;  %s18978_s1 = inlined_call_operand.vmem [shape: f32[2,16,16,32], index: 1, kind: input, shape index: {}]   ;;  %s18979_s2 = inlined_call_operand.vmem [shape: bf16[288,32], index: 2, kind: input, shape index: {}]   ;;  %s18980_s3 = inlined_call_operand.vmem [shape: f32[1,32], index: 3, kind: input, shape index: {}]   ;;  %s18981_s4 = inlined_call_operand.hbm [shape: f32[2,16,16,32], index: 4, kind: output, shape index: {}]  }
   0x1   :  { %v128_v0 = vld [vmem:[%s18977_s0 + $0x61] sm:$0xff]  ;;  %v129_v1 = vld [vmem:[%s18977_s0 + $0x69] sm:$0xff]  ;;  %v124_v2 = vld [vmem:[%s18977_s0 + $0x31] sm:$0xff] }
   0x2   :  { %v10661_v3 = vpack.i.bf16 %v129_v1, %v128_v0  ;;  %v125_v4 = vld [vmem:[%s18977_s0 + $0x39] sm:$0xff]  ;;  %v120_v5 = vld [vmem:[%s18977_s0 + $0x1] sm:$0xff]  ;;  %v121_v6 = vld [vmem:[%s18977_s0 + $0x9] sm:$0xff] }
   0x3   :  { %v10651_v7 = vpack.i.bf16 %v125_v4, %v124_v2  ;;  %v10641_v8 = vpack.i.bf16 %v121_v6, %v120_v5  ;;  %v130_v9 = vld [vmem:[%s18977_s0 + $0x79] sm:$0xff]  ;;  %v131_v10 = vld [vmem:[%s18977_s0 + $0x81] sm:$0xff]  ;;  %v126_v11 = vld [vmem:[%s18977_s0 + $0x49] sm:$0xff] }
   0x4   :  { %10662 = vrot.lane.b32.xlu2 %v10661_v3, %s12640_s27  ;;  %v127_v12 = vld [vmem:[%s18977_s0 + $0x51] sm:$0xff]  ;;  %v122_v13 = vld [vmem:[%s18977_s0 + $0x19] sm:$0xff]  ;;  %v123_v14 = vld [vmem:[%s18977_s0 + $0x21] sm:$0xff]  ;;  %v10666_v15 = vpack.i.bf16 %v131_v10, %v130_v9 }
   0x5   :  { %10652 = vrot.lane.b32.xlu1 %v10651_v7, %s12640_s27  ;;  %10642 = vrot.lane.b32.xlu0 %v10641_v8, %s12640_s27  ;;  %v10656_v16 = vpack.i.bf16 %v127_v12, %v126_v11  ;;  %v10646_v17 = vpack.i.bf16 %v123_v14, %v122_v13  ;;  %v136_v18 = vld [vmem:[%s18977_s0 + $0xc1] sm:$0xff]  ;;  %v137_v19 = vld [vmem:[%s18977_s0 + $0xc9] sm:$0xff] }
   0x6   :  { %v134_v20 = vld [vmem:[%s18977_s0 + $0xa9] sm:$0xff]  ;;  %v135_v21 = vld [vmem:[%s18977_s0 + $0xb1] sm:$0xff]  ;;  %v133_v23 = vld [vmem:[%s18977_s0 + $0x99] sm:$0xff] }
   0x7   :  { %v132_v22 = vld [vmem:[%s18977_s0 + $0x91] sm:$0xff] }
   0xc   :  { %10667 = vrot.lane.b32.xlu2 %v10666_v15, %s12640_s27 }
   0xd   :  { %10657 = vrot.lane.b32.xlu1 %v10656_v16, %s12640_s27  ;;  %10647 = vrot.lane.b32.xlu0 %v10646_v17, %s12640_s27 }
   0xe   :  { %9 = vsyncpa [#allocation5], 0  ;;  %v10681_v24 = vpack.i.bf16 %v137_v19, %v136_v18  ;;  %v10676_v25 = vpack.i.bf16 %v135_v21, %v134_v20  ;;  %v10671_v26 = vpack.i.bf16 %v133_v23, %v132_v22  ;;  %v142_v27 = vld [vmem:[%s18977_s0 + $0x109] sm:$0xff]  ;;  %v143_v28 = vld [vmem:[%s18977_s0 + $0x111] sm:$0xff]  ;;  %s12641_s22 = smov 64   ;;  %s12642_s10 = smov 96  }
   0xf   :  { %v140_v29 = vld [vmem:[%s18977_s0 + $0xf1] sm:$0xff]  ;;  %v141_v30 = vld [vmem:[%s18977_s0 + $0xf9] sm:$0xff]  ;;  %v139_v32 = vld [vmem:[%s18977_s0 + $0xe1] sm:$0xff]  ;;  %v10696_v33 = vpack.i.bf16 %v143_v28, %v142_v27  ;;  %vm1402_vm0 = vcmask 261120   ;;  %vm1467_vm1 = vcmask 523264   ;;  %vm1532_vm2 = vcmask 785408  }
  0x10   :  { %v138_v31 = vld [vmem:[%s18977_s0 + $0xd9] sm:$0xff]  ;;  %v10691_v34 = vpack.i.bf16 %v141_v30, %v140_v29  ;;  %v148_v36 = vld [vmem:[%s18977_s0 + $0x151] sm:$0xff]  ;;  %v147_v39 = vld [vmem:[%s18977_s0 + $0x141] sm:$0xff]  ;;  %vm2877_vm3 = vcmask 257024   ;;  %vm4330_vm4 = vcmask 254976   ;;  %vm4406_vm5 = vcmask 1040384  }
  0x11   :  { %v10686_v35 = vpack.i.bf16 %v139_v32, %v138_v31  ;;  %v149_v37 = vld [vmem:[%s18977_s0 + $0x159] sm:$0xff]  ;;  %v144_v40 = vld [vmem:[%s18977_s0 + $0x121] sm:$0xff]  ;;  %v145_v41 = vld [vmem:[%s18977_s0 + $0x129] sm:$0xff]  ;;  %s12644_s8 = smov [#allocation4]   ;;  %s12645_s13 = smov 128  }
  0x12   :  { %v146_v38 = vld [vmem:[%s18977_s0 + $0x139] sm:$0xff]  ;;  %v10711_v42 = vpack.i.bf16 %v149_v37, %v148_v36  ;;  %v10701_v44 = vpack.i.bf16 %v145_v41, %v144_v40  ;;  %v154_v45 = vld [vmem:[%s18977_s0 + $0x1c9] sm:$0xff]  ;;  %v155_v46 = vld [vmem:[%s18977_s0 + $0x1d1] sm:$0xff]  ;;  %s9112_s9 = sshll.u32 %s12644_s8, 4  ;;  %s12646_s14 = smov 8   ;;  %s9113_s9 = int_to_ptr.vmem [resolvable:$true] %s9112_s9 }
  0x13   :  { %v10706_v43 = vpack.i.bf16 %v147_v39, %v146_v38  ;;  %v152_v47 = vld [vmem:[%s18977_s0 + $0x1b1] sm:$0xff]  ;;  %v153_v48 = vld [vmem:[%s18977_s0 + $0x1b9] sm:$0xff]  ;;  %v150_v49 = vld [vmem:[%s18977_s0 + $0x169] sm:$0xff]  ;;  %v10726_v51 = vpack.i.bf16 %v155_v46, %v154_v45 }
  0x14   :  { %10682 = vrot.lane.b32.xlu2 %v10681_v24, %s12640_s27  ;;  %v151_v50 = vld [vmem:[%s18977_s0 + $0x171] sm:$0xff]  ;;  %v10721_v52 = vpack.i.bf16 %v153_v48, %v152_v47  ;;  %v161_v55 = vld [vmem:[%s18977_s0 + $0x219] sm:$0xff]  ;;  %v159_v57 = vld [vmem:[%s18977_s0 + $0x201] sm:$0xff] }
  0x15   :  { %10677 = vrot.lane.b32.xlu1 %v10676_v25, %s12640_s27  ;;  %10672 = vrot.lane.b32.xlu0 %v10671_v26, %s12640_s27  ;;  %v10716_v53 = vpack.i.bf16 %v151_v50, %v150_v49  ;;  %v160_v54 = vld [vmem:[%s18977_s0 + $0x211] sm:$0xff]  ;;  %v158_v56 = vld [vmem:[%s18977_s0 + $0x1f9] sm:$0xff] }
  0x16   :  { %v156_v58 = vld [vmem:[%s18977_s0 + $0x1e1] sm:$0xff]  ;;  %v157_v59 = vld [vmem:[%s18977_s0 + $0x1e9] sm:$0xff]  ;;  %v10741_v60 = vpack.i.bf16 %v161_v55, %v160_v54  ;;  %v10736_v61 = vpack.i.bf16 %v159_v57, %v158_v56  ;;  %v166_v63 = vld [vmem:[%s18977_s0 + $0x259] sm:$0xff] }
  0x17   :  { %v10731_v62 = vpack.i.bf16 %v157_v59, %v156_v58  ;;  %v167_v0 = vld [vmem:[%s18977_s0 + $0x261] sm:$0xff]  ;;  %v165_v2 = vld [vmem:[%s18977_s0 + $0x249] sm:$0xff]  ;;  %v163_v4 = vld [vmem:[%s18977_s0 + $0x231] sm:$0xff] }
  0x18   :  { %v164_v1 = vld [vmem:[%s18977_s0 + $0x241] sm:$0xff]  ;;  %v162_v3 = vld [vmem:[%s18977_s0 + $0x229] sm:$0xff]  ;;  %v10756_v5 = vpack.i.bf16 %v167_v0, %v166_v63  ;;  %v171_v11 = vld [vmem:[%s18977_s0 + $0x291] sm:$0xff] }
  0x19   :  { %v10751_v6 = vpack.i.bf16 %v165_v2, %v164_v1  ;;  %v10746_v7 = vpack.i.bf16 %v163_v4, %v162_v3  ;;  %v172_v8 = vld [vmem:[%s18977_s0 + $0x2a1] sm:$0xff]  ;;  %v173_v9 = vld [vmem:[%s18977_s0 + $0x2a9] sm:$0xff]  ;;  %v168_v12 = vld [vmem:[%s18977_s0 + $0x271] sm:$0xff] }
  0x1a   :  { %v170_v10 = vld [vmem:[%s18977_s0 + $0x289] sm:$0xff]  ;;  %v169_v13 = vld [vmem:[%s18977_s0 + $0x279] sm:$0xff]  ;;  %v10771_v14 = vpack.i.bf16 %v173_v9, %v172_v8  ;;  %v179_v18 = vld [vmem:[%s18977_s0 + $0x2f1] sm:$0xff] }
  0x1b   :  { %v10766_v15 = vpack.i.bf16 %v171_v11, %v170_v10  ;;  %v10761_v16 = vpack.i.bf16 %v169_v13, %v168_v12  ;;  %v178_v17 = vld [vmem:[%s18977_s0 + $0x2e9] sm:$0xff]  ;;  %v176_v19 = vld [vmem:[%s18977_s0 + $0x2d1] sm:$0xff]  ;;  %v177_v20 = vld [vmem:[%s18977_s0 + $0x2d9] sm:$0xff] }
  0x1c   :  { %10697 = vrot.lane.b32.xlu2 %v10696_v33, %s12640_s27  ;;  %v174_v21 = vld [vmem:[%s18977_s0 + $0x2b9] sm:$0xff]  ;;  %v175_v22 = vld [vmem:[%s18977_s0 + $0x2c1] sm:$0xff]  ;;  %v10786_v23 = vpack.i.bf16 %v179_v18, %v178_v17  ;;  %v10781_v24 = vpack.i.bf16 %v177_v20, %v176_v19  ;;  %v185_v27 = vld [vmem:[%s18977_s0 + $0xa] sm:$0xff] }
  0x1d   :  { %10692 = vrot.lane.b32.xlu1 %v10691_v34, %s12640_s27  ;;  %10687 = vrot.lane.b32.xlu0 %v10686_v35, %s12640_s27  ;;  %v10776_v25 = vpack.i.bf16 %v175_v22, %v174_v21  ;;  %v184_v26 = vld [vmem:[%s18977_s0 + $0x2] sm:$0xff]  ;;  %v182_v28 = vld [vmem:[%s18977_s0 + $0x319] sm:$0xff] }
  0x1e   :  { %v183_v29 = vld [vmem:[%s18977_s0 + $0x321] sm:$0xff]  ;;  %v181_v31 = vld [vmem:[%s18977_s0 + $0x309] sm:$0xff]  ;;  %v10801_v32 = vpack.i.bf16 %v185_v27, %v184_v26  ;;  %v191_v36 = vld [vmem:[%s18977_s0 + $0x52] sm:$0xff] }
  0x1f   :  { %v180_v30 = vld [vmem:[%s18977_s0 + $0x301] sm:$0xff]  ;;  %v10796_v33 = vpack.i.bf16 %v183_v29, %v182_v28  ;;  %v190_v35 = vld [vmem:[%s18977_s0 + $0x4a] sm:$0xff]  ;;  %v188_v37 = vld [vmem:[%s18977_s0 + $0x32] sm:$0xff] }
  0x20   :  { %v10791_v34 = vpack.i.bf16 %v181_v31, %v180_v30  ;;  %v189_v38 = vld [vmem:[%s18977_s0 + $0x3a] sm:$0xff]  ;;  %v187_v40 = vld [vmem:[%s18977_s0 + $0x22] sm:$0xff]  ;;  %v10816_v41 = vpack.i.bf16 %v191_v36, %v190_v35  ;;  %v193_v50 = vld [vmem:[%s18977_s0 + $0x6a] sm:$0xff] }
  0x21   :  { %v186_v39 = vld [vmem:[%s18977_s0 + $0x1a] sm:$0xff]  ;;  %v195_v48 = vld [vmem:[%s18977_s0 + $0x82] sm:$0xff]  ;;  %v201_v58 = vld [vmem:[%s18977_s0 + $0xca] sm:$0xff] }
  0x22   :  { %v197_v45 = vld [vmem:[%s18977_s0 + $0x9a] sm:$0xff]  ;;  %v192_v49 = vld [vmem:[%s18977_s0 + $0x62] sm:$0xff]  ;;  %v198_v59 = vld [vmem:[%s18977_s0 + $0xaa] sm:$0xff] }
  0x23   :  { %v194_v46 = vld [vmem:[%s18977_s0 + $0x7a] sm:$0xff]  ;;  %v203_v55 = vld [vmem:[%s18977_s0 + $0xe2] sm:$0xff]  ;;  %v209_v1 = vld [vmem:[%s18977_s0 + $0x12a] sm:$0xff] }
  0x24   :  { %10712 = vrot.lane.b32.xlu2 %v10711_v42, %s12640_s27  ;;  %v10811_v42 = vpack.i.bf16 %v189_v38, %v188_v37  ;;  %v202_v54 = vld [vmem:[%s18977_s0 + $0xda] sm:$0xff]  ;;  %v200_v56 = vld [vmem:[%s18977_s0 + $0xc2] sm:$0xff]  ;;  %v206_v2 = vld [vmem:[%s18977_s0 + $0x10a] sm:$0xff] }
  0x25   :  { %10707 = vrot.lane.b32.xlu1 %v10706_v43, %s12640_s27  ;;  %10702 = vrot.lane.b32.xlu0 %v10701_v44, %s12640_s27  ;;  %v10806_v43 = vpack.i.bf16 %v187_v40, %v186_v39  ;;  %v196_v44 = vld [vmem:[%s18977_s0 + $0x92] sm:$0xff]  ;;  %v208_v0 = vld [vmem:[%s18977_s0 + $0x122] sm:$0xff] }
  0x26   :  { %v207_v4 = vld [vmem:[%s18977_s0 + $0x112] sm:$0xff]  ;;  %v214_v10 = vld [vmem:[%s18977_s0 + $0x16a] sm:$0xff]  ;;  %v220_v22 = vld [vmem:[%s18977_s0 + $0x1e2] sm:$0xff] }
  0x27   :  { %v10856_v8 = vpack.i.bf16 %v207_v4, %v206_v2  ;;  %v215_v11 = vld [vmem:[%s18977_s0 + $0x172] sm:$0xff]  ;;  %v217_v28 = vld [vmem:[%s18977_s0 + $0x1ba] sm:$0xff]  ;;  %v223_v40 = vld [vmem:[%s18977_s0 + $0x202] sm:$0xff] }
  0x28   :  { %v212_v12 = vld [vmem:[%s18977_s0 + $0x152] sm:$0xff]  ;;  %v10876_v19 = vpack.i.bf16 %v215_v11, %v214_v10  ;;  %v225_v38 = vld [vmem:[%s18977_s0 + $0x21a] sm:$0xff]  ;;  %v245_v10 = vld [vmem:[%s18977_s0 + $0x30a] sm:$0xff] }
  0x29   :  { %v219_v26 = vld [vmem:[%s18977_s0 + $0x1d2] sm:$0xff]  ;;  %v222_v39 = vld [vmem:[%s18977_s0 + $0x1fa] sm:$0xff]  ;;  %v242_v11 = vld [vmem:[%s18977_s0 + $0x2ea] sm:$0xff] }
  0x2a   :  { %v216_v27 = vld [vmem:[%s18977_s0 + $0x1b2] sm:$0xff] }
  0x2b   :  { %v227_v35 = vld [vmem:[%s18977_s0 + $0x232] sm:$0xff] }
  0x2c   :  { %10727 = vrot.lane.b32.xlu2 %v10726_v51, %s12640_s27  ;;  %v10831_v51 = vpack.i.bf16 %v197_v45, %v196_v44  ;;  %v224_v36 = vld [vmem:[%s18977_s0 + $0x212] sm:$0xff]  ;;  %v10896_v45 = vpack.i.bf16 %v223_v40, %v222_v39 }
  0x2d   :  { %10722 = vrot.lane.b32.xlu1 %v10721_v52, %s12640_s27  ;;  %10717 = vrot.lane.b32.xlu0 %v10716_v53, %s12640_s27  ;;  %v10826_v52 = vpack.i.bf16 %v195_v48, %v194_v46  ;;  %v10821_v53 = vpack.i.bf16 %v193_v50, %v192_v49  ;;  %v10901_v44 = vpack.i.bf16 %v225_v38, %v224_v36  ;;  %v232_v46 = vld [vmem:[%s18977_s0 + $0x272] sm:$0xff]  ;;  %v233_v48 = vld [vmem:[%s18977_s0 + $0x27a] sm:$0xff] }
  0x2e   :  { %v230_v49 = vld [vmem:[%s18977_s0 + $0x25a] sm:$0xff]  ;;  %v235_v2 = vld [vmem:[%s18977_s0 + $0x292] sm:$0xff] }
  0x34   :  { %10742 = vrot.lane.b32.xlu2 %v10741_v60, %s12640_s27  ;;  %v199_v60 = vld [vmem:[%s18977_s0 + $0xb2] sm:$0xff] }
  0x35   :  { %10737 = vrot.lane.b32.xlu1 %v10736_v61, %s12640_s27  ;;  %10732 = vrot.lane.b32.xlu0 %v10731_v62, %s12640_s27  ;;  %v10846_v61 = vpack.i.bf16 %v203_v55, %v202_v54  ;;  %v10841_v62 = vpack.i.bf16 %v201_v58, %v200_v56  ;;  %v10836_v63 = vpack.i.bf16 %v199_v60, %v198_v59  ;;  %v238_v60 = vld [vmem:[%s18977_s0 + $0x2ba] sm:$0xff] }
  0x36   :  { %v10921_v56 = vpack.i.bf16 %v233_v48, %v232_v46 }
  0x3c   :  { %10757 = vrot.lane.b32.xlu2 %v10756_v5, %s12640_s27  ;;  %v204_v5 = vld [vmem:[%s18977_s0 + $0xf2] sm:$0xff] }
  0x3d   :  { %10752 = vrot.lane.b32.xlu1 %v10751_v6, %s12640_s27  ;;  %10747 = vrot.lane.b32.xlu0 %v10746_v7, %s12640_s27  ;;  %v205_v6 = vld [vmem:[%s18977_s0 + $0xfa] sm:$0xff]  ;;  %v10861_v7 = vpack.i.bf16 %v209_v1, %v208_v0  ;;  %v237_v0 = vld [vmem:[%s18977_s0 + $0x2aa] sm:$0xff] }
  0x3e   :  { %v10851_v9 = vpack.i.bf16 %v205_v6, %v204_v5  ;;  %v234_v1 = vld [vmem:[%s18977_s0 + $0x28a] sm:$0xff] }
  0x44   :  { %10772 = vrot.lane.b32.xlu2 %v10771_v14, %s12640_s27  ;;  %v213_v14 = vld [vmem:[%s18977_s0 + $0x15a] sm:$0xff] }
  0x45   :  { %10767 = vrot.lane.b32.xlu1 %v10766_v15, %s12640_s27  ;;  %10762 = vrot.lane.b32.xlu0 %v10761_v16, %s12640_s27  ;;  %v210_v15 = vld [vmem:[%s18977_s0 + $0x13a] sm:$0xff]  ;;  %v211_v16 = vld [vmem:[%s18977_s0 + $0x142] sm:$0xff]  ;;  %v10871_v20 = vpack.i.bf16 %v213_v14, %v212_v12 }
  0x46   :  { %v10866_v21 = vpack.i.bf16 %v211_v16, %v210_v15  ;;  %v243_v14 = vld [vmem:[%s18977_s0 + $0x2f2] sm:$0xff]  ;;  %v241_v16 = vld [vmem:[%s18977_s0 + $0x2da] sm:$0xff] }
  0x47   :  { %v240_v15 = vld [vmem:[%s18977_s0 + $0x2d2] sm:$0xff] }
  0x4c   :  { %10787 = vrot.lane.b32.xlu2 %v10786_v23, %s12640_s27  ;;  %v221_v23 = vld [vmem:[%s18977_s0 + $0x1ea] sm:$0xff] }
  0x4d   :  { %10782 = vrot.lane.b32.xlu1 %v10781_v24, %s12640_s27  ;;  %10777 = vrot.lane.b32.xlu0 %v10776_v25, %s12640_s27  ;;  %v218_v24 = vld [vmem:[%s18977_s0 + $0x1ca] sm:$0xff]  ;;  %v10891_v31 = vpack.i.bf16 %v221_v23, %v220_v22  ;;  %v10946_v22 = vpack.i.bf16 %v243_v14, %v242_v11  ;;  %v10941_v23 = vpack.i.bf16 %v241_v16, %v240_v15 }
  0x4e   :  { %v13289_v14 = vld [vmem:[%s18977_s0 + $0x108] sm:$0xff]  ;;  %v13294_v15 = vld [vmem:[%s18977_s0 + $0x110] sm:$0xff] }
  0x4f   :  { %v13299_v16 = vld [vmem:[%s18977_s0 + $0xf0] sm:$0xff] }
  0x54   :  { %10802 = vrot.lane.b32.xlu2 %v10801_v32, %s12641_s22  ;;  %v10886_v32 = vpack.i.bf16 %v219_v26, %v218_v24  ;;  %v246_v26 = vld [vmem:[%s18977_s0 + $0x31a] sm:$0xff] }
  0x55   :  { %10797 = vrot.lane.b32.xlu1 %v10796_v33, %s12640_s27  ;;  %10792 = vrot.lane.b32.xlu0 %v10791_v34, %s12640_s27  ;;  %v10881_v33 = vpack.i.bf16 %v217_v28, %v216_v27  ;;  %v226_v34 = vld [vmem:[%s18977_s0 + $0x22a] sm:$0xff]  ;;  %v247_v27 = vld [vmem:[%s18977_s0 + $0x322] sm:$0xff] }
  0x56   :  { %v13166_v28 = vld [vmem:[%s18977_s0 + $0x30] sm:$0xff]  ;;  %v10956_v39 = vpack.i.bf16 %v247_v27, %v246_v26  ;;  %v13313_v26 = vld [vmem:[%s18977_s0 + $0xd8] sm:$0xff]  ;;  %v13318_v27 = vld [vmem:[%s18977_s0 + $0xe0] sm:$0xff] }
  0x5c   :  { %10817 = vrot.lane.b32.xlu2 %v10816_v41, %s12641_s22 }
  0x5d   :  { %10812 = vrot.lane.b32.xlu1 %v10811_v42, %s12641_s22  ;;  %10807 = vrot.lane.b32.xlu0 %v10806_v43, %s12641_s22  ;;  %v10906_v43 = vpack.i.bf16 %v227_v35, %v226_v34  ;;  %v13180_v34 = vld [vmem:[%s18977_s0 + $0x18] sm:$0xff]  ;;  %v13185_v35 = vld [vmem:[%s18977_s0 + $0x20] sm:$0xff] }
  0x5e   :  { %v12933_v47 = vpop.permute.xlu2 %10662  ;;  %v10961_v38 = vpack.i.bf16 %v13185_v35, %v13180_v34 }
  0x64   :  { %10832 = vrot.lane.b32.xlu2 %v10831_v51, %s12641_s22  ;;  %v231_v51 = vld [vmem:[%s18977_s0 + $0x262] sm:$0xff] }
  0x65   :  { %10827 = vrot.lane.b32.xlu1 %v10826_v52, %s12641_s22  ;;  %10822 = vrot.lane.b32.xlu0 %v10821_v53, %s12641_s22  ;;  %v228_v52 = vld [vmem:[%s18977_s0 + $0x242] sm:$0xff]  ;;  %v229_v53 = vld [vmem:[%s18977_s0 + $0x24a] sm:$0xff]  ;;  %v10916_v58 = vpack.i.bf16 %v231_v51, %v230_v49 }
  0x66   :  { %v12956_v57 = vpop.permute.xlu2 %10667  ;;  %v10911_v59 = vpack.i.bf16 %v229_v53, %v228_v52  ;;  %v13218_v49 = vld [vmem:[%s18977_s0 + $0x68] sm:$0xff]  ;;  %v13228_v52 = vld [vmem:[%s18977_s0 + $0x50] sm:$0xff] }
  0x67   :  { %v13223_v51 = vld [vmem:[%s18977_s0 + $0x48] sm:$0xff] }
  0x6c   :  { %10847 = vrot.lane.b32.xlu2 %v10846_v61, %s12641_s22  ;;  %v239_v61 = vld [vmem:[%s18977_s0 + $0x2c2] sm:$0xff] }
  0x6d   :  { %10842 = vrot.lane.b32.xlu1 %v10841_v62, %s12641_s22  ;;  %10837 = vrot.lane.b32.xlu0 %v10836_v63, %s12641_s22  ;;  %v236_v62 = vld [vmem:[%s18977_s0 + $0x2a2] sm:$0xff]  ;;  %v10936_v6 = vpack.i.bf16 %v239_v61, %v238_v60 }
  0x6e   :  { %v12979_v3 = vpop.permute.xlu2 %10682  ;;  %v13244_v60 = vld [vmem:[%s18977_s0 + $0xc0] sm:$0xff]  ;;  %v13249_v61 = vld [vmem:[%s18977_s0 + $0xc8] sm:$0xff] }
  0x74   :  { %10862 = vrot.lane.b32.xlu2 %v10861_v7, %s12641_s22  ;;  %v10931_v7 = vpack.i.bf16 %v237_v0, %v236_v62  ;;  %v13254_v62 = vld [vmem:[%s18977_s0 + $0xa8] sm:$0xff] }
  0x75   :  { %10857 = vrot.lane.b32.xlu1 %v10856_v8, %s12641_s22  ;;  %10852 = vrot.lane.b32.xlu0 %v10851_v9, %s12641_s22  ;;  %v10926_v8 = vpack.i.bf16 %v235_v2, %v234_v1  ;;  %v244_v9 = vld [vmem:[%s18977_s0 + $0x302] sm:$0xff]  ;;  %v13263_v2 = vld [vmem:[%s18977_s0 + $0xb0] sm:$0xff] }
  0x76   :  { %v13002_v13 = vpop.permute.xlu2 %10697 }
  0x77   :  { %v13013_v17 = vpop.permute.xlu1 %10652  ;;  %v13015_v18 = vpop.permute.xlu0 %10642 }
  0x7c   :  { %10877 = vrot.lane.b32.xlu2 %v10876_v19, %s12641_s22 }
  0x7d   :  { %10872 = vrot.lane.b32.xlu1 %v10871_v20, %s12641_s22  ;;  %10867 = vrot.lane.b32.xlu0 %v10866_v21, %s12641_s22  ;;  %v10951_v21 = vpack.i.bf16 %v245_v10, %v244_v9  ;;  %v10991_v9 = vpack.i.bf16 %v13263_v2, %v13254_v62 }
  0x7e   :  { %v13029_v25 = vpop.permute.xlu2 %10712 }
  0x7f   :  { %v13040_v29 = vpop.permute.xlu1 %10657  ;;  %v13042_v30 = vpop.permute.xlu0 %10647 }
  0x84   :  { %10892 = vrot.lane.b32.xlu2 %v10891_v31, %s12641_s22  ;;  %v13171_v31 = vld [vmem:[%s18977_s0 + $0x38] sm:$0xff] }
  0x85   :  { %10887 = vrot.lane.b32.xlu1 %v10886_v32, %s12641_s22  ;;  %10882 = vrot.lane.b32.xlu0 %v10881_v33, %s12641_s22  ;;  %v10966_v36 = vpack.i.bf16 %v13171_v31, %v13166_v28 }
  0x86   :  { %v13056_v37 = vpop.permute.xlu2 %10727 }
  0x87   :  { %v13067_v41 = vpop.permute.xlu1 %10677  ;;  %v13069_v42 = vpop.permute.xlu0 %10672 }
  0x8c   :  { %10907 = vrot.lane.b32.xlu2 %v10906_v43, %s12641_s22  ;;  %v13199_v43 = vld [vmem:[%s18977_s0 + $0x60] sm:$0xff] }
  0x8d   :  { %10902 = vrot.lane.b32.xlu1 %v10901_v44, %s12641_s22  ;;  %10897 = vrot.lane.b32.xlu0 %v10896_v45, %s12641_s22  ;;  %v13204_v44 = vld [vmem:[%s18977_s0 + $0x78] sm:$0xff]  ;;  %v13209_v45 = vld [vmem:[%s18977_s0 + $0x80] sm:$0xff] }
  0x8e   :  { %v13083_v50 = vpop.permute.xlu2 %10742  ;;  %v10981_v53 = vpack.i.bf16 %v13209_v45, %v13204_v44 }
  0x8f   :  { %v13094_v54 = vpop.permute.xlu1 %10692  ;;  %v13096_v55 = vpop.permute.xlu0 %10687 }
  0x94   :  { %10922 = vrot.lane.b32.xlu2 %v10921_v56, %s12641_s22  ;;  %v10976_v56 = vpack.i.bf16 %v13218_v49, %v13199_v43 }
  0x95   :  { %10917 = vrot.lane.b32.xlu1 %v10916_v58, %s12641_s22  ;;  %10912 = vrot.lane.b32.xlu0 %v10911_v59, %s12641_s22  ;;  %v10971_v58 = vpack.i.bf16 %v13228_v52, %v13223_v51 }
  0x96   :  { %v13110_v63 = vpop.permute.xlu2 %10757 }
  0x97   :  { %19115 = vst [vmem:[#allocation7_spill] sm:$0xff] %v13110_v63  ;;  %v13121_v4 = vpop.permute.xlu1 %10707  ;;  %v13123_v5 = vpop.permute.xlu0 %10702 }
  0x9c   :  { %10937 = vrot.lane.b32.xlu2 %v10936_v6, %s12641_s22  ;;  %v13268_v6 = vld [vmem:[%s18977_s0 + $0x90] sm:$0xff] }
  0x9d   :  { %10932 = vrot.lane.b32.xlu1 %v10931_v7, %s12641_s22  ;;  %10927 = vrot.lane.b32.xlu0 %v10926_v8, %s12641_s22  ;;  %v13273_v7 = vld [vmem:[%s18977_s0 + $0x98] sm:$0xff]  ;;  %v10996_v8 = vpack.i.bf16 %v13249_v61, %v13244_v60 }
  0x9e   :  { %v13137_v12 = vpop.permute.xlu2 %10772  ;;  %v10986_v10 = vpack.i.bf16 %v13273_v7, %v13268_v6 }
  0x9f   :  { %19116 = vst [vmem:[#allocation8_spill] sm:$0xff] %v13137_v12  ;;  %v13148_v19 = vpop.permute.xlu1 %10722  ;;  %v13150_v20 = vpop.permute.xlu0 %10717 }
  0xa0   :  { %19117 = vst [vmem:[#allocation9_spill] sm:$0xff] %v13148_v19  ;;  %v10685_v19 = vunpack.i.h.bf16 %v12979_v3 }
  0xa1   :  { %19118 = vst [vmem:[#allocation10_spill] sm:$0xff] %v13150_v20 }
  0xa4   :  { %10952 = vrot.lane.b32.xlu2 %v10951_v21, %s12641_s22 }
  0xa5   :  { %10947 = vrot.lane.b32.xlu1 %v10946_v22, %s12641_s22  ;;  %10942 = vrot.lane.b32.xlu0 %v10941_v23, %s12641_s22  ;;  %v13308_v23 = vld [vmem:[%s18977_s0 + $0xf8] sm:$0xff] }
  0xa6   :  { %v13155_v24 = vpop.permute.xlu2 %10787 }
  0xa7   :  { %19119 = vst [vmem:[#allocation11_spill] sm:$0xff] %v13155_v24  ;;  %v13173_v32 = vpop.permute.xlu1 %10737  ;;  %v13175_v33 = vpop.permute.xlu0 %10732 }
  0xa8   :  { %19120 = vst [vmem:[#allocation12_spill] sm:$0xff] %v13173_v32 }
  0xa9   :  { %19121 = vst [vmem:[#allocation13_spill] sm:$0xff] %v13175_v33  ;;  %v10669_v33 = vunpack.i.l.bf16 %v12956_v57 }
  0xac   :  { %10967 = vrot.lane.b32.xlu2 %v10966_v36, %s12642_s10  ;;  %v11011_v36 = vpack.i.bf16 %v13294_v15, %v13289_v14 }
  0xad   :  { %10962 = vrot.lane.b32.xlu1 %v10961_v38, %s12642_s10  ;;  %10957 = vrot.lane.b32.xlu0 %v10956_v39, %s12641_s22  ;;  %v11006_v38 = vpack.i.bf16 %v13308_v23, %v13299_v16  ;;  %v11001_v39 = vpack.i.bf16 %v13318_v27, %v13313_v26 }
  0xae   :  { %v13194_v40 = vpop.permute.xlu2 %10802 }
  0xaf   :  { %19122 = vst [vmem:[#allocation14_spill] sm:$0xff] %v13194_v40  ;;  %v13211_v46 = vpop.permute.xlu1 %10752  ;;  %v13213_v48 = vpop.permute.xlu0 %10747 }
  0xb0   :  { %19123 = vst [vmem:[#allocation15_spill] sm:$0xff] %v13211_v46  ;;  %v13447_v46 = vld [vmem:[%s18977_s0 + $0x1e8] sm:$0xff] }
  0xb1   :  { %19124 = vst [vmem:[#allocation16_spill] sm:$0xff] %v13213_v48  ;;  %v13418_v48 = vld [vmem:[%s18977_s0 + $0x210] sm:$0xff] }
  0xb2   :  { %19148 = vst [vmem:[#allocation40_spill] sm:$0xff] %v13447_v46 }
  0xb4   :  { %10982 = vrot.lane.b32.xlu2 %v10981_v53, %s12642_s10 }
  0xb5   :  { %10977 = vrot.lane.b32.xlu1 %v10976_v56, %s12642_s10  ;;  %10972 = vrot.lane.b32.xlu0 %v10971_v58, %s12642_s10  ;;  %v13334_v56 = vld [vmem:[%s18977_s0 + $0x150] sm:$0xff]  ;;  %v13339_v58 = vld [vmem:[%s18977_s0 + $0x158] sm:$0xff] }
  0xb6   :  { %v13239_v59 = vpop.permute.xlu2 %10817  ;;  %v11026_v24 = vpack.i.bf16 %v13339_v58, %v13334_v56 }
  0xb7   :  { %19125 = vst [vmem:[#allocation17_spill] sm:$0xff] %v13239_v59  ;;  %v13256_v0 = vpop.permute.xlu1 %10767  ;;  %v13258_v1 = vpop.permute.xlu0 %10762 }
  0xb8   :  { %19126 = vst [vmem:[#allocation18_spill] sm:$0xff] %v13256_v0 }
  0xb9   :  { %19127 = vst [vmem:[#allocation19_spill] sm:$0xff] %v13258_v1  ;;  %v9156_v1 = vld [vmem:[%s18977_s0 + $0x180] sm:$0xff] }
  0xbc   :  { %10997 = vrot.lane.b32.xlu2 %v10996_v8, %s12642_s10  ;;  %v13344_v8 = vld [vmem:[%s18977_s0 + $0x138] sm:$0xff] }
  0xbd   :  { %10992 = vrot.lane.b32.xlu1 %v10991_v9, %s12642_s10  ;;  %10987 = vrot.lane.b32.xlu0 %v10986_v10, %s12642_s10  ;;  %19132 = vst [vmem:[#allocation24_spill] sm:$0xff] %v13344_v8 }
  0xbe   :  { %v13284_v11 = vpop.permute.xlu2 %10832 }
  0xbf   :  { %19128 = vst [vmem:[#allocation20_spill] sm:$0xff] %v13284_v11  ;;  %v13301_v21 = vpop.permute.xlu1 %10782  ;;  %v13303_v22 = vpop.permute.xlu0 %10777 }
  0xc0   :  { %19129 = vst [vmem:[#allocation21_spill] sm:$0xff] %v13301_v21  ;;  %v13404_v21 = vld [vmem:[%s18977_s0 + $0x170] sm:$0xff] }
  0xc1   :  { %19130 = vst [vmem:[#allocation22_spill] sm:$0xff] %v13303_v22 }
  0xc2   :  { %19141 = vst [vmem:[#allocation33_spill] sm:$0xff] %v13404_v21 }
  0xc4   :  { %11012 = vrot.lane.b32.xlu2 %v11011_v36, %s12642_s10  ;;  %v13353_v36 = vld [vmem:[%s18977_s0 + $0x140] sm:$0xff] }
  0xc5   :  { %11007 = vrot.lane.b32.xlu1 %v11006_v38, %s12642_s10  ;;  %11002 = vrot.lane.b32.xlu0 %v11001_v39, %s12642_s10  ;;  %19135 = vst [vmem:[#allocation27_spill] sm:$0xff] %v13353_v36  ;;  %v13358_v38 = vld [vmem:[%s18977_s0 + $0x120] sm:$0xff]  ;;  %v13363_v39 = vld [vmem:[%s18977_s0 + $0x128] sm:$0xff] }
  0xc6   :  { %v13329_v53 = vpop.permute.xlu2 %10847  ;;  %19136 = vst [vmem:[#allocation28_spill] sm:$0xff] %v13358_v38  ;;  %v11016_v22 = vpack.i.bf16 %v13363_v39, %v13358_v38  ;;  %v108_v38 = vld [vmem:[%s18977_s0 + $0x2a0] sm:$0xff] }
  0xc7   :  { %19131 = vst [vmem:[#allocation23_spill] sm:$0xff] %v13329_v53  ;;  %v13346_v9 = vpop.permute.xlu1 %10797  ;;  %v13348_v10 = vpop.permute.xlu0 %10792  ;;  %v13385_v53 = vld [vmem:[%s18977_s0 + $0x1c8] sm:$0xff] }
  0xc8   :  { %19133 = vst [vmem:[#allocation25_spill] sm:$0xff] %v13346_v9  ;;  %v9157_v9 = vld [vmem:[%s18977_s0 + $0x188] sm:$0xff] }
  0xc9   :  { %19134 = vst [vmem:[#allocation26_spill] sm:$0xff] %v13348_v10  ;;  %v11021_v10 = vpack.i.bf16 %v13353_v36, %v13344_v8  ;;  %v11036_v0 = vpack.i.bf16 %v9157_v9, %v9156_v1  ;;  %v13423_v1 = vld [vmem:[%s18977_s0 + $0x218] sm:$0xff]  ;;  %v13437_v9 = vld [vmem:[%s18977_s0 + $0x200] sm:$0xff]  ;;  %v10699_v8 = vunpack.i.l.bf16 %v13002_v13 }
  0xca   :  { %19137 = vst [vmem:[#allocation29_spill] sm:$0xff] %v13363_v39 }
  0xcb   :  { %19146 = vst [vmem:[#allocation38_spill] sm:$0xff] %v13437_v9 }
  0xcc   :  { %11027 = vrot.lane.b32.xlu2 %v11026_v24, %s12642_s10  ;;  %v13390_v24 = vld [vmem:[%s18977_s0 + $0x1d0] sm:$0xff] }
  0xcd   :  { %11022 = vrot.lane.b32.xlu1 %v11021_v10, %s12642_s10  ;;  %11017 = vrot.lane.b32.xlu0 %v11016_v22, %s12642_s10  ;;  %v11041_v11 = vpack.i.bf16 %v13390_v24, %v13385_v53 }
  0xce   :  { %v13374_v12 = vpop.permute.xlu2 %10862 }
  0xcf   :  { %19138 = vst [vmem:[#allocation30_spill] sm:$0xff] %v13374_v12  ;;  %v13392_v22 = vpop.permute.xlu1 %10812  ;;  %v13394_v10 = vpop.permute.xlu0 %10807  ;;  %v13399_v12 = vld [vmem:[%s18977_s0 + $0x168] sm:$0xff] }
  0xd0   :  { %19139 = vst [vmem:[#allocation31_spill] sm:$0xff] %v13392_v22  ;;  %v11031_v59 = vpack.i.bf16 %v13404_v21, %v13399_v12 }
  0xd1   :  { %19140 = vst [vmem:[#allocation32_spill] sm:$0xff] %v13399_v12  ;;  %v13463_v12 = vld [vmem:[%s18977_s0 + $0x258] sm:$0xff] }
  0xd2   :  { %19150 = vst [vmem:[#allocation42_spill] sm:$0xff] %v13463_v12 }
  0xd4   :  { %11042 = vrot.lane.b32.xlu2 %v11041_v11, %s12642_s10  ;;  %v13428_v11 = vld [vmem:[%s18977_s0 + $0x1f8] sm:$0xff] }
  0xd5   :  { %11037 = vrot.lane.b32.xlu1 %v11036_v0, %s12642_s10  ;;  %11032 = vrot.lane.b32.xlu0 %v11031_v59, %s12642_s10  ;;  %19143 = vst [vmem:[#allocation35_spill] sm:$0xff] %v13428_v11  ;;  %v11051_v40 = vpack.i.bf16 %v13437_v9, %v13428_v11  ;;  %v103_v9 = vld [vmem:[%s18977_s0 + $0x260] sm:$0xff] }
  0xd6   :  { %v13413_v22 = vpop.permute.xlu2 %10877  ;;  %v11071_v11 = vpack.i.bf16 %v103_v9, %v13463_v12  ;;  %v109_v9 = vld [vmem:[%s18977_s0 + $0x2a8] sm:$0xff]  ;;  %v10420_v12 = vld [vmem:[%s18979_s2 + $0x30] sm:$0xff] }
  0xd7   :  { %19142 = vst [vmem:[#allocation34_spill] sm:$0xff] %v13413_v22  ;;  %v13430_v0 = vpop.permute.xlu1 %10827  ;;  %v13432_v59 = vpop.permute.xlu0 %10822  ;;  %v13442_v22 = vld [vmem:[%s18977_s0 + $0x1e0] sm:$0xff] }
  0xd8   :  { %19144 = vst [vmem:[#allocation36_spill] sm:$0xff] %v13430_v0  ;;  %v11056_v0 = vpack.i.bf16 %v13423_v1, %v13418_v48 }
  0xd9   :  { %19145 = vst [vmem:[#allocation37_spill] sm:$0xff] %v13432_v59  ;;  %v11046_v59 = vpack.i.bf16 %v13447_v46, %v13442_v22  ;;  %v13471_v46 = vld [vmem:[%s18977_s0 + $0x240] sm:$0xff] }
  0xda   :  { %19147 = vst [vmem:[#allocation39_spill] sm:$0xff] %v13442_v22  ;;  %v13490_v22 = vld [vmem:[%s18977_s0 + $0x230] sm:$0xff] }
  0xdb   :  { %19151 = vst [vmem:[#allocation43_spill] sm:$0xff] %v13471_v46 }
  0xdc   :  { %11057 = vrot.lane.b32.xlu2 %v11056_v0, %s12642_s10  ;;  %19156 = vst [vmem:[#allocation48_spill] sm:$0xff] %v13490_v22 }
  0xdd   :  { %11052 = vrot.lane.b32.xlu1 %v11051_v40, %s12642_s10  ;;  %11047 = vrot.lane.b32.xlu0 %v11046_v59, %s12642_s10  ;;  %v13480_v59 = vld [vmem:[%s18977_s0 + $0x248] sm:$0xff] }
  0xde   :  { %v13458_v21 = vpop.permute.xlu2 %10892  ;;  %19154 = vst [vmem:[#allocation46_spill] sm:$0xff] %v13480_v59 }
  0xdf   :  { %19149 = vst [vmem:[#allocation41_spill] sm:$0xff] %v13458_v21  ;;  %v13473_v0 = vpop.permute.xlu1 %10842  ;;  %v13475_v40 = vpop.permute.xlu0 %10837  ;;  %v13485_v21 = vld [vmem:[%s18977_s0 + $0x228] sm:$0xff] }
  0xe0   :  { %19152 = vst [vmem:[#allocation44_spill] sm:$0xff] %v13473_v0  ;;  %v11066_v0 = vpack.i.bf16 %v13480_v59, %v13471_v46  ;;  %v11086_v59 = vpack.i.bf16 %v109_v9, %v108_v38  ;;  %v115_v38 = vld [vmem:[%s18977_s0 + $0x2f0] sm:$0xff]  ;;  %v10665_v9 = vunpack.i.h.bf16 %v12933_v47 }
  0xe1   :  { %19153 = vst [vmem:[#allocation45_spill] sm:$0xff] %v13475_v40  ;;  %v11061_v40 = vpack.i.bf16 %v13490_v22, %v13485_v21  ;;  %v13511_v22 = vld [vmem:[%s18977_s0 + $0x288] sm:$0xff] }
  0xe2   :  { %19155 = vst [vmem:[#allocation47_spill] sm:$0xff] %v13485_v21  ;;  %v105_v21 = vld [vmem:[%s18977_s0 + $0x278] sm:$0xff] }
  0xe3   :  { %19158 = vst [vmem:[#allocation50_spill] sm:$0xff] %v13511_v22 }
  0xe4   :  { %11072 = vrot.lane.b32.xlu2 %v11071_v11, %s12642_s10 }
  0xe5   :  { %11067 = vrot.lane.b32.xlu1 %v11066_v0, %s12642_s10  ;;  %11062 = vrot.lane.b32.xlu0 %v11061_v40, %s12642_s10  ;;  %v13520_v40 = vld [vmem:[%s18977_s0 + $0x290] sm:$0xff] }
  0xe6   :  { %v13500_v39 = vpop.permute.xlu2 %10907  ;;  %19161 = vst [vmem:[#allocation53_spill] sm:$0xff] %v13520_v40  ;;  %v11081_v46 = vpack.i.bf16 %v13520_v40, %v13511_v22  ;;  %v13559_v40 = vld [vmem:[%s18977_s0 + $0x2d8] sm:$0xff] }
  0xe7   :  { %19157 = vst [vmem:[#allocation49_spill] sm:$0xff] %v13500_v39  ;;  %v13513_v11 = vpop.permute.xlu1 %10857  ;;  %v13515_v0 = vpop.permute.xlu0 %10852  ;;  %v104_v39 = vld [vmem:[%s18977_s0 + $0x270] sm:$0xff] }
  0xe8   :  { %19159 = vst [vmem:[#allocation51_spill] sm:$0xff] %v13513_v11  ;;  %v11076_v11 = vpack.i.bf16 %v105_v21, %v104_v39  ;;  %v13544_v21 = vld [vmem:[%s18977_s0 + $0x2d0] sm:$0xff] }
  0xe9   :  { %19160 = vst [vmem:[#allocation52_spill] sm:$0xff] %v13515_v0  ;;  %v114_v0 = vld [vmem:[%s18977_s0 + $0x2e8] sm:$0xff]  ;;  %v11096_v32 = vpack.i.bf16 %v13559_v40, %v13544_v21 }
  0xea   :  { %v11101_v22 = vpack.i.bf16 %v115_v38, %v114_v0  ;;  %v10700_v38 = vunpack.i.h.bf16 %v13002_v13  ;;  %v9188_v13 = vld [vmem:[%s18977_s0 + $0x330] sm:$0xff] }
  0xec   :  { %11087 = vrot.lane.b32.xlu2 %v11086_v59, %s12642_s10  ;;  %v10421_v59 = vld [vmem:[%s18979_s2 + $0x38] sm:$0xff] }
  0xed   :  { %11082 = vrot.lane.b32.xlu1 %v11081_v46, %s12642_s10  ;;  %11077 = vrot.lane.b32.xlu0 %v11076_v11, %s12642_s10  ;;  %v10664_v11 = vunpack.i.l.bf16 %v12933_v47  ;;  %v10684_v47 = vunpack.i.l.bf16 %v12979_v3  ;;  %v13588_v3 = vsel %vm1402_vm0, %v13204_v44, %v10669_v33  ;;  %v9189_v33 = vld [vmem:[%s18977_s0 + $0x338] sm:$0xff]  ;;  %v13608_v44 = vsel %vm1402_vm0, %v13249_v61, %v10685_v19 }
  0xee   :  { %v13536_v36 = vpop.permute.xlu2 %10922  ;;  %3757 = vmatpush.bf16.msra.mxu0 %v10421_v59  ;;  %10624 = vmatpush.bf16.msra.mxu1 %v10421_v59  ;;  %19166 = vst [vmem:[#allocation58_spill] sm:$0xff] %v13608_v44  ;;  %v10644_v19 = vunpack.i.l.bf16 %v13015_v18  ;;  %v10715_v61 = vunpack.i.h.bf16 %v13029_v25  ;;  %v10730_v44 = vunpack.i.h.bf16 %v13056_v37 }
  0xef   :  { %19162 = vst [vmem:[#allocation54_spill] sm:$0xff] %v13536_v36  ;;  %v13546_v39 = vpop.permute.xlu1 %10872  ;;  %v13548_v46 = vpop.permute.xlu0 %10867  ;;  %v10670_v36 = vunpack.i.h.bf16 %v12956_v57  ;;  %v13578_v0 = vsel %vm1402_vm0, %v13199_v43, %v10664_v11  ;;  %v13582_v57 = vsel %vm1402_vm0, %v13218_v49, %v10665_v9  ;;  %v13596_v43 = vsel %vm1402_vm0, %v13244_v60, %v10684_v47  ;;  %v13649_v9 = vld [vmem:[%s18977_s0 + $0x320] sm:$0xff]  ;;  %v117_v47 = vld [vmem:[%s18977_s0 + $0x308] sm:$0xff] }
  0xf0   :  { %19163 = vst [vmem:[#allocation55_spill] sm:$0xff] %v13546_v39  ;;  %v110_v39 = vld [vmem:[%s18977_s0 + $0x2b8] sm:$0xff]  ;;  %v10654_v49 = vunpack.i.l.bf16 %v13013_v17  ;;  %v116_v11 = vld [vmem:[%s18977_s0 + $0x300] sm:$0xff] }
  0xf1   :  { %19164 = vst [vmem:[#allocation56_spill] sm:$0xff] %v13548_v46  ;;  %v111_v46 = vld [vmem:[%s18977_s0 + $0x2c0] sm:$0xff] }
  0xf2   :  { %v11091_v20 = vpack.i.bf16 %v111_v46, %v110_v39  ;;  %v13592_v39 = vsel %vm1402_vm0, %v13209_v45, %v10670_v36  ;;  %19165 = vst [vmem:[#allocation57_spill] sm:$0xff] %v13596_v43  ;;  %v10655_v45 = vunpack.i.h.bf16 %v13013_v17  ;;  %3758 = vmatpush.bf16.msra.mxu0 %v10420_v12  ;;  %10625 = vmatpush.bf16.msra.mxu1 %v10420_v12  ;;  %v57_v17 = vld [vmem:[%s18977_s0 + $0x8] sm:$0xff]  ;;  %v13631_v46 = vld [vmem:[%s18977_s0 + $0x318] sm:$0xff] }
  0xf3   :  { %v13620_v36 = vsel %vm1402_vm0, %v13289_v14, %v10699_v8  ;;  %v13642_v14 = vsel %vm1402_vm0, %v13294_v15, %v10700_v38  ;;  %v10660_v8 = vunpack.i.h.bf16 %v13040_v29  ;;  %v10650_v15 = vunpack.i.h.bf16 %v13042_v30  ;;  %v19207_v43 = vld [vmem:[#allocation40_spill] sm:$0xff] }
  0xf4   :  { %11102 = vrot.lane.b32.xlu2 %v11101_v22, %s12642_s10  ;;  %19168 = vst [vmem:[#allocation60_spill] sm:$0xff] %v13620_v36  ;;  %v10714_v22 = vunpack.i.l.bf16 %v13029_v25  ;;  %v10659_v25 = vunpack.i.l.bf16 %v13040_v29  ;;  %v10649_v38 = vunpack.i.l.bf16 %v13042_v30  ;;  %v11111_v29 = vpack.i.bf16 %v13649_v9, %v13631_v46 }
  0xf5   :  { %11097 = vrot.lane.b32.xlu1 %v11096_v32, %s12642_s10  ;;  %11092 = vrot.lane.b32.xlu0 %v11091_v20, %s12642_s10  ;;  %v10645_v32 = vunpack.i.h.bf16 %v13015_v18  ;;  %v56_v20 = vld [vmem:[%s18977_s0] sm:$0xff]  ;;  %v10419_v18 = vld [vmem:[%s18979_s2 + $0x28] sm:$0xff]  ;;  %19170 = vst [vmem:[#allocation62_spill] sm:$0xff] %v13642_v14  ;;  %v13663_v14 = vsel %vm1402_vm0, %v13166_v28, %v10654_v49  ;;  %v13667_v36 = vsel %vm1402_vm0, %v13171_v31, %v10655_v45  ;;  %v10680_v45 = vunpack.i.h.bf16 %v13067_v41 }
  0xf6   :  { %v13616_v60 = vpop.permute.xlu2 %10937  ;;  %3759 = vmatpush.bf16.msra.mxu0 %v10419_v18  ;;  %v13683_v28 = vsel %vm1402_vm0, %v13339_v58, %v10715_v61  ;;  %v10418_v31 = vld [vmem:[%s18979_s2 + $0x20] sm:$0xff]  ;;  %10626 = vmatpush.bf16.msra.mxu1 %v10419_v18  ;;  %v10679_v49 = vunpack.i.l.bf16 %v13067_v41  ;;  %v9258_v58 = vld [vmem:[%s18977_s0 + $0x4a] sm:$0xff]  ;;  %v10675_v41 = vunpack.i.h.bf16 %v13069_v42 }
  0xf7   :  { %19167 = vst [vmem:[#allocation59_spill] sm:$0xff] %v13616_v60  ;;  %v13633_v12 = vpop.permute.xlu1 %10887  ;;  %v13635_v59 = vpop.permute.xlu0 %10882  ;;  %v11116_v60 = vpack.i.bf16 %v9189_v33, %v9188_v13  ;;  %v10729_v13 = vunpack.i.l.bf16 %v13056_v37  ;;  %v13672_v33 = vsel %vm1402_vm0, %v56_v20, %v10644_v19  ;;  %v13675_v30 = vsel %vm1402_vm0, %v57_v17, %v10645_v32  ;;  %v9257_v61 = vld [vmem:[%s18977_s0 + $0x3a] sm:$0xff] }
  0xf8   :  { %19169 = vst [vmem:[#allocation61_spill] sm:$0xff] %v13633_v12  ;;  %v11106_v12 = vpack.i.bf16 %v117_v47, %v116_v11  ;;  %v13679_v11 = vsel %vm1402_vm0, %v13334_v56, %v10714_v22  ;;  %v13690_v37 = vsel %vm1402_vm0, %v13223_v51, %v10659_v25  ;;  %v10674_v56 = vunpack.i.l.bf16 %v13069_v42  ;;  %v9254_v22 = vld [vmem:[%s18977_s0 + $0x1a] sm:$0xff] }
  0xf9   :  { %19171 = vst [vmem:[#allocation63_spill] sm:$0xff] %v13679_v11  ;;  %v13701_v32 = vsel %vm1402_vm0, %v13228_v52, %v10660_v8  ;;  %v13705_v51 = vsel %vm1402_vm0, %v13180_v34, %v10649_v38  ;;  %v13709_v20 = vsel %vm1402_vm0, %v13185_v35, %v10650_v15  ;;  %v9256_v52 = vld [vmem:[%s18977_s0 + $0x32] sm:$0xff]  ;;  %v13722_v34 = vsel %vm1402_vm0, %v13385_v53, %v10729_v13  ;;  %v9255_v53 = vld [vmem:[%s18977_s0 + $0x22] sm:$0xff] }
  0xfa   :  { %19172 = vst [vmem:[#allocation64_spill] sm:$0xff] %v13683_v28  ;;  %v13726_v35 = vsel %vm1402_vm0, %v13390_v24, %v10730_v44  ;;  %v10745_v42 = vunpack.i.h.bf16 %v13083_v50  ;;  %v10744_v19 = vunpack.i.l.bf16 %v13083_v50  ;;  %3760 = vmatpush.bf16.msra.mxu0 %v10418_v31  ;;  %v10695_v24 = vunpack.i.h.bf16 %v13094_v54  ;;  %10627 = vmatpush.bf16.msra.mxu1 %v10418_v31  ;;  %v19190_v28 = vld [vmem:[#allocation28_spill] sm:$0xff] }
  0xfb   :  { %19173 = vst [vmem:[#allocation65_spill] sm:$0xff] %v13722_v34  ;;  %v10694_v44 = vunpack.i.l.bf16 %v13094_v54  ;;  %v10690_v50 = vunpack.i.h.bf16 %v13096_v55  ;;  %v13751_v25 = vsel %vm1402_vm0, %v13254_v62, %v10679_v49  ;;  %v13755_v47 = vsel %vm1402_vm0, %v13263_v2, %v10680_v45 }
  0xfc   :  { %11117 = vrot.lane.b32.xlu2 %v11116_v60, %s12642_s10  ;;  %v9259_v60 = vld [vmem:[%s18977_s0 + $0x52] sm:$0xff]  ;;  %19174 = vst [vmem:[#allocation66_spill] sm:$0xff] %v13726_v35  ;;  %v13759_v54 = vsel %vm1402_vm0, %v13268_v6, %v10674_v56  ;;  %v10759_v38 = vunpack.i.l.bf16 %v13110_v63  ;;  %v11126_v13 = vpack.i.bf16 %v9257_v61, %v9256_v52  ;;  %v11121_v62 = vpack.i.bf16 %v9255_v53, %v9254_v22  ;;  %v9262_v61 = vld [vmem:[%s18977_s0 + $0x7a] sm:$0xff] }
  0xfd   :  { %11112 = vrot.lane.b32.xlu1 %v11111_v29, %s12642_s10  ;;  %11107 = vrot.lane.b32.xlu0 %v11106_v12, %s12642_s10  ;;  %v10689_v12 = vunpack.i.l.bf16 %v13096_v55  ;;  %v11131_v15 = vpack.i.bf16 %v9259_v60, %v9258_v58  ;;  %v10417_v55 = vld [vmem:[%s18979_s2 + $0x18] sm:$0xff]  ;;  %v10709_v29 = vunpack.i.l.bf16 %v13121_v4  ;;  %v13768_v31 = vsel %vm1402_vm0, %v13273_v7, %v10675_v41  ;;  %v19183_v52 = vld [vmem:[#allocation9_spill] sm:$0xff]  ;;  %v19189_v35 = vld [vmem:[#allocation27_spill] sm:$0xff] }
  0xfe   :  { %v13730_v17 = vpop.permute.xlu2 %10952  ;;  %v13772_v2 = vsel %vm1402_vm0, %v13418_v48, %v10744_v19  ;;  %v13776_v6 = vsel %vm1402_vm0, %v13423_v1, %v10745_v42  ;;  %3761 = vmatpush.bf16.msra.mxu0 %v10417_v55  ;;  %v13780_v45 = vsel %vm1402_vm0, %v13299_v16, %v10694_v44  ;;  %v13784_v49 = vsel %vm1402_vm0, %v13308_v23, %v10695_v24  ;;  %v9264_v23 = vld [vmem:[%s18977_s0 + $0x92] sm:$0xff]  ;;  %v9265_v19 = vld [vmem:[%s18977_s0 + $0x9a] sm:$0xff] }
  0xff   :  { %19175 = vst [vmem:[#allocation67_spill] sm:$0xff] %v13730_v17  ;;  %v13745_v18 = vpop.permute.xlu1 %10902  ;;  %v13747_v8 = vpop.permute.xlu0 %10897  ;;  %v13788_v7 = vsel %vm1402_vm0, %v13313_v26, %v10689_v12  ;;  %v13792_v48 = vsel %vm1402_vm0, %v13318_v27, %v10690_v50  ;;  %10628 = vmatpush.bf16.msra.mxu1 %v10417_v55  ;;  %v10710_v1 = vunpack.i.h.bf16 %v13121_v4  ;;  %v10705_v56 = vunpack.i.h.bf16 %v13123_v5  ;;  %v10416_v26 = vld [vmem:[%s18979_s2 + $0x10] sm:$0xff]  ;;  %v19180_v27 = vld [vmem:[#allocation42_spill] sm:$0xff]  ;;  %v19182_v4 = vld [vmem:[#allocation24_spill] sm:$0xff] }
 0x100   :  { %19176 = vst [vmem:[#allocation68_spill] sm:$0xff] %v13745_v18  ;;  %v10810_v16 = vunpack.i.h.bf16 %v13394_v10  ;;  %v10809_v58 = vunpack.i.l.bf16 %v13394_v10  ;;  %v13807_v41 = vsel %vm1402_vm0, %v19180_v27, %v10759_v38  ;;  %v13811_v60 = vsel %vm1402_vm0, %v19182_v4, %v10709_v29  ;;  %v19184_v53 = vld [vmem:[#allocation10_spill] sm:$0xff]  ;;  %v9263_v50 = vld [vmem:[%s18977_s0 + $0x82] sm:$0xff]  ;;  %v19188_v17 = vld [vmem:[#allocation13_spill] sm:$0xff] }
 0x101   :  { %19177 = vst [vmem:[#allocation69_spill] sm:$0xff] %v13747_v8  ;;  %v10704_v10 = vunpack.i.l.bf16 %v13123_v5  ;;  %v10725_v42 = vunpack.i.h.bf16 %v19183_v52  ;;  %v10724_v22 = vunpack.i.l.bf16 %v19183_v52  ;;  %v10720_v24 = vunpack.i.h.bf16 %v19184_v53  ;;  %v9260_v12 = vld [vmem:[%s18977_s0 + $0x62] sm:$0xff]  ;;  %v88_v52 = vld [vmem:[%s18977_s0 + $0x1b0] sm:$0xff] }
 0x102   :  { %19178 = vst [vmem:[#allocation70_spill] sm:$0xff] %v13772_v2  ;;  %v10719_v5 = vunpack.i.l.bf16 %v19184_v53  ;;  %3762 = vmatpush.bf16.msra.mxu0 %v10416_v26  ;;  %v19185_v55 = vld [vmem:[#allocation12_spill] sm:$0xff]  ;;  %v89_v53 = vld [vmem:[%s18977_s0 + $0x1b8] sm:$0xff]  ;;  %v11141_v2 = vpack.i.bf16 %v9263_v50, %v9262_v61  ;;  %v13856_v34 = vsel %vm1402_vm0, %v19189_v35, %v10710_v1 }
 0x103   :  { %19179 = vst [vmem:[#allocation71_spill] sm:$0xff] %v13776_v6  ;;  %v10740_v38 = vunpack.i.h.bf16 %v19185_v55  ;;  %v10739_v29 = vunpack.i.l.bf16 %v19185_v55  ;;  %10629 = vmatpush.bf16.msra.mxu1 %v10416_v26  ;;  %v1470_v55 = vsel %vm1467_vm1, %v13705_v51, %v10809_v58  ;;  %v13860_v11 = vsel %vm1402_vm0, %v19190_v28, %v10704_v10  ;;  %v19192_v1 = vld [vmem:[#allocation32_spill] sm:$0xff] }
 0x104   :  { %11132 = vrot.lane.b32.xlu2 %v11131_v15, %s12640_s27  ;;  %19181 = vst [vmem:[#allocation42_spill] sm:$0xff] %v13807_v41  ;;  %v9261_v15 = vld [vmem:[%s18977_s0 + $0x6a] sm:$0xff]  ;;  %v10734_v41 = vunpack.i.l.bf16 %v19188_v17  ;;  %v13873_v35 = vsel %vm1402_vm0, %v89_v53, %v10725_v42  ;;  %v13877_v28 = vsel %vm1402_vm0, %v19192_v1, %v10719_v5  ;;  %v9270_v42 = vld [vmem:[%s18977_s0 + $0xda] sm:$0xff] }
 0x105   :  { %11127 = vrot.lane.b32.xlu1 %v11126_v13, %s12640_s27  ;;  %11122 = vrot.lane.b32.xlu0 %v11121_v62, %s12640_s27  ;;  %v11136_v18 = vpack.i.bf16 %v9261_v15, %v9260_v12  ;;  %v19197_v5 = vld [vmem:[#allocation38_spill] sm:$0xff]  ;;  %v10735_v15 = vunpack.i.h.bf16 %v19188_v17  ;;  %v19204_v1 = vld [vmem:[#allocation17_spill] sm:$0xff] }
 0x106   :  { %v10968_v44 = vpop.permute.xlu2 %10967  ;;  %v13898_v12 = vsel %vm1402_vm0, %v19197_v5, %v10740_v38  ;;  %v9269_v38 = vld [vmem:[%s18977_s0 + $0xca] sm:$0xff] }
 0x107   :  { %v10970_v13 = vunpack.i.h.bf16 %v10968_v44  ;;  %v10969_v62 = vunpack.i.l.bf16 %v10968_v44  ;;  %v13837_v27 = vpop.permute.xlu1 %10917  ;;  %v13839_v4 = vpop.permute.xlu0 %10912  ;;  %v1471_v44 = vsel %vm1467_vm1, %v13709_v20, %v10810_v16  ;;  %v10415_v20 = vld [vmem:[%s18979_s2 + $0x8] sm:$0xff]  ;;  %v19191_v16 = vld [vmem:[#allocation29_spill] sm:$0xff]  ;;  %19198 = vst [vmem:[#allocation12_spill] sm:$0xff] %v13898_v12 }
 0x108   :  { %19186 = vst [vmem:[#allocation24_spill] sm:$0xff] %v13837_v27  ;;  %v11146_v27 = vpack.i.bf16 %v9265_v19, %v9264_v23  ;;  %v13867_v58 = vsel %vm1402_vm0, %v19191_v16, %v10705_v56  ;;  %v13870_v23 = vsel %vm1402_vm0, %v88_v52, %v10724_v22  ;;  %v19194_v19 = vld [vmem:[#allocation35_spill] sm:$0xff]  ;;  %v19196_v56 = vld [vmem:[#allocation37_spill] sm:$0xff]  ;;  %3763 = vmatpush.bf16.msra.mxu0 %v10415_v20 }
 0x109   :  { %19187 = vst [vmem:[#allocation9_spill] sm:$0xff] %v13839_v4  ;;  %v1535_v6 = vsel %vm1532_vm2, %v1470_v55, %v10969_v62  ;;  %v1536_v26 = vsel %vm1532_vm2, %v1471_v44, %v10970_v13  ;;  %v13885_v61 = vsel %vm1402_vm0, %v19194_v19, %v10739_v29  ;;  %v10825_v50 = vunpack.i.h.bf16 %v19196_v56  ;;  %v19199_v29 = vld [vmem:[#allocation39_spill] sm:$0xff]  ;;  %v19201_v13 = vld [vmem:[#allocation14_spill] sm:$0xff]  ;;  %v19203_v55 = vld [vmem:[#allocation16_spill] sm:$0xff]  ;;  %10630 = vmatpush.bf16.msra.mxu1 %v10415_v20 }
 0x10a   :  { %v1599_v63 = vpack.c.bf16 %v1535_v6, %v1535_v6  ;;  %v1600_v51 = vpack.c.bf16 %v1536_v26, %v1536_v26  ;;  %v19193_v6 = vld [vmem:[#allocation33_spill] sm:$0xff]  ;;  %19195 = vst [vmem:[#allocation10_spill] sm:$0xff] %v13885_v61  ;;  %v10824_v22 = vunpack.i.l.bf16 %v19196_v56  ;;  %v10805_v62 = vunpack.i.h.bf16 %v19201_v13  ;;  %v19202_v52 = vld [vmem:[#allocation15_spill] sm:$0xff] }
 0x10b   :  { %v13881_v10 = vsel %vm1402_vm0, %v19193_v6, %v10720_v24  ;;  %v9271_v24 = vld [vmem:[%s18977_s0 + $0xe2] sm:$0xff]  ;;  %v10804_v17 = vunpack.i.l.bf16 %v19201_v13  ;;  %v10754_v53 = vunpack.i.l.bf16 %v19202_v52  ;;  %v10750_v44 = vunpack.i.h.bf16 %v19203_v55 }
 0x10c   :  { %1663 = vst [vmem:[#allocation2 + $0x18] sm:$0xf] %v1599_v63  ;;  %11147 = vrot.lane.b32.xlu2 %v11146_v27, %s12640_s27  ;;  %v13903_v63 = vsel %vm1402_vm0, %v19199_v29, %v10734_v41  ;;  %v9268_v27 = vld [vmem:[%s18977_s0 + $0xc2] sm:$0xff]  ;;  %v10755_v41 = vunpack.i.h.bf16 %v19202_v52  ;;  %v10749_v16 = vunpack.i.l.bf16 %v19203_v55  ;;  %v10820_v6 = vunpack.i.h.bf16 %v19204_v1 }
 0x10d   :  { %19200 = vst [vmem:[#allocation13_spill] sm:$0xff] %v13903_v63  ;;  %11142 = vrot.lane.b32.xlu1 %v11141_v2, %s12640_s27  ;;  %11137 = vrot.lane.b32.xlu0 %v11136_v18, %s12640_s27  ;;  %v9266_v18 = vld [vmem:[%s18977_s0 + $0xaa] sm:$0xff]  ;;  %v9267_v2 = vld [vmem:[%s18977_s0 + $0xb2] sm:$0xff]  ;;  %v10819_v13 = vunpack.i.l.bf16 %v19204_v1  ;;  %v1476_v52 = vsel %vm1467_vm1, %v13578_v0, %v10824_v22  ;;  %v1477_v4 = vsel %vm1467_vm1, %v13582_v57, %v10825_v50 }
 0x10e   :  { %1664 = vst [vmem:[#allocation2 + $0x24] sm:$0xf] %v1600_v51  ;;  %v10983_v26 = vpop.permute.xlu2 %10982  ;;  %v10414_v51 = vld [vmem:[%s18979_s2] sm:$0xff]  ;;  %v11161_v12 = vpack.i.bf16 %v9271_v24, %v9270_v42  ;;  %v11156_v61 = vpack.i.bf16 %v9269_v38, %v9268_v27  ;;  %v13947_v0 = vsel %vm1467_vm1, %v13672_v33, %v10804_v17  ;;  %v13951_v57 = vsel %vm1467_vm1, %v13675_v30, %v10805_v62  ;;  %v19210_v22 = vld [vmem:[#allocation46_spill] sm:$0xff]  ;;  %v19215_v27 = vld [vmem:[#allocation45_spill] sm:$0xff] }
 0x10f   :  { %v10985_v19 = vunpack.i.h.bf16 %v10983_v26  ;;  %v10984_v56 = vunpack.i.l.bf16 %v10983_v26  ;;  %v13929_v5 = vpop.permute.xlu1 %10932  ;;  %v13931_v29 = vpop.permute.xlu0 %10927  ;;  %3764 = vmatpush.bf16.msra.mxu0 %v10414_v51  ;;  %v11151_v26 = vpack.i.bf16 %v9267_v2, %v9266_v18  ;;  %10631 = vmatpush.bf16.msra.mxu1 %v10414_v51  ;;  %v19211_v42 = vld [vmem:[#allocation47_spill] sm:$0xff]  ;;  %v10840_v38 = vunpack.i.h.bf16 %v19215_v27  ;;  %v19218_v2 = vld [vmem:[#allocation21_spill] sm:$0xff] }
 0x110   :  { %19205 = vst [vmem:[#allocation27_spill] sm:$0xff] %v13929_v5  ;;  %v13942_v5 = vsel %vm1402_vm0, %v19207_v43, %v10735_v15  ;;  %v13959_v43 = vsel %vm1402_vm0, %v19210_v22, %v10755_v41  ;;  %v13963_v24 = vsel %vm1402_vm0, %v19211_v42, %v10749_v16  ;;  %v19213_v15 = vld [vmem:[#allocation48_spill] sm:$0xff]  ;;  %v10839_v30 = vunpack.i.l.bf16 %v19215_v27  ;;  %v9275_v16 = vld [vmem:[%s18977_s0 + $0x112] sm:$0xff] }
 0x111   :  { %19206 = vst [vmem:[#allocation28_spill] sm:$0xff] %v13931_v29  ;;  %v1541_v20 = vsel %vm1532_vm2, %v1476_v52, %v10984_v56  ;;  %v1542_v55 = vsel %vm1532_vm2, %v1477_v4, %v10985_v19  ;;  %v19208_v29 = vld [vmem:[#allocation18_spill] sm:$0xff]  ;;  %v19209_v4 = vld [vmem:[#allocation43_spill] sm:$0xff]  ;;  %v13967_v33 = vsel %vm1402_vm0, %v19213_v15, %v10750_v44  ;;  %v13977_v17 = vsel %vm1467_vm1, %v13690_v37, %v10819_v13  ;;  %v9274_v37 = vld [vmem:[%s18977_s0 + $0x10a] sm:$0xff] }
 0x112   :  { %v10769_v1 = vunpack.i.l.bf16 %v19208_v29  ;;  %v1605_v63 = vpack.c.bf16 %v1541_v20, %v1541_v20  ;;  %v1606_v8 = vpack.c.bf16 %v1542_v55, %v1542_v55  ;;  %v13955_v50 = vsel %vm1402_vm0, %v19209_v4, %v10754_v53  ;;  %19212 = vst [vmem:[#allocation29_spill] sm:$0xff] %v13963_v24  ;;  %v9276_v62 = vld [vmem:[%s18977_s0 + $0x122] sm:$0xff]  ;;  %v9273_v19 = vld [vmem:[%s18977_s0 + $0xfa] sm:$0xff] }
 0x113   :  { %19214 = vst [vmem:[#allocation32_spill] sm:$0xff] %v13967_v33  ;;  %v13981_v41 = vsel %vm1467_vm1, %v13701_v32, %v10820_v6  ;;  %v10770_v53 = vunpack.i.h.bf16 %v19208_v29  ;;  %v19217_v32 = vld [vmem:[#allocation20_spill] sm:$0xff]  ;;  %v9272_v6 = vld [vmem:[%s18977_s0 + $0xf2] sm:$0xff]  ;;  %v10784_v56 = vunpack.i.l.bf16 %v19218_v2  ;;  %v19219_v29 = vld [vmem:[#allocation23_spill] sm:$0xff]  ;;  %v1482_v4 = vsel %vm1467_vm1, %v13751_v25, %v10839_v30 }
 0x114   :  { %1669 = vst [vmem:[#allocation2 + $0x60] sm:$0xf] %v1605_v63  ;;  %11162 = vrot.lane.b32.xlu2 %v11161_v12, %s12640_s27  ;;  %v9277_v12 = vld [vmem:[%s18977_s0 + $0x12a] sm:$0xff]  ;;  %v19216_v63 = vld [vmem:[#allocation50_spill] sm:$0xff]  ;;  %v10835_v18 = vunpack.i.h.bf16 %v19217_v32  ;;  %v10850_v13 = vunpack.i.h.bf16 %v19219_v29  ;;  %v1483_v22 = vsel %vm1467_vm1, %v13755_v47, %v10840_v38 }
 0x115   :  { %1670 = vst [vmem:[#allocation2 + $0x6c] sm:$0xf] %v1606_v8  ;;  %11157 = vrot.lane.b32.xlu1 %v11156_v61, %s12640_s27  ;;  %11152 = vrot.lane.b32.xlu0 %v11151_v26, %s12640_s27  ;;  %v13994_v44 = vsel %vm1402_vm0, %v19216_v63, %v10769_v1  ;;  %v10834_v8 = vunpack.i.l.bf16 %v19217_v32  ;;  %v10785_v61 = vunpack.i.h.bf16 %v19218_v2  ;;  %v10849_v1 = vunpack.i.l.bf16 %v19219_v29  ;;  %v19221_v2 = vld [vmem:[#allocation53_spill] sm:$0xff] }
 0x116   :  { %v10998_v51 = vpop.permute.xlu2 %10997  ;;  %v11176_v42 = vpack.i.bf16 %v9277_v12, %v9276_v62  ;;  %v11171_v63 = vpack.i.bf16 %v9275_v16, %v9274_v37  ;;  %v11166_v32 = vpack.i.bf16 %v9273_v19, %v9272_v6  ;;  %v14032_v47 = vsel %vm1467_vm1, %v13768_v31, %v10835_v18  ;;  %v9283_v16 = vld [vmem:[%s18977_s0 + $0x172] sm:$0xff] }
 0x117   :  { %v11000_v52 = vunpack.i.h.bf16 %v10998_v51  ;;  %v10999_v20 = vunpack.i.l.bf16 %v10998_v51  ;;  %v14010_v55 = vpop.permute.xlu1 %10947  ;;  %v14012_v26 = vpop.permute.xlu0 %10942  ;;  %v14023_v51 = vsel %vm1402_vm0, %v19221_v2, %v10770_v53  ;;  %v14028_v25 = vsel %vm1467_vm1, %v13759_v54, %v10834_v8  ;;  %v19224_v54 = vld [vmem:[#allocation25_spill] sm:$0xff]  ;;  %v19226_v8 = vld [vmem:[#allocation31_spill] sm:$0xff]  ;;  %v19227_v19 = vld [vmem:[#allocation34_spill] sm:$0xff] }
 0x118   :  { %19220 = vst [vmem:[#allocation33_spill] sm:$0xff] %v14010_v55  ;;  %v19222_v55 = vld [vmem:[#allocation52_spill] sm:$0xff]  ;;  %v14036_v38 = vsel %vm1402_vm0, %v13544_v21, %v10784_v56  ;;  %v14041_v62 = vsel %vm1402_vm0, %v13559_v40, %v10785_v61  ;;  %v14045_v53 = vsel %vm1467_vm1, %v13788_v7, %v10849_v1  ;;  %v10800_v12 = vunpack.i.h.bf16 %v19224_v54  ;;  %v19225_v40 = vld [vmem:[#allocation30_spill] sm:$0xff] }
 0x119   :  { %v1547_v15 = vsel %vm1532_vm2, %v1482_v4, %v10999_v20  ;;  %v1548_v27 = vsel %vm1532_vm2, %v1483_v22, %v11000_v52  ;;  %v10854_v33 = vunpack.i.l.bf16 %v19222_v55  ;;  %v10855_v30 = vunpack.i.h.bf16 %v19222_v55  ;;  %19223 = vst [vmem:[#allocation35_spill] sm:$0xff] %v14041_v62  ;;  %v9282_v21 = vld [vmem:[%s18977_s0 + $0x16a] sm:$0xff]  ;;  %v9281_v20 = vld [vmem:[%s18977_s0 + $0x15a] sm:$0xff]  ;;  %v9279_v1 = vld [vmem:[%s18977_s0 + $0x142] sm:$0xff] }
 0x11a   :  { %v1611_v29 = vpack.c.bf16 %v1547_v15, %v1547_v15  ;;  %v1612_v24 = vpack.c.bf16 %v1548_v27, %v1548_v27  ;;  %v10799_v37 = vunpack.i.l.bf16 %v19224_v54  ;;  %v14055_v31 = vsel %vm1467_vm1, %v13792_v48, %v10850_v13  ;;  %v9280_v48 = vld [vmem:[%s18977_s0 + $0x152] sm:$0xff]  ;;  %v9278_v55 = vld [vmem:[%s18977_s0 + $0x13a] sm:$0xff]  ;;  %v19228_v22 = vld [vmem:[#allocation56_spill] sm:$0xff] }
 0x11b   :  { %v10865_v18 = vunpack.i.h.bf16 %v19225_v40  ;;  %v10864_v7 = vunpack.i.l.bf16 %v19225_v40  ;;  %v10815_v61 = vunpack.i.h.bf16 %v19226_v8  ;;  %v10814_v6 = vunpack.i.l.bf16 %v19226_v8 }
 0x11c   :  { %1675 = vst [vmem:[#allocation2 + $0xa8] sm:$0xf] %v1611_v29  ;;  %11177 = vrot.lane.b32.xlu2 %v11176_v42, %s12640_s27  ;;  %v10880_v56 = vunpack.i.h.bf16 %v19227_v19  ;;  %v10879_v13 = vunpack.i.l.bf16 %v19227_v19  ;;  %v1489_v4 = vsel %vm1467_vm1, %v13784_v49, %v10855_v30  ;;  %v10870_v42 = vunpack.i.h.bf16 %v19228_v22 }
 0x11d   :  { %1676 = vst [vmem:[#allocation2 + $0xb4] sm:$0xf] %v1612_v24  ;;  %11172 = vrot.lane.b32.xlu1 %v11171_v63, %s12640_s27  ;;  %11167 = vrot.lane.b32.xlu0 %v11166_v32, %s12640_s27  ;;  %v1488_v24 = vsel %vm1467_vm1, %v13780_v45, %v10854_v33  ;;  %v10869_v63 = vunpack.i.l.bf16 %v19228_v22  ;;  %v11191_v29 = vpack.i.bf16 %v9283_v16, %v9282_v21 }
 0x11e   :  { %v11013_v52 = vpop.permute.xlu2 %11012  ;;  %v11186_v8 = vpack.i.bf16 %v9281_v20, %v9280_v48  ;;  %v11181_v19 = vpack.i.bf16 %v9279_v1, %v9278_v55  ;;  %v14096_v22 = vsel %vm1402_vm0, %v13631_v46, %v10799_v37  ;;  %v14100_v21 = vsel %vm1402_vm0, %v13649_v9, %v10800_v12  ;;  %v9288_v46 = vld [vmem:[%s18977_s0 + $0x1e2] sm:$0xff]  ;;  %v9289_v9 = vld [vmem:[%s18977_s0 + $0x1ea] sm:$0xff] }
 0x11f   :  { %v11015_v15 = vunpack.i.h.bf16 %v11013_v52  ;;  %v11014_v45 = vunpack.i.l.bf16 %v11013_v52  ;;  %v10963_v33 = vpop.permute.xlu1 %10962  ;;  %v14085_v27 = vpop.permute.xlu0 %10957  ;;  %v14104_v48 = vsel %vm1467_vm1, %v13860_v11, %v10864_v7  ;;  %v1473_v11 = vsel %vm1467_vm1, %v13667_v36, %v10815_v61  ;;  %v19229_v12 = vld [vmem:[#allocation36_spill] sm:$0xff] }
 0x120   :  { %v10965_v32 = vunpack.i.h.bf16 %v10963_v33  ;;  %v10964_v2 = vunpack.i.l.bf16 %v10963_v33  ;;  %v9286_v37 = vld [vmem:[%s18977_s0 + $0x1ca] sm:$0xff]  ;;  %v14134_v36 = vsel %vm1467_vm1, %v13881_v10, %v10880_v56  ;;  %v10885_v7 = vunpack.i.h.bf16 %v13635_v59 }
 0x121   :  { %v1553_v54 = vsel %vm1532_vm2, %v1488_v24, %v11014_v45  ;;  %v1554_v40 = vsel %vm1532_vm2, %v1489_v4, %v11015_v15  ;;  %v9285_v10 = vld [vmem:[%s18977_s0 + $0x18a] sm:$0xff]  ;;  %v11206_v1 = vpack.i.bf16 %v9289_v9, %v9288_v46  ;;  %v9293_v46 = vld [vmem:[%s18977_s0 + $0x21a] sm:$0xff] }
 0x122   :  { %v1617_v62 = vpack.c.bf16 %v1553_v54, %v1553_v54  ;;  %v1618_v49 = vpack.c.bf16 %v1554_v40, %v1554_v40  ;;  %v1533_v30 = vsel %vm1532_vm2, %v13947_v0, %v10964_v2  ;;  %v1534_v52 = vsel %vm1532_vm2, %v13951_v57, %v10965_v32  ;;  %v19230_v9 = vld [vmem:[#allocation41_spill] sm:$0xff] }
 0x123   :  { %v1597_v16 = vpack.c.bf16 %v1533_v30, %v1533_v30  ;;  %v1598_v24 = vpack.c.bf16 %v1534_v52, %v1534_v52  ;;  %v14108_v0 = vsel %vm1467_vm1, %v13867_v58, %v10865_v18  ;;  %v1472_v57 = vsel %vm1467_vm1, %v13663_v14, %v10814_v6  ;;  %v9287_v6 = vld [vmem:[%s18977_s0 + $0x1d2] sm:$0xff]  ;;  %v9294_v52 = vld [vmem:[%s18977_s0 + $0x22a] sm:$0xff] }
 0x124   :  { %1681 = vst [vmem:[#allocation2 + $0xf0] sm:$0xf] %v1617_v62  ;;  %11192 = vrot.lane.b32.xlu2 %v11191_v29, %s12640_s27  ;;  %v14123_v58 = vsel %vm1467_vm1, %v13877_v28, %v10879_v13  ;;  %v10830_v14 = vunpack.i.h.bf16 %v19229_v12  ;;  %v10829_v62 = vunpack.i.l.bf16 %v19229_v12  ;;  %v1494_v28 = vsel %vm1467_vm1, %v13811_v60, %v10869_v63  ;;  %v9284_v13 = vld [vmem:[%s18977_s0 + $0x182] sm:$0xff] }
 0x125   :  { %1682 = vst [vmem:[#allocation2 + $0xfc] sm:$0xf] %v1618_v49  ;;  %11187 = vrot.lane.b32.xlu1 %v11186_v8, %s12640_s27  ;;  %11182 = vrot.lane.b32.xlu0 %v11181_v19, %s12640_s27  ;;  %v1495_v18 = vsel %vm1467_vm1, %v13856_v34, %v10870_v42  ;;  %v10884_v60 = vunpack.i.l.bf16 %v13635_v59  ;;  %v11201_v32 = vpack.i.bf16 %v9287_v6, %v9286_v37  ;;  %v19231_v12 = vld [vmem:[#allocation44_spill] sm:$0xff] }
 0x126   :  { %1661 = vst [vmem:[#allocation2] sm:$0xf] %v1597_v16  ;;  %v11028_v61 = vpop.permute.xlu2 %11027  ;;  %v11196_v2 = vpack.i.bf16 %v9285_v10, %v9284_v13  ;;  %v9295_v16 = vld [vmem:[%s18977_s0 + $0x232] sm:$0xff]  ;;  %v10845_v37 = vunpack.i.h.bf16 %v19231_v12 }
 0x127   :  { %1662 = vst [vmem:[#allocation2 + $0xc] sm:$0xf] %v1598_v24  ;;  %v11030_v34 = vunpack.i.h.bf16 %v11028_v61  ;;  %v11029_v56 = vunpack.i.l.bf16 %v11028_v61  ;;  %v10978_v20 = vpop.permute.xlu1 %10977  ;;  %v10973_v55 = vpop.permute.xlu0 %10972  ;;  %v11221_v10 = vpack.i.bf16 %v9295_v16, %v9294_v52  ;;  %v19234_v16 = vld [vmem:[#allocation57_spill] sm:$0xff] }
 0x128   :  { %v10980_v4 = vunpack.i.h.bf16 %v10978_v20  ;;  %v10979_v42 = vunpack.i.l.bf16 %v10978_v20  ;;  %v10975_v15 = vunpack.i.h.bf16 %v10973_v55  ;;  %v10974_v45 = vunpack.i.l.bf16 %v10973_v55 }
 0x129   :  { %v1559_v33 = vsel %vm1532_vm2, %v1494_v28, %v11029_v56  ;;  %v1560_v63 = vsel %vm1532_vm2, %v1495_v18, %v11030_v34  ;;  %v1501_v28 = vsel %vm1467_vm1, %v13873_v35, %v10885_v7  ;;  %v19232_v18 = vld [vmem:[#allocation69_spill] sm:$0xff]  ;;  %v9290_v34 = vld [vmem:[%s18977_s0 + $0x1fa] sm:$0xff]  ;;  %v9291_v56 = vld [vmem:[%s18977_s0 + $0x202] sm:$0xff] }
 0x12a   :  { %v1623_v29 = vpack.c.bf16 %v1559_v33, %v1559_v33  ;;  %v1624_v54 = vpack.c.bf16 %v1560_v63, %v1560_v63  ;;  %v1539_v59 = vsel %vm1532_vm2, %v13977_v17, %v10979_v42  ;;  %v1540_v40 = vsel %vm1532_vm2, %v13981_v41, %v10980_v4 }
 0x12b   :  { %v1603_v8 = vpack.c.bf16 %v1539_v59, %v1539_v59  ;;  %v1604_v19 = vpack.c.bf16 %v1540_v40, %v1540_v40  ;;  %v1537_v49 = vsel %vm1532_vm2, %v1472_v57, %v10974_v45  ;;  %v1538_v30 = vsel %vm1532_vm2, %v1473_v11, %v10975_v15  ;;  %v9292_v57 = vld [vmem:[%s18977_s0 + $0x212] sm:$0xff] }
 0x12c   :  { %v1478_v17 = vsel %vm1467_vm1, %v13588_v3, %v10829_v62  ;;  %v1479_v41 = vsel %vm1467_vm1, %v13592_v39, %v10830_v14  ;;  %1687 = vst [vmem:[#allocation2 + $0x138] sm:$0xf] %v1623_v29  ;;  %v1601_v24 = vpack.c.bf16 %v1537_v49, %v1537_v49  ;;  %11207 = vrot.lane.b32.xlu2 %v11206_v1, %s12640_s27  ;;  %v10894_v11 = vunpack.i.l.bf16 %v19230_v9 }
 0x12d   :  { %v10844_v3 = vunpack.i.l.bf16 %v19231_v12  ;;  %1688 = vst [vmem:[#allocation2 + $0x144] sm:$0xf] %v1624_v54  ;;  %v1602_v39 = vpack.c.bf16 %v1538_v30, %v1538_v30  ;;  %11202 = vrot.lane.b32.xlu1 %v11201_v32, %s12640_s27  ;;  %11197 = vrot.lane.b32.xlu0 %v11196_v2, %s12640_s27  ;;  %v9512_v14 = vld [vmem:[#allocation2] sm:$0xf]  ;;  %v1500_v62 = vsel %vm1467_vm1, %v13870_v23, %v10884_v60  ;;  %v10900_v61 = vunpack.i.h.bf16 %v19232_v18  ;;  %v19233_v30 = vld [vmem:[#allocation13_spill] sm:$0xff] }
 0x12e   :  { %1667 = vst [vmem:[#allocation2 + $0x48] sm:$0xf] %v1603_v8  ;;  %v11043_v6 = vpop.permute.xlu2 %11042  ;;  %v10433_v13 = vld [vmem:[#allocation2 + $0x8] sm:$0xf0]  ;;  %v11216_v7 = vpack.i.bf16 %v9293_v46, %v9292_v57  ;;  %v10899_v45 = vunpack.i.l.bf16 %v19232_v18  ;;  %v11211_v32 = vpack.i.bf16 %v9291_v56, %v9290_v34  ;;  %v14203_v52 = vsel %vm1467_vm1, %v19233_v30, %v10894_v11  ;;  %v19236_v46 = vld [vmem:[#allocation51_spill] sm:$0xff]  ;;  %v19239_v18 = vld [vmem:[#allocation9_spill] sm:$0xff] }
 0x12f   :  { %1668 = vst [vmem:[#allocation2 + $0x54] sm:$0xf] %v1604_v19  ;;  %v11045_v20 = vunpack.i.h.bf16 %v11043_v6  ;;  %v11044_v23 = vunpack.i.l.bf16 %v11043_v6  ;;  %v10993_v60 = vpop.permute.xlu1 %10992  ;;  %v10988_v55 = vpop.permute.xlu0 %10987  ;;  %v9513_v35 = vor.u32 %v10433_v13, %v9512_v14  ;;  %v10860_v11 = vunpack.i.h.bf16 %v19236_v46  ;;  %v19237_v14 = vld [vmem:[#allocation10_spill] sm:$0xff]  ;;  %v9296_v34 = vld [vmem:[%s18977_s0 + $0x242] sm:$0xff]  ;;  %v9297_v56 = vld [vmem:[%s18977_s0 + $0x24a] sm:$0xff] }
 0x130   :  { %1665 = vst [vmem:[#allocation2 + $0x30] sm:$0xf] %v1601_v24  ;;  %v10995_v1 = vunpack.i.h.bf16 %v10993_v60  ;;  %v10994_v4 = vunpack.i.l.bf16 %v10993_v60  ;;  %v10990_v42 = vunpack.i.h.bf16 %v10988_v55  ;;  %v10989_v15 = vunpack.i.l.bf16 %v10988_v55 }
 0x131   :  { %1666 = vst [vmem:[#allocation2 + $0x3c] sm:$0xf] %v1602_v39  ;;  %v1565_v33 = vsel %vm1532_vm2, %v1500_v62, %v11044_v23  ;;  %v1566_v63 = vsel %vm1532_vm2, %v1501_v28, %v11045_v20  ;;  %3765 = vmatmul.bf16.vlgmr.msra.gmra.mxu0 %v9513_v35  ;;  %v1484_v24 = vsel %vm1467_vm1, %v19234_v16, %v10844_v3  ;;  %v9298_v3 = vld [vmem:[%s18977_s0 + $0x25a] sm:$0xff]  ;;  %v10859_v39 = vunpack.i.l.bf16 %v19236_v46  ;;  %v19238_v28 = vld [vmem:[#allocation12_spill] sm:$0xff] }
 0x132   :  { %v1629_v2 = vpack.c.bf16 %v1565_v33, %v1565_v33  ;;  %v1630_v29 = vpack.c.bf16 %v1566_v63, %v1566_v63  ;;  %v1545_v54 = vsel %vm1532_vm2, %v14028_v25, %v10994_v4  ;;  %v1546_v59 = vsel %vm1532_vm2, %v14032_v47, %v10995_v1  ;;  %v9300_v25 = vld [vmem:[%s18977_s0 + $0x272] sm:$0xff]  ;;  %v9301_v47 = vld [vmem:[%s18977_s0 + $0x27a] sm:$0xff] }
 0x133   :  { %v1609_v40 = vpack.c.bf16 %v1545_v54, %v1545_v54  ;;  %v1610_v8 = vpack.c.bf16 %v1546_v59, %v1546_v59  ;;  %v1543_v19 = vsel %vm1532_vm2, %v1478_v17, %v10989_v15  ;;  %v1544_v49 = vsel %vm1532_vm2, %v1479_v41, %v10990_v42  ;;  %v19235_v17 = vld [vmem:[#allocation58_spill] sm:$0xff] }
 0x134   :  { %1693 = vst [vmem:[#allocation2 + $0x180] sm:$0xf] %v1629_v2  ;;  %v1607_v57 = vpack.c.bf16 %v1543_v19, %v1543_v19  ;;  %11222 = vrot.lane.b32.xlu2 %v11221_v10, %s12640_s27  ;;  %v1485_v41 = vsel %vm1467_vm1, %v19235_v17, %v10845_v37  ;;  %v1608_v12 = vpack.c.bf16 %v1544_v49, %v1544_v49  ;;  %v10915_v6 = vunpack.i.h.bf16 %v19239_v18  ;;  %v9299_v10 = vld [vmem:[%s18977_s0 + $0x262] sm:$0xff]  ;;  %v19241_v46 = vld [vmem:[#allocation62_spill] sm:$0xff] }
 0x135   :  { %1694 = vst [vmem:[#allocation2 + $0x18c] sm:$0xf] %v1630_v29  ;;  %11217 = vrot.lane.b32.xlu1 %v11216_v7, %s12640_s27  ;;  %11212 = vrot.lane.b32.xlu0 %v11211_v32, %s12640_s27  ;;  %v1506_v62 = vsel %vm1467_vm1, %v19237_v14, %v10899_v45  ;;  %v1507_v37 = vsel %vm1467_vm1, %v19238_v28, %v10900_v61  ;;  %v10914_v20 = vunpack.i.l.bf16 %v19239_v18  ;;  %v10429_v32 = vld [vmem:[%s18979_s2 + $0x78] sm:$0xff]  ;;  %v9305_v14 = vld [vmem:[%s18977_s0 + $0x2aa] sm:$0xff] }
 0x136   :  { %1673 = vst [vmem:[#allocation2 + $0x90] sm:$0xf] %v1609_v40  ;;  %v11058_v13 = vpop.permute.xlu2 %11057  ;;  %v11236_v35 = vpack.i.bf16 %v9301_v47, %v9300_v25  ;;  %v11231_v33 = vpack.i.bf16 %v9299_v10, %v9298_v3  ;;  %v11226_v63 = vpack.i.bf16 %v9297_v56, %v9296_v34  ;;  %v9524_v40 = vld [vmem:[#allocation2 + $0x18] sm:$0xf]  ;;  %3926 = vmatpush.bf16.msrb.mxu1 %v10429_v32  ;;  %v19240_v47 = vld [vmem:[#allocation60_spill] sm:$0xff] }
 0x137   :  { %1674 = vst [vmem:[#allocation2 + $0x9c] sm:$0xf] %v1610_v8  ;;  %v11060_v61 = vunpack.i.h.bf16 %v11058_v13  ;;  %v11059_v23 = vunpack.i.l.bf16 %v11058_v13  ;;  %v11008_v60 = vpop.permute.xlu1 %11007  ;;  %v11003_v55 = vpop.permute.xlu0 %11002  ;;  %v10436_v8 = vld [vmem:[#allocation2 + $0x20] sm:$0xf0]  ;;  %v9306_v25 = vld [vmem:[%s18977_s0 + $0x2ba] sm:$0xff]  ;;  %v1490_v17 = vsel %vm1467_vm1, %v19240_v47, %v10859_v39  ;;  %v1513_v18 = vsel %vm1467_vm1, %v13959_v43, %v10915_v6  ;;  %v19243_v13 = vld [vmem:[#allocation28_spill] sm:$0xff] }
 0x138   :  { %1671 = vst [vmem:[#allocation2 + $0x78] sm:$0xf] %v1607_v57  ;;  %v11010_v7 = vunpack.i.h.bf16 %v11008_v60  ;;  %v11009_v1 = vunpack.i.l.bf16 %v11008_v60  ;;  %v11005_v4 = vunpack.i.h.bf16 %v11003_v55  ;;  %v11004_v42 = vunpack.i.l.bf16 %v11003_v55  ;;  %v9304_v3 = vld [vmem:[%s18977_s0 + $0x2a2] sm:$0xff] }
 0x139   :  { %1672 = vst [vmem:[#allocation2 + $0x84] sm:$0xf] %v1608_v12  ;;  %v1571_v15 = vsel %vm1532_vm2, %v1506_v62, %v11059_v23  ;;  %v1572_v45 = vsel %vm1532_vm2, %v1507_v37, %v11060_v61  ;;  %v1512_v37 = vsel %vm1467_vm1, %v13955_v50, %v10914_v20  ;;  %v10930_v10 = vunpack.i.h.bf16 %v19243_v13  ;;  %v9302_v61 = vld [vmem:[%s18977_s0 + $0x28a] sm:$0xff]  ;;  %v9303_v23 = vld [vmem:[%s18977_s0 + $0x292] sm:$0xff] }
 0x13a   :  { %v1635_v2 = vpack.c.bf16 %v1571_v15, %v1571_v15  ;;  %v1636_v29 = vpack.c.bf16 %v1572_v45, %v1572_v45  ;;  %v1551_v54 = vsel %vm1532_vm2, %v14045_v53, %v11009_v1  ;;  %v1552_v59 = vsel %vm1532_vm2, %v14055_v31, %v11010_v7  ;;  %v9307_v53 = vld [vmem:[%s18977_s0 + $0x2c2] sm:$0xff] }
 0x13b   :  { %v1615_v19 = vpack.c.bf16 %v1551_v54, %v1551_v54  ;;  %v1616_v49 = vpack.c.bf16 %v1552_v59, %v1552_v59  ;;  %v1549_v30 = vsel %vm1532_vm2, %v1484_v24, %v11004_v42  ;;  %v1550_v16 = vsel %vm1532_vm2, %v1485_v41, %v11005_v4  ;;  %v9704_v57 = vld [vmem:[#allocation2 + $0x180] sm:$0xf] }
 0x13c   :  { %v10895_v31 = vunpack.i.h.bf16 %v19230_v9  ;;  %v1491_v24 = vsel %vm1467_vm1, %v19241_v46, %v10860_v11  ;;  %1699 = vst [vmem:[#allocation2 + $0x1c8] sm:$0xf] %v1635_v2  ;;  %v1613_v41 = vpack.c.bf16 %v1549_v30, %v1549_v30  ;;  %11237 = vrot.lane.b32.xlu2 %v11236_v35, %s12640_s27  ;;  %v10481_v12 = vld [vmem:[#allocation2 + $0x188] sm:$0xf0]  ;;  %v19242_v9 = vld [vmem:[#allocation55_spill] sm:$0xff]  ;;  %v1614_v28 = vpack.c.bf16 %v1550_v16, %v1550_v16 }
 0x13d   :  { %v10875_v62 = vunpack.i.h.bf16 %v19242_v9  ;;  %v10874_v39 = vunpack.i.l.bf16 %v19242_v9  ;;  %1700 = vst [vmem:[#allocation2 + $0x1d4] sm:$0xf] %v1636_v29  ;;  %11232 = vrot.lane.b32.xlu1 %v11231_v33, %s12640_s27  ;;  %11227 = vrot.lane.b32.xlu0 %v11226_v63, %s12640_s27  ;;  %v9705_v11 = vor.u32 %v10481_v12, %v9704_v57  ;;  %v9525_v56 = vor.u32 %v10436_v8, %v9524_v40  ;;  %v19245_v16 = vld [vmem:[#allocation63_spill] sm:$0xff] }
 0x13e   :  { %1679 = vst [vmem:[#allocation2 + $0xd8] sm:$0xf] %v1615_v19  ;;  %v11073_v34 = vpop.permute.xlu2 %11072  ;;  %v11251_v43 = vpack.i.bf16 %v9307_v53, %v9306_v25  ;;  %v11246_v6 = vpack.i.bf16 %v9305_v14, %v9304_v3  ;;  %v10929_v42 = vunpack.i.l.bf16 %v19243_v13  ;;  %v11241_v33 = vpack.i.bf16 %v9303_v23, %v9302_v61  ;;  %v19244_v19 = vld [vmem:[#allocation7_spill] sm:$0xff]  ;;  %v9313_v25 = vld [vmem:[%s18977_s0 + $0x30a] sm:$0xff] }
 0x13f   :  { %1680 = vst [vmem:[#allocation2 + $0xe4] sm:$0xf] %v1616_v49  ;;  %v11075_v60 = vunpack.i.h.bf16 %v11073_v34  ;;  %v11074_v55 = vunpack.i.l.bf16 %v11073_v34  ;;  %v11023_v50 = vpop.permute.xlu1 %11022  ;;  %v11018_v20 = vpop.permute.xlu0 %11017  ;;  %3845 = vmatmul.bf16.vlgmr.msra.gmra.mxu1 %v9705_v11  ;;  %v10760_v49 = vunpack.i.h.bf16 %v19244_v19  ;;  %v14294_v30 = vsel %vm1467_vm1, %v13942_v5, %v10895_v31  ;;  %v19246_v53 = vld [vmem:[#allocation19_spill] sm:$0xff]  ;;  %v19248_v31 = vld [vmem:[#allocation61_spill] sm:$0xff] }
 0x140   :  { %1677 = vst [vmem:[#allocation2 + $0xc0] sm:$0xf] %v1613_v41  ;;  %v11025_v35 = vunpack.i.h.bf16 %v11023_v50  ;;  %v11024_v7 = vunpack.i.l.bf16 %v11023_v50  ;;  %v11020_v1 = vunpack.i.h.bf16 %v11018_v20  ;;  %v11019_v4 = vunpack.i.l.bf16 %v11018_v20  ;;  %v9310_v41 = vld [vmem:[%s18977_s0 + $0x2ea] sm:$0xff]  ;;  %v9309_v11 = vld [vmem:[%s18977_s0 + $0x2da] sm:$0xff] }
 0x141   :  { %1678 = vst [vmem:[#allocation2 + $0xcc] sm:$0xf] %v1614_v28  ;;  %v1577_v15 = vsel %vm1532_vm2, %v1512_v37, %v11074_v55  ;;  %v1578_v45 = vsel %vm1532_vm2, %v1513_v18, %v11075_v60  ;;  %3770 = vmatmul.bf16.gmra.mxu0 %v9525_v56  ;;  %v1496_v57 = vsel %vm1467_vm1, %v19245_v16, %v10874_v39  ;;  %v10765_v47 = vunpack.i.h.bf16 %v19246_v53  ;;  %v9311_v39 = vld [vmem:[%s18977_s0 + $0x2f2] sm:$0xff] }
 0x142   :  { %v1641_v63 = vpack.c.bf16 %v1577_v15, %v1577_v15  ;;  %v1642_v32 = vpack.c.bf16 %v1578_v45, %v1578_v45  ;;  %v1557_v2 = vsel %vm1532_vm2, %v14104_v48, %v11024_v7  ;;  %v1558_v29 = vsel %vm1532_vm2, %v14108_v0, %v11025_v35  ;;  %v9312_v0 = vld [vmem:[%s18977_s0 + $0x302] sm:$0xff]  ;;  %v9308_v28 = vld [vmem:[%s18977_s0 + $0x2d2] sm:$0xff] }
 0x143   :  { %v1621_v54 = vpack.c.bf16 %v1557_v2, %v1557_v2  ;;  %v1622_v59 = vpack.c.bf16 %v1558_v29, %v1558_v29  ;;  %v1555_v40 = vsel %vm1532_vm2, %v1490_v17, %v11019_v4  ;;  %v1556_v8 = vsel %vm1532_vm2, %v1491_v24, %v11020_v1  ;;  %v19247_v17 = vld [vmem:[#allocation64_spill] sm:$0xff]  ;;  %v9536_v15 = vld [vmem:[#allocation2 + $0x30] sm:$0xf] }
 0x144   :  { %1705 = vst [vmem:[#allocation2 + $0x210] sm:$0xf] %v1641_v63  ;;  %v1619_v48 = vpack.c.bf16 %v1555_v40, %v1555_v40  ;;  %11252 = vrot.lane.b32.xlu2 %v11251_v43, %s12640_s27  ;;  %v1497_v5 = vsel %vm1467_vm1, %v19247_v17, %v10875_v62  ;;  %v10890_v46 = vunpack.i.h.bf16 %v19248_v31  ;;  %v1620_v24 = vpack.c.bf16 %v1556_v8, %v1556_v8  ;;  %v9318_v45 = vld [vmem:[%s18977_s0 + $0x30] sm:$0xff]  ;;  %v9317_v40 = vld [vmem:[%s18977_s0 + $0x33a] sm:$0xff] }
 0x145   :  { %1706 = vst [vmem:[#allocation2 + $0x21c] sm:$0xf] %v1642_v32  ;;  %11247 = vrot.lane.b32.xlu1 %v11246_v6, %s12640_s27  ;;  %11242 = vrot.lane.b32.xlu0 %v11241_v33, %s12640_s27  ;;  %v10889_v12 = vunpack.i.l.bf16 %v19248_v31  ;;  %v1518_v3 = vsel %vm1467_vm1, %v13994_v44, %v10929_v42  ;;  %v1519_v14 = vsel %vm1467_vm1, %v14023_v51, %v10930_v10  ;;  %v10945_v9 = vunpack.i.h.bf16 %v14012_v26  ;;  %v9319_v33 = vld [vmem:[%s18977_s0 + $0x38] sm:$0xff]  ;;  %v19249_v63 = vld [vmem:[#allocation49_spill] sm:$0xff] }
 0x146   :  { %1685 = vst [vmem:[#allocation2 + $0x120] sm:$0xf] %v1621_v54  ;;  %v11088_v62 = vpop.permute.xlu2 %11087  ;;  %v10944_v44 = vunpack.i.l.bf16 %v14012_v26  ;;  %v11266_v10 = vpack.i.bf16 %v9313_v25, %v9312_v0  ;;  %v11261_v50 = vpack.i.bf16 %v9311_v39, %v9310_v41  ;;  %v11256_v20 = vpack.i.bf16 %v9309_v11, %v9308_v28  ;;  %v10439_v54 = vld [vmem:[#allocation2 + $0x38] sm:$0xf0]  ;;  %v12563_v19 = vld [vmem:[%s18977_s0 + $0x270] sm:$0xff] }
 0x147   :  { %1686 = vst [vmem:[#allocation2 + $0x12c] sm:$0xf] %v1622_v59  ;;  %v11090_v51 = vunpack.i.h.bf16 %v11088_v62  ;;  %v11089_v37 = vunpack.i.l.bf16 %v11088_v62  ;;  %v11038_v18 = vpop.permute.xlu1 %11037  ;;  %v11033_v13 = vpop.permute.xlu0 %11032  ;;  %v10909_v32 = vunpack.i.l.bf16 %v19249_v63  ;;  %v9316_v59 = vld [vmem:[%s18977_s0 + $0x332] sm:$0xff]  ;;  %v11281_v41 = vpack.i.bf16 %v9319_v33, %v9318_v45 }
 0x148   :  { %1683 = vst [vmem:[#allocation2 + $0x108] sm:$0xf] %v1619_v48  ;;  %v11040_v34 = vunpack.i.h.bf16 %v11038_v18  ;;  %v11039_v56 = vunpack.i.l.bf16 %v11038_v18  ;;  %v11035_v61 = vunpack.i.h.bf16 %v11033_v13  ;;  %v11034_v23 = vunpack.i.l.bf16 %v11033_v13  ;;  %v19251_v8 = vld [vmem:[#allocation66_spill] sm:$0xff] }
 0x149   :  { %1684 = vst [vmem:[#allocation2 + $0x114] sm:$0xf] %v1620_v24  ;;  %v1583_v60 = vsel %vm1532_vm2, %v1518_v3, %v11089_v37  ;;  %v1584_v55 = vsel %vm1532_vm2, %v1519_v14, %v11090_v51  ;;  %v1503_v16 = vsel %vm1467_vm1, %v19251_v8, %v10890_v46  ;;  %v1524_v17 = vsel %vm1467_vm1, %v14036_v38, %v10944_v44  ;;  %v9315_v3 = vld [vmem:[%s18977_s0 + $0x322] sm:$0xff]  ;;  %v19257_v45 = vld [vmem:[#allocation70_spill] sm:$0xff] }
 0x14a   :  { %v1647_v43 = vpack.c.bf16 %v1583_v60, %v1583_v60  ;;  %v1648_v26 = vpack.c.bf16 %v1584_v55, %v1584_v55  ;;  %v1563_v6 = vsel %vm1532_vm2, %v14123_v58, %v11039_v56  ;;  %v1564_v35 = vsel %vm1532_vm2, %v14134_v36, %v11040_v34  ;;  %v19250_v36 = vld [vmem:[#allocation65_spill] sm:$0xff]  ;;  %v9323_v8 = vld [vmem:[%s18977_s0 + $0x68] sm:$0xff] }
 0x14b   :  { %v1627_v7 = vpack.c.bf16 %v1563_v6, %v1563_v6  ;;  %v1628_v1 = vpack.c.bf16 %v1564_v35, %v1564_v35  ;;  %v1561_v4 = vsel %vm1532_vm2, %v1496_v57, %v11034_v23  ;;  %v1562_v42 = vsel %vm1532_vm2, %v1497_v5, %v11035_v61  ;;  %v19252_v57 = vld [vmem:[#allocation68_spill] sm:$0xff]  ;;  %v19253_v5 = vld [vmem:[#allocation35_spill] sm:$0xff] }
 0x14c   :  { %v10910_v58 = vunpack.i.h.bf16 %v19249_v63  ;;  %v1502_v2 = vsel %vm1467_vm1, %v19250_v36, %v10889_v12  ;;  %1711 = vst [vmem:[#allocation2 + $0x258] sm:$0xf] %v1647_v43  ;;  %v1625_v29 = vpack.c.bf16 %v1561_v4, %v1561_v4  ;;  %11267 = vrot.lane.b32.xlu2 %v11266_v10, %s12640_s27  ;;  %v10905_v48 = vunpack.i.h.bf16 %v19252_v57  ;;  %v9314_v12 = vld [vmem:[%s18977_s0 + $0x31a] sm:$0xff]  ;;  %v19255_v35 = vld [vmem:[#allocation32_spill] sm:$0xff] }
 0x14d   :  { %v10904_v0 = vunpack.i.l.bf16 %v19252_v57  ;;  %1712 = vst [vmem:[#allocation2 + $0x264] sm:$0xf] %v1648_v26  ;;  %v1626_v25 = vpack.c.bf16 %v1562_v42, %v1562_v42  ;;  %11262 = vrot.lane.b32.xlu1 %v11261_v50, %s12640_s27  ;;  %11257 = vrot.lane.b32.xlu0 %v11256_v20, %s12640_s27  ;;  %v1525_v31 = vsel %vm1467_vm1, %v19253_v5, %v10945_v9  ;;  %v10960_v24 = vunpack.i.h.bf16 %v14085_v27  ;;  %v19254_v26 = vld [vmem:[#allocation29_spill] sm:$0xff]  ;;  %v19256_v4 = vld [vmem:[#allocation54_spill] sm:$0xff] }
 0x14e   :  { %1691 = vst [vmem:[#allocation2 + $0x168] sm:$0xf] %v1627_v7  ;;  %v11103_v46 = vpop.permute.xlu2 %11102  ;;  %v9537_v28 = vor.u32 %v10439_v54, %v9536_v15  ;;  %v11276_v9 = vpack.i.bf16 %v9317_v40, %v9316_v59  ;;  %v10959_v18 = vunpack.i.l.bf16 %v14085_v27  ;;  %v11271_v34 = vpack.i.bf16 %v9315_v3, %v9314_v12  ;;  %v9321_v57 = vld [vmem:[%s18977_s0 + $0x50] sm:$0xff] }
 0x14f   :  { %1692 = vst [vmem:[#allocation2 + $0x174] sm:$0xf] %v1628_v1  ;;  %v11105_v14 = vunpack.i.h.bf16 %v11103_v46  ;;  %v11104_v62 = vunpack.i.l.bf16 %v11103_v46  ;;  %v11053_v38 = vpop.permute.xlu1 %11052  ;;  %v11048_v39 = vpop.permute.xlu0 %11047  ;;  %v10764_v43 = vunpack.i.l.bf16 %v19246_v53  ;;  %v1510_v6 = vsel %vm1467_vm1, %v19254_v26, %v10909_v32  ;;  %v19258_v32 = vld [vmem:[#allocation71_spill] sm:$0xff]  ;;  %v10428_v3 = vld [vmem:[%s18979_s2 + $0x70] sm:$0xff] }
 0x150   :  { %1689 = vst [vmem:[#allocation2 + $0x150] sm:$0xf] %v1625_v29  ;;  %v11055_v11 = vunpack.i.h.bf16 %v11053_v38  ;;  %v11054_v44 = vunpack.i.l.bf16 %v11053_v38  ;;  %v11050_v51 = vunpack.i.h.bf16 %v11048_v39  ;;  %v11049_v37 = vunpack.i.l.bf16 %v11048_v39  ;;  %3927 = vmatpush.bf16.msrb.mxu1 %v10428_v3  ;;  %v12565_v3 = vld [vmem:[%s18977_s0 + $0x2a0] sm:$0xff] }
 0x151   :  { %1690 = vst [vmem:[#allocation2 + $0x15c] sm:$0xf] %v1626_v25  ;;  %v1589_v13 = vsel %vm1532_vm2, %v1524_v17, %v11104_v62  ;;  %v1590_v10 = vsel %vm1532_vm2, %v1525_v31, %v11105_v14  ;;  %3775 = vmatmul.bf16.gmra.mxu0 %v9537_v28  ;;  %v1511_v7 = vsel %vm1467_vm1, %v19255_v35, %v10910_v58  ;;  %v10925_v42 = vunpack.i.h.bf16 %v19256_v4  ;;  %v9322_v58 = vld [vmem:[%s18977_s0 + $0x60] sm:$0xff]  ;;  %v19261_v35 = vld [vmem:[#allocation22_spill] sm:$0xff] }
 0x152   :  { %v1653_v56 = vpack.c.bf16 %v1589_v13, %v1589_v13  ;;  %v1654_v61 = vpack.c.bf16 %v1590_v10, %v1590_v10  ;;  %v1569_v23 = vsel %vm1532_vm2, %v14203_v52, %v11054_v44  ;;  %v1570_v60 = vsel %vm1532_vm2, %v14294_v30, %v11055_v11  ;;  %v9324_v52 = vld [vmem:[%s18977_s0 + $0x78] sm:$0xff]  ;;  %v9325_v30 = vld [vmem:[%s18977_s0 + $0x80] sm:$0xff] }
 0x153   :  { %v1633_v55 = vpack.c.bf16 %v1569_v23, %v1569_v23  ;;  %v1634_v50 = vpack.c.bf16 %v1570_v60, %v1570_v60  ;;  %v1567_v20 = vsel %vm1532_vm2, %v1502_v2, %v11049_v37  ;;  %v1568_v27 = vsel %vm1532_vm2, %v1503_v16, %v11050_v51  ;;  %v19259_v2 = vld [vmem:[#allocation24_spill] sm:$0xff]  ;;  %v12562_v13 = vld [vmem:[%s18977_s0 + $0x260] sm:$0xff]  ;;  %v10442_v60 = vld [vmem:[#allocation2 + $0x50] sm:$0xf0] }
 0x154   :  { %1717 = vst [vmem:[#allocation2 + $0x2a0] sm:$0xf] %v1653_v56  ;;  %v1631_v1 = vpack.c.bf16 %v1567_v20, %v1567_v20  ;;  %11282 = vrot.lane.b32.xlu2 %v11281_v41, %s12641_s22  ;;  %v10924_v15 = vunpack.i.l.bf16 %v19256_v4  ;;  %v1508_v33 = vsel %vm1467_vm1, %v19257_v45, %v10904_v0  ;;  %v1632_v63 = vpack.c.bf16 %v1568_v27, %v1568_v27  ;;  %v9320_v16 = vld [vmem:[%s18977_s0 + $0x48] sm:$0xff]  ;;  %v12564_v20 = vld [vmem:[%s18977_s0 + $0x278] sm:$0xff] }
 0x155   :  { %1718 = vst [vmem:[#allocation2 + $0x2ac] sm:$0xf] %v1654_v61  ;;  %11277 = vrot.lane.b32.xlu1 %v11276_v9, %s12640_s27  ;;  %11272 = vrot.lane.b32.xlu0 %v11271_v34, %s12640_s27  ;;  %v1509_v36 = vsel %vm1467_vm1, %v19258_v32, %v10905_v48  ;;  %v10920_v29 = vunpack.i.h.bf16 %v19259_v2  ;;  %v10919_v54 = vunpack.i.l.bf16 %v19259_v2  ;;  %v1530_v59 = vsel %vm1467_vm1, %v14096_v22, %v10959_v18  ;;  %v9548_v18 = vld [vmem:[#allocation2 + $0x48] sm:$0xf]  ;;  %v9327_v45 = vld [vmem:[%s18977_s0 + $0x98] sm:$0xff] }
 0x156   :  { %1697 = vst [vmem:[#allocation2 + $0x1b0] sm:$0xf] %v1633_v55  ;;  %v11118_v40 = vpop.permute.xlu2 %11117  ;;  %v1531_v48 = vsel %vm1467_vm1, %v14100_v21, %v10960_v24  ;;  %v11296_v5 = vpack.i.bf16 %v9325_v30, %v9324_v52  ;;  %v11291_v24 = vpack.i.bf16 %v9323_v8, %v9322_v58  ;;  %v11286_v62 = vpack.i.bf16 %v9321_v57, %v9320_v16  ;;  %v19260_v34 = vld [vmem:[#allocation8_spill] sm:$0xff]  ;;  %v9330_v55 = vld [vmem:[%s18977_s0 + $0xc0] sm:$0xff]  ;;  %v9329_v52 = vld [vmem:[%s18977_s0 + $0xb0] sm:$0xff] }
 0x157   :  { %1698 = vst [vmem:[#allocation2 + $0x1bc] sm:$0xf] %v1634_v50  ;;  %v11120_v0 = vunpack.i.h.bf16 %v11118_v40  ;;  %v11119_v22 = vunpack.i.l.bf16 %v11118_v40  ;;  %v11068_v25 = vpop.permute.xlu1 %11067  ;;  %v11063_v17 = vpop.permute.xlu0 %11062  ;;  %v1450_v10 = vsel %vm1402_vm0, %v12562_v13, %v10760_v49  ;;  %v10775_v56 = vunpack.i.h.bf16 %v19260_v34  ;;  %v9331_v50 = vld [vmem:[%s18977_s0 + $0xc8] sm:$0xff]  ;;  %v9326_v30 = vld [vmem:[%s18977_s0 + $0x90] sm:$0xff]  ;;  %v19262_v4 = vld [vmem:[#allocation42_spill] sm:$0xff] }
 0x158   :  { %1695 = vst [vmem:[#allocation2 + $0x198] sm:$0xf] %v1631_v1  ;;  %v11070_v31 = vunpack.i.h.bf16 %v11068_v25  ;;  %v11069_v46 = vunpack.i.l.bf16 %v11068_v25  ;;  %v11065_v41 = vunpack.i.h.bf16 %v11063_v17  ;;  %v11064_v12 = vunpack.i.l.bf16 %v11063_v17 }
 0x159   :  { %1696 = vst [vmem:[#allocation2 + $0x1a4] sm:$0xf] %v1632_v63  ;;  %v1595_v14 = vsel %vm1532_vm2, %v1530_v59, %v11119_v22  ;;  %v1596_v21 = vsel %vm1532_vm2, %v1531_v48, %v11120_v0  ;;  %v10774_v61 = vunpack.i.l.bf16 %v19260_v34  ;;  %v1451_v49 = vsel %vm1402_vm0, %v12563_v19, %v10764_v43  ;;  %v19263_v48 = vld [vmem:[#allocation59_spill] sm:$0xff]  ;;  %v9335_v19 = vld [vmem:[%s18977_s0 + $0xf8] sm:$0xff] }
 0x15a   :  { %v1659_v38 = vpack.c.bf16 %v1595_v14, %v1595_v14  ;;  %v1660_v39 = vpack.c.bf16 %v1596_v21, %v1596_v21  ;;  %v1575_v28 = vsel %vm1532_vm2, %v1510_v6, %v11069_v46  ;;  %v1576_v9 = vsel %vm1532_vm2, %v1511_v7, %v11070_v31  ;;  %v9328_v6 = vld [vmem:[%s18977_s0 + $0xa8] sm:$0xff]  ;;  %v12568_v34 = vld [vmem:[%s18977_s0 + $0x2c0] sm:$0xff] }
 0x15b   :  { %v1639_v11 = vpack.c.bf16 %v1575_v28, %v1575_v28  ;;  %v1640_v44 = vpack.c.bf16 %v1576_v9, %v1576_v9  ;;  %v1573_v51 = vsel %vm1532_vm2, %v1508_v33, %v11064_v12  ;;  %v1574_v37 = vsel %vm1532_vm2, %v1509_v36, %v11065_v41  ;;  %v12566_v21 = vld [vmem:[%s18977_s0 + $0x2a8] sm:$0xff]  ;;  %v9337_v9 = vld [vmem:[%s18977_s0 + $0x110] sm:$0xff] }
 0x15c   :  { %1723 = vst [vmem:[#allocation2 + $0x2e8] sm:$0xf] %v1659_v38  ;;  %v1637_v23 = vpack.c.bf16 %v1573_v51, %v1573_v51  ;;  %11297 = vrot.lane.b32.xlu2 %v11296_v5, %s12641_s22  ;;  %v1452_v27 = vsel %vm1402_vm0, %v12564_v20, %v10765_v47  ;;  %v1638_v26 = vpack.c.bf16 %v1574_v37, %v1574_v37  ;;  %v10780_v43 = vunpack.i.h.bf16 %v19261_v35  ;;  %v9336_v28 = vld [vmem:[%s18977_s0 + $0x108] sm:$0xff]  ;;  %v19265_v37 = vld [vmem:[#allocation27_spill] sm:$0xff] }
 0x15d   :  { %1724 = vst [vmem:[#allocation2 + $0x2f4] sm:$0xf] %v1660_v39  ;;  %11292 = vrot.lane.b32.xlu1 %v11291_v24, %s12641_s22  ;;  %11287 = vrot.lane.b32.xlu0 %v11286_v62, %s12641_s22  ;;  %v10779_v7 = vunpack.i.l.bf16 %v19261_v35  ;;  %v1516_v53 = vsel %vm1467_vm1, %v1451_v49, %v10924_v15  ;;  %v1517_v47 = vsel %vm1467_vm1, %v1452_v27, %v10925_v42  ;;  %v10939_v0 = vunpack.i.l.bf16 %v19263_v48  ;;  %v19264_v62 = vld [vmem:[#allocation11_spill] sm:$0xff]  ;;  %v9332_v49 = vld [vmem:[%s18977_s0 + $0xd8] sm:$0xff] }
 0x15e   :  { %1703 = vst [vmem:[#allocation2 + $0x1f8] sm:$0xf] %v1639_v11  ;;  %v14468_v1 = vpop.permute.xlu2 %11132  ;;  %v1514_v42 = vsel %vm1467_vm1, %v19262_v4, %v10919_v54  ;;  %v1515_v15 = vsel %vm1467_vm1, %v1450_v10, %v10920_v29  ;;  %v9549_v58 = vor.u32 %v10442_v60, %v9548_v18  ;;  %v11311_v36 = vpack.i.bf16 %v9331_v50, %v9330_v55  ;;  %v9334_v10 = vld [vmem:[%s18977_s0 + $0xf0] sm:$0xff]  ;;  %v9333_v20 = vld [vmem:[%s18977_s0 + $0xe0] sm:$0xff] }
 0x15f   :  { %1704 = vst [vmem:[#allocation2 + $0x204] sm:$0xf] %v1640_v44  ;;  %v11083_v33 = vpop.permute.xlu1 %11082  ;;  %v11078_v63 = vpop.permute.xlu0 %11077  ;;  %v9716_v32 = vld [vmem:[#allocation2 + $0x198] sm:$0xf]  ;;  %v11306_v2 = vpack.i.bf16 %v9329_v52, %v9328_v6  ;;  %v11301_v22 = vpack.i.bf16 %v9327_v45, %v9326_v30  ;;  %v10940_v31 = vunpack.i.h.bf16 %v19263_v48  ;;  %v1455_v14 = vsel %vm1402_vm0, %v12565_v3, %v10774_v61  ;;  %v9560_v48 = vld [vmem:[#allocation2 + $0x60] sm:$0xf] }
 0x160   :  { %1701 = vst [vmem:[#allocation2 + $0x1e0] sm:$0xf] %v1637_v23  ;;  %v11085_v59 = vunpack.i.h.bf16 %v11083_v33  ;;  %v11084_v40 = vunpack.i.l.bf16 %v11083_v33  ;;  %v11080_v8 = vunpack.i.h.bf16 %v11078_v63  ;;  %v11079_v16 = vunpack.i.l.bf16 %v11078_v63  ;;  %v10484_v57 = vld [vmem:[#allocation2 + $0x1a0] sm:$0xf0]  ;;  %v12567_v44 = vld [vmem:[%s18977_s0 + $0x2b8] sm:$0xff] }
 0x161   :  { %1702 = vst [vmem:[#allocation2 + $0x1ec] sm:$0xf] %v1638_v26  ;;  %3780 = vmatmul.bf16.gmra.mxu0 %v9549_v58  ;;  %v9717_v54 = vor.u32 %v10484_v57, %v9716_v32  ;;  %v1456_v24 = vsel %vm1402_vm0, %v12566_v21, %v10775_v56  ;;  %v10790_v38 = vunpack.i.h.bf16 %v19264_v62  ;;  %v10789_v11 = vunpack.i.l.bf16 %v19264_v62  ;;  %v19266_v61 = vld [vmem:[#allocation26_spill] sm:$0xff]  ;;  %v19267_v26 = vld [vmem:[#allocation67_spill] sm:$0xff] }
 0x162   :  { %v1581_v29 = vsel %vm1532_vm2, %v1516_v53, %v11084_v40  ;;  %v1582_v25 = vsel %vm1532_vm2, %v1517_v47, %v11085_v59  ;;  %v1579_v17 = vsel %vm1532_vm2, %v1514_v42, %v11079_v16  ;;  %v1580_v5 = vsel %vm1532_vm2, %v1515_v15, %v11080_v8  ;;  %v19268_v59 = vld [vmem:[#allocation33_spill] sm:$0xff] }
 0x163   :  { %v1645_v46 = vpack.c.bf16 %v1581_v29, %v1581_v29  ;;  %v1646_v41 = vpack.c.bf16 %v1582_v25, %v1582_v25  ;;  %v1643_v12 = vpack.c.bf16 %v1579_v17, %v1579_v17  ;;  %3850 = vmatmul.bf16.gmra.mxu1 %v9717_v54  ;;  %v1644_v39 = vpack.c.bf16 %v1580_v5, %v1580_v5  ;;  %v9342_v54 = vld [vmem:[%s18977_s0 + $0x150] sm:$0xff]  ;;  %v9340_v29 = vld [vmem:[%s18977_s0 + $0x138] sm:$0xff]  ;;  %v9341_v25 = vld [vmem:[%s18977_s0 + $0x140] sm:$0xff] }
 0x164   :  { %11312 = vrot.lane.b32.xlu2 %v11311_v36, %s12641_s22  ;;  %v1457_v51 = vsel %vm1402_vm0, %v12567_v44, %v10779_v7  ;;  %v10935_v18 = vunpack.i.h.bf16 %v19265_v37  ;;  %v10934_v13 = vunpack.i.l.bf16 %v19265_v37  ;;  %v1458_v56 = vsel %vm1402_vm0, %v12568_v34, %v10780_v43  ;;  %v12569_v17 = vld [vmem:[%s18977_s0 + $0x300] sm:$0xff]  ;;  %v10487_v44 = vld [vmem:[#allocation2 + $0x1b8] sm:$0xf0] }
 0x165   :  { %1709 = vst [vmem:[#allocation2 + $0x240] sm:$0xf] %v1645_v46  ;;  %11307 = vrot.lane.b32.xlu1 %v11306_v2, %s12641_s22  ;;  %11302 = vrot.lane.b32.xlu0 %v11301_v22, %s12641_s22  ;;  %v10795_v23 = vunpack.i.h.bf16 %v19266_v61  ;;  %v10794_v60 = vunpack.i.l.bf16 %v19266_v61  ;;  %v1522_v55 = vsel %vm1467_vm1, %v1457_v51, %v10939_v0  ;;  %v1523_v27 = vsel %vm1467_vm1, %v1458_v56, %v10940_v31  ;;  %v10445_v0 = vld [vmem:[#allocation2 + $0x68] sm:$0xf0]  ;;  %v9343_v22 = vld [vmem:[%s18977_s0 + $0x158] sm:$0xff]  ;;  %v9338_v46 = vld [vmem:[%s18977_s0 + $0x120] sm:$0xff] }
 0x166   :  { %1710 = vst [vmem:[#allocation2 + $0x24c] sm:$0xf] %v1646_v41  ;;  %v14527_v50 = vpop.permute.xlu2 %11147  ;;  %v10955_v6 = vunpack.i.h.bf16 %v19267_v26  ;;  %v10954_v35 = vunpack.i.l.bf16 %v19267_v26  ;;  %v11326_v53 = vpack.i.bf16 %v9337_v9, %v9336_v28  ;;  %v1520_v4 = vsel %vm1467_vm1, %v1455_v14, %v10934_v13  ;;  %v9339_v41 = vld [vmem:[%s18977_s0 + $0x128] sm:$0xff]  ;;  %v12571_v14 = vld [vmem:[%s18977_s0 + $0x2f0] sm:$0xff] }
 0x167   :  { %1707 = vst [vmem:[#allocation2 + $0x228] sm:$0xf] %v1643_v12  ;;  %v11098_v43 = vpop.permute.xlu1 %11097  ;;  %v11093_v7 = vpop.permute.xlu0 %11092  ;;  %v1521_v42 = vsel %vm1467_vm1, %v1456_v24, %v10935_v18  ;;  %v11321_v15 = vpack.i.bf16 %v9335_v19, %v9334_v10  ;;  %v11316_v33 = vpack.i.bf16 %v9333_v20, %v9332_v49  ;;  %v10949_v40 = vunpack.i.l.bf16 %v19268_v59  ;;  %v12570_v12 = vld [vmem:[%s18977_s0 + $0x2e8] sm:$0xff] }
 0x168   :  { %1708 = vst [vmem:[#allocation2 + $0x234] sm:$0xf] %v1644_v39  ;;  %v11100_v47 = vunpack.i.h.bf16 %v11098_v43  ;;  %v11099_v52 = vunpack.i.l.bf16 %v11098_v43  ;;  %v11095_v30 = vunpack.i.h.bf16 %v11093_v7  ;;  %v11094_v45 = vunpack.i.l.bf16 %v11093_v7  ;;  %v12572_v24 = vld [vmem:[%s18977_s0 + $0x308] sm:$0xff] }
 0x169   :  { %v1463_v5 = vsel %vm1402_vm0, %v12569_v17, %v10794_v60  ;;  %v10950_v31 = vunpack.i.h.bf16 %v19268_v59  ;;  %v1461_v3 = vsel %vm1402_vm0, %v12570_v12, %v10789_v11  ;;  %v1462_v21 = vsel %vm1402_vm0, %v12571_v14, %v10790_v38  ;;  %v9728_v11 = vld [vmem:[#allocation2 + $0x1b0] sm:$0xf]  ;;  %v10427_v7 = vld [vmem:[%s18979_s2 + $0x68] sm:$0xff]  ;;  %v9572_v59 = vld [vmem:[#allocation2 + $0x78] sm:$0xf] }
 0x16a   :  { %v1587_v63 = vsel %vm1532_vm2, %v1522_v55, %v11099_v52  ;;  %v1588_v58 = vsel %vm1532_vm2, %v1523_v27, %v11100_v47  ;;  %v1585_v32 = vsel %vm1532_vm2, %v1520_v4, %v11094_v45  ;;  %v1586_v36 = vsel %vm1532_vm2, %v1521_v42, %v11095_v30  ;;  %v9348_v47 = vld [vmem:[%s18977_s0 + $0x198] sm:$0xff]  ;;  %v9349_v52 = vld [vmem:[%s18977_s0 + $0x1a0] sm:$0xff]  ;;  %v9347_v4 = vld [vmem:[%s18977_s0 + $0x188] sm:$0xff]  ;;  %3928 = vmatpush.bf16.msrb.mxu1 %v10427_v7 }
 0x16b   :  { %v1651_v8 = vpack.c.bf16 %v1587_v63, %v1587_v63  ;;  %v1652_v16 = vpack.c.bf16 %v1588_v58, %v1588_v58  ;;  %v1649_v57 = vpack.c.bf16 %v1585_v32, %v1585_v32  ;;  %v1650_v2 = vpack.c.bf16 %v1586_v36, %v1586_v36  ;;  %v9346_v30 = vld [vmem:[%s18977_s0 + $0x180] sm:$0xff]  ;;  %v9344_v42 = vld [vmem:[%s18977_s0 + $0x168] sm:$0xff] }
 0x16c   :  { %11327 = vrot.lane.b32.xlu2 %v11326_v53, %s12641_s22  ;;  %v1464_v39 = vsel %vm1402_vm0, %v12572_v24, %v10795_v23  ;;  %v1528_v28 = vsel %vm1467_vm1, %v1463_v5, %v10954_v35  ;;  %v1526_v37 = vsel %vm1467_vm1, %v1461_v3, %v10949_v40  ;;  %v9561_v18 = vor.u32 %v10445_v0, %v9560_v48  ;;  %v10448_v40 = vld [vmem:[#allocation2 + $0x80] sm:$0xf0]  ;;  %v9355_v48 = vld [vmem:[%s18977_s0 + $0x218] sm:$0xff] }
 0x16d   :  { %1715 = vst [vmem:[#allocation2 + $0x288] sm:$0xf] %v1651_v8  ;;  %11322 = vrot.lane.b32.xlu1 %v11321_v15, %s12641_s22  ;;  %11317 = vrot.lane.b32.xlu0 %v11316_v33, %s12641_s22  ;;  %v1529_v51 = vsel %vm1467_vm1, %v1464_v39, %v10955_v6  ;;  %v11341_v13 = vpack.i.bf16 %v9343_v22, %v9342_v54  ;;  %v9345_v15 = vld [vmem:[%s18977_s0 + $0x170] sm:$0xff]  ;;  %v9740_v8 = vld [vmem:[#allocation2 + $0x1c8] sm:$0xf]  ;;  %v9352_v0 = vld [vmem:[%s18977_s0 + $0x1f8] sm:$0xff] }
 0x16e   :  { %1716 = vst [vmem:[#allocation2 + $0x294] sm:$0xf] %v1652_v16  ;;  %v14589_v9 = vpop.permute.xlu2 %11162  ;;  %v1527_v23 = vsel %vm1467_vm1, %v1462_v21, %v10950_v31  ;;  %v9729_v60 = vor.u32 %v10487_v44, %v9728_v11  ;;  %v11336_v55 = vpack.i.bf16 %v9341_v25, %v9340_v29  ;;  %v11331_v19 = vpack.i.bf16 %v9339_v41, %v9338_v46  ;;  %v9354_v16 = vld [vmem:[%s18977_s0 + $0x210] sm:$0xff]  ;;  %v9350_v22 = vld [vmem:[%s18977_s0 + $0x1e0] sm:$0xff]  ;;  %v9351_v29 = vld [vmem:[%s18977_s0 + $0x1e8] sm:$0xff] }
 0x16f   :  { %1713 = vst [vmem:[#allocation2 + $0x270] sm:$0xf] %v1649_v57  ;;  %v11113_v62 = vpop.permute.xlu1 %11112  ;;  %v11108_v38 = vpop.permute.xlu0 %11107  ;;  %v11356_v58 = vpack.i.bf16 %v9349_v52, %v9348_v47  ;;  %v11351_v32 = vpack.i.bf16 %v9347_v4, %v9346_v30  ;;  %v11346_v36 = vpack.i.bf16 %v9345_v15, %v9344_v42  ;;  %v10490_v57 = vld [vmem:[#allocation2 + $0x1d0] sm:$0xf0]  ;;  %v9573_v5 = vor.u32 %v10448_v40, %v9572_v59  ;;  %v9360_v3 = vld [vmem:[%s18977_s0 + $0x258] sm:$0xff]  ;;  %v9361_v14 = vld [vmem:[%s18977_s0 + $0x260] sm:$0xff] }
 0x170   :  { %1714 = vst [vmem:[#allocation2 + $0x27c] sm:$0xf] %v1650_v2  ;;  %v11115_v10 = vunpack.i.h.bf16 %v11113_v62  ;;  %v11114_v34 = vunpack.i.l.bf16 %v11113_v62  ;;  %v11110_v56 = vunpack.i.h.bf16 %v11108_v38  ;;  %v11109_v61 = vunpack.i.l.bf16 %v11108_v38  ;;  %v9353_v2 = vld [vmem:[%s18977_s0 + $0x200] sm:$0xff]  ;;  %v9359_v39 = vld [vmem:[%s18977_s0 + $0x248] sm:$0xff]  ;;  %v9357_v11 = vld [vmem:[%s18977_s0 + $0x230] sm:$0xff] }
 0x171   :  { %3785 = vmatmul.bf16.gmra.mxu0 %v9561_v18  ;;  %v11371_v31 = vpack.i.bf16 %v9355_v48, %v9354_v16  ;;  %v9741_v46 = vor.u32 %v10490_v57, %v9740_v8  ;;  %v11366_v41 = vpack.i.bf16 %v9353_v2, %v9352_v0  ;;  %v11361_v12 = vpack.i.bf16 %v9351_v29, %v9350_v22  ;;  %v9358_v21 = vld [vmem:[%s18977_s0 + $0x240] sm:$0xff]  ;;  %v9584_v18 = vld [vmem:[#allocation2 + $0x90] sm:$0xf]  ;;  %v9372_v47 = vld [vmem:[%s18977_s0 + $0x2e8] sm:$0xff] }
 0x172   :  { %v1593_v49 = vsel %vm1532_vm2, %v1528_v28, %v11114_v34  ;;  %v1594_v20 = vsel %vm1532_vm2, %v1529_v51, %v11115_v10  ;;  %v1591_v27 = vsel %vm1532_vm2, %v1526_v37, %v11109_v61  ;;  %v1592_v26 = vsel %vm1532_vm2, %v1527_v23, %v11110_v56  ;;  %v9356_v28 = vld [vmem:[%s18977_s0 + $0x228] sm:$0xff]  ;;  %v9752_v10 = vld [vmem:[#allocation2 + $0x1e0] sm:$0xf]  ;;  %v9373_v52 = vld [vmem:[%s18977_s0 + $0x2f0] sm:$0xff] }
 0x173   :  { %v1657_v6 = vpack.c.bf16 %v1593_v49, %v1593_v49  ;;  %v1658_v35 = vpack.c.bf16 %v1594_v20, %v1594_v20  ;;  %v1655_v43 = vpack.c.bf16 %v1591_v27, %v1591_v27  ;;  %3855 = vmatmul.bf16.gmra.mxu1 %v9729_v60  ;;  %v1656_v53 = vpack.c.bf16 %v1592_v26, %v1592_v26  ;;  %v9366_v34 = vld [vmem:[%s18977_s0 + $0x2a0] sm:$0xff]  ;;  %v10493_v56 = vld [vmem:[#allocation2 + $0x1e8] sm:$0xf0]  ;;  %v9363_v49 = vld [vmem:[%s18977_s0 + $0x278] sm:$0xff] }
 0x174   :  { %11342 = vrot.lane.b32.xlu2 %v11341_v13, %s12641_s22  ;;  %v11386_v37 = vpack.i.bf16 %v9361_v14, %v9360_v3  ;;  %v11381_v62 = vpack.i.bf16 %v9359_v39, %v9358_v21  ;;  %v11376_v38 = vpack.i.bf16 %v9357_v11, %v9356_v28  ;;  %v10451_v13 = vld [vmem:[#allocation2 + $0x98] sm:$0xf0]  ;;  %v9367_v61 = vld [vmem:[%s18977_s0 + $0x2a8] sm:$0xff]  ;;  %v9370_v30 = vld [vmem:[%s18977_s0 + $0x2d0] sm:$0xff]  ;;  %v11416_v59 = vpack.i.bf16 %v9373_v52, %v9372_v47 }
 0x175   :  { %1721 = vst [vmem:[#allocation2 + $0x2d0] sm:$0xf] %v1657_v6  ;;  %11337 = vrot.lane.b32.xlu1 %v11336_v55, %s12641_s22  ;;  %11332 = vrot.lane.b32.xlu0 %v11331_v19, %s12641_s22  ;;  %v9364_v23 = vld [vmem:[%s18977_s0 + $0x288] sm:$0xff]  ;;  %v9365_v55 = vld [vmem:[%s18977_s0 + $0x290] sm:$0xff]  ;;  %v9585_v26 = vor.u32 %v10451_v13, %v9584_v18  ;;  %v11401_v6 = vpack.i.bf16 %v9367_v61, %v9366_v34  ;;  %v9764_v48 = vld [vmem:[#allocation2 + $0x1f8] sm:$0xf] }
 0x176   :  { %1722 = vst [vmem:[#allocation2 + $0x2dc] sm:$0xf] %v1658_v35  ;;  %v14613_v45 = vpop.permute.xlu2 %11177  ;;  %v9362_v19 = vld [vmem:[%s18977_s0 + $0x270] sm:$0xff]  ;;  %v9753_v35 = vor.u32 %v10493_v56, %v9752_v10  ;;  %v9371_v42 = vld [vmem:[%s18977_s0 + $0x2d8] sm:$0xff]  ;;  %v9596_v16 = vld [vmem:[#allocation2 + $0xa8] sm:$0xf] }
 0x177   :  { %1719 = vst [vmem:[#allocation2 + $0x2b8] sm:$0xf] %v1655_v43  ;;  %v14624_v33 = vpop.permute.xlu1 %11127  ;;  %v14626_v63 = vpop.permute.xlu0 %11122  ;;  %v11396_v43 = vpack.i.bf16 %v9365_v55, %v9364_v23  ;;  %v11391_v7 = vpack.i.bf16 %v9363_v49, %v9362_v19  ;;  %v9368_v15 = vld [vmem:[%s18977_s0 + $0x2b8] sm:$0xff]  ;;  %v11411_v40 = vpack.i.bf16 %v9371_v42, %v9370_v30  ;;  %v10454_v57 = vld [vmem:[#allocation2 + $0xb0] sm:$0xf0]  ;;  %v9380_v18 = vld [vmem:[%s18977_s0 + $0x348] sm:$0xff] }
 0x178   :  { %1720 = vst [vmem:[#allocation2 + $0x2c4] sm:$0xf] %v1656_v53  ;;  %v10426_v53 = vld [vmem:[%s18979_s2 + $0x60] sm:$0xff]  ;;  %v9378_v0 = vld [vmem:[%s18977_s0 + $0x330] sm:$0xff]  ;;  %v9379_v22 = vld [vmem:[%s18977_s0 + $0x338] sm:$0xff]  ;;  %v9597_v14 = vor.u32 %v10454_v57, %v9596_v16 }
 0x179   :  { %3929 = vmatpush.bf16.msrb.mxu1 %v10426_v53  ;;  %v10496_v2 = vld [vmem:[#allocation2 + $0x200] sm:$0xf0]  ;;  %v9376_v29 = vld [vmem:[%s18977_s0 + $0x318] sm:$0xff]  ;;  %v11431_v21 = vpack.i.bf16 %v9379_v22, %v9378_v0  ;;  %v9381_v13 = vld [vmem:[%s18977_s0 + $0x350] sm:$0xff] }
 0x17a   :  { %v9765_v39 = vor.u32 %v10496_v2, %v9764_v48  ;;  %v14794_v56 = vld [vmem:[%s18977_s0 + $0x31] sm:$0xff]  ;;  %v14799_v61 = vld [vmem:[%s18977_s0 + $0x39] sm:$0xff]  ;;  %v11436_v19 = vpack.i.bf16 %v9381_v13, %v9380_v18  ;;  %v14826_v53 = vld [vmem:[%s18977_s0 + $0x69] sm:$0xff] }
 0x17b   :  { %v11441_v55 = vpack.i.bf16 %v14799_v61, %v14794_v56  ;;  %v9608_v49 = vld [vmem:[#allocation2 + $0xc0] sm:$0xf]  ;;  %v10499_v52 = vld [vmem:[#allocation2 + $0x218] sm:$0xf0]  ;;  %v14869_v22 = vld [vmem:[%s18977_s0 + $0xa9] sm:$0xff] }
 0x17c   :  { %11357 = vrot.lane.b32.xlu2 %v11356_v58, %s12641_s22  ;;  %v9369_v58 = vld [vmem:[%s18977_s0 + $0x2c0] sm:$0xff]  ;;  %v10425_v48 = vld [vmem:[%s18979_s2 + $0x58] sm:$0xff] }
 0x17d   :  { %11352 = vrot.lane.b32.xlu1 %v11351_v32, %s12641_s22  ;;  %11347 = vrot.lane.b32.xlu0 %v11346_v36, %s12641_s22  ;;  %v11406_v8 = vpack.i.bf16 %v9369_v58, %v9368_v15  ;;  %v14837_v58 = vld [vmem:[%s18977_s0 + $0x79] sm:$0xff]  ;;  %v14862_v2 = vld [vmem:[%s18977_s0 + $0xe1] sm:$0xff] }
 0x17e   :  { %v14640_v54 = vpop.permute.xlu2 %11192  ;;  %v14857_v0 = vld [vmem:[%s18977_s0 + $0xd9] sm:$0xff]  ;;  %3930 = vmatpush.bf16.msrb.mxu1 %v10425_v48  ;;  %v10460_v13 = vld [vmem:[#allocation2 + $0xe0] sm:$0xf0] }
 0x17f   :  { %v14651_v25 = vpop.permute.xlu1 %11142  ;;  %v14653_v17 = vpop.permute.xlu0 %11137  ;;  %v9620_v18 = vld [vmem:[#allocation2 + $0xd8] sm:$0xf] }
 0x181   :  { %3790 = vmatmul.bf16.gmra.mxu0 %v9573_v5 }
 0x183   :  { %3860 = vmatmul.bf16.gmra.mxu1 %v9741_v46  ;;  %v9374_v46 = vld [vmem:[%s18977_s0 + $0x300] sm:$0xff] }
 0x184   :  { %11372 = vrot.lane.b32.xlu2 %v11371_v31, %s12641_s22  ;;  %v9377_v31 = vld [vmem:[%s18977_s0 + $0x320] sm:$0xff] }
 0x185   :  { %11367 = vrot.lane.b32.xlu1 %v11366_v41, %s12641_s22  ;;  %11362 = vrot.lane.b32.xlu0 %v11361_v12, %s12641_s22  ;;  %v9375_v41 = vld [vmem:[%s18977_s0 + $0x308] sm:$0xff]  ;;  %v11426_v28 = vpack.i.bf16 %v9377_v31, %v9376_v29  ;;  %v14874_v29 = vld [vmem:[%s18977_s0 + $0xb1] sm:$0xff] }
 0x186   :  { %v14667_v24 = vpop.permute.xlu2 %11207  ;;  %v11421_v11 = vpack.i.bf16 %v9375_v41, %v9374_v46 }
 0x187   :  { %v14678_v44 = vpop.permute.xlu1 %11157  ;;  %v14680_v51 = vpop.permute.xlu0 %11152 }
 0x18c   :  { %11387 = vrot.lane.b32.xlu2 %v11386_v37, %s12641_s22  ;;  %v14770_v37 = vld [vmem:[%s18977_s0 + $0x49] sm:$0xff] }
 0x18d   :  { %11382 = vrot.lane.b32.xlu1 %v11381_v62, %s12641_s22  ;;  %11377 = vrot.lane.b32.xlu0 %v11376_v38, %s12641_s22  ;;  %v14775_v62 = vld [vmem:[%s18977_s0 + $0x51] sm:$0xff] }
 0x18e   :  { %v14694_v60 = vpop.permute.xlu2 %11222  ;;  %v11446_v23 = vpack.i.bf16 %v14775_v62, %v14770_v37 }
 0x18f   :  { %v14705_v20 = vpop.permute.xlu1 %11172  ;;  %v14707_v27 = vpop.permute.xlu0 %11167 }
 0x191   :  { %3795 = vmatmul.bf16.gmra.mxu0 %v9585_v26  ;;  %v10457_v26 = vld [vmem:[#allocation2 + $0xc8] sm:$0xf0] }
 0x192   :  { %v9609_v15 = vor.u32 %v10457_v26, %v9608_v49  ;;  %v14914_v49 = vld [vmem:[%s18977_s0 + $0xf1] sm:$0xff]  ;;  %v14919_v26 = vld [vmem:[%s18977_s0 + $0xf9] sm:$0xff] }
 0x193   :  { %3865 = vmatmul.bf16.gmra.mxu1 %v9753_v35  ;;  %v14814_v35 = vld [vmem:[%s18977_s0 + $0x99] sm:$0xff]  ;;  %19284 = vst [vmem:[#allocation20_spill] sm:$0xff] %v14914_v49 }
 0x194   :  { %11402 = vrot.lane.b32.xlu2 %v11401_v6, %s12641_s22  ;;  %v14809_v6 = vld [vmem:[%s18977_s0 + $0x91] sm:$0xff]  ;;  %19285 = vst [vmem:[#allocation21_spill] sm:$0xff] %v14919_v26 }
 0x195   :  { %11397 = vrot.lane.b32.xlu1 %v11396_v43, %s12641_s22  ;;  %11392 = vrot.lane.b32.xlu0 %v11391_v7, %s12641_s22  ;;  %v9776_v43 = vld [vmem:[#allocation2 + $0x210] sm:$0xf]  ;;  %v14821_v7 = vld [vmem:[%s18977_s0 + $0x61] sm:$0xff] }
 0x196   :  { %v14724_v4 = vpop.permute.xlu2 %11237  ;;  %v11451_v57 = vpack.i.bf16 %v14826_v53, %v14821_v7 }
 0x197   :  { %19269 = vst [vmem:[#allocation37_spill] sm:$0xff] %v14724_v4  ;;  %v14735_v32 = vpop.permute.xlu1 %11187  ;;  %v14737_v36 = vpop.permute.xlu0 %11182 }
 0x198   :  { %19270 = vst [vmem:[#allocation38_spill] sm:$0xff] %v14735_v32 }
 0x199   :  { %19271 = vst [vmem:[#allocation39_spill] sm:$0xff] %v14737_v36  ;;  %v11150_v36 = vunpack.i.h.bf16 %v14527_v50 }
 0x19c   :  { %11417 = vrot.lane.b32.xlu2 %v11416_v59, %s12641_s22  ;;  %v14842_v59 = vld [vmem:[%s18977_s0 + $0x81] sm:$0xff] }
 0x19d   :  { %11412 = vrot.lane.b32.xlu1 %v11411_v40, %s12641_s22  ;;  %11407 = vrot.lane.b32.xlu0 %v11406_v8, %s12641_s22  ;;  %v11461_v40 = vpack.i.bf16 %v14814_v35, %v14809_v6  ;;  %v9777_v8 = vor.u32 %v10499_v52, %v9776_v43  ;;  %v11456_v16 = vpack.i.bf16 %v14842_v59, %v14837_v58  ;;  %v10502_v52 = vld [vmem:[#allocation2 + $0x230] sm:$0xf0] }
 0x19e   :  { %v14751_v5 = vpop.permute.xlu2 %11252 }
 0x19f   :  { %19272 = vst [vmem:[#allocation14_spill] sm:$0xff] %v14751_v5  ;;  %v14762_v12 = vpop.permute.xlu1 %11202  ;;  %v14764_v3 = vpop.permute.xlu0 %11197 }
 0x1a0   :  { %19273 = vst [vmem:[#allocation15_spill] sm:$0xff] %v14762_v12 }
 0x1a1   :  { %19274 = vst [vmem:[#allocation16_spill] sm:$0xff] %v14764_v3  ;;  %3800 = vmatmul.bf16.gmra.mxu0 %v9597_v14  ;;  %v14885_v14 = vld [vmem:[%s18977_s0 + $0xc1] sm:$0xff] }
 0x1a3   :  { %3870 = vmatmul.bf16.gmra.mxu1 %v9765_v39  ;;  %v11476_v39 = vpack.i.bf16 %v14862_v2, %v14857_v0 }
 0x1a4   :  { %11432 = vrot.lane.b32.xlu2 %v11431_v21, %s12641_s22  ;;  %v14890_v21 = vld [vmem:[%s18977_s0 + $0xc9] sm:$0xff] }
 0x1a5   :  { %11427 = vrot.lane.b32.xlu1 %v11426_v28, %s12641_s22  ;;  %11422 = vrot.lane.b32.xlu0 %v11421_v11, %s12641_s22  ;;  %v11471_v28 = vpack.i.bf16 %v14890_v21, %v14885_v14  ;;  %v11466_v11 = vpack.i.bf16 %v14874_v29, %v14869_v22 }
 0x1a6   :  { %v14779_v38 = vpop.permute.xlu2 %11267 }
 0x1a7   :  { %19275 = vst [vmem:[#allocation17_spill] sm:$0xff] %v14779_v38  ;;  %v14787_v10 = vpop.permute.xlu1 %11217  ;;  %v14789_v34 = vpop.permute.xlu0 %11212 }
 0x1a8   :  { %19276 = vst [vmem:[#allocation40_spill] sm:$0xff] %v14787_v10  ;;  %v15114_v10 = vld [vmem:[%s18977_s0 + $0x261] sm:$0xff] }
 0x1a9   :  { %19277 = vst [vmem:[#allocation18_spill] sm:$0xff] %v14789_v34 }
 0x1aa   :  { %19317 = vst [vmem:[#allocation68_spill] sm:$0xff] %v15114_v10 }
 0x1ac   :  { %11447 = vrot.lane.b32.xlu2 %v11446_v23, %s12642_s10  ;;  %v14902_v23 = vld [vmem:[%s18977_s0 + $0x121] sm:$0xff] }
 0x1ad   :  { %11442 = vrot.lane.b32.xlu1 %v11441_v55, %s12642_s10  ;;  %11437 = vrot.lane.b32.xlu0 %v11436_v19, %s12641_s22  ;;  %v14907_v55 = vld [vmem:[%s18977_s0 + $0x129] sm:$0xff] }
 0x1ae   :  { %v14828_v47 = vpop.permute.xlu2 %11282  ;;  %v9788_v19 = vld [vmem:[#allocation2 + $0x228] sm:$0xf]  ;;  %v11491_v48 = vpack.i.bf16 %v14907_v55, %v14902_v23 }
 0x1af   :  { %19278 = vst [vmem:[#allocation43_spill] sm:$0xff] %v14828_v47  ;;  %v14830_v30 = vpop.permute.xlu1 %11232  ;;  %v14832_v42 = vpop.permute.xlu0 %11227  ;;  %v9412_v47 = vld [vmem:[%s18977_s0 + $0x199] sm:$0xff] }
 0x1b0   :  { %19279 = vst [vmem:[#allocation46_spill] sm:$0xff] %v14830_v30 }
 0x1b1   :  { %19280 = vst [vmem:[#allocation47_spill] sm:$0xff] %v14832_v42  ;;  %3805 = vmatmul.bf16.gmra.mxu0 %v9609_v15  ;;  %v15009_v42 = vld [vmem:[%s18977_s0 + $0x189] sm:$0xff] }
 0x1b2   :  { %19299 = vst [vmem:[#allocation57_spill] sm:$0xff] %v15009_v42 }
 0x1b3   :  { %3875 = vmatmul.bf16.gmra.mxu1 %v9777_v8  ;;  %v9621_v8 = vor.u32 %v10460_v13, %v9620_v18  ;;  %v14947_v18 = vld [vmem:[%s18977_s0 + $0x169] sm:$0xff]  ;;  %v14952_v13 = vld [vmem:[%s18977_s0 + $0x171] sm:$0xff] }
 0x1b4   :  { %11462 = vrot.lane.b32.xlu2 %v11461_v40, %s12642_s10  ;;  %v11506_v38 = vpack.i.bf16 %v14952_v13, %v14947_v18 }
 0x1b5   :  { %11457 = vrot.lane.b32.xlu1 %v11456_v16, %s12642_s10  ;;  %11452 = vrot.lane.b32.xlu0 %v11451_v57, %s12642_s10  ;;  %v14930_v16 = vld [vmem:[%s18977_s0 + $0x109] sm:$0xff]  ;;  %v14935_v57 = vld [vmem:[%s18977_s0 + $0x111] sm:$0xff] }
 0x1b6   :  { %v14876_v31 = vpop.permute.xlu2 %11297  ;;  %19289 = vst [vmem:[#allocation25_spill] sm:$0xff] %v14930_v16 }
 0x1b7   :  { %19281 = vst [vmem:[#allocation48_spill] sm:$0xff] %v14876_v31  ;;  %v14878_v46 = vpop.permute.xlu1 %11247  ;;  %v14880_v41 = vpop.permute.xlu0 %11242  ;;  %v10505_v31 = vld [vmem:[#allocation2 + $0x248] sm:$0xf0] }
 0x1b8   :  { %19282 = vst [vmem:[#allocation45_spill] sm:$0xff] %v14878_v46  ;;  %v9800_v46 = vld [vmem:[#allocation2 + $0x240] sm:$0xf] }
 0x1b9   :  { %19283 = vst [vmem:[#allocation50_spill] sm:$0xff] %v14880_v41  ;;  %v15002_v41 = vld [vmem:[%s18977_s0 + $0x181] sm:$0xff] }
 0x1ba   :  { %19290 = vst [vmem:[#allocation30_spill] sm:$0xff] %v14935_v57 }
 0x1bb   :  { %19298 = vst [vmem:[#allocation13_spill] sm:$0xff] %v15002_v41 }
 0x1bc   :  { %11477 = vrot.lane.b32.xlu2 %v11476_v39, %s12642_s10  ;;  %v9789_v39 = vor.u32 %v10502_v52, %v9788_v19  ;;  %v14959_v19 = vld [vmem:[%s18977_s0 + $0x139] sm:$0xff]  ;;  %v14964_v52 = vld [vmem:[%s18977_s0 + $0x141] sm:$0xff]  ;;  %v15011_v30 = vpop.f32.mrf.mxu1 }
 0x1bd   :  { %11472 = vrot.lane.b32.xlu1 %v11471_v28, %s12642_s10  ;;  %11467 = vrot.lane.b32.xlu0 %v11466_v11, %s12642_s10  ;;  %v11486_v28 = vpack.i.bf16 %v14935_v57, %v14930_v16  ;;  %v11481_v11 = vpack.i.bf16 %v14919_v26, %v14914_v49  ;;  %19291 = vst [vmem:[#allocation31_spill] sm:$0xff] %v14959_v19  ;;  %v15250_v49 = vld [vmem:[#allocation2 + $0x2a8] sm:$0xf0]  ;;  %v15254_v16 = vld [vmem:[#allocation2 + $0x2e8] sm:$0xf] }
 0x1be   :  { %v14921_v43 = vpop.permute.xlu2 %11312  ;;  %19292 = vst [vmem:[#allocation34_spill] sm:$0xff] %v14964_v52  ;;  %v15256_v57 = vld [vmem:[#allocation2 + $0x2f0] sm:$0xf0] }
 0x1bf   :  { %19286 = vst [vmem:[#allocation23_spill] sm:$0xff] %v14921_v43  ;;  %v14923_v15 = vpop.permute.xlu1 %11262  ;;  %v14925_v40 = vpop.permute.xlu0 %11257  ;;  %v10463_v43 = vld [vmem:[#allocation2 + $0xf8] sm:$0xf0] }
 0x1c0   :  { %19287 = vst [vmem:[#allocation53_spill] sm:$0xff] %v14923_v15  ;;  %v14996_v15 = vld [vmem:[%s18977_s0 + $0x1e9] sm:$0xff] }
 0x1c1   :  { %19288 = vst [vmem:[#allocation52_spill] sm:$0xff] %v14925_v40  ;;  %3810 = vmatmul.bf16.gmra.mxu0 %v9621_v8 }
 0x1c2   :  { %19300 = vst [vmem:[#allocation58_spill] sm:$0xff] %v15011_v30  ;;  %v9801_v30 = vor.u32 %v10505_v31, %v9800_v46 }
 0x1c3   :  { %3880 = vmatmul.bf16.gmra.mxu1 %v9789_v39  ;;  %19339 = vst [vmem:[#allocation77_spill] sm:$0xff] %v15254_v16 }
 0x1c4   :  { %11492 = vrot.lane.b32.xlu2 %v11491_v48, %s12642_s10  ;;  %19340 = vst [vmem:[#allocation78_spill] sm:$0xff] %v15256_v57  ;;  %v15322_v57 = vld [vmem:[#allocation2 + $0x2b8] sm:$0xf] }
 0x1c5   :  { %11487 = vrot.lane.b32.xlu1 %v11486_v28, %s12642_s10  ;;  %11482 = vrot.lane.b32.xlu0 %v11481_v11, %s12642_s10  ;;  %v14975_v28 = vld [vmem:[%s18977_s0 + $0x151] sm:$0xff]  ;;  %v14980_v11 = vld [vmem:[%s18977_s0 + $0x159] sm:$0xff] }
 0x1c6   :  { %v14966_v8 = vpop.permute.xlu2 %11327  ;;  %19296 = vst [vmem:[#allocation44_spill] sm:$0xff] %v14975_v28  ;;  %v11501_v40 = vpack.i.bf16 %v14980_v11, %v14975_v28  ;;  %v10424_v28 = vld [vmem:[%s18979_s2 + $0x50] sm:$0xff] }
 0x1c7   :  { %19293 = vst [vmem:[#allocation56_spill] sm:$0xff] %v14966_v8  ;;  %v14968_v48 = vpop.permute.xlu1 %11277  ;;  %v14970_v39 = vpop.permute.xlu0 %11272  ;;  %v14991_v8 = vld [vmem:[%s18977_s0 + $0x1e1] sm:$0xff]  ;;  %3931 = vmatpush.bf16.msrb.mxu1 %v10424_v28 }
 0x1c8   :  { %19294 = vst [vmem:[#allocation36_spill] sm:$0xff] %v14968_v48  ;;  %v11496_v48 = vpack.i.bf16 %v14964_v52, %v14959_v19  ;;  %v11521_v19 = vpack.i.bf16 %v14996_v15, %v14991_v8 }
 0x1c9   :  { %19295 = vst [vmem:[#allocation41_spill] sm:$0xff] %v14970_v39  ;;  %v9632_v39 = vld [vmem:[#allocation2 + $0xf0] sm:$0xf] }
 0x1ca   :  { %19297 = vst [vmem:[#allocation69_spill] sm:$0xff] %v14980_v11  ;;  %v9633_v5 = vor.u32 %v10463_v43, %v9632_v39  ;;  %v15036_v43 = vld [vmem:[%s18977_s0 + $0x229] sm:$0xff]  ;;  %v15069_v39 = vld [vmem:[%s18977_s0 + $0x219] sm:$0xff] }
 0x1cb   :  { %19308 = vst [vmem:[#allocation28_spill] sm:$0xff] %v15069_v39 }
 0x1cc   :  { %11507 = vrot.lane.b32.xlu2 %v11506_v38, %s12642_s10 }
 0x1cd   :  { %11502 = vrot.lane.b32.xlu1 %v11501_v40, %s12642_s10  ;;  %11497 = vrot.lane.b32.xlu0 %v11496_v48, %s12642_s10  ;;  %v9413_v40 = vld [vmem:[%s18977_s0 + $0x1a1] sm:$0xff] }
 0x1ce   :  { %v15013_v38 = vpop.permute.xlu2 %11342  ;;  %v11516_v52 = vpack.i.bf16 %v9413_v40, %v9412_v47  ;;  %v15048_v47 = vld [vmem:[%s18977_s0 + $0x1f9] sm:$0xff] }
 0x1cf   :  { %19301 = vst [vmem:[#allocation51_spill] sm:$0xff] %v15013_v38  ;;  %v15021_v48 = vpop.permute.xlu1 %11292  ;;  %v15023_v34 = vpop.permute.xlu0 %11287  ;;  %v11511_v38 = vpack.i.bf16 %v15009_v42, %v15002_v41  ;;  %v10466_v41 = vld [vmem:[#allocation2 + $0x110] sm:$0xf0] }
 0x1d0   :  { %19302 = vst [vmem:[#allocation10_spill] sm:$0xff] %v15021_v48  ;;  %v9644_v48 = vld [vmem:[#allocation2 + $0x108] sm:$0xf]  ;;  %v9236_v42 = vld [vmem:[%s18977_s0 + $0x271] sm:$0xff] }
 0x1d1   :  { %3815 = vmatmul.bf16.gmra.mxu0 %v9633_v5  ;;  %v15041_v5 = vld [vmem:[%s18977_s0 + $0x231] sm:$0xff]  ;;  %19303 = vst [vmem:[#allocation12_spill] sm:$0xff] %v15048_v47 }
 0x1d2   :  { %v11536_v40 = vpack.i.bf16 %v15041_v5, %v15036_v43 }
 0x1d3   :  { %3885 = vmatmul.bf16.gmra.mxu1 %v9801_v30  ;;  %v15053_v30 = vld [vmem:[%s18977_s0 + $0x201] sm:$0xff] }
 0x1d4   :  { %11522 = vrot.lane.b32.xlu2 %v11521_v19, %s12642_s10  ;;  %19304 = vst [vmem:[#allocation9_spill] sm:$0xff] %v15053_v30 }
 0x1d5   :  { %11517 = vrot.lane.b32.xlu1 %v11516_v52, %s12642_s10  ;;  %11512 = vrot.lane.b32.xlu0 %v11511_v38, %s12642_s10  ;;  %v15064_v52 = vld [vmem:[%s18977_s0 + $0x211] sm:$0xff]  ;;  %v15071_v38 = vpop.f32.mrf.mxu1 }
 0x1d6   :  { %v15055_v31 = vpop.permute.xlu2 %11357  ;;  %19307 = vst [vmem:[#allocation55_spill] sm:$0xff] %v15064_v52  ;;  %v11531_v28 = vpack.i.bf16 %v15069_v39, %v15064_v52  ;;  %v9812_v52 = vld [vmem:[#allocation2 + $0x258] sm:$0xf] }
 0x1d7   :  { %19305 = vst [vmem:[#allocation60_spill] sm:$0xff] %v15055_v31  ;;  %v15057_v46 = vpop.permute.xlu1 %11307  ;;  %v15059_v19 = vpop.permute.xlu0 %11302  ;;  %v11526_v31 = vpack.i.bf16 %v15053_v30, %v15048_v47  ;;  %v10508_v30 = vld [vmem:[#allocation2 + $0x260] sm:$0xf0] }
 0x1d8   :  { %19306 = vst [vmem:[#allocation62_spill] sm:$0xff] %v15057_v46  ;;  %v15079_v46 = vpop.f32.mrf.mxu0 }
 0x1d9   :  { %19309 = vst [vmem:[#allocation7_spill] sm:$0xff] %v15071_v38  ;;  %v9237_v38 = vld [vmem:[%s18977_s0 + $0x279] sm:$0xff] }
 0x1da   :  { %19310 = vst [vmem:[#allocation63_spill] sm:$0xff] %v15079_v46  ;;  %v15093_v46 = vld [vmem:[%s18977_s0 + $0x241] sm:$0xff]  ;;  %v11551_v12 = vpack.i.bf16 %v9237_v38, %v9236_v42 }
 0x1db   :  { %19311 = vst [vmem:[#allocation19_spill] sm:$0xff] %v15093_v46  ;;  %v9243_v42 = vld [vmem:[%s18977_s0 + $0x2c1] sm:$0xff] }
 0x1dc   :  { %11537 = vrot.lane.b32.xlu2 %v11536_v40, %s12642_s10  ;;  %v15098_v40 = vld [vmem:[%s18977_s0 + $0x249] sm:$0xff] }
 0x1dd   :  { %11532 = vrot.lane.b32.xlu1 %v11531_v28, %s12642_s10  ;;  %11527 = vrot.lane.b32.xlu0 %v11526_v31, %s12642_s10  ;;  %19312 = vst [vmem:[#allocation64_spill] sm:$0xff] %v15098_v40  ;;  %v9645_v28 = vor.u32 %v10466_v41, %v9644_v48  ;;  %v15109_v31 = vld [vmem:[%s18977_s0 + $0x259] sm:$0xff]  ;;  %v11541_v41 = vpack.i.bf16 %v15098_v40, %v15093_v46  ;;  %v10469_v46 = vld [vmem:[#allocation2 + $0x128] sm:$0xf0]  ;;  %v9248_v40 = vld [vmem:[%s18977_s0 + $0x301] sm:$0xff] }
 0x1de   :  { %v15100_v47 = vpop.permute.xlu2 %11372  ;;  %19316 = vst [vmem:[#allocation66_spill] sm:$0xff] %v15109_v31 }
 0x1df   :  { %19313 = vst [vmem:[#allocation61_spill] sm:$0xff] %v15100_v47  ;;  %v15102_v39 = vpop.permute.xlu1 %11322  ;;  %v15104_v11 = vpop.permute.xlu0 %11317  ;;  %v9813_v47 = vor.u32 %v10508_v30, %v9812_v52 }
 0x1e0   :  { %19314 = vst [vmem:[#allocation49_spill] sm:$0xff] %v15102_v39  ;;  %v15116_v3 = vpop.f32.mrf.mxu1  ;;  %v11546_v39 = vpack.i.bf16 %v15114_v10, %v15109_v31  ;;  %v15122_v48 = vpop.f32.mrf.mxu0 }
 0x1e1   :  { %19315 = vst [vmem:[#allocation65_spill] sm:$0xff] %v15104_v11  ;;  %3820 = vmatmul.bf16.gmra.mxu0 %v9645_v28  ;;  %v9242_v11 = vld [vmem:[%s18977_s0 + $0x2b9] sm:$0xff]  ;;  %v15153_v28 = vld [vmem:[%s18977_s0 + $0x2a9] sm:$0xff] }
 0x1e2   :  { %19318 = vst [vmem:[#allocation35_spill] sm:$0xff] %v15116_v3  ;;  %v11566_v3 = vpack.i.bf16 %v9243_v42, %v9242_v11  ;;  %v9824_v11 = vld [vmem:[#allocation2 + $0x270] sm:$0xf] }
 0x1e3   :  { %3890 = vmatmul.bf16.gmra.mxu1 %v9813_v47  ;;  %19319 = vst [vmem:[#allocation29_spill] sm:$0xff] %v15122_v48  ;;  %v9238_v47 = vld [vmem:[%s18977_s0 + $0x289] sm:$0xff] }
 0x1e4   :  { %11552 = vrot.lane.b32.xlu2 %v11551_v12, %s12642_s10  ;;  %v9239_v12 = vld [vmem:[%s18977_s0 + $0x291] sm:$0xff]  ;;  %19324 = vst [vmem:[#allocation24_spill] sm:$0xff] %v15153_v28 }
 0x1e5   :  { %11547 = vrot.lane.b32.xlu1 %v11546_v39, %s12642_s10  ;;  %11542 = vrot.lane.b32.xlu0 %v11541_v41, %s12642_s10  ;;  %v15148_v39 = vld [vmem:[%s18977_s0 + $0x2a1] sm:$0xff] }
 0x1e6   :  { %v15139_v30 = vpop.permute.xlu2 %11387  ;;  %19323 = vst [vmem:[#allocation71_spill] sm:$0xff] %v15148_v39  ;;  %v11561_v48 = vpack.i.bf16 %v15153_v28, %v15148_v39 }
 0x1e7   :  { %19320 = vst [vmem:[#allocation32_spill] sm:$0xff] %v15139_v30  ;;  %v15141_v52 = vpop.permute.xlu1 %11337  ;;  %v15143_v38 = vpop.permute.xlu0 %11332  ;;  %v11556_v30 = vpack.i.bf16 %v9239_v12, %v9238_v47  ;;  %v9245_v47 = vld [vmem:[%s18977_s0 + $0x2d9] sm:$0xff] }
 0x1e8   :  { %19321 = vst [vmem:[#allocation54_spill] sm:$0xff] %v15141_v52  ;;  %v15155_v41 = vpop.f32.mrf.mxu1  ;;  %v9656_v52 = vld [vmem:[#allocation2 + $0x120] sm:$0xf]  ;;  %v15168_v42 = vpop.f32.mrf.mxu0 }
 0x1e9   :  { %19322 = vst [vmem:[#allocation70_spill] sm:$0xff] %v15143_v38  ;;  %v9249_v38 = vld [vmem:[%s18977_s0 + $0x309] sm:$0xff] }
 0x1ea   :  { %19325 = vst [vmem:[#allocation8_spill] sm:$0xff] %v15155_v41  ;;  %v10511_v41 = vld [vmem:[#allocation2 + $0x278] sm:$0xf0]  ;;  %v11581_v10 = vpack.i.bf16 %v9249_v38, %v9248_v40  ;;  %v9445_v40 = vld [vmem:[%s18977_s0 + $0x351] sm:$0xff]  ;;  %v9251_v38 = vld [vmem:[%s18977_s0 + $0x321] sm:$0xff] }
 0x1eb   :  { %19326 = vst [vmem:[#allocation22_spill] sm:$0xff] %v15168_v42  ;;  %v15190_v42 = vld [vmem:[%s18977_s0 + $0x2f1] sm:$0xff] }
 0x1ec   :  { %11567 = vrot.lane.b32.xlu2 %v11566_v3, %s12642_s10  ;;  %v9244_v3 = vld [vmem:[%s18977_s0 + $0x2d1] sm:$0xff]  ;;  %19331 = vst [vmem:[#allocation26_spill] sm:$0xff] %v15190_v42 }
 0x1ed   :  { %11562 = vrot.lane.b32.xlu1 %v11561_v48, %s12642_s10  ;;  %11557 = vrot.lane.b32.xlu0 %v11556_v30, %s12642_s10  ;;  %v9657_v48 = vor.u32 %v10469_v46, %v9656_v52  ;;  %v15185_v30 = vld [vmem:[%s18977_s0 + $0x2e9] sm:$0xff] }
 0x1ee   :  { %v15176_v12 = vpop.permute.xlu2 %11402  ;;  %19330 = vst [vmem:[#allocation27_spill] sm:$0xff] %v15185_v30  ;;  %v9444_v46 = vld [vmem:[%s18977_s0 + $0x349] sm:$0xff] }
 0x1ef   :  { %19327 = vst [vmem:[#allocation42_spill] sm:$0xff] %v15176_v12  ;;  %v15178_v39 = vpop.permute.xlu1 %11352  ;;  %v15180_v28 = vpop.permute.xlu0 %11347  ;;  %v9825_v12 = vor.u32 %v10511_v41, %v9824_v11  ;;  %v15208_v52 = vld [vmem:[%s18979_s2 + $0x48] sm:$0xff]  ;;  %v11135_v41 = vunpack.i.h.bf16 %v14468_v1 }
 0x1f0   :  { %19328 = vst [vmem:[#allocation59_spill] sm:$0xff] %v15178_v39  ;;  %v15192_v31 = vpop.f32.mrf.mxu1  ;;  %v11576_v39 = vpack.i.bf16 %v15190_v42, %v15185_v30  ;;  %3932 = vmatpush.bf16.msrb.mxu1 %v15208_v52  ;;  %v15233_v30 = vpop.f32.mrf.mxu0 }
 0x1f1   :  { %19329 = vst [vmem:[#allocation11_spill] sm:$0xff] %v15180_v28  ;;  %3825 = vmatmul.bf16.gmra.mxu0 %v9657_v48  ;;  %v11571_v28 = vpack.i.bf16 %v9245_v47, %v9244_v3  ;;  %v15225_v47 = vld [vmem:[#allocation2 + $0x140] sm:$0xf0]  ;;  %v15230_v48 = vld [vmem:[#allocation2 + $0x170] sm:$0xf0] }
 0x1f2   :  { %19332 = vst [vmem:[#allocation67_spill] sm:$0xff] %v15192_v31  ;;  %v11134_v31 = vunpack.i.l.bf16 %v14468_v1  ;;  %v15246_v1 = vld [vmem:[#allocation2 + $0x158] sm:$0xf0] }
 0x1f3   :  { %3895 = vmatmul.bf16.gmra.mxu1 %v9825_v12  ;;  %19333 = vst [vmem:[#allocation33_spill] sm:$0xff] %v15208_v52  ;;  %v15228_v12 = vld [vmem:[#allocation2 + $0x168] sm:$0xf]  ;;  %v15243_v52 = vld [vmem:[#allocation2 + $0x150] sm:$0xf] }
 0x1f4   :  { %11582 = vrot.lane.b32.xlu2 %v11581_v10, %s12642_s10  ;;  %v9250_v10 = vld [vmem:[%s18977_s0 + $0x319] sm:$0xff]  ;;  %19337 = vst [vmem:[#allocation75_spill] sm:$0xff] %v15233_v30 }
 0x1f5   :  { %11577 = vrot.lane.b32.xlu1 %v11576_v39, %s12642_s10  ;;  %11572 = vrot.lane.b32.xlu0 %v11571_v28, %s12642_s10  ;;  %v15218_v28 = vld [vmem:[#allocation2 + $0x138] sm:$0xf]  ;;  %v11586_v4 = vpack.i.bf16 %v9251_v38, %v9250_v10  ;;  %v15248_v30 = vld [vmem:[#allocation2 + $0x2a0] sm:$0xf]  ;;  %v11165_v10 = vunpack.i.h.bf16 %v14589_v9  ;;  %v11129_v38 = vunpack.i.l.bf16 %v14624_v33 }
 0x1f6   :  { %v15216_v39 = vpop.permute.xlu2 %11417  ;;  %v9669_v26 = vor.u32 %v15225_v47, %v15218_v28  ;;  %v11164_v28 = vunpack.i.l.bf16 %v14589_v9  ;;  %v11179_v47 = vunpack.i.l.bf16 %v14613_v45  ;;  %v9836_v9 = vld [vmem:[#allocation2 + $0x288] sm:$0xf] }
 0x1f7   :  { %19334 = vst [vmem:[#allocation72_spill] sm:$0xff] %v15216_v39  ;;  %v15221_v11 = vpop.permute.xlu1 %11367  ;;  %v15223_v3 = vpop.permute.xlu0 %11362  ;;  %v9252_v39 = vld [vmem:[%s18977_s0 + $0x331] sm:$0xff] }
 0x1f8   :  { %19335 = vst [vmem:[#allocation73_spill] sm:$0xff] %v15221_v11  ;;  %v9253_v11 = vld [vmem:[%s18977_s0 + $0x339] sm:$0xff]  ;;  %v15241_v42 = vpop.f32.mrf.mxu1 }
 0x1f9   :  { %19336 = vst [vmem:[#allocation74_spill] sm:$0xff] %v15223_v3  ;;  %v11596_v3 = vpack.i.bf16 %v9445_v40, %v9444_v46  ;;  %v11591_v32 = vpack.i.bf16 %v9253_v11, %v9252_v39  ;;  %v15260_v46 = vsel %vm1402_vm0, %v14775_v62, %v11135_v41  ;;  %v11149_v40 = vunpack.i.l.bf16 %v14527_v50 }
 0x1fa   :  { %19338 = vst [vmem:[#allocation76_spill] sm:$0xff] %v15241_v42  ;;  %v15268_v39 = vsel %vm1402_vm0, %v14770_v37, %v11134_v31  ;;  %v15278_v50 = vsel %vm1402_vm0, %v14814_v35, %v11150_v36  ;;  %v11180_v41 = vunpack.i.h.bf16 %v14613_v45  ;;  %v10514_v37 = vld [vmem:[#allocation2 + $0x290] sm:$0xf0]  ;;  %v11125_v36 = vunpack.i.h.bf16 %v14626_v63 }
 0x1fb   :  { %v11124_v35 = vunpack.i.l.bf16 %v14626_v63  ;;  %v15294_v45 = vsel %vm1402_vm0, %v14809_v6, %v11149_v40  ;;  %v11195_v63 = vunpack.i.h.bf16 %v14640_v54  ;;  %v11194_v31 = vunpack.i.l.bf16 %v14640_v54  ;;  %v15312_v40 = vld [vmem:[#allocation2 + $0x2d0] sm:$0xf]  ;;  %v15324_v54 = vld [vmem:[#allocation2 + $0x2c0] sm:$0xf0] }
 0x1fc   :  { %11597 = vrot.lane.b32.xlu2 %v11596_v3, %s12642_s10  ;;  %v11130_v3 = vunpack.i.h.bf16 %v14624_v33  ;;  %v9191_v33 = vld [vmem:[%s18977_s0 + $0x21] sm:$0xff]  ;;  %v11144_v42 = vunpack.i.l.bf16 %v14651_v25  ;;  %v9837_v16 = vor.u32 %v10514_v37, %v9836_v9  ;;  %v2495_v37 = vsel %vm1402_vm0, %v14794_v56, %v11129_v38 }
 0x1fd   :  { %11592 = vrot.lane.b32.xlu1 %v11591_v32, %s12642_s10  ;;  %11587 = vrot.lane.b32.xlu0 %v11586_v4, %s12642_s10  ;;  %v15298_v4 = vsel %vm1402_vm0, %v14862_v2, %v11165_v10  ;;  %v9190_v32 = vld [vmem:[%s18977_s0 + $0x19] sm:$0xff]  ;;  %v15316_v2 = vsel %vm1402_vm0, %v14857_v0, %v11164_v28  ;;  %v11145_v10 = vunpack.i.h.bf16 %v14651_v25  ;;  %v15334_v0 = vsel %vm1402_vm0, %v14902_v23, %v11179_v47 }
 0x1fe   :  { %v15290_v62 = vpop.permute.xlu2 %11432  ;;  %19342 = vst [vmem:[#allocation80_spill] sm:$0xff] %v15298_v4  ;;  %v15330_v4 = vsel %vm1402_vm0, %v14907_v55, %v11180_v41  ;;  %v11140_v28 = vunpack.i.h.bf16 %v14653_v17  ;;  %v11139_v25 = vunpack.i.l.bf16 %v14653_v17  ;;  %v2496_v9 = vsel %vm1402_vm0, %v14799_v61, %v11130_v3  ;;  %v15348_v41 = vpop.f32.mrf.mxu0 }
 0x1ff   :  { %19341 = vst [vmem:[#allocation79_spill] sm:$0xff] %v15290_v62  ;;  %v15308_v11 = vpop.permute.xlu1 %11382  ;;  %v15310_v6 = vpop.permute.xlu0 %11377  ;;  %v15346_v55 = vsel %vm1402_vm0, %v9190_v32, %v11124_v35  ;;  %v15352_v23 = vsel %vm1402_vm0, %v14952_v13, %v11195_v63  ;;  %v15356_v17 = vsel %vm1402_vm0, %v14947_v18, %v11194_v31  ;;  %v2501_v38 = vsel %vm1402_vm0, %v14837_v58, %v11144_v42 }
 0x200   :  { %19343 = vst [vmem:[#allocation81_spill] sm:$0xff] %v15308_v11  ;;  %v15320_v62 = vpop.f32.mrf.mxu1  ;;  %v15326_v11 = vld [vmem:[#allocation2 + $0x2d8] sm:$0xf0]  ;;  %v11290_v13 = vunpack.i.h.bf16 %v15023_v34  ;;  %v11289_v47 = vunpack.i.l.bf16 %v15023_v34  ;;  %v15370_v18 = vsel %vm1402_vm0, %v14826_v53, %v11140_v28  ;;  %v11210_v31 = vunpack.i.h.bf16 %v14667_v24 }
 0x201   :  { %19344 = vst [vmem:[#allocation82_spill] sm:$0xff] %v15320_v62  ;;  %3830 = vmatmul.bf16.gmra.mxu0 %v9669_v26  ;;  %v15343_v62 = vsel %vm1402_vm0, %v9191_v33, %v11125_v36  ;;  %v2502_v26 = vsel %vm1402_vm0, %v14842_v59, %v11145_v10  ;;  %v11209_v3 = vunpack.i.l.bf16 %v14667_v24  ;;  %v11160_v59 = vunpack.i.h.bf16 %v14678_v44 }
 0x202   :  { %19345 = vst [vmem:[#allocation83_spill] sm:$0xff] %v15348_v41  ;;  %v11159_v58 = vunpack.i.l.bf16 %v14678_v44  ;;  %v11155_v42 = vunpack.i.h.bf16 %v14680_v51  ;;  %v11154_v34 = vunpack.i.l.bf16 %v14680_v51  ;;  %v11225_v53 = vunpack.i.h.bf16 %v14694_v60 }
 0x203   :  { %3900 = vmatmul.bf16.gmra.mxu1 %v9837_v16  ;;  %v15374_v16 = vsel %vm1402_vm0, %v14821_v7, %v11139_v25  ;;  %v11224_v35 = vunpack.i.l.bf16 %v14694_v60  ;;  %v11175_v24 = vunpack.i.h.bf16 %v14705_v20  ;;  %v11174_v10 = vunpack.i.l.bf16 %v14705_v20 }
 0x204   :  { %v2560_v44 = vsel %vm1467_vm1, %v2496_v9, %v11290_v13  ;;  %v2559_v28 = vsel %vm1467_vm1, %v2495_v37, %v11289_v47  ;;  %v11170_v25 = vunpack.i.h.bf16 %v14707_v27  ;;  %v11169_v60 = vunpack.i.l.bf16 %v14707_v27 }
 0x205   :  { %v15400_v56 = vsel %vm1402_vm0, %v14996_v15, %v11210_v31  ;;  %v15404_v20 = vsel %vm1402_vm0, %v14991_v8, %v11209_v3  ;;  %v15408_v13 = vsel %vm1402_vm0, %v14890_v21, %v11160_v59  ;;  %v15412_v27 = vsel %vm1402_vm0, %v14885_v14, %v11159_v58 }
 0x206   :  { %v11448_v36 = vpop.permute.xlu2 %11447  ;;  %19348 = vst [vmem:[#allocation86_spill] sm:$0xff] %v15400_v56  ;;  %v15416_v47 = vsel %vm1402_vm0, %v14874_v29, %v11155_v42  ;;  %v15420_v15 = vsel %vm1402_vm0, %v14869_v22, %v11154_v34  ;;  %v15424_v8 = vsel %vm1402_vm0, %v15041_v5, %v11225_v53  ;;  %v15428_v21 = vsel %vm1402_vm0, %v15036_v43, %v11224_v35  ;;  %v19353_v29 = vld [vmem:[#allocation30_spill] sm:$0xff]  ;;  %v19354_v22 = vld [vmem:[#allocation25_spill] sm:$0xff]  ;;  %v19356_v43 = vld [vmem:[#allocation20_spill] sm:$0xff] }
 0x207   :  { %v11450_v32 = vunpack.i.h.bf16 %v11448_v36  ;;  %v11449_v7 = vunpack.i.l.bf16 %v11448_v36  ;;  %v15384_v33 = vpop.permute.xlu1 %11397  ;;  %v15386_v63 = vpop.permute.xlu0 %11392  ;;  %19349 = vst [vmem:[#allocation87_spill] sm:$0xff] %v15404_v20  ;;  %v11305_v14 = vunpack.i.h.bf16 %v15059_v19  ;;  %v11304_v31 = vunpack.i.l.bf16 %v15059_v19  ;;  %v19355_v5 = vld [vmem:[#allocation21_spill] sm:$0xff]  ;;  %v19358_v35 = vld [vmem:[#allocation38_spill] sm:$0xff]  ;;  %v19363_v53 = vld [vmem:[#allocation16_spill] sm:$0xff] }
 0x208   :  { %19346 = vst [vmem:[#allocation84_spill] sm:$0xff] %v15384_v33  ;;  %v15392_v51 = vpop.f32.mrf.mxu1  ;;  %v15436_v3 = vsel %vm1402_vm0, %v19353_v29, %v11175_v24  ;;  %v15440_v59 = vsel %vm1402_vm0, %v19354_v22, %v11174_v10  ;;  %v15444_v58 = vsel %vm1402_vm0, %v19355_v5, %v11170_v25  ;;  %v15448_v42 = vsel %vm1402_vm0, %v19356_v43, %v11169_v60  ;;  %v19359_v10 = vld [vmem:[#allocation39_spill] sm:$0xff]  ;;  %v19388_v56 = vld [vmem:[#allocation12_spill] sm:$0xff] }
 0x209   :  { %19347 = vst [vmem:[#allocation85_spill] sm:$0xff] %v15392_v51  ;;  %v2623_v36 = vsel %vm1532_vm2, %v2559_v28, %v11449_v7  ;;  %v2624_v61 = vsel %vm1532_vm2, %v2560_v44, %v11450_v32  ;;  %v11190_v32 = vunpack.i.h.bf16 %v19358_v35  ;;  %v11189_v7 = vunpack.i.l.bf16 %v19358_v35 }
 0x20a   :  { %v2687_v9 = vpack.c.bf16 %v2623_v36, %v2623_v36  ;;  %v2688_v37 = vpack.c.bf16 %v2624_v61, %v2624_v61  ;;  %19350 = vst [vmem:[#allocation88_spill] sm:$0xff] %v15424_v8  ;;  %v15430_v61 = vpop.f32.mrf.mxu0  ;;  %v11185_v44 = vunpack.i.h.bf16 %v19359_v10  ;;  %v11184_v28 = vunpack.i.l.bf16 %v19359_v10  ;;  %v9223_v10 = vld [vmem:[%s18977_s0 + $0x1d1] sm:$0xff] }
 0x20b   :  { %19351 = vst [vmem:[#allocation89_spill] sm:$0xff] %v15428_v21  ;;  %v2566_v5 = vsel %vm1467_vm1, %v2502_v26, %v11305_v14  ;;  %v2565_v43 = vsel %vm1467_vm1, %v2501_v38, %v11304_v31  ;;  %v11199_v19 = vunpack.i.l.bf16 %v19363_v53  ;;  %v9222_v26 = vld [vmem:[%s18977_s0 + $0x1c9] sm:$0xff] }
 0x20c   :  { %19352 = vst [vmem:[#allocation90_spill] sm:$0xff] %v15430_v61  ;;  %v19365_v38 = vld [vmem:[#allocation40_spill] sm:$0xff] }
 0x20d   :  { %2751 = vst [vmem:[#allocation2 + $0x1c] sm:$0xf] %v2687_v9  ;;  %v11220_v14 = vunpack.i.h.bf16 %v19365_v38  ;;  %v11219_v31 = vunpack.i.l.bf16 %v19365_v38  ;;  %v19384_v21 = vld [vmem:[#allocation48_spill] sm:$0xff] }
 0x20e   :  { %2752 = vst [vmem:[#allocation2 + $0x28] sm:$0xf] %v2688_v37  ;;  %v11463_v24 = vpop.permute.xlu2 %11462  ;;  %v19361_v37 = vld [vmem:[#allocation15_spill] sm:$0xff] }
 0x20f   :  { %v11465_v25 = vunpack.i.h.bf16 %v11463_v24  ;;  %v11464_v36 = vunpack.i.l.bf16 %v11463_v24  ;;  %v15456_v9 = vpop.permute.xlu1 %11412  ;;  %v15458_v60 = vpop.permute.xlu0 %11407  ;;  %v11205_v29 = vunpack.i.h.bf16 %v19361_v37  ;;  %v11204_v22 = vunpack.i.l.bf16 %v19361_v37 }
 0x210   :  { %19360 = vst [vmem:[#allocation30_spill] sm:$0xff] %v15456_v9  ;;  %v15464_v35 = vpop.f32.mrf.mxu1  ;;  %v11200_v24 = vunpack.i.h.bf16 %v19363_v53  ;;  %v19364_v37 = vor.u32 %v15246_v1, %v15243_v52  ;;  %v19366_v9 = vld [vmem:[#allocation69_spill] sm:$0xff]  ;;  %v19368_v52 = vld [vmem:[#allocation34_spill] sm:$0xff] }
 0x211   :  { %19362 = vst [vmem:[#allocation25_spill] sm:$0xff] %v15464_v35  ;;  %v2629_v51 = vsel %vm1532_vm2, %v2565_v43, %v11464_v36  ;;  %v2630_v61 = vsel %vm1532_vm2, %v2566_v5, %v11465_v25  ;;  %v15483_v53 = vsel %vm1402_vm0, %v19366_v9, %v11190_v32  ;;  %v19367_v36 = vld [vmem:[#allocation44_spill] sm:$0xff]  ;;  %v15491_v1 = vsel %vm1402_vm0, %v19368_v52, %v11185_v44  ;;  %v19369_v5 = vld [vmem:[#allocation31_spill] sm:$0xff]  ;;  %v19372_v9 = vld [vmem:[#allocation65_spill] sm:$0xff] }
 0x212   :  { %3835 = vmatmul.bf16.gmra.mxu0 %v19364_v37  ;;  %v2693_v35 = vpack.c.bf16 %v2629_v51, %v2629_v51  ;;  %v2694_v41 = vpack.c.bf16 %v2630_v61, %v2630_v61  ;;  %v15487_v25 = vsel %vm1402_vm0, %v19367_v36, %v11189_v7  ;;  %v15495_v43 = vsel %vm1402_vm0, %v19369_v5, %v11184_v28  ;;  %v19373_v36 = vld [vmem:[#allocation57_spill] sm:$0xff] }
 0x213   :  { %v19370_v51 = vor.u32 %v15250_v49, %v15248_v30  ;;  %v15502_v32 = vsel %vm1402_vm0, %v9223_v10, %v11205_v29  ;;  %v11320_v7 = vunpack.i.h.bf16 %v19372_v9  ;;  %v11319_v38 = vunpack.i.l.bf16 %v19372_v9  ;;  %v19374_v52 = vld [vmem:[#allocation13_spill] sm:$0xff]  ;;  %v19375_v30 = vld [vmem:[#allocation18_spill] sm:$0xff]  ;;  %v19376_v29 = vld [vmem:[#allocation28_spill] sm:$0xff]  ;;  %v15528_v9 = vpop.f32.mrf.mxu0 }
 0x214   :  { %2757 = vst [vmem:[#allocation2 + $0x64] sm:$0xf] %v2693_v35  ;;  %v15507_v44 = vsel %vm1402_vm0, %v9222_v26, %v11204_v22  ;;  %v15511_v28 = vsel %vm1402_vm0, %v19373_v36, %v11200_v24  ;;  %v15515_v49 = vsel %vm1402_vm0, %v19374_v52, %v11199_v19  ;;  %v11215_v5 = vunpack.i.h.bf16 %v19375_v30  ;;  %v19378_v26 = vld [vmem:[#allocation43_spill] sm:$0xff]  ;;  %v19380_v52 = vld [vmem:[#allocation46_spill] sm:$0xff] }
 0x215   :  { %3905 = vmatmul.bf16.gmra.mxu1 %v19370_v51  ;;  %2758 = vst [vmem:[#allocation2 + $0x70] sm:$0xf] %v2694_v41  ;;  %v15520_v10 = vsel %vm1402_vm0, %v19376_v29, %v11220_v14  ;;  %v19377_v51 = vld [vmem:[#allocation55_spill] sm:$0xff]  ;;  %v11214_v22 = vunpack.i.l.bf16 %v19375_v30  ;;  %v11285_v24 = vunpack.i.h.bf16 %v19378_v26  ;;  %v11284_v19 = vunpack.i.l.bf16 %v19378_v26 }
 0x216   :  { %v15524_v35 = vsel %vm1402_vm0, %v19377_v51, %v11219_v31  ;;  %19379 = vst [vmem:[#allocation21_spill] sm:$0xff] %v15528_v9  ;;  %v11478_v36 = vpop.permute.xlu2 %11477  ;;  %v11235_v37 = vunpack.i.h.bf16 %v19380_v52  ;;  %v11234_v31 = vunpack.i.l.bf16 %v19380_v52  ;;  %v19382_v29 = vld [vmem:[#allocation47_spill] sm:$0xff]  ;;  %v2572_v30 = vsel %vm1467_vm1, %v15408_v13, %v11320_v7  ;;  %v19385_v7 = vld [vmem:[#allocation45_spill] sm:$0xff] }
 0x217   :  { %v11480_v41 = vunpack.i.h.bf16 %v11478_v36  ;;  %v11479_v61 = vunpack.i.l.bf16 %v11478_v36  ;;  %v15532_v34 = vpop.permute.xlu1 %11427  ;;  %v15534_v14 = vpop.permute.xlu0 %11422  ;;  %v11230_v51 = vunpack.i.h.bf16 %v19382_v29  ;;  %v2571_v9 = vsel %vm1467_vm1, %v15412_v27, %v11319_v38  ;;  %v15551_v52 = vld [vmem:[%s18979_s2 + $0x40] sm:$0xff] }
 0x218   :  { %19381 = vst [vmem:[#allocation20_spill] sm:$0xff] %v15532_v34  ;;  %v15542_v33 = vpop.f32.mrf.mxu1  ;;  %v11229_v26 = vunpack.i.l.bf16 %v19382_v29  ;;  %v11300_v36 = vunpack.i.h.bf16 %v19384_v21  ;;  %v11299_v13 = vunpack.i.l.bf16 %v19384_v21  ;;  %v11250_v20 = vunpack.i.h.bf16 %v19385_v7  ;;  %3933 = vmatpush.bf16.msrb.mxu1 %v15551_v52  ;;  %v19390_v21 = vld [vmem:[#allocation68_spill] sm:$0xff] }
 0x219   :  { %19383 = vst [vmem:[#allocation38_spill] sm:$0xff] %v15542_v33  ;;  %v2635_v34 = vsel %vm1532_vm2, %v2571_v9, %v11479_v61  ;;  %v2636_v8 = vsel %vm1532_vm2, %v2572_v30, %v11480_v41  ;;  %v19386_v33 = vld [vmem:[#allocation9_spill] sm:$0xff]  ;;  %v15561_v61 = vsel %vm1402_vm0, %v19388_v56, %v11214_v22  ;;  %v2557_v9 = vsel %vm1467_vm1, %v15346_v55, %v11284_v19  ;;  %v19393_v22 = vld [vmem:[#allocation64_spill] sm:$0xff] }
 0x21a   :  { %v2699_v27 = vpack.c.bf16 %v2635_v34, %v2635_v34  ;;  %v2700_v38 = vpack.c.bf16 %v2636_v8, %v2636_v8  ;;  %v15557_v29 = vsel %vm1402_vm0, %v19386_v33, %v11215_v5  ;;  %19389 = vst [vmem:[#allocation15_spill] sm:$0xff] %v15561_v61  ;;  %v2558_v41 = vsel %vm1467_vm1, %v15343_v62, %v11285_v24  ;;  %v19391_v8 = vld [vmem:[#allocation66_spill] sm:$0xff]  ;;  %v19395_v62 = vld [vmem:[#allocation19_spill] sm:$0xff] }
 0x21b   :  { %19387 = vst [vmem:[#allocation39_spill] sm:$0xff] %v15557_v29  ;;  %v15570_v34 = vsel %vm1402_vm0, %v19390_v21, %v11235_v37  ;;  %v15574_v33 = vsel %vm1402_vm0, %v19391_v8, %v11234_v31  ;;  %v19392_v5 = vld [vmem:[#allocation70_spill] sm:$0xff]  ;;  %v15580_v55 = vsel %vm1402_vm0, %v19393_v22, %v11230_v51  ;;  %v15584_v24 = vsel %vm1402_vm0, %v19395_v62, %v11229_v26  ;;  %v19398_v8 = vld [vmem:[#allocation24_spill] sm:$0xff]  ;;  %v19399_v22 = vld [vmem:[#allocation23_spill] sm:$0xff]  ;;  %v15612_v19 = vpop.f32.mrf.mxu0 }
 0x21c   :  { %v11335_v30 = vunpack.i.h.bf16 %v19392_v5  ;;  %v11334_v56 = vunpack.i.l.bf16 %v19392_v5  ;;  %2763 = vst [vmem:[#allocation2 + $0xac] sm:$0xf] %v2699_v27  ;;  %v11249_v37 = vunpack.i.l.bf16 %v19385_v7  ;;  %v15590_v31 = vsel %vm1467_vm1, %v15374_v16, %v11299_v13  ;;  %v19400_v62 = vld [vmem:[#allocation10_spill] sm:$0xff]  ;;  %v19404_v29 = vld [vmem:[#allocation11_spill] sm:$0xff] }
 0x21d   :  { %19394 = vst [vmem:[#allocation16_spill] sm:$0xff] %v15580_v55  ;;  %v15594_v27 = vsel %vm1467_vm1, %v15370_v18, %v11300_v36  ;;  %v15598_v51 = vsel %vm1402_vm0, %v19398_v8, %v11250_v20  ;;  %v11314_v7 = vunpack.i.l.bf16 %v19399_v22  ;;  %v11295_v21 = vunpack.i.h.bf16 %v19400_v62 }
 0x21e   :  { %19396 = vst [vmem:[#allocation40_spill] sm:$0xff] %v15584_v24  ;;  %v11493_v5 = vpop.permute.xlu2 %11492  ;;  %v2578_v18 = vsel %vm1467_vm1, %v15436_v3, %v11335_v30  ;;  %v2577_v36 = vsel %vm1467_vm1, %v15440_v59, %v11334_v56  ;;  %v11294_v26 = vunpack.i.l.bf16 %v19400_v62  ;;  %v11350_v61 = vunpack.i.h.bf16 %v19404_v29  ;;  %v10431_v59 = vld [vmem:[%s18979_s2 + $0x88] sm:$0xff] }
 0x21f   :  { %2764 = vst [vmem:[#allocation2 + $0xb8] sm:$0xf] %v2700_v38  ;;  %v11495_v38 = vunpack.i.h.bf16 %v11493_v5  ;;  %v11494_v55 = vunpack.i.l.bf16 %v11493_v5  ;;  %v11443_v24 = vpop.permute.xlu1 %11442  ;;  %v15603_v16 = vpop.permute.xlu0 %11437  ;;  %v19405_v3 = vor.u32 %v15230_v48, %v15228_v12  ;;  %v19407_v12 = vor.u32 %v15324_v54, %v15322_v57  ;;  %4101 = vmatpush.bf16.msra.mxu2 %v10431_v59  ;;  %10632 = vmatpush.bf16.msra.mxu3 %v10431_v59  ;;  %v19410_v54 = vld [vmem:[#allocation62_spill] sm:$0xff] }
 0x220   :  { %19401 = vst [vmem:[#allocation69_spill] sm:$0xff] %v15603_v16  ;;  %v15609_v20 = vpop.f32.mrf.mxu1  ;;  %v11445_v13 = vunpack.i.h.bf16 %v11443_v24  ;;  %v11444_v8 = vunpack.i.l.bf16 %v11443_v24  ;;  %v11315_v48 = vunpack.i.h.bf16 %v19399_v22  ;;  %v2561_v57 = vsel %vm1467_vm1, %v15268_v39, %v11294_v26  ;;  %8689 = vmatpush.bf16.msrb.mxu0 %v10431_v59 }
 0x221   :  { %19402 = vst [vmem:[#allocation44_spill] sm:$0xff] %v15609_v20  ;;  %v2641_v5 = vsel %vm1532_vm2, %v2577_v36, %v11494_v55  ;;  %v2642_v16 = vsel %vm1532_vm2, %v2578_v18, %v11495_v38  ;;  %v19406_v20 = vld [vmem:[#allocation71_spill] sm:$0xff]  ;;  %v11349_v55 = vunpack.i.l.bf16 %v19404_v29  ;;  %v19409_v36 = vld [vmem:[#allocation56_spill] sm:$0xff]  ;;  %v11310_v22 = vunpack.i.h.bf16 %v19410_v54 }
 0x222   :  { %19403 = vst [vmem:[#allocation34_spill] sm:$0xff] %v15612_v19  ;;  %3840 = vmatmul.bf16.gmra.mxu0 %v19405_v3  ;;  %v2705_v30 = vpack.c.bf16 %v2641_v5, %v2641_v5  ;;  %v2706_v56 = vpack.c.bf16 %v2642_v16, %v2642_v16  ;;  %v2621_v24 = vsel %vm1532_vm2, %v2557_v9, %v11444_v8  ;;  %v19408_v9 = vld [vmem:[#allocation53_spill] sm:$0xff]  ;;  %v11329_v29 = vunpack.i.l.bf16 %v19409_v36 }
 0x223   :  { %v2622_v62 = vsel %vm1532_vm2, %v2558_v41, %v11445_v13  ;;  %v15627_v19 = vsel %vm1402_vm0, %v19406_v20, %v11249_v37  ;;  %v2685_v38 = vpack.c.bf16 %v2621_v24, %v2621_v24  ;;  %v15636_v16 = vsel %vm1467_vm1, %v15420_v15, %v11314_v7  ;;  %v9446_v15 = vld [vmem:[%s18977_s0 + $0x32] sm:$0xff]  ;;  %v9447_v7 = vld [vmem:[%s18977_s0 + $0x3a] sm:$0xff] }
 0x224   :  { %v2686_v18 = vpack.c.bf16 %v2622_v62, %v2622_v62  ;;  %v11265_v41 = vunpack.i.h.bf16 %v19408_v9  ;;  %v11330_v13 = vunpack.i.h.bf16 %v19409_v36  ;;  %2769 = vst [vmem:[#allocation2 + $0xf4] sm:$0xf] %v2705_v30  ;;  %v2562_v37 = vsel %vm1467_vm1, %v15260_v46, %v11295_v21 }
 0x225   :  { %3910 = vmatmul.bf16.gmra.mxu1 %v19407_v12  ;;  %2770 = vst [vmem:[#allocation2 + $0x100] sm:$0xf] %v2706_v56  ;;  %v11309_v20 = vunpack.i.l.bf16 %v19410_v54  ;;  %v2584_v46 = vsel %vm1467_vm1, %v15483_v53, %v11350_v61  ;;  %v2813_v39 = vpack.c.bf16 %v9446_v15, %v9446_v15  ;;  %v2814_v26 = vpack.c.bf16 %v9447_v7, %v9447_v7  ;;  %v19411_v53 = vld [vmem:[#allocation74_spill] sm:$0xff] }
 0x226   :  { %2749 = vst [vmem:[#allocation2 + $0x4] sm:$0xf] %v2685_v38  ;;  %v11508_v21 = vpop.permute.xlu2 %11507  ;;  %v2583_v8 = vsel %vm1467_vm1, %v15487_v25, %v11349_v55  ;;  %v11365_v61 = vunpack.i.h.bf16 %v19411_v53  ;;  %v11364_v38 = vunpack.i.l.bf16 %v19411_v53 }
 0x227   :  { %2750 = vst [vmem:[#allocation2 + $0x10] sm:$0xf] %v2686_v18  ;;  %v11510_v5 = vunpack.i.h.bf16 %v11508_v21  ;;  %v11509_v3 = vunpack.i.l.bf16 %v11508_v21  ;;  %v11458_v30 = vpop.permute.xlu1 %11457  ;;  %v11453_v56 = vpop.permute.xlu0 %11452  ;;  %v10430_v18 = vld [vmem:[%s18979_s2 + $0x80] sm:$0xff] }
 0x228   :  { %v15657_v24 = vpop.f32.mrf.mxu1  ;;  %v11460_v59 = vunpack.i.h.bf16 %v11458_v30  ;;  %v11459_v62 = vunpack.i.l.bf16 %v11458_v30  ;;  %v11455_v12 = vunpack.i.h.bf16 %v11453_v56  ;;  %v11454_v36 = vunpack.i.l.bf16 %v11453_v56  ;;  %2878 = vst.msk [vmem:[#allocation2 + $0x8] sm:$0xf] %vm2877_vm3, %v2813_v39  ;;  %4102 = vmatpush.bf16.msra.mxu2 %v10430_v18  ;;  %10633 = vmatpush.bf16.msra.mxu3 %v10430_v18 }
 0x229   :  { %v2647_v25 = vsel %vm1532_vm2, %v2583_v8, %v11509_v3  ;;  %v2648_v55 = vsel %vm1532_vm2, %v2584_v46, %v11510_v5  ;;  %2879 = vst.msk [vmem:[#allocation2 + $0x14] sm:$0xf] %vm2877_vm3, %v2814_v26  ;;  %v2570_v5 = vsel %vm1467_vm1, %v15416_v47, %v11315_v48  ;;  %v15678_v26 = vsel %vm1467_vm1, %v15448_v42, %v11329_v29  ;;  %v12573_v47 = vld [vmem:[%s18979_s2 + $0x78] sm:$0xff] }
 0x22a   :  { %v2711_v54 = vpack.c.bf16 %v2647_v25, %v2647_v25  ;;  %v2712_v15 = vpack.c.bf16 %v2648_v55, %v2648_v55  ;;  %v2627_v7 = vsel %vm1532_vm2, %v15590_v31, %v11459_v62  ;;  %v2628_v21 = vsel %vm1532_vm2, %v15594_v27, %v11460_v59  ;;  %8690 = vmatpush.bf16.msrb.mxu0 %v10430_v18  ;;  %v12574_v42 = vld [vmem:[%s18979_s2 + $0x38] sm:$0xff] }
 0x22b   :  { %v2691_v39 = vpack.c.bf16 %v2627_v7, %v2627_v7  ;;  %v2692_v30 = vpack.c.bf16 %v2628_v21, %v2628_v21  ;;  %v2626_v8 = vsel %vm1532_vm2, %v2562_v37, %v11455_v12  ;;  %v2625_v46 = vsel %vm1532_vm2, %v2561_v57, %v11454_v36 }
 0x22c   :  { %2775 = vst [vmem:[#allocation2 + $0x13c] sm:$0xf] %v2711_v54  ;;  %v2690_v3 = vpack.c.bf16 %v2626_v8, %v2626_v8  ;;  %v15682_v31 = vsel %vm1467_vm1, %v15444_v58, %v11330_v13  ;;  %v2568_v27 = vsel %vm1467_vm1, %v15278_v50, %v11310_v22  ;;  %v2689_v37 = vpack.c.bf16 %v2625_v46, %v2625_v46  ;;  %v19412_v58 = vld [vmem:[#allocation49_spill] sm:$0xff] }
 0x22d   :  { %2776 = vst [vmem:[#allocation2 + $0x148] sm:$0xf] %v2712_v15  ;;  %8514 = vmatpush.bf16.msrb.mxu2 %v12573_v47  ;;  %8345 = vmatpush.bf16.msrb.mxu3 %v12574_v42  ;;  %v2567_v48 = vsel %vm1467_vm1, %v15294_v45, %v11309_v20  ;;  %v11325_v13 = vunpack.i.h.bf16 %v19412_v58  ;;  %v11324_v29 = vunpack.i.l.bf16 %v19412_v58  ;;  %v2590_v50 = vsel %vm1467_vm1, %v15502_v32, %v11365_v61  ;;  %v19414_v47 = vld [vmem:[#allocation51_spill] sm:$0xff] }
 0x22e   :  { %2755 = vst [vmem:[#allocation2 + $0x4c] sm:$0xf] %v2691_v39  ;;  %v11523_v57 = vpop.permute.xlu2 %11522  ;;  %v2589_v22 = vsel %vm1467_vm1, %v15507_v44, %v11364_v38  ;;  %v11380_v56 = vunpack.i.h.bf16 %v15310_v6  ;;  %v11379_v18 = vunpack.i.l.bf16 %v15310_v6  ;;  %v11345_v42 = vunpack.i.h.bf16 %v19414_v47 }
 0x22f   :  { %2756 = vst [vmem:[#allocation2 + $0x58] sm:$0xf] %v2692_v30  ;;  %v11525_v59 = vunpack.i.h.bf16 %v11523_v57  ;;  %v11524_v62 = vunpack.i.l.bf16 %v11523_v57  ;;  %v11473_v12 = vpop.permute.xlu1 %11472  ;;  %v11468_v36 = vpop.permute.xlu0 %11467  ;;  %v9520_v45 = vld [vmem:[#allocation2 + $0x8] sm:$0xf]  ;;  %v12575_v30 = vld [vmem:[%s18979_s2 + $0x70] sm:$0xff] }
 0x230   :  { %2754 = vst [vmem:[#allocation2 + $0x40] sm:$0xf] %v2690_v3  ;;  %v15701_v20 = vpop.f32.mrf.mxu1  ;;  %v11475_v53 = vunpack.i.h.bf16 %v11473_v12  ;;  %v11474_v25 = vunpack.i.l.bf16 %v11473_v12  ;;  %v11470_v55 = vunpack.i.h.bf16 %v11468_v36  ;;  %v11469_v32 = vunpack.i.l.bf16 %v11468_v36  ;;  %v10434_v61 = vld [vmem:[#allocation2 + $0x10] sm:$0xf0]  ;;  %v19416_v57 = vld [vmem:[#allocation80_spill] sm:$0xff]  ;;  %v19417_v12 = vld [vmem:[#allocation54_spill] sm:$0xff] }
 0x231   :  { %2753 = vst [vmem:[#allocation2 + $0x34] sm:$0xf] %v2689_v37  ;;  %v2653_v44 = vsel %vm1532_vm2, %v2589_v22, %v11524_v62  ;;  %v2654_v38 = vsel %vm1532_vm2, %v2590_v50, %v11525_v59  ;;  %v9521_v54 = vor.u32 %v10434_v61, %v9520_v45  ;;  %8515 = vmatpush.bf16.msrb.mxu2 %v12575_v30  ;;  %v9448_v59 = vld [vmem:[%s18977_s0 + $0x4a] sm:$0xff]  ;;  %v9449_v62 = vld [vmem:[%s18977_s0 + $0x52] sm:$0xff]  ;;  %v11340_v36 = vunpack.i.h.bf16 %v19417_v12 }
 0x232   :  { %v2717_v15 = vpack.c.bf16 %v2653_v44, %v2653_v44  ;;  %v2718_v7 = vpack.c.bf16 %v2654_v38, %v2654_v38  ;;  %v2633_v21 = vsel %vm1532_vm2, %v15636_v16, %v11474_v25  ;;  %v2634_v39 = vsel %vm1532_vm2, %v2570_v5, %v11475_v53  ;;  %v19415_v5 = vld [vmem:[#allocation60_spill] sm:$0xff] }
 0x233   :  { %v2697_v8 = vpack.c.bf16 %v2633_v21, %v2633_v21  ;;  %v2698_v6 = vpack.c.bf16 %v2634_v39, %v2634_v39  ;;  %v2632_v46 = vsel %vm1532_vm2, %v2568_v27, %v11470_v55  ;;  %v2631_v3 = vsel %vm1532_vm2, %v2567_v48, %v11469_v32  ;;  %9966 = vmatmul.msk.bf16.vlgmr.msra.gmra.mxu2 %vm1402_vm0, %v9521_v54  ;;  %v12576_v27 = vld [vmem:[%s18979_s2 + $0x30] sm:$0xff]  ;;  %v12578_v21 = vld [vmem:[%s18979_s2 + $0x28] sm:$0xff] }
 0x234   :  { %v19413_v37 = vor.u32 %v15326_v11, %v15312_v40  ;;  %v11344_v16 = vunpack.i.l.bf16 %v19414_v47  ;;  %v11360_v58 = vunpack.i.h.bf16 %v19415_v5  ;;  %2781 = vst [vmem:[#allocation2 + $0x184] sm:$0xf] %v2717_v15  ;;  %v2696_v50 = vpack.c.bf16 %v2632_v46, %v2632_v46  ;;  %8346 = vmatpush.bf16.msrb.mxu3 %v12576_v27 }
 0x235   :  { %v11359_v48 = vunpack.i.l.bf16 %v19415_v5  ;;  %v2574_v11 = vsel %vm1467_vm1, %v19416_v57, %v11325_v13  ;;  %v2573_v40 = vsel %vm1467_vm1, %v15316_v2, %v11324_v29  ;;  %2782 = vst [vmem:[#allocation2 + $0x190] sm:$0xf] %v2718_v7  ;;  %v2695_v22 = vpack.c.bf16 %v2631_v3, %v2631_v3  ;;  %v12577_v29 = vld [vmem:[%s18979_s2 + $0x68] sm:$0xff]  ;;  %v12579_v57 = vld [vmem:[%s18979_s2 + $0x20] sm:$0xff] }
 0x236   :  { %3915 = vmatmul.bf16.gmra.mxu1 %v19413_v37  ;;  %v11339_v45 = vunpack.i.l.bf16 %v19417_v12  ;;  %v2596_v13 = vsel %vm1467_vm1, %v15520_v10, %v11380_v56  ;;  %2761 = vst [vmem:[#allocation2 + $0x94] sm:$0xf] %v2697_v8  ;;  %v11538_v53 = vpop.permute.xlu2 %11537  ;;  %v2815_v2 = vpack.c.bf16 %v9448_v59, %v9448_v59  ;;  %8516 = vmatpush.bf16.msrb.mxu2 %v12577_v29  ;;  %v12581_v29 = vld [vmem:[%s18979_s2 + $0x18] sm:$0xff] }
 0x237   :  { %v2595_v25 = vsel %vm1467_vm1, %v15524_v35, %v11379_v18  ;;  %2762 = vst [vmem:[#allocation2 + $0xa0] sm:$0xf] %v2698_v6  ;;  %v11540_v55 = vunpack.i.h.bf16 %v11538_v53  ;;  %v11539_v32 = vunpack.i.l.bf16 %v11538_v53  ;;  %v11488_v61 = vpop.permute.xlu1 %11487  ;;  %v11483_v44 = vpop.permute.xlu0 %11482  ;;  %v2816_v38 = vpack.c.bf16 %v9449_v62, %v9449_v62  ;;  %v19420_v62 = vld [vmem:[#allocation59_spill] sm:$0xff] }
 0x238   :  { %2760 = vst [vmem:[#allocation2 + $0x88] sm:$0xf] %v2696_v50  ;;  %v15744_v54 = vpop.f32.mrf.mxu1  ;;  %v11490_v10 = vunpack.i.h.bf16 %v11488_v61  ;;  %v11489_v56 = vunpack.i.l.bf16 %v11488_v61  ;;  %v11485_v15 = vunpack.i.h.bf16 %v11483_v44  ;;  %v11484_v7 = vunpack.i.l.bf16 %v11483_v44  ;;  %8347 = vmatpush.bf16.msrb.mxu3 %v12578_v21  ;;  %v19419_v50 = vld [vmem:[#allocation26_spill] sm:$0xff] }
 0x239   :  { %19418 = vst [vmem:[#allocation31_spill] sm:$0xff] %v15744_v54  ;;  %v11395_v35 = vunpack.i.h.bf16 %v15386_v63  ;;  %v11394_v18 = vunpack.i.l.bf16 %v15386_v63  ;;  %v2659_v39 = vsel %vm1532_vm2, %v2595_v25, %v11539_v32  ;;  %v2660_v30 = vsel %vm1532_vm2, %v2596_v13, %v11540_v55 }
 0x23a   :  { %2759 = vst [vmem:[#allocation2 + $0x7c] sm:$0xf] %v2695_v22  ;;  %v2723_v8 = vpack.c.bf16 %v2659_v39, %v2659_v39  ;;  %v2724_v6 = vpack.c.bf16 %v2660_v30, %v2660_v30  ;;  %v2639_v46 = vsel %vm1532_vm2, %v15678_v26, %v11489_v56  ;;  %v2640_v3 = vsel %vm1532_vm2, %v15682_v31, %v11490_v10  ;;  %v19423_v39 = vld [vmem:[#allocation77_spill] sm:$0xff] }
 0x23b   :  { %2880 = vst.msk [vmem:[#allocation2 + $0x20] sm:$0xf] %vm2877_vm3, %v2815_v2  ;;  %v2703_v37 = vpack.c.bf16 %v2639_v46, %v2639_v46  ;;  %v2704_v47 = vpack.c.bf16 %v2640_v3, %v2640_v3  ;;  %v2638_v5 = vsel %vm1532_vm2, %v2574_v11, %v11485_v15  ;;  %v2637_v63 = vsel %vm1532_vm2, %v2573_v40, %v11484_v7  ;;  %v12580_v11 = vld [vmem:[%s18979_s2 + $0x60] sm:$0xff] }
 0x23c   :  { %2881 = vst.msk [vmem:[#allocation2 + $0x2c] sm:$0xf] %vm2877_vm3, %v2816_v38  ;;  %v15765_v27 = vsel %vm1402_vm0, %v19419_v50, %v11265_v41  ;;  %v2581_v26 = vsel %vm1467_vm1, %v15495_v43, %v11344_v16  ;;  %v2702_v31 = vpack.c.bf16 %v2638_v5, %v2638_v5  ;;  %8348 = vmatpush.bf16.msrb.mxu3 %v12579_v57  ;;  %v11355_v12 = vunpack.i.h.bf16 %v19420_v62  ;;  %v12584_v5 = vld [vmem:[%s18979_s2 + $0x50] sm:$0xff] }
 0x23d   :  { %2787 = vst [vmem:[#allocation2 + $0x1cc] sm:$0xf] %v2723_v8  ;;  %8517 = vmatpush.bf16.msrb.mxu2 %v12580_v11  ;;  %v2582_v40 = vsel %vm1467_vm1, %v15491_v1, %v11345_v42  ;;  %v15779_v41 = vsel %vm1467_vm1, %v15515_v49, %v11359_v48  ;;  %v15783_v43 = vsel %vm1467_vm1, %v15511_v28, %v11360_v58  ;;  %v11354_v1 = vunpack.i.l.bf16 %v19420_v62  ;;  %v9451_v57 = vld [vmem:[%s18977_s0 + $0x6a] sm:$0xff] }
 0x23e   :  { %2788 = vst [vmem:[#allocation2 + $0x1d8] sm:$0xf] %v2724_v6  ;;  %v2701_v16 = vpack.c.bf16 %v2637_v63, %v2637_v63  ;;  %v2580_v22 = vsel %vm1467_vm1, %v15330_v4, %v11340_v36  ;;  %v2579_v59 = vsel %vm1467_vm1, %v15334_v0, %v11339_v45  ;;  %v11553_v42 = vpop.permute.xlu2 %11552  ;;  %v2602_v49 = vsel %vm1467_vm1, %v15570_v34, %v11395_v35  ;;  %v12582_v34 = vld [vmem:[%s18979_s2 + $0x58] sm:$0xff]  ;;  %v19425_v6 = vld [vmem:[#allocation61_spill] sm:$0xff] }
 0x23f   :  { %2767 = vst [vmem:[#allocation2 + $0xdc] sm:$0xf] %v2703_v37  ;;  %v2601_v28 = vsel %vm1467_vm1, %v15574_v33, %v11394_v18  ;;  %v11555_v58 = vunpack.i.h.bf16 %v11553_v42  ;;  %v11554_v48 = vunpack.i.l.bf16 %v11553_v42  ;;  %v11503_v13 = vpop.permute.xlu1 %11502  ;;  %v11498_v4 = vpop.permute.xlu0 %11497  ;;  %v11410_v33 = vunpack.i.h.bf16 %v15458_v60  ;;  %v19426_v11 = vld [vmem:[#allocation73_spill] sm:$0xff] }
 0x240   :  { %2768 = vst [vmem:[#allocation2 + $0xe8] sm:$0xf] %v2704_v47  ;;  %v15795_v36 = vpop.f32.mrf.mxu1  ;;  %v11505_v0 = vunpack.i.h.bf16 %v11503_v13  ;;  %v11504_v45 = vunpack.i.l.bf16 %v11503_v13  ;;  %v11500_v53 = vunpack.i.h.bf16 %v11498_v4  ;;  %v11499_v2 = vunpack.i.l.bf16 %v11498_v4  ;;  %8349 = vmatpush.bf16.msrb.mxu3 %v12581_v29  ;;  %v12583_v47 = vld [vmem:[%s18979_s2 + $0x10] sm:$0xff]  ;;  %v12585_v4 = vld [vmem:[%s18979_s2 + $0x8] sm:$0xff] }
 0x241   :  { %2766 = vst [vmem:[#allocation2 + $0xd0] sm:$0xf] %v2702_v31  ;;  %8518 = vmatpush.bf16.msrb.mxu2 %v12582_v34  ;;  %v11409_v25 = vunpack.i.l.bf16 %v15458_v60  ;;  %v2665_v55 = vsel %vm1532_vm2, %v2601_v28, %v11554_v48  ;;  %v2666_v32 = vsel %vm1532_vm2, %v2602_v49, %v11555_v58  ;;  %v19422_v60 = vld [vmem:[#allocation78_spill] sm:$0xff]  ;;  %v11264_v8 = vunpack.i.l.bf16 %v19408_v9  ;;  %v9450_v31 = vld [vmem:[%s18977_s0 + $0x62] sm:$0xff] }
 0x242   :  { %19421 = vst [vmem:[#allocation65_spill] sm:$0xff] %v15795_v36  ;;  %v9532_v61 = vld [vmem:[#allocation2 + $0x20] sm:$0xf]  ;;  %v2729_v44 = vpack.c.bf16 %v2665_v55, %v2665_v55  ;;  %v2730_v38 = vpack.c.bf16 %v2666_v32, %v2666_v32  ;;  %v2645_v10 = vsel %vm1532_vm2, %v2581_v26, %v11504_v45  ;;  %v2646_v56 = vsel %vm1532_vm2, %v2582_v40, %v11505_v0  ;;  %v19428_v0 = vld [vmem:[#allocation33_spill] sm:$0xff] }
 0x243   :  { %2765 = vst [vmem:[#allocation2 + $0xc4] sm:$0xf] %v2701_v16  ;;  %v10437_v15 = vld [vmem:[#allocation2 + $0x28] sm:$0xf0]  ;;  %v2709_v7 = vpack.c.bf16 %v2645_v10, %v2645_v10  ;;  %v2710_v21 = vpack.c.bf16 %v2646_v56, %v2646_v56  ;;  %v2644_v35 = vsel %vm1532_vm2, %v2580_v22, %v11500_v53  ;;  %v2643_v18 = vsel %vm1532_vm2, %v2579_v59, %v11499_v2 }
 0x244   :  { %v19424_v30 = vor.u32 %v19422_v60, %v19423_v39  ;;  %v11375_v46 = vunpack.i.h.bf16 %v19425_v6  ;;  %2793 = vst [vmem:[#allocation2 + $0x214] sm:$0xf] %v2729_v44  ;;  %v2708_v3 = vpack.c.bf16 %v2644_v35, %v2644_v35  ;;  %v9533_v37 = vor.u32 %v10437_v15, %v9532_v61  ;;  %8350 = vmatpush.bf16.msrb.mxu3 %v12583_v47  ;;  %v19429_v44 = vld [vmem:[#allocation27_spill] sm:$0xff]  ;;  %v19430_v10 = vld [vmem:[#allocation36_spill] sm:$0xff] }
 0x245   :  { %8519 = vmatpush.bf16.msrb.mxu2 %v12584_v5  ;;  %v11374_v63 = vunpack.i.l.bf16 %v19425_v6  ;;  %v2586_v9 = vsel %vm1467_vm1, %v15352_v23, %v11355_v12  ;;  %v2585_v50 = vsel %vm1467_vm1, %v15356_v17, %v11354_v1  ;;  %2794 = vst [vmem:[#allocation2 + $0x220] sm:$0xf] %v2730_v38  ;;  %v2707_v26 = vpack.c.bf16 %v2643_v18, %v2643_v18  ;;  %v19432_v35 = vld [vmem:[#allocation39_spill] sm:$0xff]  ;;  %v19433_v60 = vld [vmem:[#allocation32_spill] sm:$0xff] }
 0x246   :  { %3920 = vmatmul.bf16.gmra.mxu1 %v19424_v30  ;;  %v11370_v40 = vunpack.i.h.bf16 %v19426_v11  ;;  %v11369_v16 = vunpack.i.l.bf16 %v19426_v11  ;;  %v2608_v23 = vsel %vm1467_vm1, %v15598_v51, %v11410_v33  ;;  %2773 = vst [vmem:[#allocation2 + $0x124] sm:$0xf] %v2709_v7  ;;  %v11568_v22 = vpop.permute.xlu2 %11567  ;;  %9967 = vmatmul.msk.bf16.gmra.mxu2 %vm1402_vm0, %v9533_v37  ;;  %v2817_v17 = vpack.c.bf16 %v9450_v31, %v9450_v31  ;;  %v19431_v7 = vld [vmem:[#allocation15_spill] sm:$0xff] }
 0x247   :  { %v2607_v59 = vsel %vm1467_vm1, %v15627_v19, %v11409_v25  ;;  %2774 = vst [vmem:[#allocation2 + $0x130] sm:$0xf] %v2710_v21  ;;  %v11570_v62 = vunpack.i.h.bf16 %v11568_v22  ;;  %v11569_v12 = vunpack.i.l.bf16 %v11568_v22  ;;  %v11518_v1 = vpop.permute.xlu1 %11517  ;;  %v11513_v42 = vpop.permute.xlu0 %11512  ;;  %v2818_v49 = vpack.c.bf16 %v9451_v57, %v9451_v57  ;;  %v19435_v47 = vld [vmem:[#allocation87_spill] sm:$0xff] }
 0x248   :  { %2772 = vst [vmem:[#allocation2 + $0x118] sm:$0xf] %v2708_v3  ;;  %v15840_v28 = vpop.f32.mrf.mxu1  ;;  %v11520_v58 = vunpack.i.h.bf16 %v11518_v1  ;;  %v11519_v48 = vunpack.i.l.bf16 %v11518_v1  ;;  %v11515_v51 = vunpack.i.h.bf16 %v11513_v42  ;;  %v11514_v13 = vunpack.i.l.bf16 %v11513_v42  ;;  %8351 = vmatpush.bf16.msrb.mxu3 %v12585_v4  ;;  %v19434_v3 = vld [vmem:[#allocation86_spill] sm:$0xff] }
 0x249   :  { %19427 = vst [vmem:[#allocation57_spill] sm:$0xff] %v15840_v28  ;;  %8520 = vmatpush.bf16.msrb.mxu2 %v19428_v0  ;;  %v11425_v19 = vunpack.i.h.bf16 %v15534_v14  ;;  %v11424_v45 = vunpack.i.l.bf16 %v15534_v14  ;;  %v2671_v53 = vsel %vm1532_vm2, %v2607_v59, %v11569_v12  ;;  %v2672_v2 = vsel %vm1532_vm2, %v2608_v23, %v11570_v62 }
 0x24a   :  { %2771 = vst [vmem:[#allocation2 + $0x10c] sm:$0xf] %v2707_v26  ;;  %v2735_v29 = vpack.c.bf16 %v2671_v53, %v2671_v53  ;;  %v2736_v34 = vpack.c.bf16 %v2672_v2, %v2672_v2  ;;  %v2651_v33 = vsel %vm1532_vm2, %v15779_v41, %v11519_v48  ;;  %v2652_v25 = vsel %vm1532_vm2, %v15783_v43, %v11520_v58  ;;  %v12586_v43 = vld [vmem:[%s18979_s2] sm:$0xff] }
 0x24b   :  { %2882 = vst.msk [vmem:[#allocation2 + $0x38] sm:$0xf] %vm2877_vm3, %v2817_v17  ;;  %v2715_v55 = vpack.c.bf16 %v2651_v33, %v2651_v33  ;;  %v2716_v32 = vpack.c.bf16 %v2652_v25, %v2652_v25  ;;  %v2650_v61 = vsel %vm1532_vm2, %v2586_v9, %v11515_v51  ;;  %v2649_v14 = vsel %vm1532_vm2, %v2585_v50, %v11514_v13  ;;  %v9514_v9 = vld [vmem:[#allocation2 + $0xc] sm:$0xf0]  ;;  %v12587_v53 = vld [vmem:[%s18977_s0 + $0x339] sm:$0xff] }
 0x24c   :  { %2883 = vst.msk [vmem:[#allocation2 + $0x44] sm:$0xf] %vm2877_vm3, %v2818_v49  ;;  %v2549_v38 = vsel %vm1402_vm0, %v19429_v44, %v11264_v8  ;;  %v11280_v56 = vunpack.i.h.bf16 %v19430_v10  ;;  %v11279_v41 = vunpack.i.l.bf16 %v19430_v10  ;;  %v2714_v15 = vpack.c.bf16 %v2650_v61, %v2650_v61  ;;  %8352 = vmatpush.bf16.msrb.mxu3 %v12586_v43  ;;  %v19436_v50 = vld [vmem:[#allocation69_spill] sm:$0xff]  ;;  %v9452_v10 = vld [vmem:[%s18977_s0 + $0x7a] sm:$0xff] }
 0x24d   :  { %2799 = vst [vmem:[#allocation2 + $0x25c] sm:$0xf] %v2735_v29  ;;  %8521 = vmatpush.bf16.msrb.mxu2 %v15551_v52  ;;  %v2593_v21 = vsel %vm1467_vm1, %v19431_v7, %v11374_v63  ;;  %v2594_v18 = vsel %vm1467_vm1, %v19432_v35, %v11375_v46  ;;  %v11390_v39 = vunpack.i.h.bf16 %v19433_v60  ;;  %v2713_v30 = vpack.c.bf16 %v2649_v14, %v2649_v14  ;;  %v10432_v63 = vld [vmem:[#allocation2 + $0x4] sm:$0xf]  ;;  %v12588_v29 = vld [vmem:[%s18977_s0 + $0x331] sm:$0xff] }
 0x24e   :  { %2800 = vst [vmem:[#allocation2 + $0x268] sm:$0xf] %v2736_v34  ;;  %v11389_v8 = vunpack.i.l.bf16 %v19433_v60  ;;  %v2592_v37 = vsel %vm1467_vm1, %v19434_v3, %v11370_v40  ;;  %v2591_v52 = vsel %vm1467_vm1, %v19435_v47, %v11369_v16  ;;  %v2614_v5 = vsel %vm1467_vm1, %v15765_v27, %v11425_v19  ;;  %v11583_v6 = vpop.permute.xlu2 %11582  ;;  %v19439_v61 = vld [vmem:[#allocation81_spill] sm:$0xff]  ;;  %v19441_v43 = vld [vmem:[#allocation42_spill] sm:$0xff] }
 0x24f   :  { %2779 = vst [vmem:[#allocation2 + $0x16c] sm:$0xf] %v2715_v55  ;;  %v2613_v46 = vsel %vm1467_vm1, %v2549_v38, %v11424_v45  ;;  %v11440_v26 = vunpack.i.h.bf16 %v19436_v50  ;;  %v11585_v31 = vunpack.i.h.bf16 %v11583_v6  ;;  %v11584_v57 = vunpack.i.l.bf16 %v11583_v6  ;;  %v11533_v11 = vpop.permute.xlu1 %11532  ;;  %v11528_v23 = vpop.permute.xlu0 %11527  ;;  %v19438_v55 = vld [vmem:[#allocation40_spill] sm:$0xff] }
 0x250   :  { %2780 = vst [vmem:[#allocation2 + $0x178] sm:$0xf] %v2716_v32  ;;  %v15882_v40 = vpop.f32.mrf.mxu1  ;;  %v11535_v16 = vunpack.i.h.bf16 %v11533_v11  ;;  %v11534_v22 = vunpack.i.l.bf16 %v11533_v11  ;;  %v11530_v17 = vunpack.i.h.bf16 %v11528_v23  ;;  %v11529_v27 = vunpack.i.l.bf16 %v11528_v23 }
 0x251   :  { %2778 = vst [vmem:[#allocation2 + $0x160] sm:$0xf] %v2714_v15  ;;  %v11439_v59 = vunpack.i.l.bf16 %v19436_v50  ;;  %v2677_v62 = vsel %vm1532_vm2, %v2613_v46, %v11584_v57  ;;  %v2678_v12 = vsel %vm1532_vm2, %v2614_v5, %v11585_v31  ;;  %v9517_v1 = vor.u32 %v10432_v63, %v9514_v9  ;;  %v19443_v9 = vld [vmem:[#allocation88_spill] sm:$0xff]  ;;  %v19444_v50 = vld [vmem:[#allocation89_spill] sm:$0xff] }
 0x252   :  { %19437 = vst [vmem:[#allocation13_spill] sm:$0xff] %v15882_v40  ;;  %v9544_v42 = vld [vmem:[#allocation2 + $0x38] sm:$0xf]  ;;  %v2741_v49 = vpack.c.bf16 %v2677_v62, %v2677_v62  ;;  %v2742_v58 = vpack.c.bf16 %v2678_v12, %v2678_v12  ;;  %v2657_v48 = vsel %vm1532_vm2, %v2593_v21, %v11534_v22  ;;  %v2658_v51 = vsel %vm1532_vm2, %v2594_v18, %v11535_v16  ;;  %v12589_v12 = vld [vmem:[%s18977_s0 + $0x289] sm:$0xff] }
 0x253   :  { %2777 = vst [vmem:[#allocation2 + $0x154] sm:$0xf] %v2713_v30  ;;  %v10440_v13 = vld [vmem:[#allocation2 + $0x40] sm:$0xf0]  ;;  %v2721_v4 = vpack.c.bf16 %v2657_v48, %v2657_v48  ;;  %v2722_v0 = vpack.c.bf16 %v2658_v51, %v2658_v51  ;;  %v2656_v19 = vsel %vm1532_vm2, %v2592_v37, %v11530_v17  ;;  %v2655_v45 = vsel %vm1532_vm2, %v2591_v52, %v11529_v27  ;;  %v19447_v51 = vld [vmem:[#allocation84_spill] sm:$0xff] }
 0x254   :  { %v2556_v2 = vsel %vm1402_vm0, %v12587_v53, %v11280_v56  ;;  %v2555_v34 = vsel %vm1402_vm0, %v12588_v29, %v11279_v41  ;;  %2805 = vst [vmem:[#allocation2 + $0x2a4] sm:$0xf] %v2741_v49  ;;  %v2720_v33 = vpack.c.bf16 %v2656_v19, %v2656_v19  ;;  %v9545_v25 = vor.u32 %v10440_v13, %v9544_v42  ;;  %v9453_v56 = vld [vmem:[%s18977_s0 + $0x82] sm:$0xff]  ;;  %v12590_v19 = vld [vmem:[%s18977_s0 + $0x279] sm:$0xff]  ;;  %v12591_v29 = vld [vmem:[%s18977_s0 + $0x271] sm:$0xff] }
 0x255   :  { %v2599_v32 = vsel %vm1467_vm1, %v19438_v55, %v11389_v8  ;;  %v11385_v14 = vunpack.i.h.bf16 %v19439_v61  ;;  %v11384_v44 = vunpack.i.l.bf16 %v19439_v61  ;;  %2806 = vst [vmem:[#allocation2 + $0x2b0] sm:$0xf] %v2742_v58  ;;  %v2719_v38 = vpack.c.bf16 %v2655_v45, %v2655_v45  ;;  %v19440_v41 = vld [vmem:[#allocation16_spill] sm:$0xff]  ;;  %v19448_v45 = vld [vmem:[#allocation37_spill] sm:$0xff] }
 0x256   :  { %3934 = vmatmul.bf16.vlgmr.msrb.gmra.mxu1 %v9517_v1  ;;  %v2600_v15 = vsel %vm1467_vm1, %v19440_v41, %v11390_v39  ;;  %v11404_v7 = vunpack.i.l.bf16 %v19441_v43  ;;  %v2620_v21 = vsel %vm1467_vm1, %v2556_v2, %v11440_v26  ;;  %2785 = vst [vmem:[#allocation2 + $0x1b4] sm:$0xf] %v2721_v4  ;;  %v11598_v35 = vpop.permute.xlu2 %11597  ;;  %9968 = vmatmul.msk.bf16.gmra.mxu2 %vm1402_vm0, %v9545_v25  ;;  %v19445_v1 = vld [vmem:[#allocation50_spill] sm:$0xff]  ;;  %v11405_v48 = vunpack.i.h.bf16 %v19441_v43 }
 0x257   :  { %v2819_v18 = vpack.c.bf16 %v9452_v10, %v9452_v10  ;;  %v2619_v60 = vsel %vm1467_vm1, %v2555_v34, %v11439_v59  ;;  %2786 = vst [vmem:[#allocation2 + $0x1c0] sm:$0xf] %v2722_v0  ;;  %v11600_v30 = vunpack.i.h.bf16 %v11598_v35  ;;  %v11599_v8 = vunpack.i.l.bf16 %v11598_v35  ;;  %v11548_v3 = vpop.permute.xlu1 %11547  ;;  %v11543_v37 = vpop.permute.xlu0 %11542  ;;  %v19451_v25 = vld [vmem:[#allocation14_spill] sm:$0xff]  ;;  %v12593_v10 = vld [vmem:[%s18977_s0 + $0x2c1] sm:$0xff] }
 0x258   :  { %v2820_v47 = vpack.c.bf16 %v9453_v56, %v9453_v56  ;;  %2784 = vst [vmem:[#allocation2 + $0x1a8] sm:$0xf] %v2720_v33  ;;  %v15915_v52 = vpop.f32.mrf.mxu1  ;;  %v11550_v39 = vunpack.i.h.bf16 %v11548_v3  ;;  %v11549_v5 = vunpack.i.l.bf16 %v11548_v3  ;;  %v11545_v6 = vunpack.i.h.bf16 %v11543_v37 }
 0x259   :  { %19442 = vst [vmem:[#allocation18_spill] sm:$0xff] %v15915_v52  ;;  %v11544_v63 = vunpack.i.l.bf16 %v11543_v37  ;;  %v2598_v46 = vsel %vm1467_vm1, %v19443_v9, %v11385_v14  ;;  %v2597_v26 = vsel %vm1467_vm1, %v19444_v50, %v11384_v44  ;;  %v2683_v31 = vsel %vm1532_vm2, %v2619_v60, %v11599_v8  ;;  %v10435_v44 = vld [vmem:[#allocation2 + $0x1c] sm:$0xf] }
 0x25a   :  { %2783 = vst [vmem:[#allocation2 + $0x19c] sm:$0xf] %v2719_v38  ;;  %v2684_v57 = vsel %vm1532_vm2, %v2620_v21, %v11600_v30  ;;  %v2747_v11 = vpack.c.bf16 %v2683_v31, %v2683_v31  ;;  %v2663_v16 = vsel %vm1532_vm2, %v2599_v32, %v11549_v5  ;;  %v2664_v22 = vsel %vm1532_vm2, %v2600_v15, %v11550_v39  ;;  %v12592_v32 = vld [vmem:[%s18977_s0 + $0x291] sm:$0xff]  ;;  %v9526_v38 = vld [vmem:[#allocation2 + $0x24] sm:$0xf0] }
 0x25b   :  { %v2748_v23 = vpack.c.bf16 %v2684_v57, %v2684_v57  ;;  %2884 = vst.msk [vmem:[#allocation2 + $0x50] sm:$0xf] %vm2877_vm3, %v2819_v18  ;;  %v2727_v17 = vpack.c.bf16 %v2663_v16, %v2663_v16  ;;  %v2728_v27 = vpack.c.bf16 %v2664_v22, %v2664_v22  ;;  %v2662_v59 = vsel %vm1532_vm2, %v2598_v46, %v11545_v6  ;;  %v19454_v15 = vld [vmem:[#allocation52_spill] sm:$0xff]  ;;  %v12594_v57 = vld [vmem:[%s18977_s0 + $0x2b9] sm:$0xff] }
 0x25c   :  { %v2661_v62 = vsel %vm1532_vm2, %v2597_v26, %v11544_v63  ;;  %2885 = vst.msk [vmem:[#allocation2 + $0x5c] sm:$0xf] %vm2877_vm3, %v2820_v47  ;;  %v19446_v42 = vunpack.i.l.bf16 %v19445_v1  ;;  %v2726_v58 = vpack.c.bf16 %v2662_v59, %v2662_v59  ;;  %v11400_v13 = vunpack.i.h.bf16 %v19447_v51  ;;  %v19456_v59 = vld [vmem:[#allocation17_spill] sm:$0xff] }
 0x25d   :  { %2811 = vst [vmem:[#allocation2 + $0x2ec] sm:$0xf] %v2747_v11  ;;  %v11399_v4 = vunpack.i.l.bf16 %v19447_v51  ;;  %v2725_v0 = vpack.c.bf16 %v2661_v62, %v2661_v62  ;;  %v19449_v53 = vunpack.i.h.bf16 %v19448_v45  ;;  %v19450_v34 = vunpack.i.l.bf16 %v19448_v45 }
 0x25e   :  { %v2541_v49 = vsel %vm1402_vm0, %v12589_v12, %v19446_v42  ;;  %2812 = vst [vmem:[#allocation2 + $0x2f8] sm:$0xf] %v2748_v23  ;;  %v11254_v55 = vunpack.i.l.bf16 %v19451_v25  ;;  %v19452_v61 = vunpack.i.h.bf16 %v19445_v1  ;;  %v19453_v56 = vunpack.i.h.bf16 %v19451_v25  ;;  %v19457_v12 = vld [vmem:[#allocation72_spill] sm:$0xff]  ;;  %v19459_v25 = vld [vmem:[#allocation41_spill] sm:$0xff] }
 0x25f   :  { %v2540_v2 = vsel %vm1402_vm0, %v12590_v19, %v19449_v53  ;;  %v2539_v33 = vsel %vm1402_vm0, %v12591_v29, %v19450_v34  ;;  %2791 = vst [vmem:[#allocation2 + $0x1fc] sm:$0xf] %v2727_v17  ;;  %v11260_v43 = vunpack.i.h.bf16 %v19454_v15  ;;  %v11259_v21 = vunpack.i.l.bf16 %v19454_v15  ;;  %v11563_v18 = vpop.permute.xlu1 %11562  ;;  %v11558_v60 = vpop.permute.xlu0 %11557  ;;  %v9480_v17 = vld [vmem:[%s18977_s0 + $0x1fa] sm:$0xff]  ;;  %v12596_v29 = vld [vmem:[%s18977_s0 + $0x2d1] sm:$0xff] }
 0x260   :  { %v2542_v14 = vsel %vm1402_vm0, %v12592_v32, %v19452_v61  ;;  %v15963_v41 = vsel %vm1402_vm0, %v12593_v10, %v19453_v56  ;;  %v2605_v35 = vsel %vm1467_vm1, %v2541_v49, %v11404_v7  ;;  %2792 = vst [vmem:[#allocation2 + $0x208] sm:$0xf] %v2728_v27  ;;  %v15968_v30 = vpop.f32.mrf.mxu1  ;;  %v11565_v8 = vunpack.i.h.bf16 %v11563_v18  ;;  %v9481_v27 = vld [vmem:[%s18977_s0 + $0x202] sm:$0xff]  ;;  %v12595_v53 = vld [vmem:[%s18977_s0 + $0x2d9] sm:$0xff] }
 0x261   :  { %2790 = vst [vmem:[#allocation2 + $0x1f0] sm:$0xf] %v2726_v58  ;;  %v11564_v3 = vunpack.i.l.bf16 %v11563_v18  ;;  %v11560_v37 = vunpack.i.h.bf16 %v11558_v60  ;;  %v11559_v47 = vunpack.i.l.bf16 %v11558_v60  ;;  %v2606_v39 = vsel %vm1467_vm1, %v2542_v14, %v11405_v48  ;;  %v9454_v58 = vld [vmem:[%s18977_s0 + $0x92] sm:$0xff]  ;;  %v9455_v48 = vld [vmem:[%s18977_s0 + $0x9a] sm:$0xff] }
 0x262   :  { %19455 = vst [vmem:[#allocation28_spill] sm:$0xff] %v15968_v30  ;;  %v2604_v5 = vsel %vm1467_vm1, %v2540_v2, %v11400_v13  ;;  %v2603_v6 = vsel %vm1467_vm1, %v2539_v33, %v11399_v4  ;;  %v9529_v63 = vor.u32 %v10435_v44, %v9526_v38  ;;  %v9556_v9 = vld [vmem:[#allocation2 + $0x50] sm:$0xf]  ;;  %v2670_v46 = vsel %vm1532_vm2, %v2606_v39, %v11565_v8  ;;  %v19458_v13 = vld [vmem:[#allocation30_spill] sm:$0xff] }
 0x263   :  { %2789 = vst [vmem:[#allocation2 + $0x1e4] sm:$0xf] %v2725_v0  ;;  %v2669_v7 = vsel %vm1532_vm2, %v2605_v35, %v11564_v3  ;;  %v2668_v50 = vsel %vm1532_vm2, %v2604_v5, %v11560_v37  ;;  %v2667_v26 = vsel %vm1532_vm2, %v2603_v6, %v11559_v47  ;;  %v10443_v31 = vld [vmem:[#allocation2 + $0x58] sm:$0xf0]  ;;  %v2545_v11 = vsel %vm1402_vm0, %v12594_v57, %v11254_v55  ;;  %v19461_v5 = vld [vmem:[#allocation79_spill] sm:$0xff] }
 0x264   :  { %v2733_v23 = vpack.c.bf16 %v2669_v7, %v2669_v7  ;;  %v2734_v16 = vpack.c.bf16 %v2670_v46, %v2670_v46  ;;  %v2732_v22 = vpack.c.bf16 %v2668_v50, %v2668_v50  ;;  %v11270_v62 = vunpack.i.h.bf16 %v19456_v59 }
 0x265   :  { %v11420_v1 = vunpack.i.h.bf16 %v19457_v12  ;;  %v2731_v42 = vpack.c.bf16 %v2667_v26, %v2667_v26  ;;  %v9557_v49 = vor.u32 %v10443_v31, %v9556_v9  ;;  %v11419_v51 = vunpack.i.l.bf16 %v19457_v12  ;;  %v19462_v31 = vld [vmem:[#allocation20_spill] sm:$0xff] }
 0x266   :  { %3939 = vmatmul.bf16.gmra.mxu1 %v9529_v63  ;;  %v11415_v4 = vunpack.i.h.bf16 %v19458_v13  ;;  %v11414_v0 = vunpack.i.l.bf16 %v19458_v13  ;;  %2797 = vst [vmem:[#allocation2 + $0x244] sm:$0xf] %v2733_v23  ;;  %v2847_v19 = vpack.c.bf16 %v9480_v17, %v9480_v17  ;;  %v11269_v45 = vunpack.i.l.bf16 %v19456_v59  ;;  %v12598_v23 = vld [vmem:[%s18977_s0 + $0x321] sm:$0xff] }
 0x267   :  { %v2548_v2 = vsel %vm1402_vm0, %v12595_v53, %v11260_v43  ;;  %v2547_v34 = vsel %vm1402_vm0, %v12596_v29, %v11259_v21  ;;  %2798 = vst [vmem:[#allocation2 + $0x250] sm:$0xf] %v2734_v16  ;;  %9969 = vmatmul.msk.bf16.gmra.mxu2 %vm1402_vm0, %v9557_v49  ;;  %v2848_v33 = vpack.c.bf16 %v9481_v27, %v9481_v27  ;;  %v11275_v55 = vunpack.i.h.bf16 %v19459_v25  ;;  %v11578_v61 = vpop.permute.xlu1 %11577  ;;  %v11573_v14 = vpop.permute.xlu0 %11572  ;;  %v9538_v17 = vld [vmem:[#allocation2 + $0x3c] sm:$0xf0]  ;;  %v12599_v27 = vld [vmem:[%s18977_s0 + $0x309] sm:$0xff] }
 0x268   :  { %v11274_v32 = vunpack.i.l.bf16 %v19459_v25  ;;  %2796 = vst [vmem:[#allocation2 + $0x238] sm:$0xf] %v2732_v22  ;;  %v2821_v44 = vpack.c.bf16 %v9454_v58, %v9454_v58  ;;  %v2822_v38 = vpack.c.bf16 %v9455_v48, %v9455_v48  ;;  %v16010_v10 = vpop.f32.mrf.mxu1  ;;  %v11580_v56 = vunpack.i.h.bf16 %v11578_v61  ;;  %v10438_v22 = vld [vmem:[#allocation2 + $0x34] sm:$0xf]  ;;  %v12600_v12 = vld [vmem:[%s18977_s0 + $0x301] sm:$0xff] }
 0x269   :  { %2795 = vst [vmem:[#allocation2 + $0x22c] sm:$0xf] %v2731_v42  ;;  %v11579_v15 = vunpack.i.l.bf16 %v11578_v61  ;;  %v11575_v43 = vunpack.i.h.bf16 %v11573_v14  ;;  %v11574_v21 = vunpack.i.l.bf16 %v11573_v14  ;;  %v2611_v35 = vsel %vm1467_vm1, %v2547_v34, %v11419_v51 }
 0x26a   :  { %19460 = vst [vmem:[#allocation55_spill] sm:$0xff] %v16010_v10  ;;  %v2612_v18 = vsel %vm1467_vm1, %v2548_v2, %v11420_v1  ;;  %v2610_v60 = vsel %vm1467_vm1, %v15963_v41, %v11415_v4  ;;  %v2609_v8 = vsel %vm1467_vm1, %v2545_v11, %v11414_v0  ;;  %v11434_v6 = vunpack.i.l.bf16 %v19461_v5  ;;  %v12597_v41 = vld [vmem:[%s18977_s0 + $0x319] sm:$0xff] }
 0x26b   :  { %2912 = vst.msk [vmem:[#allocation2 + $0x1a0] sm:$0xf] %vm2877_vm3, %v2847_v19  ;;  %v2675_v3 = vsel %vm1532_vm2, %v2611_v35, %v11579_v15  ;;  %v2676_v37 = vsel %vm1532_vm2, %v2612_v18, %v11580_v56  ;;  %v2674_v47 = vsel %vm1532_vm2, %v2610_v60, %v11575_v43  ;;  %v2673_v39 = vsel %vm1532_vm2, %v2609_v8, %v11574_v21  ;;  %v9482_v56 = vld [vmem:[%s18977_s0 + $0x212] sm:$0xff]  ;;  %v9483_v15 = vld [vmem:[%s18977_s0 + $0x21a] sm:$0xff]  ;;  %v9456_v18 = vld [vmem:[%s18977_s0 + $0xaa] sm:$0xff] }
 0x26c   :  { %2913 = vst.msk [vmem:[#allocation2 + $0x1ac] sm:$0xf] %vm2877_vm3, %v2848_v33  ;;  %v2739_v63 = vpack.c.bf16 %v2675_v3, %v2675_v3  ;;  %v2740_v9 = vpack.c.bf16 %v2676_v37, %v2676_v37  ;;  %v2738_v7 = vpack.c.bf16 %v2674_v47, %v2674_v47  ;;  %v2553_v46 = vsel %vm1402_vm0, %v12597_v41, %v11274_v32  ;;  %v9457_v8 = vld [vmem:[%s18977_s0 + $0xb2] sm:$0xff] }
 0x26d   :  { %2886 = vst.msk [vmem:[#allocation2 + $0x68] sm:$0xf] %vm2877_vm3, %v2821_v44  ;;  %v2737_v50 = vpack.c.bf16 %v2673_v39, %v2673_v39  ;;  %v11435_v26 = vunpack.i.h.bf16 %v19461_v5  ;;  %v11430_v57 = vunpack.i.h.bf16 %v19462_v31  ;;  %v11429_v11 = vunpack.i.l.bf16 %v19462_v31  ;;  %v10441_v5 = vld [vmem:[#allocation2 + $0x4c] sm:$0xf] }
 0x26e   :  { %2887 = vst.msk [vmem:[#allocation2 + $0x74] sm:$0xf] %vm2877_vm3, %v2822_v38  ;;  %v2554_v16 = vsel %vm1402_vm0, %v12598_v23, %v11275_v55  ;;  %v2552_v59 = vsel %vm1402_vm0, %v12599_v27, %v11270_v62  ;;  %v2551_v1 = vsel %vm1402_vm0, %v12600_v12, %v11269_v45  ;;  %v2617_v42 = vsel %vm1467_vm1, %v2553_v46, %v11434_v6  ;;  %v9550_v6 = vld [vmem:[#allocation2 + $0x54] sm:$0xf0]  ;;  %v9484_v31 = vld [vmem:[%s18977_s0 + $0x22a] sm:$0xff] }
 0x26f   :  { %2803 = vst [vmem:[#allocation2 + $0x28c] sm:$0xf] %v2739_v63  ;;  %v11593_v49 = vpop.permute.xlu1 %11592  ;;  %v11588_v58 = vpop.permute.xlu0 %11587  ;;  %v2618_v62 = vsel %vm1467_vm1, %v2554_v16, %v11435_v26  ;;  %v2616_v19 = vsel %vm1467_vm1, %v2552_v59, %v11430_v57  ;;  %v2615_v53 = vsel %vm1467_vm1, %v2551_v1, %v11429_v11  ;;  %v9541_v2 = vor.u32 %v10438_v22, %v9538_v17  ;;  %v9485_v57 = vld [vmem:[%s18977_s0 + $0x232] sm:$0xff]  ;;  %v9458_v22 = vld [vmem:[%s18977_s0 + $0xc2] sm:$0xff]  ;;  %v9459_v17 = vld [vmem:[%s18977_s0 + $0xca] sm:$0xff] }
 0x270   :  { %2804 = vst [vmem:[#allocation2 + $0x298] sm:$0xf] %v2740_v9  ;;  %v16046_v48 = vpop.f32.mrf.mxu1  ;;  %v11595_v51 = vunpack.i.h.bf16 %v11593_v49  ;;  %v11594_v13 = vunpack.i.l.bf16 %v11593_v49  ;;  %v11590_v4 = vunpack.i.h.bf16 %v11588_v58  ;;  %v11589_v0 = vunpack.i.l.bf16 %v11588_v58  ;;  %v10444_v1 = vld [vmem:[#allocation2 + $0x64] sm:$0xf] }
 0x271   :  { %2802 = vst [vmem:[#allocation2 + $0x280] sm:$0xf] %v2738_v7  ;;  %v2849_v60 = vpack.c.bf16 %v9482_v56, %v9482_v56  ;;  %v2850_v3 = vpack.c.bf16 %v9483_v15, %v9483_v15  ;;  %v2823_v37 = vpack.c.bf16 %v9456_v18, %v9456_v18  ;;  %v2824_v39 = vpack.c.bf16 %v9457_v8, %v9457_v8 }
 0x272   :  { %2801 = vst [vmem:[#allocation2 + $0x274] sm:$0xf] %v2737_v50  ;;  %v9724_v45 = vld [vmem:[#allocation2 + $0x1a0] sm:$0xf]  ;;  %v2681_v34 = vsel %vm1532_vm2, %v2617_v42, %v11594_v13  ;;  %v2682_v33 = vsel %vm1532_vm2, %v2618_v62, %v11595_v51  ;;  %v2680_v25 = vsel %vm1532_vm2, %v2616_v19, %v11590_v4  ;;  %v2679_v55 = vsel %vm1532_vm2, %v2615_v53, %v11589_v0  ;;  %v9562_v42 = vld [vmem:[#allocation2 + $0x6c] sm:$0xf0] }
 0x273   :  { %19463 = vst [vmem:[#allocation43_spill] sm:$0xff] %v16046_v48  ;;  %v10485_v29 = vld [vmem:[#allocation2 + $0x1a8] sm:$0xf0]  ;;  %v2745_v61 = vpack.c.bf16 %v2681_v34, %v2681_v34  ;;  %v2746_v14 = vpack.c.bf16 %v2682_v33, %v2682_v33  ;;  %v2744_v44 = vpack.c.bf16 %v2680_v25, %v2680_v25  ;;  %v2743_v43 = vpack.c.bf16 %v2679_v55, %v2679_v55  ;;  %v9486_v53 = vld [vmem:[%s18977_s0 + $0x242] sm:$0xff] }
 0x274   :  { %v9568_v32 = vld [vmem:[#allocation2 + $0x68] sm:$0xf]  ;;  %v9725_v21 = vor.u32 %v10485_v29, %v9724_v45  ;;  %2914 = vst.msk [vmem:[#allocation2 + $0x1b8] sm:$0xf] %vm2877_vm3, %v2849_v60  ;;  %v9553_v7 = vor.u32 %v10441_v5, %v9550_v6  ;;  %v2851_v23 = vpack.c.bf16 %v9484_v31, %v9484_v31  ;;  %v2852_v16 = vpack.c.bf16 %v9485_v57, %v9485_v57  ;;  %v9460_v45 = vld [vmem:[%s18977_s0 + $0xda] sm:$0xff]  ;;  %v16108_v29 = vpop.f32.mrf.mxu0 }
 0x275   :  { %v10446_v38 = vld [vmem:[#allocation2 + $0x70] sm:$0xf0]  ;;  %2809 = vst [vmem:[#allocation2 + $0x2d4] sm:$0xf] %v2745_v61  ;;  %v2825_v27 = vpack.c.bf16 %v9458_v22, %v9458_v22  ;;  %v2826_v59 = vpack.c.bf16 %v9459_v17, %v9459_v17  ;;  %v9565_v0 = vor.u32 %v10444_v1, %v9562_v42  ;;  %v2853_v34 = vpack.c.bf16 %v9486_v53, %v9486_v53  ;;  %v9461_v25 = vld [vmem:[%s18977_s0 + $0xe2] sm:$0xff] }
 0x276   :  { %3944 = vmatmul.bf16.gmra.mxu1 %v9541_v2  ;;  %v9569_v35 = vor.u32 %v10446_v38, %v9568_v32  ;;  %2810 = vst [vmem:[#allocation2 + $0x2e0] sm:$0xf] %v2746_v14  ;;  %9983 = vmatmul.msk.bf16.vlgmr.msra.gmra.mxu3 %vm1402_vm0, %v9725_v21  ;;  %v9487_v2 = vld [vmem:[%s18977_s0 + $0x24a] sm:$0xff]  ;;  %v2827_v55 = vpack.c.bf16 %v9460_v45, %v9460_v45  ;;  %v9586_v31 = vld [vmem:[#allocation2 + $0x9c] sm:$0xf0]  ;;  %v9490_v42 = vld [vmem:[%s18977_s0 + $0x272] sm:$0xff] }
 0x277   :  { %2808 = vst [vmem:[#allocation2 + $0x2c8] sm:$0xf] %v2744_v44  ;;  %v2854_v33 = vpack.c.bf16 %v9487_v2, %v9487_v2  ;;  %v2828_v32 = vpack.c.bf16 %v9461_v25, %v9461_v25  ;;  %v10447_v44 = vld [vmem:[#allocation2 + $0x7c] sm:$0xf]  ;;  %v9574_v38 = vld [vmem:[#allocation2 + $0x84] sm:$0xf0] }
 0x278   :  { %9970 = vmatmul.msk.bf16.gmra.mxu2 %vm1402_vm0, %v9569_v35  ;;  %2807 = vst [vmem:[#allocation2 + $0x2bc] sm:$0xf] %v2743_v43  ;;  %v16069_v47 = vpop.f32.mrf.mxu1  ;;  %v9577_v18 = vor.u32 %v10447_v44, %v9574_v38  ;;  %v10453_v53 = vld [vmem:[#allocation2 + $0xac] sm:$0xf]  ;;  %v9598_v2 = vld [vmem:[#allocation2 + $0xb4] sm:$0xf0] }
 0x279   :  { %19464 = vst [vmem:[#allocation46_spill] sm:$0xff] %v16069_v47  ;;  %v9464_v44 = vld [vmem:[%s18977_s0 + $0x10a] sm:$0xff]  ;;  %v9465_v38 = vld [vmem:[%s18977_s0 + $0x112] sm:$0xff] }
 0x27a   :  { %2915 = vst.msk [vmem:[#allocation2 + $0x1c4] sm:$0xf] %vm2877_vm3, %v2850_v3  ;;  %v9488_v3 = vld [vmem:[%s18977_s0 + $0x25a] sm:$0xff] }
 0x27b   :  { %2888 = vst.msk [vmem:[#allocation2 + $0x80] sm:$0xf] %vm2877_vm3, %v2823_v37  ;;  %v9736_v9 = vld [vmem:[#allocation2 + $0x1b8] sm:$0xf]  ;;  %v9489_v37 = vld [vmem:[%s18977_s0 + $0x262] sm:$0xff]  ;;  %v2855_v5 = vpack.c.bf16 %v9488_v3, %v9488_v3 }
 0x27c   :  { %2889 = vst.msk [vmem:[#allocation2 + $0x8c] sm:$0xf] %vm2877_vm3, %v2824_v39  ;;  %v16121_v14 = vpop.f32.mrf.mxu0  ;;  %v9462_v39 = vld [vmem:[%s18977_s0 + $0xf2] sm:$0xff]  ;;  %v2856_v6 = vpack.c.bf16 %v9489_v37, %v9489_v37 }
 0x27d   :  { %2916 = vst.msk [vmem:[#allocation2 + $0x1d0] sm:$0xf] %vm2877_vm3, %v2851_v23 }
 0x27e   :  { %2917 = vst.msk [vmem:[#allocation2 + $0x1dc] sm:$0xf] %vm2877_vm3, %v2852_v16 }
 0x27f   :  { %2890 = vst.msk [vmem:[#allocation2 + $0x98] sm:$0xf] %vm2877_vm3, %v2825_v27 }
 0x280   :  { %v16075_v63 = vpop.f32.mrf.mxu1  ;;  %2891 = vst.msk [vmem:[#allocation2 + $0xa4] sm:$0xf] %vm2877_vm3, %v2826_v59 }
 0x281   :  { %19465 = vst [vmem:[#allocation47_spill] sm:$0xff] %v16075_v63  ;;  %v10488_v41 = vld [vmem:[#allocation2 + $0x1c0] sm:$0xf0] }
 0x282   :  { %v9737_v46 = vor.u32 %v10488_v41, %v9736_v9  ;;  %v9580_v50 = vld [vmem:[#allocation2 + $0x80] sm:$0xf]  ;;  %2918 = vst.msk [vmem:[#allocation2 + $0x1e8] sm:$0xf] %vm2877_vm3, %v2853_v34 }
 0x283   :  { %v10449_v26 = vld [vmem:[#allocation2 + $0x88] sm:$0xf0]  ;;  %2919 = vst.msk [vmem:[#allocation2 + $0x1f4] sm:$0xf] %vm2877_vm3, %v2854_v33  ;;  %v9463_v9 = vld [vmem:[%s18977_s0 + $0xfa] sm:$0xff] }
 0x284   :  { %v9581_v11 = vor.u32 %v10449_v26, %v9580_v50  ;;  %v9748_v49 = vld [vmem:[#allocation2 + $0x1d0] sm:$0xf]  ;;  %2892 = vst.msk [vmem:[#allocation2 + $0xb0] sm:$0xf] %vm2877_vm3, %v2827_v55  ;;  %v2830_v41 = vpack.c.bf16 %v9463_v9, %v9463_v9  ;;  %v10450_v26 = vld [vmem:[#allocation2 + $0x94] sm:$0xf]  ;;  %v9601_v55 = vor.u32 %v10453_v53, %v9598_v2 }
 0x285   :  { %v10491_v58 = vld [vmem:[#allocation2 + $0x1d8] sm:$0xf0]  ;;  %2893 = vst.msk [vmem:[#allocation2 + $0xbc] sm:$0xf] %vm2877_vm3, %v2828_v32  ;;  %v9589_v17 = vor.u32 %v10450_v26, %v9586_v31  ;;  %v16208_v26 = vld [vmem:[%s18980_s3] ss:$0 sm:$0xff] }
 0x286   :  { %3949 = vmatmul.bf16.gmra.mxu1 %v9553_v7  ;;  %9984 = vmatmul.msk.bf16.gmra.mxu3 %vm1402_vm0, %v9737_v46  ;;  %v9592_v51 = vld [vmem:[#allocation2 + $0x98] sm:$0xf]  ;;  %v9749_v62 = vor.u32 %v10491_v58, %v9748_v49  ;;  %v2829_v7 = vpack.c.bf16 %v9462_v39, %v9462_v39  ;;  %2920 = vst.msk [vmem:[#allocation2 + $0x200] sm:$0xf] %vm2877_vm3, %v2855_v5  ;;  %v16141_v46 = vpop.f32.mrf.mxu0 }
 0x287   :  { %v10452_v4 = vld [vmem:[#allocation2 + $0xa0] sm:$0xf0]  ;;  %2921 = vst.msk [vmem:[#allocation2 + $0x20c] sm:$0xf] %vm2877_vm3, %v2856_v6  ;;  %v9491_v49 = vld [vmem:[%s18977_s0 + $0x27a] sm:$0xff]  ;;  %v2857_v58 = vpack.c.bf16 %v9490_v42, %v9490_v42 }
 0x288   :  { %9971 = vmatmul.msk.bf16.gmra.mxu2 %vm1402_vm0, %v9581_v11  ;;  %v16093_v12 = vpop.f32.mrf.mxu1  ;;  %v9593_v19 = vor.u32 %v10452_v4, %v9592_v51  ;;  %2894 = vst.msk [vmem:[#allocation2 + $0xc8] sm:$0xf] %vm2877_vm3, %v2829_v7  ;;  %v2858_v51 = vpack.c.bf16 %v9491_v49, %v9491_v49  ;;  %v19475_v49 = vld [vmem:[#allocation63_spill] sm:$0xff] }
 0x289   :  { %19466 = vst [vmem:[#allocation48_spill] sm:$0xff] %v16093_v12  ;;  %v9760_v56 = vld [vmem:[#allocation2 + $0x1e8] sm:$0xf] }
 0x28a   :  { %v10494_v15 = vld [vmem:[#allocation2 + $0x1f0] sm:$0xf0]  ;;  %2895 = vst.msk [vmem:[#allocation2 + $0xd4] sm:$0xf] %vm2877_vm3, %v2830_v41 }
 0x28b   :  { %v9604_v43 = vld [vmem:[#allocation2 + $0xb0] sm:$0xf]  ;;  %v9761_v60 = vor.u32 %v10494_v15, %v9760_v56  ;;  %2922 = vst.msk [vmem:[#allocation2 + $0x218] sm:$0xf] %vm2877_vm3, %v2857_v58  ;;  %v3767_v58 = vadd.f32 %v16208_v26, %v19475_v49  ;;  %v9468_v49 = vld [vmem:[%s18977_s0 + $0x13a] sm:$0xff] }
 0x28c   :  { %v10455_v35 = vld [vmem:[#allocation2 + $0xb8] sm:$0xf0]  ;;  %2923 = vst.msk [vmem:[#allocation2 + $0x224] sm:$0xf] %vm2877_vm3, %v2858_v51  ;;  %v9492_v56 = vld [vmem:[%s18977_s0 + $0x28a] sm:$0xff] }
 0x28d   :  { %v9605_v8 = vor.u32 %v10455_v35, %v9604_v43  ;;  %v9772_v57 = vld [vmem:[#allocation2 + $0x200] sm:$0xf]  ;;  %v2831_v43 = vpack.c.bf16 %v9464_v44, %v9464_v44  ;;  %v9493_v35 = vld [vmem:[%s18977_s0 + $0x292] sm:$0xff]  ;;  %v2859_v37 = vpack.c.bf16 %v9492_v56, %v9492_v56 }
 0x28e   :  { %v10497_v11 = vld [vmem:[#allocation2 + $0x208] sm:$0xf0]  ;;  %v16149_v27 = vpop.f32.mrf.mxu0  ;;  %v2860_v5 = vpack.c.bf16 %v9493_v35, %v9493_v35 }
 0x28f   :  { %v9616_v23 = vld [vmem:[#allocation2 + $0xc8] sm:$0xf]  ;;  %v9773_v59 = vor.u32 %v10497_v11, %v9772_v57  ;;  %2896 = vst.msk [vmem:[#allocation2 + $0xe0] sm:$0xf] %vm2877_vm3, %v2831_v43 }
 0x290   :  { %2924 = vst.msk [vmem:[#allocation2 + $0x230] sm:$0xf] %vm2877_vm3, %v2859_v37  ;;  %v9494_v43 = vld [vmem:[%s18977_s0 + $0x2a2] sm:$0xff]  ;;  %v9495_v35 = vld [vmem:[%s18977_s0 + $0x2aa] sm:$0xff] }
 0x291   :  { %v10458_v22 = vld [vmem:[#allocation2 + $0xd0] sm:$0xf0]  ;;  %2925 = vst.msk [vmem:[#allocation2 + $0x23c] sm:$0xf] %vm2877_vm3, %v2860_v5 }
 0x292   :  { %v16097_v13 = vpop.f32.mrf.mxu1  ;;  %v9617_v1 = vor.u32 %v10458_v22, %v9616_v23  ;;  %v9784_v34 = vld [vmem:[#allocation2 + $0x218] sm:$0xf]  ;;  %v9466_v23 = vld [vmem:[%s18977_s0 + $0x122] sm:$0xff]  ;;  %v9467_v22 = vld [vmem:[%s18977_s0 + $0x12a] sm:$0xff] }
 0x293   :  { %19467 = vst [vmem:[#allocation45_spill] sm:$0xff] %v16097_v13  ;;  %v10500_v33 = vld [vmem:[#allocation2 + $0x220] sm:$0xf0]  ;;  %v2834_v42 = vpack.c.bf16 %v9467_v22, %v9467_v22 }
 0x294   :  { %v9785_v32 = vor.u32 %v10500_v33, %v9784_v34 }
 0x295   :  { %2899 = vst.msk [vmem:[#allocation2 + $0x104] sm:$0xf] %vm2877_vm3, %v2834_v42 }
 0x296   :  { %3954 = vmatmul.bf16.gmra.mxu1 %v9565_v0  ;;  %9985 = vmatmul.msk.bf16.gmra.mxu3 %vm1402_vm0, %v9749_v62  ;;  %v16165_v62 = vpop.f32.mrf.mxu0  ;;  %v9628_v53 = vld [vmem:[#allocation2 + $0xe0] sm:$0xf] }
 0x297   :  { %v9796_v44 = vld [vmem:[#allocation2 + $0x230] sm:$0xf] }
 0x298   :  { %9972 = vmatmul.msk.bf16.gmra.mxu2 %vm1402_vm0, %v9593_v19  ;;  %v12643_v19 = vmov 0.0   ;;  %v10503_v56 = vld [vmem:[#allocation2 + $0x238] sm:$0xf0] }
 0x299   :  { %4328 = vst.msk [vmem:[#allocation3] sm:$0xff] %vm1402_vm0, %v12643_v19 }
 0x29a   :  { %v16117_v61 = vpop.f32.mrf.mxu1  ;;  %4329 = vst.msk [vmem:[#allocation3 + $0x8] sm:$0xff] %vm1402_vm0, %v12643_v19 }
 0x29b   :  { %19468 = vst [vmem:[#allocation9_spill] sm:$0xff] %v16117_v61 }
 0x29c   :  { %4331 = vst.msk [vmem:[#allocation3 + $0x10] sm:$0x3] %vm4330_vm4, %v12643_v19 }
 0x29d   :  { %4332 = vst.msk [vmem:[#allocation3 + $0x1b0] sm:$0xff] %vm1402_vm0, %v12643_v19 }
 0x29e   :  { %4333 = vst.msk [vmem:[#allocation3 + $0x1b8] sm:$0xff] %vm1402_vm0, %v12643_v19 }
 0x29f   :  { %4334 = vst.msk [vmem:[#allocation3 + $0x1c0] sm:$0x3] %vm4330_vm4, %v12643_v19 }
 0x2a0   :  { %4336 = vst.msk [vmem:[#allocation3 + $0x198] sm:$0xff] %vm1402_vm0, %v12643_v19 }
 0x2a1   :  { %4337 = vst.msk [vmem:[#allocation3 + $0x1a0] sm:$0xff] %vm1402_vm0, %v12643_v19  ;;  %v4824_v15 = vld [vmem:[#allocation3 + $0x1] sm:$0xff] }
 0x2a2   :  { %v16123_v21 = vpop.f32.mrf.mxu1  ;;  %4338 = vst.msk [vmem:[#allocation3 + $0x1a8] sm:$0x3] %vm4330_vm4, %v12643_v19  ;;  %v4888_v22 = vld [vmem:[#allocation3 + $0x2] sm:$0xff] }
 0x2a3   :  { %19469 = vst [vmem:[#allocation12_spill] sm:$0xff] %v16123_v21 }
 0x2a4   :  { %4339 = vst.msk [vmem:[#allocation3 + $0x348] sm:$0xff] %vm1402_vm0, %v12643_v19 }
 0x2a5   :  { %4340 = vst.msk [vmem:[#allocation3 + $0x350] sm:$0xff] %vm1402_vm0, %v12643_v19  ;;  %v4856_v9 = vld [vmem:[#allocation3 + $0x1b1] sm:$0xff] }
 0x2a6   :  { %3959 = vmatmul.bf16.gmra.mxu1 %v9577_v18  ;;  %9986 = vmatmul.msk.bf16.gmra.mxu3 %vm1402_vm0, %v9761_v60  ;;  %v16192_v18 = vpop.f32.mrf.mxu0  ;;  %v4825_v60 = vld [vmem:[#allocation3 + $0x9] sm:$0xff]  ;;  %4341 = vst.msk [vmem:[#allocation3 + $0x358] sm:$0x3] %vm4330_vm4, %v12643_v19  ;;  %v4857_v7 = vld [vmem:[#allocation3 + $0x1b9] sm:$0xff] }
 0x2a7   :  { %v11601_v3 = vpack.i.bf16 %v4825_v60, %v4824_v15  ;;  %v4920_v41 = vld [vmem:[#allocation3 + $0x1b2] sm:$0xff]  ;;  %v11606_v31 = vpack.i.bf16 %v4857_v7, %v4856_v9  ;;  %v4921_v57 = vld [vmem:[#allocation3 + $0x1ba] sm:$0xff]  ;;  %v9797_v15 = vor.u32 %v10503_v56, %v9796_v44 }
 0x2a8   :  { %9973 = vmatmul.msk.bf16.gmra.mxu2 %vm1402_vm0, %v9605_v8  ;;  %v2832_v8 = vpack.c.bf16 %v9465_v38, %v9465_v38  ;;  %v11616_v11 = vpack.i.bf16 %v4921_v57, %v4920_v41 }
 0x2a9   :  { %11602 = vrot.lane.b32.xlu0 %v11601_v3, %s12640_s27  ;;  %11607 = vrot.lane.b32.xlu1 %v11606_v31, %s12640_s27  ;;  %v2862_v3 = vpack.c.bf16 %v9495_v35, %v9495_v35 }
 0x2aa   :  { %v16143_v50 = vpop.f32.mrf.mxu1  ;;  %2897 = vst.msk [vmem:[#allocation2 + $0xec] sm:$0xf] %vm2877_vm3, %v2832_v8  ;;  %v2861_v8 = vpack.c.bf16 %v9494_v43, %v9494_v43 }
 0x2ab   :  { %19470 = vst [vmem:[#allocation68_spill] sm:$0xff] %v16143_v50 }
 0x2ac   :  { %2926 = vst.msk [vmem:[#allocation2 + $0x248] sm:$0xf] %vm2877_vm3, %v2861_v8 }
 0x2ad   :  { %2927 = vst.msk [vmem:[#allocation2 + $0x254] sm:$0xf] %vm2877_vm3, %v2862_v3 }
 0x2ae   :  { %v16221_v51 = vpop.f32.mrf.mxu0 }
 0x2b1   :  { %v10461_v33 = vld [vmem:[#allocation2 + $0xe8] sm:$0xf0]  ;;  %11617 = vrot.lane.b32.xlu0 %v11616_v11, %s12641_s22 }
 0x2b3   :  { %v16147_v16 = vpop.f32.mrf.mxu1  ;;  %v9808_v44 = vld [vmem:[#allocation2 + $0x248] sm:$0xf] }
 0x2b4   :  { %19471 = vst [vmem:[#allocation66_spill] sm:$0xff] %v16147_v16 }
 0x2b6   :  { %3964 = vmatmul.bf16.gmra.mxu1 %v9589_v17  ;;  %9987 = vmatmul.msk.bf16.gmra.mxu3 %vm1402_vm0, %v9773_v59  ;;  %v16159_v4 = vpop.f32.mrf.mxu2  ;;  %v10456_v17 = vld [vmem:[#allocation2 + $0xc4] sm:$0xf]  ;;  %v9610_v59 = vld [vmem:[#allocation2 + $0xcc] sm:$0xf0]  ;;  %v16244_v57 = vpop.f32.mrf.mxu0 }
 0x2b7   :  { %v9613_v34 = vor.u32 %v10456_v17, %v9610_v59  ;;  %v4889_v17 = vld [vmem:[#allocation3 + $0xa] sm:$0xff] }
 0x2b8   :  { %9974 = vmatmul.msk.bf16.gmra.mxu2 %vm1402_vm0, %v9617_v1  ;;  %v2833_v1 = vpack.c.bf16 %v9466_v23, %v9466_v23  ;;  %v11611_v42 = vpack.i.bf16 %v4889_v17, %v4888_v22  ;;  %v19478_v22 = vld [vmem:[#allocation75_spill] sm:$0xff] }
 0x2ba   :  { %2898 = vst.msk [vmem:[#allocation2 + $0xf8] sm:$0xf] %vm2877_vm3, %v2833_v1  ;;  %v10464_v1 = vld [vmem:[#allocation2 + $0x100] sm:$0xf0]  ;;  %11612 = vrot.lane.b32.xlu2 %v11611_v42, %s12641_s22 }
 0x2bb   :  { %v16162_v0 = vpop.f32.mrf.mxu1 }
 0x2bc   :  { %19472 = vst [vmem:[#allocation70_spill] sm:$0xff] %v16162_v0 }
 0x2be   :  { %v16169_v45 = vpop.f32.mrf.mxu2 }
 0x2c1   :  { %v9640_v23 = vld [vmem:[#allocation2 + $0xf8] sm:$0xf] }
 0x2c3   :  { %v16172_v25 = vpop.f32.mrf.mxu1 }
 0x2c4   :  { %19473 = vst [vmem:[#allocation64_spill] sm:$0xff] %v16172_v25 }
 0x2c6   :  { %3969 = vmatmul.bf16.gmra.mxu1 %v9601_v55  ;;  %9988 = vmatmul.msk.bf16.gmra.mxu3 %vm1402_vm0, %v9785_v32  ;;  %v9629_v32 = vor.u32 %v10461_v33, %v9628_v53  ;;  %v9622_v53 = vld [vmem:[#allocation2 + $0xe4] sm:$0xf0]  ;;  %v19477_v33 = vld [vmem:[#allocation22_spill] sm:$0xff] }
 0x2c8   :  { %9975 = vmatmul.msk.bf16.gmra.mxu2 %vm1402_vm0, %v9629_v32 }
 0x2c9   :  { %v16200_v6 = vpop.f32.mrf.mxu2 }
 0x2cb   :  { %v16197_v39 = vpop.f32.mrf.mxu1 }
 0x2cc   :  { %19474 = vst [vmem:[#allocation19_spill] sm:$0xff] %v16197_v39 }
 0x2d1   :  { %v16224_v55 = vpop.f32.mrf.mxu2 }
 0x2d3   :  { %v3935_v19 = vpop.f32.mrf.mxu1 }
 0x2d4   :  { %v3936_v2 = vadd.f32 %v3935_v19, %v3767_v58  ;;  %v9469_v58 = vld [vmem:[%s18977_s0 + $0x142] sm:$0xff]  ;;  %v10459_v19 = vld [vmem:[#allocation2 + $0xdc] sm:$0xf] }
 0x2d5   :  { %v9625_v8 = vor.u32 %v10459_v19, %v9622_v53 }
 0x2d6   :  { %v4105_v38 = vadd.f32 %v16159_v4, %v3936_v2  ;;  %3974 = vmatmul.bf16.gmra.mxu1 %v9613_v34  ;;  %9989 = vmatmul.msk.bf16.gmra.mxu3 %vm1402_vm0, %v9797_v15  ;;  %v19476_v4 = vld [vmem:[#allocation29_spill] sm:$0xff]  ;;  %v2835_v2 = vpack.c.bf16 %v9468_v49, %v9468_v49  ;;  %v2836_v34 = vpack.c.bf16 %v9469_v58, %v9469_v58 }
 0x2d7   :  { %v3769_v37 = vadd.f32 %v16208_v26, %v19476_v4  ;;  %v9641_v15 = vor.u32 %v10464_v1, %v9640_v23 }
 0x2d8   :  { %v4264_v60 = vmax.f32 %v4105_v38, 0.0  ;;  %v10506_v38 = vld [vmem:[#allocation2 + $0x250] sm:$0xf0]  ;;  %2900 = vst.msk [vmem:[#allocation2 + $0x110] sm:$0xf] %vm2877_vm3, %v2835_v2 }
 0x2d9   :  { %v16242_v31 = vpop.f32.mrf.mxu2  ;;  %2901 = vst.msk [vmem:[#allocation2 + $0x11c] sm:$0xf] %vm2877_vm3, %v2836_v34  ;;  %v9809_v4 = vor.u32 %v10506_v38, %v9808_v44  ;;  %9976 = vmatmul.msk.bf16.gmra.mxu2 %vm1402_vm0, %v9641_v15  ;;  %v9471_v15 = vld [vmem:[%s18977_s0 + $0x15a] sm:$0xff] }
 0x2da   :  { %v4407_v5 = vrot.slane %v4264_v60, 7 }
 0x2db   :  { %v3937_v9 = vpop.f32.mrf.mxu1 }
 0x2dc   :  { %v4599_v7 = vsel %vm4406_vm5, 0.0, %v4407_v5  ;;  %v3938_v41 = vadd.f32 %v3937_v9, %v3769_v37  ;;  %v16266_v9 = vpop.f32.mrf.mxu0 }
 0x2dd   :  { %4664 = vst.msk [vmem:[#allocation3 + $0x18] sm:$0xff] %vm1402_vm0, %v4599_v7  ;;  %v9497_v7 = vld [vmem:[%s18977_s0 + $0x2c2] sm:$0xff] }
 0x2de   :  { %v4107_v11 = vadd.f32 %v16169_v45, %v3938_v41  ;;  %v3772_v45 = vadd.f32 %v16208_v26, %v19477_v33  ;;  %v2864_v23 = vpack.c.bf16 %v9497_v7, %v9497_v7 }
 0x2e0   :  { %v4265_v59 = vmax.f32 %v4107_v11, 0.0  ;;  %2929 = vst.msk [vmem:[#allocation2 + $0x26c] sm:$0xf] %vm2877_vm3, %v2864_v23  ;;  %v10467_v38 = vld [vmem:[#allocation2 + $0x118] sm:$0xf0] }
 0x2e1   :  { %v16260_v3 = vpop.f32.mrf.mxu2 }
 0x2e2   :  { %v4408_v32 = vrot.slane %v4265_v59, 7 }
 0x2e3   :  { %v3940_v56 = vpop.f32.mrf.mxu1 }
 0x2e4   :  { %v4409_v43 = vsel %vm4406_vm5, %v4407_v5, %v4408_v32  ;;  %v4631_v35 = vsel %vm4406_vm5, %v4408_v32, 0.0  ;;  %v3941_v60 = vadd.f32 %v3940_v56, %v3772_v45  ;;  %v9496_v5 = vld [vmem:[%s18977_s0 + $0x2ba] sm:$0xff]  ;;  %v9652_v32 = vld [vmem:[#allocation2 + $0x110] sm:$0xf] }
 0x2e5   :  { %4665 = vst.msk [vmem:[#allocation3 + $0x20] sm:$0xff] %vm1402_vm0, %v4409_v43  ;;  %v2863_v11 = vpack.c.bf16 %v9496_v5, %v9496_v5  ;;  %v9470_v56 = vld [vmem:[%s18977_s0 + $0x152] sm:$0xff] }
 0x2e6   :  { %4666 = vst.msk [vmem:[#allocation3 + $0x28] sm:$0x3] %vm4330_vm4, %v4631_v35  ;;  %v4110_v37 = vadd.f32 %v16200_v6, %v3941_v60  ;;  %3979 = vmatmul.bf16.gmra.mxu1 %v9625_v8  ;;  %9990 = vmatmul.msk.bf16.gmra.mxu3 %vm1402_vm0, %v9809_v4  ;;  %v3774_v6 = vadd.f32 %v16208_v26, %v19478_v22  ;;  %v10462_v43 = vld [vmem:[#allocation2 + $0xf4] sm:$0xf]  ;;  %v9634_v35 = vld [vmem:[#allocation2 + $0xfc] sm:$0xf0] }
 0x2e7   :  { %2928 = vst.msk [vmem:[#allocation2 + $0x260] sm:$0xf] %vm2877_vm3, %v2863_v11  ;;  %v2837_v60 = vpack.c.bf16 %v9470_v56, %v9470_v56  ;;  %v2838_v8 = vpack.c.bf16 %v9471_v15, %v9471_v15  ;;  %v19479_v4 = vld [vmem:[#allocation83_spill] sm:$0xff]  ;;  %v9653_v22 = vor.u32 %v10467_v38, %v9652_v32 }
 0x2e8   :  { %v4266_v41 = vmax.f32 %v4110_v37, 0.0  ;;  %v3777_v37 = vadd.f32 %v16208_v26, %v19479_v4 }
 0x2e9   :  { %2902 = vst.msk [vmem:[#allocation2 + $0x128] sm:$0xf] %vm2877_vm3, %v2837_v60  ;;  %9977 = vmatmul.msk.bf16.gmra.mxu2 %vm1402_vm0, %v9653_v22 }
 0x2ea   :  { %v4410_v17 = vrot.slane %v4266_v41, 7  ;;  %v16281_v19 = vpop.f32.mrf.mxu2  ;;  %v10509_v41 = vld [vmem:[#allocation2 + $0x268] sm:$0xf0]  ;;  %2903 = vst.msk [vmem:[#allocation2 + $0x134] sm:$0xf] %vm2877_vm3, %v2838_v8 }
 0x2eb   :  { %v3942_v59 = vpop.f32.mrf.mxu1 }
 0x2ec   :  { %v4600_v1 = vsel %vm4406_vm5, 0.0, %v4410_v17  ;;  %v3943_v42 = vadd.f32 %v3942_v59, %v3774_v6  ;;  %v4890_v49 = vld [vmem:[#allocation3 + $0x1a] sm:$0xff] }
 0x2ed   :  { %v4826_v58 = vld [vmem:[#allocation3 + $0x19] sm:$0xff]  ;;  %4667 = vst.msk [vmem:[#allocation3 + $0x30] sm:$0xff] %vm1402_vm0, %v4600_v1  ;;  %v4891_v53 = vld [vmem:[#allocation3 + $0x22] sm:$0xff] }
 0x2ee   :  { %v4827_v2 = vld [vmem:[#allocation3 + $0x21] sm:$0xff]  ;;  %v4112_v34 = vadd.f32 %v16224_v55, %v3943_v42  ;;  %v16285_v33 = vpack.i.bf16 %v4891_v53, %v4890_v49  ;;  %v16296_v55 = vpop.f32.mrf.mxu0  ;;  %v9637_v42 = vor.u32 %v10462_v43, %v9634_v35 }
 0x2ef   :  { %v11621_v45 = vpack.i.bf16 %v4827_v2, %v4826_v58  ;;  %v9820_v7 = vld [vmem:[#allocation2 + $0x260] sm:$0xf]  ;;  %v4952_v58 = vld [vmem:[#allocation3 + $0x18] sm:$0xff] }
 0x2f0   :  { %v4267_v44 = vmax.f32 %v4112_v34, 0.0  ;;  %11627 = vrot.lane.b32.xlu0 %v16285_v33, %s12641_s22  ;;  %v4953_v23 = vld [vmem:[#allocation3 + $0x20] sm:$0xff]  ;;  %v9821_v53 = vor.u32 %v10509_v41, %v9820_v7 }
 0x2f1   :  { %11622 = vrot.lane.b32.xlu1 %v11621_v45, %s12640_s27  ;;  %v11631_v34 = vpack.i.bf16 %v4953_v23, %v4952_v58  ;;  %v9499_v45 = vld [vmem:[%s18977_s0 + $0x2da] sm:$0xff] }
 0x2f2   :  { %v4411_v5 = vrot.slane %v4267_v44, 7  ;;  %v16303_v49 = vpop.f32.mrf.mxu2  ;;  %v2866_v38 = vpack.c.bf16 %v9499_v45, %v9499_v45 }
 0x2f3   :  { %v3945_v11 = vpop.f32.mrf.mxu1 }
 0x2f4   :  { %v4412_v6 = vsel %vm4406_vm5, %v4410_v17, %v4411_v5  ;;  %v4632_v59 = vsel %vm4406_vm5, %v4411_v5, 0.0  ;;  %v3946_v1 = vadd.f32 %v3945_v11, %v3777_v37  ;;  %v9498_v17 = vld [vmem:[%s18977_s0 + $0x2d2] sm:$0xff]  ;;  %2931 = vst.msk [vmem:[#allocation2 + $0x284] sm:$0xf] %vm2877_vm3, %v2866_v38 }
 0x2f5   :  { %4668 = vst.msk [vmem:[#allocation3 + $0x38] sm:$0xff] %vm1402_vm0, %v4412_v6  ;;  %v2865_v44 = vpack.c.bf16 %v9498_v17, %v9498_v17 }
 0x2f6   :  { %4669 = vst.msk [vmem:[#allocation3 + $0x40] sm:$0x3] %vm4330_vm4, %v4632_v59  ;;  %v4115_v2 = vadd.f32 %v16242_v31, %v3946_v1  ;;  %3984 = vmatmul.bf16.gmra.mxu1 %v9637_v42  ;;  %9991 = vmatmul.msk.bf16.gmra.mxu3 %vm1402_vm0, %v9821_v53  ;;  %v19480_v31 = vld [vmem:[#allocation90_spill] sm:$0xff]  ;;  %v16321_v43 = vpop.f32.mrf.mxu0  ;;  %v9664_v1 = vld [vmem:[#allocation2 + $0x128] sm:$0xf] }
 0x2f7   :  { %v3779_v56 = vadd.f32 %v16208_v26, %v19480_v31  ;;  %2930 = vst.msk [vmem:[#allocation2 + $0x278] sm:$0xf] %vm2877_vm3, %v2865_v44  ;;  %v10470_v42 = vld [vmem:[#allocation2 + $0x130] sm:$0xf0]  ;;  %v9472_v53 = vld [vmem:[%s18977_s0 + $0x16a] sm:$0xff] }
 0x2f8   :  { %v4268_v32 = vmax.f32 %v4115_v2, 0.0  ;;  %v10465_v2 = vld [vmem:[#allocation2 + $0x10c] sm:$0xf]  ;;  %v2839_v17 = vpack.c.bf16 %v9472_v53, %v9472_v53 }
 0x2f9   :  { %11632 = vrot.lane.b32.xlu1 %v11631_v34, %s12642_s10  ;;  %v16325_v5 = vpop.f32.mrf.mxu3  ;;  %v9646_v34 = vld [vmem:[#allocation2 + $0x114] sm:$0xf0] }
 0x2fa   :  { %v4413_v15 = vrot.slane %v4268_v32, 7  ;;  %v19481_v32 = vld [vmem:[#allocation21_spill] sm:$0xff]  ;;  %2904 = vst.msk [vmem:[#allocation2 + $0x140] sm:$0xf] %vm2877_vm3, %v2839_v17 }
 0x2fb   :  { %v3947_v35 = vpop.f32.mrf.mxu1  ;;  %v16327_v7 = vpop.f32.mrf.mxu2  ;;  %v3782_v44 = vadd.f32 %v16208_v26, %v19481_v32  ;;  %v9500_v17 = vld [vmem:[%s18977_s0 + $0x2ea] sm:$0xff] }
 0x2fc   :  { %v5273_v60 = vld [vmem:[#allocation3 + $0x32] sm:$0xff]  ;;  %v4601_v8 = vsel %vm4406_vm5, 0.0, %v4413_v15  ;;  %v3948_v4 = vadd.f32 %v3947_v35, %v3779_v56  ;;  %v10512_v56 = vld [vmem:[#allocation2 + $0x280] sm:$0xf0] }
 0x2fd   :  { %v4828_v37 = vld [vmem:[#allocation3 + $0x31] sm:$0xff]  ;;  %v5274_v41 = vld [vmem:[#allocation3 + $0x3a] sm:$0xff]  ;;  %v7513_v11 = vpack.c.bf16 %v5273_v60, %v5273_v60  ;;  %4670 = vst.msk [vmem:[#allocation3 + $0x48] sm:$0xff] %vm1402_vm0, %v4601_v8  ;;  %v9665_v8 = vor.u32 %v10470_v42, %v9664_v1 }
 0x2fe   :  { %v16330_v23 = vld [vmem:[#allocation3 + $0x39] sm:$0xff]  ;;  %v7514_v22 = vpack.c.bf16 %v5274_v41, %v5274_v41  ;;  %v4117_v6 = vadd.f32 %v16260_v3, %v3948_v4  ;;  %v11646_v42 = vpack.i.bf16 %v5274_v41, %v5273_v60  ;;  %v16831_v36 = vld [vmem:[#allocation3 + $0x31] sm:$0xff] }
 0x2ff   :  { %v11641_v59 = vpack.i.bf16 %v16330_v23, %v4828_v37  ;;  %7577 = vst.msk [vmem:[#allocation2 + $0x8] sm:$0xf] %vm2877_vm3, %v7513_v11  ;;  %v9473_v3 = vld [vmem:[%s18977_s0 + $0x172] sm:$0xff]  ;;  %9978 = vmatmul.msk.bf16.gmra.mxu2 %vm1402_vm0, %v9665_v8 }
 0x300   :  { %7578 = vst.msk [vmem:[#allocation2 + $0x14] sm:$0xf] %vm2877_vm3, %v7514_v22  ;;  %v4269_v58 = vmax.f32 %v4117_v6, 0.0  ;;  %v2840_v45 = vpack.c.bf16 %v9473_v3, %v9473_v3  ;;  %v9832_v31 = vld [vmem:[#allocation2 + $0x278] sm:$0xf]  ;;  %v9649_v22 = vor.u32 %v10465_v2, %v9646_v34  ;;  %v16356_v3 = vpop.f32.mrf.mxu0 }
 0x301   :  { %11642 = vrot.lane.b32.xlu2 %v11641_v59, %s12640_s27  ;;  %11637 = vrot.lane.b32.xlu1 %v16285_v33, %s12640_s27  ;;  %v4955_v33 = vld [vmem:[#allocation3 + $0x38] sm:$0xff]  ;;  %v16350_v6 = vpop.f32.mrf.mxu3  ;;  %v9833_v53 = vor.u32 %v10512_v56, %v9832_v31 }
 0x302   :  { %v4414_v38 = vrot.slane %v4269_v58, 7  ;;  %2905 = vst.msk [vmem:[#allocation2 + $0x14c] sm:$0xf] %vm2877_vm3, %v2840_v45  ;;  %v4954_v58 = vld [vmem:[#allocation3 + $0x30] sm:$0xff]  ;;  %v19482_v41 = vld [vmem:[#allocation34_spill] sm:$0xff] }
 0x303   :  { %v3950_v35 = vpop.f32.mrf.mxu1  ;;  %v16352_v59 = vpop.f32.mrf.mxu2  ;;  %v11651_v1 = vpack.i.bf16 %v4955_v33, %v4954_v58  ;;  %v9501_v45 = vld [vmem:[%s18977_s0 + $0x2f2] sm:$0xff] }
 0x304   :  { %v4415_v4 = vsel %vm4406_vm5, %v4413_v15, %v4414_v38  ;;  %v4633_v37 = vsel %vm4406_vm5, %v4414_v38, 0.0  ;;  %v3951_v11 = vadd.f32 %v3950_v35, %v3782_v44  ;;  %v2867_v44 = vpack.c.bf16 %v9500_v17, %v9500_v17  ;;  %v9676_v17 = vld [vmem:[#allocation2 + $0x140] sm:$0xf] }
 0x305   :  { %4671 = vst.msk [vmem:[#allocation3 + $0x50] sm:$0xff] %vm1402_vm0, %v4415_v4  ;;  %v2868_v60 = vpack.c.bf16 %v9501_v45, %v9501_v45  ;;  %v3784_v38 = vadd.f32 %v16208_v26, %v19482_v41  ;;  %v9658_v41 = vld [vmem:[#allocation2 + $0x12c] sm:$0xf0] }
 0x306   :  { %4672 = vst.msk [vmem:[#allocation3 + $0x58] sm:$0x3] %vm4330_vm4, %v4633_v37  ;;  %v4120_v15 = vadd.f32 %v16281_v19, %v3951_v11  ;;  %3989 = vmatmul.bf16.gmra.mxu1 %v9649_v22  ;;  %v10008_v2 = vld [vmem:[#allocation2 + $0x8] sm:$0xf]  ;;  %9992 = vmatmul.msk.bf16.gmra.mxu3 %vm1402_vm0, %v9833_v53 }
 0x307   :  { %v10530_v34 = vld [vmem:[#allocation2 + $0x10] sm:$0xf0]  ;;  %2932 = vst.msk [vmem:[#allocation2 + $0x290] sm:$0xf] %vm2877_vm3, %v2867_v44  ;;  %v9475_v44 = vld [vmem:[%s18977_s0 + $0x18a] sm:$0xff] }
 0x308   :  { %v4270_v32 = vmax.f32 %v4120_v15, 0.0  ;;  %v10009_v19 = vor.u32 %v10530_v34, %v10008_v2  ;;  %2933 = vst.msk [vmem:[#allocation2 + $0x29c] sm:$0xf] %vm2877_vm3, %v2868_v60  ;;  %v10468_v60 = vld [vmem:[#allocation2 + $0x124] sm:$0xf] }
 0x309   :  { %11652 = vrot.lane.b32.xlu2 %v11651_v1, %s12642_s10  ;;  %11647 = vrot.lane.b32.xlu1 %v11646_v42, %s12641_s22  ;;  %v16378_v37 = vpop.f32.mrf.mxu3  ;;  %v10473_v45 = vld [vmem:[#allocation2 + $0x148] sm:$0xf0]  ;;  %v9661_v0 = vor.u32 %v10468_v60, %v9658_v41  ;;  %v9502_v60 = vld [vmem:[%s18977_s0 + $0x302] sm:$0xff] }
 0x30a   :  { %v4416_v31 = vrot.slane %v4270_v32, 7  ;;  %10382 = vmatmul.msk.bf16.vlgmr.msrb.gmra.mxu0 %vm1402_vm0, %v10009_v19  ;;  %v16389_v32 = vpop.f32.mrf.mxu0 }
 0x30b   :  { %v3952_v56 = vpop.f32.mrf.mxu1  ;;  %v16380_v11 = vpop.f32.mrf.mxu2 }
 0x30c   :  { %v5275_v35 = vld [vmem:[#allocation3 + $0x4a] sm:$0xff]  ;;  %v4602_v33 = vsel %vm4406_vm5, 0.0, %v4416_v31  ;;  %v3953_v8 = vadd.f32 %v3952_v56, %v3784_v38  ;;  %v2842_v56 = vpack.c.bf16 %v9475_v44, %v9475_v44 }
 0x30d   :  { %v16376_v4 = vld [vmem:[#allocation3 + $0x49] sm:$0xff]  ;;  %v5276_v22 = vld [vmem:[#allocation3 + $0x52] sm:$0xff]  ;;  %v7515_v58 = vpack.c.bf16 %v5275_v35, %v5275_v35  ;;  %4673 = vst.msk [vmem:[#allocation3 + $0x60] sm:$0xff] %vm1402_vm0, %v4602_v33  ;;  %v3787_v33 = vadd.f32 %v16208_v26, %v16108_v29 }
 0x30e   :  { %v16383_v53 = vld [vmem:[#allocation3 + $0x51] sm:$0xff]  ;;  %v7516_v15 = vpack.c.bf16 %v5276_v22, %v5276_v22  ;;  %v4122_v2 = vadd.f32 %v16303_v49, %v3953_v8  ;;  %v9474_v49 = vld [vmem:[%s18977_s0 + $0x182] sm:$0xff]  ;;  %2907 = vst.msk [vmem:[#allocation2 + $0x164] sm:$0xf] %vm2877_vm3, %v2842_v56 }
 0x30f   :  { %v11666_v34 = vpack.i.bf16 %v16383_v53, %v16376_v4  ;;  %7579 = vst.msk [vmem:[#allocation2 + $0x20] sm:$0xf] %vm2877_vm3, %v7515_v58  ;;  %v2841_v38 = vpack.c.bf16 %v9474_v49, %v9474_v49  ;;  %v9844_v8 = vld [vmem:[#allocation2 + $0x290] sm:$0xf]  ;;  %v10515_v58 = vld [vmem:[#allocation2 + $0x298] sm:$0xf0] }
 0x310   :  { %7580 = vst.msk [vmem:[#allocation2 + $0x2c] sm:$0xf] %vm2877_vm3, %v7516_v15  ;;  %v4271_v19 = vmax.f32 %v4122_v2, 0.0  ;;  %v4957_v2 = vld [vmem:[#allocation3 + $0x50] sm:$0xff]  ;;  %v4956_v29 = vld [vmem:[#allocation3 + $0x48] sm:$0xff] }
 0x311   :  { %11657 = vrot.lane.b32.xlu2 %v11651_v1, %s12641_s22  ;;  %11667 = vrot.lane.b32.xlu0 %v11666_v34, %s12640_s27  ;;  %v9677_v34 = vor.u32 %v10473_v45, %v9676_v17  ;;  %2906 = vst.msk [vmem:[#allocation2 + $0x158] sm:$0xf] %vm2877_vm3, %v2841_v38  ;;  %v16406_v16 = vpop.f32.mrf.mxu3  ;;  %v11671_v45 = vpack.i.bf16 %v5276_v22, %v5275_v35 }
 0x312   :  { %11662 = vrot.lane.b32.xlu1 %v11646_v42, %s12640_s27  ;;  %v4417_v1 = vrot.slane %v4271_v19, 7  ;;  %v9845_v19 = vor.u32 %v10515_v58, %v9844_v8  ;;  %v11676_v49 = vpack.i.bf16 %v4957_v2, %v4956_v29  ;;  %v3789_v22 = vadd.f32 %v16208_v26, %v16121_v14  ;;  %v16427_v41 = vpop.f32.mrf.mxu0 }
 0x313   :  { %v3955_v15 = vpop.f32.mrf.mxu1  ;;  %v16412_v44 = vpop.f32.mrf.mxu2  ;;  %9979 = vmatmul.msk.bf16.gmra.mxu2 %vm1402_vm0, %v9677_v34 }
 0x314   :  { %v4418_v39 = vsel %vm4406_vm5, %v4416_v31, %v4417_v1  ;;  %v4634_v25 = vsel %vm4406_vm5, %v4417_v1, 0.0  ;;  %v3956_v42 = vadd.f32 %v3955_v15, %v3787_v33 }
 0x315   :  { %4674 = vst.msk [vmem:[#allocation3 + $0x68] sm:$0xff] %vm1402_vm0, %v4418_v39  ;;  %v9503_v39 = vld [vmem:[%s18977_s0 + $0x30a] sm:$0xff] }
 0x316   :  { %4675 = vst.msk [vmem:[#allocation3 + $0x70] sm:$0x3] %vm4330_vm4, %v4634_v25  ;;  %v4125_v17 = vadd.f32 %v16327_v7, %v3956_v42  ;;  %3994 = vmatmul.bf16.gmra.mxu1 %v9661_v0  ;;  %v10020_v31 = vld [vmem:[#allocation2 + $0x20] sm:$0xf]  ;;  %v2869_v7 = vpack.c.bf16 %v9502_v60, %v9502_v60  ;;  %v2870_v35 = vpack.c.bf16 %v9503_v39, %v9503_v39 }
 0x317   :  { %v10533_v38 = vld [vmem:[#allocation2 + $0x28] sm:$0xf0]  ;;  %9993 = vmatmul.msk.bf16.gmra.mxu3 %vm1402_vm0, %v9845_v19 }
 0x318   :  { %v4272_v25 = vmax.f32 %v4125_v17, 0.0  ;;  %v10021_v0 = vor.u32 %v10533_v38, %v10020_v31  ;;  %2934 = vst.msk [vmem:[#allocation2 + $0x2a8] sm:$0xf] %vm2877_vm3, %v2869_v7  ;;  %v11681_v17 = vpack.i.bf16 %v16376_v4, %v16330_v23  ;;  %v9688_v31 = vld [vmem:[#allocation2 + $0x158] sm:$0xf] }
 0x319   :  { %11672 = vrot.lane.b32.xlu2 %v11671_v45, %s12641_s22  ;;  %11677 = vrot.lane.b32.xlu0 %v11676_v49, %s12642_s10  ;;  %2935 = vst.msk [vmem:[#allocation2 + $0x2b4] sm:$0xf] %vm2877_vm3, %v2870_v35  ;;  %v16435_v2 = vpop.f32.mrf.mxu3  ;;  %v10476_v38 = vld [vmem:[#allocation2 + $0x160] sm:$0xf0]  ;;  %v9476_v23 = vld [vmem:[%s18977_s0 + $0x19a] sm:$0xff] }
 0x31a   :  { %11692 = vrot.lane.b32.xlu1 %v11671_v45, %s12640_s27  ;;  %v4419_v56 = vrot.slane %v4272_v25, 7  ;;  %10383 = vmatmul.msk.bf16.gmra.mxu0 %vm1402_vm0, %v10021_v0  ;;  %v10471_v4 = vld [vmem:[#allocation2 + $0x13c] sm:$0xf]  ;;  %v9670_v25 = vld [vmem:[#allocation2 + $0x144] sm:$0xf0]  ;;  %v2843_v0 = vpack.c.bf16 %v9476_v23, %v9476_v23 }
 0x31b   :  { %v3957_v33 = vpop.f32.mrf.mxu1  ;;  %v16449_v39 = vpop.f32.mrf.mxu2  ;;  %v9673_v23 = vor.u32 %v10471_v4, %v9670_v25  ;;  %v9504_v4 = vld [vmem:[%s18977_s0 + $0x31a] sm:$0xff]  ;;  %v9505_v25 = vld [vmem:[%s18977_s0 + $0x322] sm:$0xff] }
 0x31c   :  { %v5277_v1 = vld [vmem:[#allocation3 + $0x62] sm:$0xff]  ;;  %v4603_v8 = vsel %vm4406_vm5, 0.0, %v4419_v56  ;;  %v3958_v58 = vadd.f32 %v3957_v33, %v3789_v22  ;;  %2908 = vst.msk [vmem:[#allocation2 + $0x170] sm:$0xf] %vm2877_vm3, %v2843_v0 }
 0x31d   :  { %v16433_v15 = vld [vmem:[#allocation3 + $0x61] sm:$0xff]  ;;  %v5278_v34 = vld [vmem:[#allocation3 + $0x6a] sm:$0xff]  ;;  %v7517_v14 = vpack.c.bf16 %v5277_v1, %v5277_v1  ;;  %4676 = vst.msk [vmem:[#allocation3 + $0x78] sm:$0xff] %vm1402_vm0, %v4603_v8 }
 0x31e   :  { %v16438_v42 = vld [vmem:[#allocation3 + $0x69] sm:$0xff]  ;;  %v7518_v29 = vpack.c.bf16 %v5278_v34, %v5278_v34  ;;  %v4127_v19 = vadd.f32 %v16352_v59, %v3958_v58  ;;  %v11701_v0 = vpack.i.bf16 %v5278_v34, %v5277_v1  ;;  %v2872_v1 = vpack.c.bf16 %v9505_v25, %v9505_v25 }
 0x31f   :  { %v11696_v45 = vpack.i.bf16 %v16438_v42, %v16433_v15  ;;  %7581 = vst.msk [vmem:[#allocation2 + $0x38] sm:$0xf] %vm2877_vm3, %v7517_v14  ;;  %v9477_v59 = vld [vmem:[%s18977_s0 + $0x1a2] sm:$0xff]  ;;  %v9689_v14 = vor.u32 %v10476_v38, %v9688_v31  ;;  %v3794_v34 = vadd.f32 %v16208_v26, %v16149_v27 }
 0x320   :  { %7582 = vst.msk [vmem:[#allocation2 + $0x44] sm:$0xf] %vm2877_vm3, %v7518_v29  ;;  %v4273_v60 = vmax.f32 %v4127_v19, 0.0  ;;  %v2844_v7 = vpack.c.bf16 %v9477_v59, %v9477_v59  ;;  %v9856_v22 = vld [vmem:[#allocation2 + $0x2a8] sm:$0xf]  ;;  %v16461_v29 = vpop.f32.mrf.mxu0 }
 0x321   :  { %11687 = vrot.lane.b32.xlu2 %v11676_v49, %s12641_s22  ;;  %11682 = vrot.lane.b32.xlu0 %v11681_v17, %s12642_s10  ;;  %v3792_v49 = vadd.f32 %v16208_v26, %v16141_v46  ;;  %v10518_v33 = vld [vmem:[#allocation2 + $0x2b0] sm:$0xf0]  ;;  %v5150_v58 = vld [vmem:[#allocation3 + $0x68] sm:$0xff]  ;;  %v16465_v59 = vpop.f32.mrf.mxu3  ;;  %v5149_v46 = vld [vmem:[#allocation3 + $0x60] sm:$0xff]  ;;  %2937 = vst.msk [vmem:[#allocation2 + $0x2cc] sm:$0xf] %vm2877_vm3, %v2872_v1 }
 0x322   :  { %11697 = vrot.lane.b32.xlu1 %v11696_v45, %s12640_s27  ;;  %v4420_v35 = vrot.slane %v4273_v60, 7  ;;  %2909 = vst.msk [vmem:[#allocation2 + $0x17c] sm:$0xf] %vm2877_vm3, %v2844_v7  ;;  %v9857_v60 = vor.u32 %v10518_v33, %v9856_v22  ;;  %v11716_v38 = vpack.i.bf16 %v5150_v58, %v5149_v46  ;;  %v9478_v1 = vld [vmem:[%s18977_s0 + $0x1e2] sm:$0xff] }
 0x323   :  { %v3960_v8 = vpop.f32.mrf.mxu1  ;;  %9980 = vmatmul.msk.bf16.gmra.mxu2 %vm1402_vm0, %v9689_v14  ;;  %v16485_v22 = vpop.f32.mrf.mxu2  ;;  %v9700_v25 = vld [vmem:[#allocation2 + $0x170] sm:$0xf]  ;;  %v2845_v21 = vpack.c.bf16 %v9478_v1, %v9478_v1 }
 0x324   :  { %v4421_v19 = vsel %vm4406_vm5, %v4419_v56, %v4420_v35  ;;  %v4635_v17 = vsel %vm4406_vm5, %v4420_v35, 0.0  ;;  %v3961_v45 = vadd.f32 %v3960_v8, %v3792_v49  ;;  %v2871_v49 = vpack.c.bf16 %v9504_v4, %v9504_v4  ;;  %v9682_v4 = vld [vmem:[#allocation2 + $0x15c] sm:$0xf0] }
 0x325   :  { %4677 = vst.msk [vmem:[#allocation3 + $0x80] sm:$0xff] %vm1402_vm0, %v4421_v19 }
 0x326   :  { %4678 = vst.msk [vmem:[#allocation3 + $0x88] sm:$0x3] %vm4330_vm4, %v4635_v17  ;;  %v4130_v31 = vadd.f32 %v16380_v11, %v3961_v45  ;;  %3999 = vmatmul.bf16.gmra.mxu1 %v9673_v23  ;;  %v10032_v56 = vld [vmem:[#allocation2 + $0x38] sm:$0xf] }
 0x327   :  { %v10536_v50 = vld [vmem:[#allocation2 + $0x40] sm:$0xf0]  ;;  %9994 = vmatmul.msk.bf16.gmra.mxu3 %vm1402_vm0, %v9857_v60  ;;  %2936 = vst.msk [vmem:[#allocation2 + $0x2c0] sm:$0xf] %vm2877_vm3, %v2871_v49  ;;  %v5303_v49 = vld [vmem:[#allocation3 + $0x19a] sm:$0xff] }
 0x328   :  { %v4274_v7 = vmax.f32 %v4130_v31, 0.0  ;;  %v10033_v11 = vor.u32 %v10536_v50, %v10032_v56  ;;  %v16495_v23 = vpop.f32.mrf.mxu0  ;;  %v10474_v56 = vld [vmem:[#allocation2 + $0x154] sm:$0xf]  ;;  %2910 = vst.msk [vmem:[#allocation2 + $0x188] sm:$0xf] %vm2877_vm3, %v2845_v21 }
 0x329   :  { %11717 = vrot.lane.b32.xlu2 %v11716_v38, %s12641_s22  ;;  %11702 = vrot.lane.b32.xlu0 %v11701_v0, %s12641_s22  ;;  %v16490_v19 = vpop.f32.mrf.mxu3 }
 0x32a   :  { %11707 = vrot.lane.b32.xlu1 %v11716_v38, %s12642_s10  ;;  %v4422_v35 = vrot.slane %v4274_v7, 7  ;;  %10384 = vmatmul.msk.bf16.gmra.mxu0 %vm1402_vm0, %v10033_v11  ;;  %v11711_v38 = vpack.i.bf16 %v16433_v15, %v16383_v53  ;;  %v10479_v7 = vld [vmem:[#allocation2 + $0x178] sm:$0xf0]  ;;  %v7543_v53 = vpack.c.bf16 %v5303_v49, %v5303_v49 }
 0x32b   :  { %v3962_v33 = vpop.f32.mrf.mxu1  ;;  %v16517_v61 = vpop.f32.mrf.mxu2 }
 0x32c   :  { %v5279_v50 = vld [vmem:[#allocation3 + $0x7a] sm:$0xff]  ;;  %v4604_v8 = vsel %vm4406_vm5, 0.0, %v4422_v35  ;;  %v3963_v58 = vadd.f32 %v3962_v33, %v3794_v34  ;;  %v9479_v34 = vld [vmem:[%s18977_s0 + $0x1ea] sm:$0xff]  ;;  %v3797_v33 = vadd.f32 %v16208_v26, %v16165_v62  ;;  %7607 = vst.msk [vmem:[#allocation2 + $0x170] sm:$0xf] %vm2877_vm3, %v7543_v53 }
 0x32d   :  { %v4834_v14 = vld [vmem:[#allocation3 + $0x79] sm:$0xff]  ;;  %v5280_v17 = vld [vmem:[#allocation3 + $0x82] sm:$0xff]  ;;  %v7519_v45 = vpack.c.bf16 %v5279_v50, %v5279_v50  ;;  %4679 = vst.msk [vmem:[#allocation3 + $0x90] sm:$0xff] %vm1402_vm0, %v4604_v8 }
 0x32e   :  { %v16493_v27 = vld [vmem:[#allocation3 + $0x81] sm:$0xff]  ;;  %v7520_v46 = vpack.c.bf16 %v5280_v17, %v5280_v17  ;;  %v4132_v60 = vadd.f32 %v16412_v44, %v3963_v58  ;;  %v11731_v53 = vpack.i.bf16 %v5280_v17, %v5279_v50 }
 0x32f   :  { %v11726_v31 = vpack.i.bf16 %v16493_v27, %v4834_v14  ;;  %7583 = vst.msk [vmem:[#allocation2 + $0x50] sm:$0xf] %vm2877_vm3, %v7519_v45  ;;  %v5304_v44 = vld [vmem:[#allocation3 + $0x1a2] sm:$0xff]  ;;  %v10521_v45 = vld [vmem:[#allocation2 + $0x2c8] sm:$0xf0] }
 0x330   :  { %7584 = vst.msk [vmem:[#allocation2 + $0x5c] sm:$0xf] %vm2877_vm3, %v7520_v46  ;;  %v4275_v11 = vmax.f32 %v4132_v60, 0.0  ;;  %v7544_v15 = vpack.c.bf16 %v5304_v44, %v5304_v44  ;;  %v9868_v58 = vld [vmem:[#allocation2 + $0x2c0] sm:$0xf]  ;;  %v9685_v60 = vor.u32 %v10474_v56, %v9682_v4  ;;  %v4960_v56 = vld [vmem:[#allocation3 + $0x78] sm:$0xff] }
 0x331   :  { %11727 = vrot.lane.b32.xlu2 %v11726_v31, %s12640_s27  ;;  %11712 = vrot.lane.b32.xlu0 %v11711_v38, %s12642_s10  ;;  %v4961_v31 = vld [vmem:[#allocation3 + $0x80] sm:$0xff]  ;;  %v9701_v38 = vor.u32 %v10479_v7, %v9700_v25  ;;  %v16520_v62 = vpop.f32.mrf.mxu3  ;;  %v9869_v4 = vor.u32 %v10521_v45, %v9868_v58  ;;  %v11741_v7 = vpack.i.bf16 %v4834_v14, %v16438_v42 }
 0x332   :  { %11722 = vrot.lane.b32.xlu1 %v11701_v0, %s12640_s27  ;;  %v4423_v8 = vrot.slane %v4275_v11, 7  ;;  %7608 = vst.msk [vmem:[#allocation2 + $0x17c] sm:$0xf] %vm2877_vm3, %v7544_v15  ;;  %v2846_v11 = vpack.c.bf16 %v9479_v34, %v9479_v34  ;;  %v9506_v15 = vld [vmem:[%s18977_s0 + $0x332] sm:$0xff]  ;;  %v9507_v34 = vld [vmem:[%s18977_s0 + $0x33a] sm:$0xff]  ;;  %v3799_v14 = vadd.f32 %v16208_v26, %v16192_v18 }
 0x333   :  { %v3965_v46 = vpop.f32.mrf.mxu1  ;;  %9981 = vmatmul.msk.bf16.gmra.mxu2 %vm1402_vm0, %v9701_v38  ;;  %v2873_v50 = vpack.c.bf16 %v9506_v15, %v9506_v15  ;;  %v2874_v21 = vpack.c.bf16 %v9507_v34, %v9507_v34  ;;  %v3802_v15 = vadd.f32 %v16208_v26, %v16221_v51 }
 0x334   :  { %v4424_v0 = vsel %vm4406_vm5, %v4422_v35, %v4423_v8  ;;  %v4636_v49 = vsel %vm4406_vm5, %v4423_v8, 0.0  ;;  %v3966_v44 = vadd.f32 %v3965_v46, %v3797_v33  ;;  %v11736_v35 = vpack.i.bf16 %v4961_v31, %v4960_v56  ;;  %2911 = vst.msk [vmem:[#allocation2 + $0x194] sm:$0xf] %vm2877_vm3, %v2846_v11 }
 0x335   :  { %4680 = vst.msk [vmem:[#allocation3 + $0x98] sm:$0xff] %vm1402_vm0, %v4424_v0 }
 0x336   :  { %4681 = vst.msk [vmem:[#allocation3 + $0xa0] sm:$0x3] %vm4330_vm4, %v4636_v49  ;;  %v4135_v25 = vadd.f32 %v16449_v39, %v3966_v44  ;;  %4004 = vmatmul.bf16.gmra.mxu1 %v9685_v60  ;;  %v10044_v1 = vld [vmem:[#allocation2 + $0x50] sm:$0xf]  ;;  %v16534_v39 = vpop.f32.mrf.mxu0 }
 0x337   :  { %v10539_v33 = vld [vmem:[#allocation2 + $0x58] sm:$0xf0]  ;;  %9995 = vmatmul.msk.bf16.gmra.mxu3 %vm1402_vm0, %v9869_v4  ;;  %2938 = vst.msk [vmem:[#allocation2 + $0x2d8] sm:$0xf] %vm2877_vm3, %v2873_v50  ;;  %v16557_v4 = vpop.f32.mrf.mxu2 }
 0x338   :  { %v4276_v8 = vmax.f32 %v4135_v25, 0.0  ;;  %v10045_v42 = vor.u32 %v10539_v33, %v10044_v1  ;;  %2939 = vst.msk [vmem:[#allocation2 + $0x2e4] sm:$0xf] %vm2877_vm3, %v2874_v21  ;;  %v9712_v25 = vld [vmem:[#allocation2 + $0x188] sm:$0xf] }
 0x339   :  { %11737 = vrot.lane.b32.xlu2 %v11736_v35, %s12642_s10  ;;  %11742 = vrot.lane.b32.xlu0 %v11741_v7, %s12642_s10  ;;  %v16549_v38 = vpop.f32.mrf.mxu3  ;;  %v10477_v33 = vld [vmem:[#allocation2 + $0x16c] sm:$0xf] }
 0x33a   :  { %11732 = vrot.lane.b32.xlu1 %v11731_v53, %s12641_s22  ;;  %v4425_v17 = vrot.slane %v4276_v8, 7  ;;  %10385 = vmatmul.msk.bf16.gmra.mxu0 %vm1402_vm0, %v10045_v42 }
 0x33b   :  { %v3967_v58 = vpop.f32.mrf.mxu1  ;;  %v10482_v1 = vld [vmem:[#allocation2 + $0x190] sm:$0xf0] }
 0x33c   :  { %v5281_v45 = vld [vmem:[#allocation3 + $0x92] sm:$0xff]  ;;  %v4605_v46 = vsel %vm4406_vm5, 0.0, %v4425_v17  ;;  %v3968_v60 = vadd.f32 %v3967_v58, %v3799_v14  ;;  %v9713_v58 = vor.u32 %v10482_v1, %v9712_v25 }
 0x33d   :  { %v16547_v31 = vld [vmem:[#allocation3 + $0x91] sm:$0xff]  ;;  %v5282_v0 = vld [vmem:[#allocation3 + $0x9a] sm:$0xff]  ;;  %v7521_v49 = vpack.c.bf16 %v5281_v45, %v5281_v45  ;;  %4682 = vst.msk [vmem:[#allocation3 + $0xa8] sm:$0xff] %vm1402_vm0, %v4605_v46 }
 0x33e   :  { %v16552_v18 = vld [vmem:[#allocation3 + $0x99] sm:$0xff]  ;;  %v7522_v44 = vpack.c.bf16 %v5282_v0, %v5282_v0  ;;  %v4137_v11 = vadd.f32 %v16485_v22, %v3968_v60  ;;  %v16566_v34 = vpop.f32.mrf.mxu0 }
 0x33f   :  { %v11756_v56 = vpack.i.bf16 %v16552_v18, %v16547_v31  ;;  %7585 = vst.msk [vmem:[#allocation2 + $0x68] sm:$0xf] %vm2877_vm3, %v7521_v49  ;;  %v9694_v22 = vld [vmem:[#allocation2 + $0x174] sm:$0xf0]  ;;  %v10524_v50 = vld [vmem:[#allocation2 + $0x2e0] sm:$0xf0] }
 0x340   :  { %7586 = vst.msk [vmem:[#allocation2 + $0x74] sm:$0xf] %vm2877_vm3, %v7522_v44  ;;  %v4277_v7 = vmax.f32 %v4137_v11, 0.0  ;;  %v9880_v42 = vld [vmem:[#allocation2 + $0x2d8] sm:$0xf]  ;;  %v9697_v49 = vor.u32 %v10477_v33, %v9694_v22  ;;  %v4962_v44 = vld [vmem:[#allocation3 + $0x90] sm:$0xff] }
 0x341   :  { %11747 = vrot.lane.b32.xlu2 %v11736_v35, %s12641_s22  ;;  %11757 = vrot.lane.b32.xlu0 %v11756_v56, %s12640_s27  ;;  %v4963_v14 = vld [vmem:[#allocation3 + $0x98] sm:$0xff]  ;;  %v9881_v51 = vor.u32 %v10524_v50, %v9880_v42  ;;  %v11761_v56 = vpack.i.bf16 %v5282_v0, %v5281_v45  ;;  %v4144_v45 = vpop.f32.mrf.mxu2 }
 0x342   :  { %11752 = vrot.lane.b32.xlu1 %v11731_v53, %s12640_s27  ;;  %v4426_v8 = vrot.slane %v4277_v7, 7  ;;  %v16570_v53 = vpop.f32.mrf.mxu3  ;;  %v11766_v7 = vpack.i.bf16 %v4963_v14, %v4962_v44  ;;  %v9509_v33 = vld [vmem:[%s18977_s0 + $0x352] sm:$0xff] }
 0x343   :  { %v3970_v21 = vpop.f32.mrf.mxu1  ;;  %9982 = vmatmul.msk.bf16.gmra.mxu2 %vm1402_vm0, %v9713_v58 }
 0x344   :  { %v4427_v35 = vsel %vm4406_vm5, %v4425_v17, %v4426_v8  ;;  %v4637_v46 = vsel %vm4406_vm5, %v4426_v8, 0.0  ;;  %v3971_v60 = vadd.f32 %v3970_v21, %v3802_v15  ;;  %v9508_v17 = vld [vmem:[%s18977_s0 + $0x34a] sm:$0xff]  ;;  %v2876_v15 = vpack.c.bf16 %v9509_v33, %v9509_v33  ;;  %v5336_v33 = vld [vmem:[#allocation3 + $0x352] sm:$0xff] }
 0x345   :  { %4683 = vst.msk [vmem:[#allocation3 + $0xb0] sm:$0xff] %vm1402_vm0, %v4427_v35  ;;  %v2875_v0 = vpack.c.bf16 %v9508_v17, %v9508_v17  ;;  %v3804_v8 = vadd.f32 %v16208_v26, %v16244_v57  ;;  %v16612_v17 = vpop.permute.xlu2 %11612 }
 0x346   :  { %4684 = vst.msk [vmem:[#allocation3 + $0xb8] sm:$0x3] %vm4330_vm4, %v4637_v46  ;;  %v4140_v11 = vadd.f32 %v16517_v61, %v3971_v60  ;;  %4009 = vmatmul.bf16.gmra.mxu1 %v9697_v49  ;;  %v10056_v25 = vld [vmem:[#allocation2 + $0x68] sm:$0xf]  ;;  %v16591_v21 = vpop.f32.mrf.mxu0 }
 0x347   :  { %v10542_v1 = vld [vmem:[#allocation2 + $0x70] sm:$0xf0]  ;;  %9996 = vmatmul.msk.bf16.gmra.mxu3 %vm1402_vm0, %v9881_v51  ;;  %2940 = vst.msk [vmem:[#allocation2 + $0x2f0] sm:$0xf] %vm2877_vm3, %v2875_v0  ;;  %v16618_v0 = vld [vmem:[%s18980_s3] ss:$0 sm:$0xff] }
 0x348   :  { %v4278_v22 = vmax.f32 %v4140_v11, 0.0  ;;  %v10057_v61 = vor.u32 %v10542_v1, %v10056_v25  ;;  %2941 = vst.msk [vmem:[#allocation2 + $0x2fc] sm:$0xf] %vm2877_vm3, %v2876_v15  ;;  %v11771_v11 = vpack.i.bf16 %v16547_v31, %v16493_v27  ;;  %v16606_v25 = vpop.permute.xlu0 %11602  ;;  %v10480_v27 = vld [vmem:[#allocation2 + $0x184] sm:$0xf] }
 0x349   :  { %11762 = vrot.lane.b32.xlu2 %v11761_v56, %s12641_s22  ;;  %11767 = vrot.lane.b32.xlu0 %v11766_v7, %s12642_s10  ;;  %v9706_v31 = vld [vmem:[#allocation2 + $0x18c] sm:$0xf0] }
 0x34a   :  { %11782 = vrot.lane.b32.xlu1 %v11761_v56, %s12640_s27  ;;  %v4428_v42 = vrot.slane %v4278_v22, 7  ;;  %10386 = vmatmul.msk.bf16.gmra.mxu0 %vm1402_vm0, %v10057_v61  ;;  %v16596_v60 = vpop.f32.mrf.mxu3  ;;  %v7576_v61 = vpack.c.bf16 %v5336_v33, %v5336_v33 }
 0x34b   :  { %v3972_v50 = vpop.f32.mrf.mxu1 }
 0x34c   :  { %v5283_v14 = vld [vmem:[#allocation3 + $0xaa] sm:$0xff]  ;;  %v4606_v58 = vsel %vm4406_vm5, 0.0, %v4428_v42  ;;  %v3973_v35 = vadd.f32 %v3972_v50, %v3804_v8  ;;  %v4146_v8 = vpop.f32.mrf.mxu2 }
 0x34d   :  { %v16594_v46 = vld [vmem:[#allocation3 + $0xa9] sm:$0xff]  ;;  %v5284_v49 = vld [vmem:[#allocation3 + $0xb2] sm:$0xff]  ;;  %v7523_v26 = vpack.c.bf16 %v5283_v14, %v5283_v14  ;;  %4685 = vst.msk [vmem:[#allocation3 + $0xc0] sm:$0xff] %vm1402_vm0, %v4606_v58 }
 0x34e   :  { %v16599_v57 = vld [vmem:[#allocation3 + $0xb1] sm:$0xff]  ;;  %v7524_v44 = vpack.c.bf16 %v5284_v49, %v5284_v49  ;;  %v4142_v51 = vadd.f32 %v16557_v4, %v3973_v35  ;;  %v16629_v33 = vpop.f32.mrf.mxu0 }
 0x34f   :  { %v11786_v56 = vpack.i.bf16 %v16599_v57, %v16594_v46  ;;  %7587 = vst.msk [vmem:[#allocation2 + $0x80] sm:$0xf] %vm2877_vm3, %v7523_v26  ;;  %v5335_v4 = vld [vmem:[#allocation3 + $0x34a] sm:$0xff]  ;;  %v10527_v58 = vld [vmem:[#allocation2 + $0x2f8] sm:$0xf0] }
 0x350   :  { %7588 = vst.msk [vmem:[#allocation2 + $0x8c] sm:$0xf] %vm2877_vm3, %v7524_v44  ;;  %v4279_v1 = vmax.f32 %v4142_v51, 0.0  ;;  %v7575_v22 = vpack.c.bf16 %v5335_v4, %v5335_v4  ;;  %v9892_v50 = vld [vmem:[#allocation2 + $0x2f0] sm:$0xf] }
 0x351   :  { %11777 = vrot.lane.b32.xlu2 %v11766_v7, %s12641_s22  ;;  %11772 = vrot.lane.b32.xlu0 %v11771_v11, %s12642_s10  ;;  %v3807_v7 = vadd.f32 %v16618_v0, %v16266_v9  ;;  %v5156_v26 = vld [vmem:[#allocation3 + $0xb0] sm:$0xff]  ;;  %7640 = vst.msk [vmem:[#allocation2 + $0x2fc] sm:$0xf] %vm2877_vm3, %v7576_v61  ;;  %v5155_v9 = vld [vmem:[#allocation3 + $0xa8] sm:$0xff]  ;;  %v16637_v61 = vpop.permute.xlu1 %11607 }
 0x352   :  { %11787 = vrot.lane.b32.xlu1 %v11786_v56, %s12640_s27  ;;  %v4429_v15 = vrot.slane %v4279_v1, 7  ;;  %7639 = vst.msk [vmem:[#allocation2 + $0x2f0] sm:$0xf] %vm2877_vm3, %v7575_v22  ;;  %v9709_v56 = vor.u32 %v10480_v27, %v9706_v31  ;;  %v16625_v4 = vpop.f32.mrf.mxu3  ;;  %v9893_v1 = vor.u32 %v10527_v58, %v9892_v50  ;;  %v11806_v22 = vpack.i.bf16 %v5156_v26, %v5155_v9  ;;  %v16634_v27 = vpop.permute.xlu0 %11617 }
 0x353   :  { %v3975_v35 = vpop.f32.mrf.mxu1  ;;  %19483 = vst [vmem:[#allocation24_spill] sm:$0xff] %v16625_v4 }
 0x354   :  { %v4430_v44 = vsel %vm4406_vm5, %v4428_v42, %v4429_v15  ;;  %v4638_v51 = vsel %vm4406_vm5, %v4429_v15, 0.0  ;;  %v3976_v11 = vadd.f32 %v3975_v35, %v3807_v7  ;;  %v11791_v42 = vpack.i.bf16 %v5284_v49, %v5283_v14  ;;  %19484 = vst [vmem:[#allocation23_spill] sm:$0xff] %v16634_v27  ;;  %v16645_v49 = vpop.f32.mrf.mxu2  ;;  %v4966_v27 = vld [vmem:[#allocation3 + $0xc0] sm:$0xff] }
 0x355   :  { %4686 = vst.msk [vmem:[#allocation3 + $0xc8] sm:$0xff] %vm1402_vm0, %v4430_v44 }
 0x356   :  { %4687 = vst.msk [vmem:[#allocation3 + $0xd0] sm:$0x3] %vm4330_vm4, %v4638_v51  ;;  %v4145_v13 = vadd.f32 %v4144_v45, %v3976_v11  ;;  %4014 = vmatmul.bf16.gmra.mxu1 %v9709_v56  ;;  %v10068_v12 = vld [vmem:[#allocation2 + $0x80] sm:$0xf]  ;;  %v3809_v45 = vadd.f32 %v16618_v0, %v16296_v55 }
 0x357   :  { %v10545_v15 = vld [vmem:[#allocation2 + $0x88] sm:$0xf0]  ;;  %19485 = vst [vmem:[#allocation10_spill] sm:$0xff] %v16637_v61  ;;  %9997 = vmatmul.msk.bf16.gmra.mxu3 %vm1402_vm0, %v9893_v1  ;;  %v5017_v61 = vld [vmem:[#allocation3 + $0x21] sm:$0xff] }
 0x358   :  { %v4280_v7 = vmax.f32 %v4145_v13, 0.0  ;;  %v10069_v31 = vor.u32 %v10545_v15, %v10068_v12  ;;  %v11605_v15 = vunpack.i.h.bf16 %v16606_v25 }
 0x359   :  { %11807 = vrot.lane.b32.xlu2 %v11806_v22, %s12641_s22  ;;  %11792 = vrot.lane.b32.xlu0 %v11791_v42, %s12641_s22 }
 0x35a   :  { %11797 = vrot.lane.b32.xlu1 %v11806_v22, %s12642_s10  ;;  %v4431_v14 = vrot.slane %v4280_v7, 7  ;;  %10387 = vmatmul.msk.bf16.gmra.mxu0 %vm1402_vm0, %v10069_v31  ;;  %v16652_v44 = vpop.f32.mrf.mxu3  ;;  %v11801_v22 = vpack.i.bf16 %v16594_v46, %v16552_v18  ;;  %v10483_v7 = vld [vmem:[#allocation2 + $0x19c] sm:$0xf]  ;;  %v9718_v31 = vld [vmem:[#allocation2 + $0x1a4] sm:$0xf0]  ;;  %v3812_v18 = vadd.f32 %v16618_v0, %v16321_v43  ;;  %v11615_v46 = vunpack.i.h.bf16 %v16612_v17 }
 0x35b   :  { %v16643_v13 = vpop.permute.xlu2 %11642  ;;  %v3977_v50 = vpop.f32.mrf.mxu1  ;;  %19486 = vst [vmem:[#allocation11_spill] sm:$0xff] %v16652_v44 }
 0x35c   :  { %v16647_v58 = vld [vmem:[#allocation3 + $0xc2] sm:$0xff]  ;;  %v4607_v12 = vsel %vm4406_vm5, 0.0, %v4431_v14  ;;  %v3978_v35 = vadd.f32 %v3977_v50, %v3809_v45  ;;  %v16665_v45 = vpop.f32.mrf.mxu0 }
 0x35d   :  { %v16650_v26 = vld [vmem:[#allocation3 + $0xc1] sm:$0xff]  ;;  %v5286_v51 = vld [vmem:[#allocation3 + $0xca] sm:$0xff]  ;;  %v7525_v55 = vpack.c.bf16 %v16647_v58, %v16647_v58  ;;  %4688 = vst.msk [vmem:[#allocation3 + $0xd8] sm:$0xff] %vm1402_vm0, %v4607_v12 }
 0x35e   :  { %v16657_v11 = vld [vmem:[#allocation3 + $0xc9] sm:$0xff]  ;;  %v7526_v56 = vpack.c.bf16 %v5286_v51, %v5286_v51  ;;  %v4147_v9 = vadd.f32 %v4146_v8, %v3978_v35  ;;  %v11604_v8 = vunpack.i.l.bf16 %v16606_v25  ;;  %v4760_v35 = vld [vmem:[#allocation3] sm:$0xff] }
 0x35f   :  { %v11816_v1 = vpack.i.bf16 %v16657_v11, %v16650_v26  ;;  %7589 = vst.msk [vmem:[#allocation2 + $0x98] sm:$0xf] %vm2877_vm3, %v7525_v55  ;;  %v4761_v50 = vld [vmem:[#allocation3 + $0x8] sm:$0xff] }
 0x360   :  { %7590 = vst.msk [vmem:[#allocation2 + $0xa4] sm:$0xf] %vm2877_vm3, %v7526_v56  ;;  %v4281_v12 = vmax.f32 %v4147_v9, 0.0  ;;  %v9721_v56 = vor.u32 %v10483_v7, %v9718_v31  ;;  %v4967_v48 = vld [vmem:[#allocation3 + $0xc8] sm:$0xff]  ;;  %v11614_v9 = vunpack.i.l.bf16 %v16612_v17  ;;  %v6105_v7 = vsel %vm1402_vm0, %v4760_v35, %v11604_v8  ;;  %v4762_v17 = vld [vmem:[#allocation3 + $0x18] sm:$0xff] }
 0x361   :  { %11817 = vrot.lane.b32.xlu2 %v11816_v1, %s12640_s27  ;;  %11802 = vrot.lane.b32.xlu0 %v11801_v22, %s12642_s10  ;;  %v6106_v1 = vsel %vm1402_vm0, %v4761_v50, %v11605_v15  ;;  %v4763_v15 = vld [vmem:[#allocation3 + $0x20] sm:$0xff]  ;;  %v11831_v50 = vpack.i.bf16 %v16650_v26, %v16599_v57 }
 0x362   :  { %11812 = vrot.lane.b32.xlu1 %v11791_v42, %s12640_s27  ;;  %v4432_v55 = vrot.slane %v4281_v12, 7  ;;  %v11628_v47 = vpop.permute.xlu0 %11627  ;;  %v4151_v12 = vpop.f32.mrf.mxu2 }
 0x363   :  { %v11653_v63 = vpop.permute.xlu2 %11652  ;;  %v11630_v22 = vunpack.i.h.bf16 %v11628_v47  ;;  %v11629_v10 = vunpack.i.l.bf16 %v11628_v47  ;;  %v11623_v25 = vpop.permute.xlu1 %11622  ;;  %v11826_v47 = vpack.i.bf16 %v4967_v48, %v4966_v27  ;;  %v11821_v48 = vpack.i.bf16 %v5286_v51, %v16647_v58 }
 0x364   :  { %v3980_v30 = vpop.f32.mrf.mxu1  ;;  %v4433_v42 = vsel %vm4406_vm5, %v4431_v14, %v4432_v55  ;;  %v4639_v43 = vsel %vm4406_vm5, %v4432_v55, 0.0  ;;  %v11625_v52 = vunpack.i.h.bf16 %v11623_v25  ;;  %v11624_v40 = vunpack.i.l.bf16 %v11623_v25  ;;  %v16679_v28 = vpop.f32.mrf.mxu3 }
 0x365   :  { %19487 = vst [vmem:[#allocation71_spill] sm:$0xff] %v16679_v28  ;;  %v3981_v31 = vadd.f32 %v3980_v30, %v3812_v18  ;;  %v11655_v14 = vunpack.i.h.bf16 %v11653_v63  ;;  %v11654_v55 = vunpack.i.l.bf16 %v11653_v63  ;;  %v6169_v51 = vsel %vm1467_vm1, %v6105_v7, %v11614_v9 }
 0x366   :  { %4689 = vst.msk [vmem:[#allocation3 + $0xe0] sm:$0xff] %vm1402_vm0, %v4433_v42  ;;  %v6107_v25 = vsel %vm1402_vm0, %v4762_v17, %v11624_v40  ;;  %v6108_v44 = vsel %vm1402_vm0, %v4763_v15, %v11625_v52  ;;  %4019 = vmatmul.bf16.gmra.mxu1 %v9721_v56  ;;  %v10080_v28 = vld [vmem:[#allocation2 + $0x98] sm:$0xf] }
 0x367   :  { %4690 = vst.msk [vmem:[#allocation3 + $0xe8] sm:$0x3] %vm4330_vm4, %v4639_v43  ;;  %v6171_v8 = vsel %vm1467_vm1, %v6107_v25, %v11629_v10  ;;  %v6172_v35 = vsel %vm1467_vm1, %v6108_v44, %v11630_v22  ;;  %v4150_v30 = vadd.f32 %v16645_v49, %v3981_v31  ;;  %v10548_v27 = vld [vmem:[#allocation2 + $0xa0] sm:$0xf0]  ;;  %v3814_v10 = vadd.f32 %v16618_v0, %v16356_v3  ;;  %v16699_v49 = vpop.f32.mrf.mxu0 }
 0x368   :  { %v6235_v57 = vsel %vm1532_vm2, %v6171_v8, %v11654_v55  ;;  %v6236_v26 = vsel %vm1532_vm2, %v6172_v35, %v11655_v14  ;;  %v10081_v40 = vor.u32 %v10548_v27, %v10080_v28  ;;  %v6170_v28 = vsel %vm1467_vm1, %v6106_v1, %v11615_v46 }
 0x369   :  { %11827 = vrot.lane.b32.xlu2 %v11826_v47, %s12642_s10  ;;  %11832 = vrot.lane.b32.xlu0 %v11831_v50, %s12642_s10  ;;  %v6299_v52 = vpack.c.bf16 %v6235_v57, %v6235_v57  ;;  %v6300_v63 = vpack.c.bf16 %v6236_v26, %v6236_v26  ;;  %v4282_v18 = vmax.f32 %v4150_v30, 0.0  ;;  %v10486_v26 = vld [vmem:[#allocation2 + $0x1b4] sm:$0xf] }
 0x36a   :  { %11822 = vrot.lane.b32.xlu1 %v11821_v48, %s12641_s22  ;;  %10388 = vmatmul.msk.bf16.gmra.mxu0 %vm1402_vm0, %v10081_v40  ;;  %v4154_v31 = vpop.f32.mrf.mxu2  ;;  %v9730_v40 = vld [vmem:[#allocation2 + $0x1bc] sm:$0xf0] }
 0x36b   :  { %v16702_v58 = vpop.permute.xlu2 %11657  ;;  %6363 = vst [vmem:[#allocation2 + $0x18] sm:$0xf] %v6299_v52  ;;  %v4434_v44 = vrot.slane %v4282_v18, 7  ;;  %v11633_v56 = vpop.permute.xlu1 %11632 }
 0x36c   :  { %v3982_v22 = vpop.f32.mrf.mxu1  ;;  %6364 = vst [vmem:[#allocation2 + $0x24] sm:$0xf] %v6300_v63  ;;  %v11635_v43 = vunpack.i.h.bf16 %v11633_v56  ;;  %v11634_v17 = vunpack.i.l.bf16 %v11633_v56  ;;  %v16708_v50 = vpop.f32.mrf.mxu3  ;;  %v3817_v63 = vadd.f32 %v16618_v0, %v16389_v32 }
 0x36d   :  { %v5287_v42 = vld [vmem:[#allocation3 + $0xda] sm:$0xff]  ;;  %v3983_v15 = vadd.f32 %v3982_v22, %v3814_v10  ;;  %19488 = vst [vmem:[#allocation53_spill] sm:$0xff] %v16708_v50  ;;  %v4608_v25 = vsel %vm4406_vm5, 0.0, %v4434_v44  ;;  %v9754_v50 = vld [vmem:[#allocation2 + $0x1ec] sm:$0xf0] }
 0x36e   :  { %v16706_v3 = vld [vmem:[#allocation3 + $0xd9] sm:$0xff]  ;;  %v5288_v14 = vld [vmem:[#allocation3 + $0xe2] sm:$0xff]  ;;  %v7527_v55 = vpack.c.bf16 %v5287_v42, %v5287_v42  ;;  %4691 = vst.msk [vmem:[#allocation3 + $0xf0] sm:$0xff] %vm1402_vm0, %v4608_v25  ;;  %v6234_v46 = vsel %vm1532_vm2, %v6170_v28, %v11635_v43  ;;  %v6233_v1 = vsel %vm1532_vm2, %v6169_v51, %v11634_v17  ;;  %v9733_v28 = vor.u32 %v10486_v26, %v9730_v40 }
 0x36f   :  { %v16711_v8 = vld [vmem:[#allocation3 + $0xe1] sm:$0xff]  ;;  %v7528_v9 = vpack.c.bf16 %v5288_v14, %v5288_v14  ;;  %v4152_v7 = vadd.f32 %v4151_v12, %v3983_v15  ;;  %v6298_v35 = vpack.c.bf16 %v6234_v46, %v6234_v46  ;;  %v6297_v30 = vpack.c.bf16 %v6233_v1, %v6233_v1  ;;  %v16733_v43 = vpop.f32.mrf.mxu0  ;;  %v4968_v15 = vld [vmem:[#allocation3 + $0xd8] sm:$0xff] }
 0x370   :  { %7591 = vst.msk [vmem:[#allocation2 + $0xb0] sm:$0xf] %vm2877_vm3, %v7527_v55  ;;  %v11846_v27 = vpack.i.bf16 %v16711_v8, %v16706_v3  ;;  %v4969_v56 = vld [vmem:[#allocation3 + $0xe0] sm:$0xff]  ;;  %v11851_v32 = vpack.i.bf16 %v5288_v14, %v5287_v42 }
 0x371   :  { %7592 = vst.msk [vmem:[#allocation2 + $0xbc] sm:$0xf] %vm2877_vm3, %v7528_v9  ;;  %v4283_v57 = vmax.f32 %v4152_v7, 0.0  ;;  %11837 = vrot.lane.b32.xlu2 %v11826_v47, %s12641_s22 }
 0x372   :  { %6362 = vst [vmem:[#allocation2 + $0xc] sm:$0xf] %v6298_v35  ;;  %11847 = vrot.lane.b32.xlu0 %v11846_v27, %s12640_s27  ;;  %11842 = vrot.lane.b32.xlu1 %v11821_v48, %s12640_s27  ;;  %v4156_v22 = vpop.f32.mrf.mxu2 }
 0x373   :  { %6361 = vst [vmem:[#allocation2] sm:$0xf] %v6297_v30  ;;  %v4435_v12 = vrot.slane %v4283_v57, 7  ;;  %v16723_v52 = vpop.permute.xlu2 %11672  ;;  %v16727_v18 = vpop.permute.xlu1 %11637  ;;  %v3819_v30 = vadd.f32 %v16618_v0, %v16427_v41 }
 0x374   :  { %v3985_v10 = vpop.f32.mrf.mxu1  ;;  %v16731_v48 = vpop.f32.mrf.mxu3 }
 0x375   :  { %v4436_v51 = vsel %vm4406_vm5, %v4434_v44, %v4435_v12  ;;  %v4640_v47 = vsel %vm4406_vm5, %v4435_v12, 0.0  ;;  %19489 = vst [vmem:[#allocation56_spill] sm:$0xff] %v16731_v48  ;;  %v3986_v17 = vadd.f32 %v3985_v10, %v3817_v63  ;;  %v11856_v44 = vpack.i.bf16 %v4969_v56, %v4968_v15 }
 0x376   :  { %4692 = vst.msk [vmem:[#allocation3 + $0xf8] sm:$0xff] %vm1402_vm0, %v4436_v51  ;;  %4024 = vmatmul.bf16.gmra.mxu1 %v9733_v28  ;;  %v11861_v15 = vpack.i.bf16 %v16706_v3, %v16657_v11  ;;  %v3822_v11 = vadd.f32 %v16618_v0, %v16461_v29 }
 0x377   :  { %4693 = vst.msk [vmem:[#allocation3 + $0x100] sm:$0x3] %vm4330_vm4, %v4640_v47  ;;  %v10092_v55 = vld [vmem:[#allocation2 + $0xb0] sm:$0xf]  ;;  %v4155_v25 = vadd.f32 %v4154_v31, %v3986_v17 }
 0x378   :  { %v10551_v9 = vld [vmem:[#allocation2 + $0xb8] sm:$0xf0] }
 0x379   :  { %11852 = vrot.lane.b32.xlu2 %v11851_v32, %s12641_s22  ;;  %v10093_v46 = vor.u32 %v10551_v9, %v10092_v55  ;;  %v10529_v1 = vld [vmem:[#allocation2 + $0x8] sm:$0xf0]  ;;  %v4284_v7 = vmax.f32 %v4155_v25, 0.0  ;;  %v9742_v9 = vld [vmem:[#allocation2 + $0x1d4] sm:$0xf0] }
 0x37a   :  { %11857 = vrot.lane.b32.xlu0 %v11856_v44, %s12642_s10  ;;  %11872 = vrot.lane.b32.xlu1 %v11851_v32, %s12640_s27  ;;  %v10000_v35 = vld [vmem:[#allocation2] sm:$0xf]  ;;  %v4159_v63 = vpop.f32.mrf.mxu2  ;;  %v16755_v32 = vpop.f32.mrf.mxu0 }
 0x37b   :  { %10389 = vmatmul.msk.bf16.gmra.mxu0 %vm1402_vm0, %v10093_v46  ;;  %v16743_v42 = vpop.permute.xlu2 %11687  ;;  %v10001_v31 = vor.u32 %v10529_v1, %v10000_v35  ;;  %v4437_v14 = vrot.slane %v4284_v7, 7  ;;  %v16745_v27 = vpop.permute.xlu1 %11647 }
 0x37c   :  { %v3987_v57 = vpop.f32.mrf.mxu1  ;;  %v16749_v10 = vpop.f32.mrf.mxu3 }
 0x37d   :  { %v5289_v26 = vld [vmem:[#allocation3 + $0xf2] sm:$0xff]  ;;  %8353 = vmatmul.bf16.vlgmr.msrb.gmra.mxu3 %v10001_v31  ;;  %v3988_v40 = vadd.f32 %v3987_v57, %v3819_v30  ;;  %19490 = vst [vmem:[#allocation62_spill] sm:$0xff] %v16749_v10  ;;  %v4609_v41 = vsel %vm4406_vm5, 0.0, %v4437_v14 }
 0x37e   :  { %v16747_v12 = vld [vmem:[#allocation3 + $0xf1] sm:$0xff]  ;;  %v5290_v51 = vld [vmem:[#allocation3 + $0xfa] sm:$0xff]  ;;  %v7529_v47 = vpack.c.bf16 %v5289_v26, %v5289_v26  ;;  %4694 = vst.msk [vmem:[#allocation3 + $0x108] sm:$0xff] %vm1402_vm0, %v4609_v41 }
 0x37f   :  { %v16752_v28 = vld [vmem:[#allocation3 + $0xf9] sm:$0xff]  ;;  %v7530_v56 = vpack.c.bf16 %v5290_v51, %v5290_v51  ;;  %v4157_v17 = vadd.f32 %v4156_v22, %v3988_v40  ;;  %v10489_v22 = vld [vmem:[#allocation2 + $0x1cc] sm:$0xf]  ;;  %v11891_v48 = vpack.i.bf16 %v16747_v12, %v16711_v8  ;;  %v3827_v8 = vadd.f32 %v16618_v0, %v16534_v39 }
 0x380   :  { %7593 = vst.msk [vmem:[#allocation2 + $0xc8] sm:$0xf] %vm2877_vm3, %v7529_v47  ;;  %v11876_v55 = vpack.i.bf16 %v16752_v28, %v16747_v12  ;;  %v5162_v30 = vld [vmem:[#allocation3 + $0xf8] sm:$0xff]  ;;  %v9745_v57 = vor.u32 %v10489_v22, %v9742_v9  ;;  %v11881_v22 = vpack.i.bf16 %v5290_v51, %v5289_v26  ;;  %v11660_v12 = vunpack.i.h.bf16 %v16702_v58 }
 0x381   :  { %7594 = vst.msk [vmem:[#allocation2 + $0xd4] sm:$0xf] %vm2877_vm3, %v7530_v56  ;;  %v4285_v25 = vmax.f32 %v4157_v17, 0.0  ;;  %11867 = vrot.lane.b32.xlu2 %v11856_v44, %s12641_s22  ;;  %v5161_v56 = vld [vmem:[#allocation3 + $0xf0] sm:$0xff] }
 0x382   :  { %11862 = vrot.lane.b32.xlu0 %v11861_v15, %s12642_s10  ;;  %11877 = vrot.lane.b32.xlu1 %v11876_v55, %s12640_s27  ;;  %v4161_v40 = vpop.f32.mrf.mxu2  ;;  %v11896_v29 = vpack.i.bf16 %v5162_v30, %v5161_v56  ;;  %v11645_v15 = vunpack.i.h.bf16 %v16643_v13  ;;  %v11644_v55 = vunpack.i.l.bf16 %v16643_v13  ;;  %v3824_v13 = vadd.f32 %v16618_v0, %v16495_v23 }
 0x383   :  { %v4438_v46 = vrot.slane %v4285_v25, 7  ;;  %v16766_v1 = vpop.permute.xlu2 %11717  ;;  %v16768_v7 = vpop.permute.xlu0 %11667  ;;  %v11640_v23 = vunpack.i.h.bf16 %v16727_v18 }
 0x384   :  { %v16772_v3 = vpop.permute.xlu1 %11662  ;;  %v3990_v35 = vpop.f32.mrf.mxu1 }
 0x385   :  { %v4439_v44 = vsel %vm4406_vm5, %v4437_v14, %v4438_v46  ;;  %v4641_v31 = vsel %vm4406_vm5, %v4438_v46, 0.0  ;;  %v16776_v47 = vpop.f32.mrf.mxu3  ;;  %v3991_v41 = vadd.f32 %v3990_v35, %v3822_v11  ;;  %v10012_v46 = vld [vmem:[#allocation2 + $0x18] sm:$0xf]  ;;  %v11649_v35 = vunpack.i.l.bf16 %v16745_v27 }
 0x386   :  { %19491 = vst [vmem:[#allocation74_spill] sm:$0xff] %v16776_v47  ;;  %4029 = vmatmul.bf16.gmra.mxu1 %v9745_v57  ;;  %v10532_v47 = vld [vmem:[#allocation2 + $0x20] sm:$0xf0] }
 0x387   :  { %4695 = vst.msk [vmem:[#allocation3 + $0x110] sm:$0xff] %vm1402_vm0, %v4439_v44  ;;  %v10104_v17 = vld [vmem:[#allocation2 + $0xc8] sm:$0xf]  ;;  %v4160_v14 = vadd.f32 %v4159_v63, %v3991_v41  ;;  %v16782_v25 = vpop.f32.mrf.mxu0  ;;  %v11650_v44 = vunpack.i.h.bf16 %v16745_v27  ;;  %v10013_v51 = vor.u32 %v10532_v47, %v10012_v46  ;;  %v12603_v41 = vld [vmem:[#allocation3 + $0x38] sm:$0xff] }
 0x388   :  { %4696 = vst.msk [vmem:[#allocation3 + $0x118] sm:$0x3] %vm4330_vm4, %v4641_v31  ;;  %v10554_v9 = vld [vmem:[#allocation2 + $0xd0] sm:$0xf0]  ;;  %v6110_v27 = vsel %vm1402_vm0, %v12603_v41, %v11645_v15  ;;  %v11664_v41 = vunpack.i.l.bf16 %v16772_v3 }
 0x389   :  { %19492 = vst [vmem:[#allocation49_spill] sm:$0xff] %v16782_v25  ;;  %11897 = vrot.lane.b32.xlu2 %v11896_v29, %s12641_s22  ;;  %v10105_v11 = vor.u32 %v10554_v9, %v10104_v17  ;;  %v4286_v30 = vmax.f32 %v4160_v14, 0.0  ;;  %v12602_v31 = vld [vmem:[#allocation3 + $0x30] sm:$0xff]  ;;  %v6174_v9 = vsel %vm1467_vm1, %v6110_v27, %v11650_v44 }
 0x38a   :  { %11882 = vrot.lane.b32.xlu0 %v11881_v22, %s12641_s22  ;;  %11887 = vrot.lane.b32.xlu1 %v11896_v29, %s12642_s10  ;;  %v6109_v57 = vsel %vm1402_vm0, %v12602_v31, %v11644_v55  ;;  %v16804_v46 = vpop.f32.mrf.mxu2 }
 0x38b   :  { %10390 = vmatmul.msk.bf16.gmra.mxu0 %vm1402_vm0, %v10105_v11  ;;  %v16792_v26 = vpop.permute.xlu2 %11727  ;;  %v11678_v63 = vpop.permute.xlu0 %11677  ;;  %v16796_v56 = vrot.slane %v4286_v30, 7  ;;  %v6173_v15 = vsel %vm1467_vm1, %v6109_v57, %v11649_v35 }
 0x38c   :  { %v11680_v17 = vunpack.i.h.bf16 %v11678_v63  ;;  %v16798_v14 = vpop.permute.xlu1 %11692  ;;  %v3992_v29 = vpop.f32.mrf.mxu1  ;;  %v11679_v25 = vunpack.i.l.bf16 %v11678_v63 }
 0x38d   :  { %8358 = vmatmul.bf16.gmra.mxu3 %v10013_v51  ;;  %v3993_v47 = vadd.f32 %v3992_v29, %v3824_v13  ;;  %v16806_v55 = vpop.f32.mrf.mxu3  ;;  %v4610_v44 = vsel %vm4406_vm5, 0.0, %v16796_v56 }
 0x38e   :  { %v16802_v11 = vld [vmem:[#allocation3 + $0x10a] sm:$0xff]  ;;  %19493 = vst [vmem:[#allocation51_spill] sm:$0xff] %v16806_v55  ;;  %v6237_v35 = vsel %vm1532_vm2, %v6173_v15, %v11679_v25  ;;  %v6238_v51 = vsel %vm1532_vm2, %v6174_v9, %v11680_v17  ;;  %v10492_v17 = vld [vmem:[#allocation2 + $0x1e4] sm:$0xf]  ;;  %v7194_v9 = vsel %vm1402_vm0, %v5017_v61, %v11640_v23  ;;  %v11670_v15 = vunpack.i.h.bf16 %v16768_v7 }
 0x38f   :  { %v16809_v30 = vld [vmem:[#allocation3 + $0x112] sm:$0xff]  ;;  %v7531_v31 = vpack.c.bf16 %v16802_v11, %v16802_v11  ;;  %v16816_v27 = vld [vmem:[#allocation3 + $0x109] sm:$0xff]  ;;  %4697 = vst.msk [vmem:[#allocation3 + $0x120] sm:$0xff] %vm1402_vm0, %v4610_v44  ;;  %v6301_v57 = vpack.c.bf16 %v6237_v35, %v6237_v35  ;;  %v6302_v29 = vpack.c.bf16 %v6238_v51, %v6238_v51  ;;  %v4162_v55 = vadd.f32 %v4161_v40, %v3993_v47  ;;  %v16826_v10 = vpop.f32.mrf.mxu0 }
 0x390   :  { %v16818_v63 = vld [vmem:[#allocation3 + $0x111] sm:$0xff]  ;;  %v7532_v13 = vpack.c.bf16 %v16809_v30, %v16809_v30  ;;  %19494 = vst [vmem:[#allocation60_spill] sm:$0xff] %v16826_v10  ;;  %v7195_v40 = vsel %vm1402_vm0, %v16831_v36, %v11664_v41  ;;  %v11669_v61 = vunpack.i.l.bf16 %v16768_v7  ;;  %v7258_v51 = vsel %vm1467_vm1, %v7194_v9, %v11660_v12 }
 0x391   :  { %7595 = vst.msk [vmem:[#allocation2 + $0xe0] sm:$0xf] %vm2877_vm3, %v7531_v31  ;;  %v11906_v25 = vpack.i.bf16 %v16818_v63, %v16816_v27  ;;  %v4287_v47 = vmax.f32 %v4162_v55, 0.0  ;;  %v11689_v31 = vunpack.i.l.bf16 %v16743_v42  ;;  %v4767_v35 = vld [vmem:[#allocation3 + $0x50] sm:$0xff]  ;;  %v11921_v12 = vpack.i.bf16 %v16816_v27, %v16752_v28 }
 0x392   :  { %7596 = vst.msk [vmem:[#allocation2 + $0xec] sm:$0xf] %vm2877_vm3, %v7532_v13  ;;  %11892 = vrot.lane.b32.xlu0 %v11891_v48, %s12642_s10  ;;  %11902 = vrot.lane.b32.xlu1 %v11881_v22, %s12640_s27  ;;  %v9757_v13 = vor.u32 %v10492_v17, %v9754_v50  ;;  %v16853_v7 = vpop.f32.mrf.mxu2  ;;  %v6112_v4 = vsel %vm1402_vm0, %v4767_v35, %v11670_v15  ;;  %v4973_v17 = vld [vmem:[#allocation3 + $0x110] sm:$0xff]  ;;  %v11675_v35 = vunpack.i.h.bf16 %v16723_v52  ;;  %v11674_v28 = vunpack.i.l.bf16 %v16723_v52 }
 0x393   :  { %6365 = vst [vmem:[#allocation2 + $0x30] sm:$0xf] %v6301_v57  ;;  %11907 = vrot.lane.b32.xlu2 %v11906_v25, %s12640_s27  ;;  %v16847_v23 = vpop.permute.xlu2 %11737  ;;  %v11683_v41 = vpop.permute.xlu0 %11682  ;;  %v4441_v55 = vrot.slane %v4287_v47, 7  ;;  %v7259_v57 = vsel %vm1467_vm1, %v7195_v40, %v11689_v31  ;;  %v4766_v25 = vld [vmem:[#allocation3 + $0x48] sm:$0xff] }
 0x394   :  { %6366 = vst [vmem:[#allocation2 + $0x3c] sm:$0xf] %v6302_v29  ;;  %v11685_v44 = vunpack.i.h.bf16 %v11683_v41  ;;  %v16849_v48 = vpop.permute.xlu1 %11697  ;;  %v3995_v22 = vpop.f32.mrf.mxu1  ;;  %v11684_v39 = vunpack.i.l.bf16 %v11683_v41  ;;  %v6111_v9 = vsel %vm1402_vm0, %v4766_v25, %v11669_v61  ;;  %v4972_v61 = vld [vmem:[#allocation3 + $0x108] sm:$0xff] }
 0x395   :  { %v3996_v10 = vadd.f32 %v3995_v22, %v3827_v8  ;;  %v16855_v29 = vpop.f32.mrf.mxu3  ;;  %v4442_v47 = vsel %vm4406_vm5, %v16796_v56, %v4441_v55  ;;  %v4642_v54 = vsel %vm4406_vm5, %v4441_v55, 0.0  ;;  %v11700_v56 = vunpack.i.h.bf16 %v16849_v48 }
 0x396   :  { %v7323_v50 = vsel %vm1532_vm2, %v7259_v57, %v11685_v44  ;;  %4698 = vst.msk [vmem:[#allocation3 + $0x128] sm:$0xff] %vm1402_vm0, %v4442_v47  ;;  %v7322_v40 = vsel %vm1532_vm2, %v7258_v51, %v11684_v39  ;;  %4034 = vmatmul.bf16.gmra.mxu1 %v9757_v13  ;;  %v16874_v44 = vpack.i.bf16 %v16809_v30, %v16802_v11  ;;  %v11699_v13 = vunpack.i.l.bf16 %v16849_v48  ;;  %v4769_v51 = vld [vmem:[#allocation3 + $0x68] sm:$0xff] }
 0x397   :  { %v7387_v8 = vpack.c.bf16 %v7323_v50, %v7323_v50  ;;  %4699 = vst.msk [vmem:[#allocation3 + $0x130] sm:$0x3] %vm4330_vm4, %v4642_v54  ;;  %v7386_v15 = vpack.c.bf16 %v7322_v40, %v7322_v40  ;;  %v4165_v41 = vadd.f32 %v16804_v46, %v3996_v10  ;;  %v16870_v55 = vpop.f32.mrf.mxu0  ;;  %v16878_v54 = vpack.i.bf16 %v4973_v17, %v4972_v61 }
 0x398   :  { %v10116_v31 = vld [vmem:[#allocation2 + $0xe0] sm:$0xf]  ;;  %19495 = vst [vmem:[#allocation80_spill] sm:$0xff] %v16870_v55  ;;  %v3829_v10 = vadd.f32 %v16618_v0, %v16566_v34  ;;  %v11665_v46 = vunpack.i.h.bf16 %v16772_v3  ;;  %v11694_v30 = vunpack.i.l.bf16 %v16798_v14  ;;  %v6175_v48 = vsel %vm1467_vm1, %v6111_v9, %v11674_v28  ;;  %v5020_v55 = vld [vmem:[#allocation3 + $0x49] sm:$0xff] }
 0x399   :  { %v10557_v22 = vld [vmem:[#allocation2 + $0xe8] sm:$0xf0]  ;;  %7451 = vst [vmem:[#allocation2 + $0x1c] sm:$0xf] %v7387_v8  ;;  %v4288_v11 = vmax.f32 %v4165_v41, 0.0  ;;  %v6176_v57 = vsel %vm1467_vm1, %v6112_v4, %v11675_v35  ;;  %v11740_v47 = vunpack.i.h.bf16 %v16847_v23  ;;  %v6114_v50 = vsel %vm1402_vm0, %v4769_v51, %v11700_v56 }
 0x39a   :  { %v10117_v27 = vor.u32 %v10557_v22, %v10116_v31  ;;  %v10024_v39 = vld [vmem:[#allocation2 + $0x30] sm:$0xf]  ;;  %7450 = vst [vmem:[#allocation2 + $0x10] sm:$0xf] %v7386_v15  ;;  %11922 = vrot.lane.b32.xlu0 %v11921_v12, %s12642_s10  ;;  %11912 = vrot.lane.b32.xlu1 %v16874_v44, %s12641_s22  ;;  %v4768_v31 = vld [vmem:[#allocation3 + $0x60] sm:$0xff]  ;;  %v16901_v9 = vpop.f32.mrf.mxu2  ;;  %v11739_v56 = vunpack.i.l.bf16 %v16847_v23 }
 0x39b   :  { %v10535_v52 = vld [vmem:[#allocation2 + $0x38] sm:$0xf0]  ;;  %11917 = vrot.lane.b32.xlu2 %v16878_v54, %s12642_s10  ;;  %v16891_v34 = vpop.permute.xlu2 %11747  ;;  %v11703_v3 = vpop.permute.xlu0 %11702  ;;  %v16897_v17 = vrot.slane %v4288_v11, 7  ;;  %v6113_v28 = vsel %vm1402_vm0, %v4768_v31, %v11699_v13 }
 0x39c   :  { %10391 = vmatmul.msk.bf16.gmra.mxu0 %vm1402_vm0, %v10117_v27  ;;  %v10025_v25 = vor.u32 %v10535_v52, %v10024_v39  ;;  %v11705_v40 = vunpack.i.h.bf16 %v11703_v3  ;;  %v11708_v8 = vpop.permute.xlu1 %11707  ;;  %v3997_v12 = vpop.f32.mrf.mxu1  ;;  %v11704_v15 = vunpack.i.l.bf16 %v11703_v3  ;;  %v16899_v27 = vld [vmem:[#allocation3 + $0x120] sm:$0xff] }
 0x39d   :  { %v11710_v41 = vunpack.i.h.bf16 %v11708_v8  ;;  %v11709_v61 = vunpack.i.l.bf16 %v11708_v8  ;;  %v3998_v22 = vadd.f32 %v3997_v12, %v3829_v10  ;;  %v16903_v4 = vpop.f32.mrf.mxu3  ;;  %v16905_v35 = vld [vmem:[#allocation3 + $0x122] sm:$0xff]  ;;  %v4611_v39 = vsel %vm4406_vm5, 0.0, %v16897_v17  ;;  %v5019_v31 = vld [vmem:[#allocation3 + $0x39] sm:$0xff] }
 0x39e   :  { %8363 = vmatmul.bf16.gmra.mxu3 %v10025_v25  ;;  %v6178_v11 = vsel %vm1467_vm1, %v6114_v50, %v11705_v40  ;;  %v5294_v52 = vld [vmem:[#allocation3 + $0x12a] sm:$0xff]  ;;  %v7533_v10 = vpack.c.bf16 %v16905_v35, %v16905_v35  ;;  %4700 = vst.msk [vmem:[#allocation3 + $0x138] sm:$0xff] %vm1402_vm0, %v4611_v39  ;;  %v6177_v51 = vsel %vm1467_vm1, %v6113_v28, %v11704_v15  ;;  %v10495_v40 = vld [vmem:[#allocation2 + $0x1fc] sm:$0xf] }
 0x39f   :  { %v6242_v3 = vsel %vm1532_vm2, %v6178_v11, %v11740_v47  ;;  %v6240_v25 = vsel %vm1532_vm2, %v6176_v57, %v11710_v41  ;;  %v7534_v23 = vpack.c.bf16 %v5294_v52, %v5294_v52  ;;  %v6241_v13 = vsel %vm1532_vm2, %v6177_v51, %v11739_v56  ;;  %v16919_v12 = vpop.f32.mrf.mxu0  ;;  %v9766_v41 = vld [vmem:[#allocation2 + $0x204] sm:$0xf0] }
 0x3a0   :  { %v6306_v8 = vpack.c.bf16 %v6242_v3, %v6242_v3  ;;  %v11931_v50 = vpack.i.bf16 %v16831_v36, %v16899_v27  ;;  %7597 = vst.msk [vmem:[#allocation2 + $0xf8] sm:$0xf] %vm2877_vm3, %v7533_v10  ;;  %v6305_v39 = vpack.c.bf16 %v6241_v13, %v6241_v13  ;;  %v6304_v15 = vpack.c.bf16 %v6240_v25, %v6240_v25 }
 0x3a1   :  { %v6239_v47 = vsel %vm1532_vm2, %v6175_v48, %v11709_v61  ;;  %v4167_v57 = vadd.f32 %v16853_v7, %v3998_v22  ;;  %v7196_v56 = vsel %vm1402_vm0, %v5019_v31, %v11665_v46  ;;  %v7197_v28 = vsel %vm1402_vm0, %v5020_v55, %v11694_v30  ;;  %7598 = vst.msk [vmem:[#allocation2 + $0x104] sm:$0xf] %vm2877_vm3, %v7534_v23  ;;  %v16944_v23 = vld [vmem:[#allocation3 + $0x121] sm:$0xff] }
 0x3a2   :  { %v6303_v11 = vpack.c.bf16 %v6239_v47, %v6239_v47  ;;  %11932 = vrot.lane.b32.xlu0 %v11931_v50, %s12642_s10  ;;  %11952 = vrot.lane.b32.xlu1 %v16874_v44, %s12640_s27  ;;  %v3832_v36 = vadd.f32 %v16618_v0, %v16591_v21  ;;  %v11690_v48 = vunpack.i.h.bf16 %v16743_v42  ;;  %v11719_v7 = vunpack.i.l.bf16 %v16766_v1  ;;  %6369 = vst [vmem:[#allocation2 + $0x60] sm:$0xf] %v6305_v39  ;;  %v4171_v13 = vpop.f32.mrf.mxu2 }
 0x3a3   :  { %v4289_v61 = vmax.f32 %v4167_v57, 0.0  ;;  %11927 = vrot.lane.b32.xlu2 %v16878_v54, %s12641_s22  ;;  %v16938_v55 = vpop.permute.xlu2 %11762  ;;  %v11713_v46 = vpop.permute.xlu0 %11712  ;;  %6370 = vst [vmem:[#allocation2 + $0x6c] sm:$0xf] %v6306_v8  ;;  %v9769_v51 = vor.u32 %v10495_v40, %v9766_v41  ;;  %v16946_v54 = vld [vmem:[#allocation3 + $0x129] sm:$0xff]  ;;  %v11695_v8 = vunpack.i.h.bf16 %v16798_v14 }
 0x3a4   :  { %v11715_v30 = vunpack.i.h.bf16 %v11713_v46  ;;  %v11714_v22 = vunpack.i.l.bf16 %v11713_v46  ;;  %v16940_v10 = vpop.permute.xlu1 %11722  ;;  %v4000_v44 = vpop.f32.mrf.mxu1  ;;  %6368 = vst [vmem:[#allocation2 + $0x54] sm:$0xf] %v6304_v15  ;;  %v7260_v42 = vsel %vm1467_vm1, %v7196_v56, %v11690_v48  ;;  %v7261_v3 = vsel %vm1467_vm1, %v7197_v28, %v11719_v7  ;;  %v5021_v7 = vld [vmem:[#allocation3 + $0x51] sm:$0xff] }
 0x3a5   :  { %v4444_v21 = vrot.slane %v4289_v61, 7  ;;  %v4001_v25 = vadd.f32 %v4000_v44, %v3832_v36  ;;  %v16948_v50 = vpop.f32.mrf.mxu3  ;;  %6367 = vst [vmem:[#allocation2 + $0x48] sm:$0xf] %v6303_v11  ;;  %v11724_v39 = vunpack.i.l.bf16 %v16940_v10  ;;  %v11941_v28 = vpack.i.bf16 %v5294_v52, %v16905_v35 }
 0x3a6   :  { %v7324_v31 = vsel %vm1532_vm2, %v7260_v42, %v11714_v22  ;;  %v7325_v40 = vsel %vm1532_vm2, %v7261_v3, %v11715_v30  ;;  %4039 = vmatmul.bf16.gmra.mxu1 %v9769_v51  ;;  %v11936_v11 = vpack.i.bf16 %v16946_v54, %v16944_v23  ;;  %v3834_v35 = vadd.f32 %v16618_v0, %v16629_v33 }
 0x3a7   :  { %v4445_v15 = vsel %vm4406_vm5, %v16897_v17, %v4444_v21  ;;  %v4643_v47 = vsel %vm4406_vm5, %v4444_v21, 0.0  ;;  %v7388_v57 = vpack.c.bf16 %v7324_v31, %v7324_v31  ;;  %v7389_v41 = vpack.c.bf16 %v7325_v40, %v7325_v40  ;;  %v16959_v14 = vpop.f32.mrf.mxu0  ;;  %v10128_v36 = vld [vmem:[#allocation2 + $0xf8] sm:$0xf]  ;;  %v5022_v17 = vld [vmem:[#allocation3 + $0x61] sm:$0xff] }
 0x3a8   :  { %4701 = vst.msk [vmem:[#allocation3 + $0x140] sm:$0xff] %vm1402_vm0, %v4445_v15  ;;  %v4170_v56 = vadd.f32 %v16901_v9, %v4001_v25  ;;  %v10560_v48 = vld [vmem:[#allocation2 + $0x100] sm:$0xf0]  ;;  %v7199_v61 = vsel %vm1402_vm0, %v5022_v17, %v11724_v39  ;;  %v7198_v52 = vsel %vm1402_vm0, %v5021_v7, %v11695_v8  ;;  %v11749_v30 = vunpack.i.l.bf16 %v16891_v34 }
 0x3a9   :  { %19496 = vst [vmem:[#allocation54_spill] sm:$0xff] %v16959_v14  ;;  %v10129_v9 = vor.u32 %v10560_v48, %v10128_v36  ;;  %v11720_v51 = vunpack.i.h.bf16 %v16766_v1 }
 0x3aa   :  { %4702 = vst.msk [vmem:[#allocation3 + $0x148] sm:$0x3] %vm4330_vm4, %v4643_v47  ;;  %v4290_v46 = vmax.f32 %v4170_v56, 0.0  ;;  %11937 = vrot.lane.b32.xlu0 %v11936_v11, %s12640_s27  ;;  %11967 = vrot.lane.b32.xlu1 %v11941_v28, %s12640_s27  ;;  %v7263_v8 = vsel %vm1467_vm1, %v7199_v61, %v11749_v30  ;;  %v4174_v15 = vpop.f32.mrf.mxu2  ;;  %v5166_v56 = vld [vmem:[#allocation3 + $0x128] sm:$0xff] }
 0x3ab   :  { %7452 = vst [vmem:[#allocation2 + $0x28] sm:$0xf] %v7388_v57  ;;  %11942 = vrot.lane.b32.xlu2 %v11941_v28, %s12641_s22  ;;  %v16973_v22 = vpop.permute.xlu2 %11777  ;;  %v11743_v44 = vpop.permute.xlu0 %11742  ;;  %v10538_v25 = vld [vmem:[#allocation2 + $0x50] sm:$0xf0]  ;;  %v7262_v57 = vsel %vm1467_vm1, %v7198_v52, %v11720_v51  ;;  %v11946_v52 = vpack.i.bf16 %v16944_v23, %v16818_v63  ;;  %v11956_v51 = vpack.i.bf16 %v5166_v56, %v16899_v27 }
 0x3ac   :  { %7453 = vst [vmem:[#allocation2 + $0x34] sm:$0xf] %v7389_v41  ;;  %v4446_v21 = vrot.slane %v4290_v46, 7  ;;  %10392 = vmatmul.msk.bf16.gmra.mxu0 %vm1402_vm0, %v10129_v9  ;;  %v11745_v42 = vunpack.i.h.bf16 %v11743_v44  ;;  %v16977_v3 = vpop.permute.xlu1 %11732  ;;  %v4002_v33 = vpop.f32.mrf.mxu1  ;;  %v11744_v31 = vunpack.i.l.bf16 %v11743_v44  ;;  %v10036_v40 = vld [vmem:[#allocation2 + $0x48] sm:$0xf] }
 0x3ad   :  { %v4003_v39 = vadd.f32 %v4002_v33, %v3834_v35  ;;  %v10037_v41 = vor.u32 %v10538_v25, %v10036_v40  ;;  %v16983_v28 = vpop.f32.mrf.mxu3  ;;  %v10498_v23 = vld [vmem:[#allocation2 + $0x214] sm:$0xf]  ;;  %v9778_v33 = vld [vmem:[#allocation2 + $0x21c] sm:$0xf0] }
 0x3ae   :  { %v4612_v47 = vsel %vm4406_vm5, 0.0, %v4446_v21  ;;  %v7327_v1 = vsel %vm1532_vm2, %v7263_v8, %v11745_v42  ;;  %v7326_v36 = vsel %vm1532_vm2, %v7262_v57, %v11744_v31  ;;  %v9781_v57 = vor.u32 %v10498_v23, %v9778_v33  ;;  %v10048_v23 = vld [vmem:[#allocation2 + $0x60] sm:$0xf]  ;;  %v10541_v33 = vld [vmem:[#allocation2 + $0x68] sm:$0xf0] }
 0x3af   :  { %v16985_v11 = vld [vmem:[#allocation3 + $0x13a] sm:$0xff]  ;;  %4703 = vst.msk [vmem:[#allocation3 + $0x150] sm:$0xff] %vm1402_vm0, %v4612_v47  ;;  %v7391_v17 = vpack.c.bf16 %v7327_v1, %v7327_v1  ;;  %v7390_v46 = vpack.c.bf16 %v7326_v36, %v7326_v36  ;;  %8368 = vmatmul.bf16.gmra.mxu3 %v10037_v41  ;;  %v4172_v9 = vadd.f32 %v4171_v13, %v4003_v39  ;;  %v16993_v35 = vpop.f32.mrf.mxu0  ;;  %v11730_v36 = vunpack.i.h.bf16 %v16792_v26 }
 0x3b0   :  { %v4850_v48 = vld [vmem:[#allocation3 + $0x139] sm:$0xff]  ;;  %v7535_v61 = vpack.c.bf16 %v16985_v11, %v16985_v11  ;;  %19497 = vst [vmem:[#allocation26_spill] sm:$0xff] %v16993_v35  ;;  %v3837_v13 = vadd.f32 %v16618_v0, %v16665_v45 }
 0x3b1   :  { %v16989_v7 = vld [vmem:[#allocation3 + $0x142] sm:$0xff]  ;;  %7455 = vst [vmem:[#allocation2 + $0x4c] sm:$0xf] %v7391_v17  ;;  %v4291_v25 = vmax.f32 %v4172_v9, 0.0  ;;  %v11729_v17 = vunpack.i.l.bf16 %v16792_v26  ;;  %v11735_v9 = vunpack.i.h.bf16 %v16977_v3 }
 0x3b2   :  { %v4851_v30 = vld [vmem:[#allocation3 + $0x141] sm:$0xff]  ;;  %v7536_v44 = vpack.c.bf16 %v16989_v7, %v16989_v7  ;;  %7599 = vst.msk [vmem:[#allocation2 + $0x110] sm:$0xf] %vm2877_vm3, %v7535_v61  ;;  %11947 = vrot.lane.b32.xlu0 %v11946_v52, %s12642_s10  ;;  %v4176_v0 = vpop.f32.mrf.mxu2  ;;  %v5167_v61 = vld [vmem:[#allocation3 + $0x138] sm:$0xff]  ;;  %v11734_v52 = vunpack.i.l.bf16 %v16977_v3 }
 0x3b3   :  { %v17000_v42 = vpack.i.bf16 %v4851_v30, %v4850_v48  ;;  %11957 = vrot.lane.b32.xlu2 %v11956_v51, %s12641_s22  ;;  %v17010_v63 = vpop.permute.xlu2 %11807  ;;  %v17012_v27 = vpop.permute.xlu0 %11757  ;;  %7454 = vst [vmem:[#allocation2 + $0x40] sm:$0xf] %v7390_v46  ;;  %v4447_v31 = vrot.slane %v4291_v25, 7  ;;  %v5168_v1 = vld [vmem:[#allocation3 + $0x140] sm:$0xff]  ;;  %v11961_v46 = vpack.i.bf16 %v5166_v56, %v16946_v54 }
 0x3b4   :  { %7600 = vst.msk [vmem:[#allocation2 + $0x11c] sm:$0xf] %vm2877_vm3, %v7536_v44  ;;  %v17014_v8 = vpop.permute.xlu1 %11752  ;;  %v4005_v40 = vpop.f32.mrf.mxu1  ;;  %v17033_v51 = vld [vmem:[%s18980_s3] ss:$0 sm:$0xff] }
 0x3b5   :  { %11972 = vrot.lane.b32.xlu1 %v17000_v42, %s12640_s27  ;;  %v4006_v39 = vadd.f32 %v4005_v40, %v3837_v13  ;;  %v4448_v45 = vsel %vm4406_vm5, %v4446_v21, %v4447_v31  ;;  %v4644_v47 = vsel %vm4406_vm5, %v4447_v31, 0.0  ;;  %v17025_v21 = vpop.f32.mrf.mxu3  ;;  %v3839_v54 = vadd.f32 %v17033_v51, %v16699_v49  ;;  %v12605_v31 = vld [vmem:[#allocation3 + $0x80] sm:$0xff] }
 0x3b6   :  { %4704 = vst.msk [vmem:[#allocation3 + $0x158] sm:$0xff] %vm1402_vm0, %v4448_v45  ;;  %4044 = vmatmul.bf16.gmra.mxu1 %v9781_v57  ;;  %v6116_v40 = vsel %vm1402_vm0, %v12605_v31, %v11730_v36  ;;  %v11754_v36 = vunpack.i.l.bf16 %v17014_v8  ;;  %v4779_v35 = vld [vmem:[#allocation3 + $0xe0] sm:$0xff] }
 0x3b7   :  { %v4175_v41 = vadd.f32 %v4174_v15, %v4006_v39  ;;  %4705 = vst.msk [vmem:[#allocation3 + $0x160] sm:$0x3] %vm4330_vm4, %v4644_v47  ;;  %v17022_v48 = vpop.f32.mrf.mxu0  ;;  %v11981_v15 = vpack.i.bf16 %v5168_v1, %v5167_v61  ;;  %v12606_v39 = vld [vmem:[#allocation3 + $0x78] sm:$0xff] }
 0x3b8   :  { %19498 = vst [vmem:[#allocation59_spill] sm:$0xff] %v17022_v48  ;;  %v6115_v45 = vsel %vm1402_vm0, %v12606_v39, %v11729_v17  ;;  %v4773_v48 = vld [vmem:[#allocation3 + $0x98] sm:$0xff] }
 0x3b9   :  { %v4292_v30 = vmax.f32 %v4175_v41, 0.0  ;;  %v10140_v44 = vld [vmem:[#allocation2 + $0x110] sm:$0xf]  ;;  %v6180_v41 = vsel %vm1467_vm1, %v6116_v40, %v11735_v9  ;;  %v6179_v61 = vsel %vm1467_vm1, %v6115_v45, %v11734_v52  ;;  %v11725_v9 = vunpack.i.h.bf16 %v16940_v10 }
 0x3ba   :  { %11962 = vrot.lane.b32.xlu0 %v11961_v46, %s12642_s10 }
 0x3bb   :  { %v10563_v26 = vld [vmem:[#allocation2 + $0x118] sm:$0xf0]  ;;  %v17037_v56 = vrot.slane %v4292_v30, 7  ;;  %11982 = vrot.lane.b32.xlu2 %v11981_v15, %s12641_s22  ;;  %v17041_v25 = vpop.permute.xlu2 %11817  ;;  %v11768_v13 = vpop.permute.xlu0 %11767 }
 0x3bc   :  { %v10141_v3 = vor.u32 %v10563_v26, %v10140_v44  ;;  %v11770_v47 = vunpack.i.h.bf16 %v11768_v13  ;;  %v11769_v49 = vunpack.i.l.bf16 %v11768_v13  ;;  %v17045_v57 = vpop.permute.xlu1 %11782  ;;  %v4007_v1 = vpop.f32.mrf.mxu1  ;;  %v10049_v26 = vor.u32 %v10541_v33, %v10048_v23  ;;  %v5024_v23 = vld [vmem:[#allocation3 + $0x79] sm:$0xff] }
 0x3bd   :  { %11992 = vrot.lane.b32.xlu1 %v11981_v15, %s12642_s10  ;;  %v4613_v46 = vsel %vm4406_vm5, 0.0, %v17037_v56  ;;  %v4008_v30 = vadd.f32 %v4007_v1, %v3839_v54  ;;  %v5297_v15 = vld [vmem:[#allocation3 + $0x152] sm:$0xff]  ;;  %v4179_v13 = vpop.f32.mrf.mxu2  ;;  %v7201_v10 = vsel %vm1402_vm0, %v5024_v23, %v11754_v36 }
 0x3be   :  { %10393 = vmatmul.msk.bf16.gmra.mxu0 %vm1402_vm0, %v10141_v3  ;;  %4706 = vst.msk [vmem:[#allocation3 + $0x168] sm:$0xff] %vm1402_vm0, %v4613_v46  ;;  %v6243_v17 = vsel %vm1532_vm2, %v6179_v61, %v11769_v49  ;;  %v6244_v44 = vsel %vm1532_vm2, %v6180_v41, %v11770_v47  ;;  %v5298_v52 = vld [vmem:[#allocation3 + $0x15a] sm:$0xff]  ;;  %v7537_v31 = vpack.c.bf16 %v5297_v15, %v5297_v15  ;;  %v5023_v47 = vld [vmem:[#allocation3 + $0x69] sm:$0xff]  ;;  %v11779_v61 = vunpack.i.l.bf16 %v16973_v22 }
 0x3bf   :  { %v6307_v40 = vpack.c.bf16 %v6243_v17, %v6243_v17  ;;  %v11996_v3 = vpack.i.bf16 %v16989_v7, %v16985_v11  ;;  %v7538_v54 = vpack.c.bf16 %v5298_v52, %v5298_v52  ;;  %v6308_v39 = vpack.c.bf16 %v6244_v44, %v6244_v44  ;;  %8373 = vmatmul.bf16.gmra.mxu3 %v10049_v26  ;;  %v17059_v1 = vpop.f32.mrf.mxu0  ;;  %v9790_v33 = vld [vmem:[#allocation2 + $0x234] sm:$0xf0]  ;;  %v10501_v11 = vld [vmem:[#allocation2 + $0x22c] sm:$0xf]  ;;  %v17067_v7 = vpop.f32.mrf.mxu3 }
 0x3c0   :  { %v4177_v45 = vadd.f32 %v4176_v0, %v4008_v30  ;;  %19499 = vst [vmem:[#allocation78_spill] sm:$0xff] %v17059_v1  ;;  %v17061_v46 = vpack.i.bf16 %v5298_v52, %v5297_v15  ;;  %v3842_v0 = vadd.f32 %v17033_v51, %v16733_v43  ;;  %v7200_v41 = vsel %vm1402_vm0, %v5023_v47, %v11725_v9 }
 0x3c1   :  { %7601 = vst.msk [vmem:[#allocation2 + $0x128] sm:$0xf] %vm2877_vm3, %v7537_v31  ;;  %v11759_v30 = vunpack.i.l.bf16 %v17012_v27  ;;  %v11750_v17 = vunpack.i.h.bf16 %v16891_v34  ;;  %v11760_v44 = vunpack.i.h.bf16 %v17012_v27  ;;  %v11764_v1 = vunpack.i.l.bf16 %v16938_v55 }
 0x3c2   :  { %7602 = vst.msk [vmem:[#allocation2 + $0x134] sm:$0xf] %vm2877_vm3, %v7538_v54  ;;  %v4293_v49 = vmax.f32 %v4177_v45, 0.0  ;;  %11977 = vrot.lane.b32.xlu0 %v11996_v3, %s12641_s22  ;;  %v9793_v54 = vor.u32 %v10501_v11, %v9790_v33  ;;  %v4772_v45 = vld [vmem:[#allocation3 + $0x90] sm:$0xff] }
 0x3c3   :  { %6371 = vst [vmem:[#allocation2 + $0x78] sm:$0xf] %v6307_v40  ;;  %11997 = vrot.lane.b32.xlu2 %v11996_v3, %s12640_s27  ;;  %v17077_v15 = vpop.permute.xlu2 %11827  ;;  %v11773_v36 = vpop.permute.xlu0 %11772  ;;  %v7265_v40 = vsel %vm1467_vm1, %v7201_v10, %v11779_v61  ;;  %v7264_v34 = vsel %vm1467_vm1, %v7200_v41, %v11750_v17 }
 0x3c4   :  { %6372 = vst [vmem:[#allocation2 + $0x84] sm:$0xf] %v6308_v39  ;;  %v4450_v43 = vrot.slane %v4293_v49, 7  ;;  %v11775_v26 = vunpack.i.h.bf16 %v11773_v36  ;;  %v17081_v9 = vpop.permute.xlu1 %11787  ;;  %v4010_v52 = vpop.f32.mrf.mxu1  ;;  %v11774_v31 = vunpack.i.l.bf16 %v11773_v36  ;;  %v4852_v39 = vld [vmem:[#allocation3 + $0x151] sm:$0xff]  ;;  %v4853_v49 = vld [vmem:[#allocation3 + $0x159] sm:$0xff]  ;;  %v6117_v36 = vsel %vm1402_vm0, %v4772_v45, %v11759_v30 }
 0x3c5   :  { %12007 = vrot.lane.b32.xlu1 %v17061_v46, %s12641_s22  ;;  %v4011_v3 = vadd.f32 %v4010_v52, %v3842_v0  ;;  %v11790_v0 = vunpack.i.h.bf16 %v17081_v9  ;;  %v17096_v17 = vpop.f32.mrf.mxu2  ;;  %v3844_v30 = vadd.f32 %v17033_v51, %v16755_v32  ;;  %v4978_v45 = vld [vmem:[#allocation3 + $0x150] sm:$0xff] }
 0x3c6   :  { %v4451_v23 = vsel %vm4406_vm5, %v17037_v56, %v4450_v43  ;;  %v4645_v47 = vsel %vm4406_vm5, %v4450_v43, 0.0  ;;  %v7329_v27 = vsel %vm1532_vm2, %v7265_v40, %v11775_v26  ;;  %v7328_v33 = vsel %vm1532_vm2, %v7264_v34, %v11774_v31  ;;  %4049 = vmatmul.bf16.gmra.mxu1 %v9793_v54  ;;  %v4979_v43 = vld [vmem:[#allocation3 + $0x158] sm:$0xff] }
 0x3c7   :  { %4707 = vst.msk [vmem:[#allocation3 + $0x170] sm:$0xff] %vm1402_vm0, %v4451_v23  ;;  %v7393_v10 = vpack.c.bf16 %v7329_v27, %v7329_v27  ;;  %v6118_v56 = vsel %vm1402_vm0, %v4773_v48, %v11760_v44  ;;  %v7392_v11 = vpack.c.bf16 %v7328_v33, %v7328_v33  ;;  %v4180_v41 = vadd.f32 %v4179_v13, %v4011_v3  ;;  %v17103_v13 = vpop.f32.mrf.mxu0 }
 0x3c8   :  { %4708 = vst.msk [vmem:[#allocation3 + $0x178] sm:$0x3] %vm4330_vm4, %v4645_v47  ;;  %v10152_v61 = vld [vmem:[#allocation2 + $0x128] sm:$0xf]  ;;  %v11765_v26 = vunpack.i.h.bf16 %v16938_v55  ;;  %v12001_v48 = vpack.i.bf16 %v4853_v49, %v4852_v39  ;;  %v11789_v31 = vunpack.i.l.bf16 %v17081_v9  ;;  %v6181_v54 = vsel %vm1467_vm1, %v6117_v36, %v11764_v1  ;;  %v4775_v47 = vld [vmem:[#allocation3 + $0xb0] sm:$0xff] }
 0x3c9   :  { %7457 = vst [vmem:[#allocation2 + $0x64] sm:$0xf] %v7393_v10  ;;  %v10566_v44 = vld [vmem:[#allocation2 + $0x130] sm:$0xf0]  ;;  %v4294_v40 = vmax.f32 %v4180_v41, 0.0  ;;  %v11784_v55 = vunpack.i.l.bf16 %v17045_v57  ;;  %v11830_v23 = vunpack.i.h.bf16 %v17077_v15  ;;  %v12021_v39 = vpack.i.bf16 %v4979_v43, %v4978_v45  ;;  %v4774_v41 = vld [vmem:[#allocation3 + $0xa8] sm:$0xff] }
 0x3ca   :  { %7456 = vst [vmem:[#allocation2 + $0x58] sm:$0xf] %v7392_v11  ;;  %11987 = vrot.lane.b32.xlu0 %v17000_v42, %s12642_s10  ;;  %v10153_v3 = vor.u32 %v10566_v44, %v10152_v61  ;;  %v10060_v32 = vld [vmem:[#allocation2 + $0x78] sm:$0xf]  ;;  %v6182_v27 = vsel %vm1467_vm1, %v6118_v56, %v11765_v26  ;;  %v11829_v1 = vunpack.i.l.bf16 %v17077_v15  ;;  %v6120_v49 = vsel %vm1402_vm0, %v4775_v47, %v11790_v0 }
 0x3cb   :  { %19500 = vst [vmem:[#allocation77_spill] sm:$0xff] %v17103_v13  ;;  %12002 = vrot.lane.b32.xlu2 %v12001_v48, %s12640_s27  ;;  %v17112_v9 = vpop.permute.xlu2 %11837  ;;  %v11793_v34 = vpop.permute.xlu0 %11792  ;;  %v10544_v42 = vld [vmem:[#allocation2 + $0x80] sm:$0xf0]  ;;  %v17117_v36 = vrot.slane %v4294_v40, 7  ;;  %v6119_v15 = vsel %vm1402_vm0, %v4774_v41, %v11789_v31  ;;  %v5026_v41 = vld [vmem:[#allocation3 + $0x91] sm:$0xff] }
 0x3cc   :  { %v11795_v33 = vunpack.i.h.bf16 %v11793_v34  ;;  %v11798_v10 = vpop.permute.xlu1 %11797  ;;  %v4012_v11 = vpop.f32.mrf.mxu1  ;;  %v11794_v61 = vunpack.i.l.bf16 %v11793_v34  ;;  %v10061_v52 = vor.u32 %v10544_v42, %v10060_v32 }
 0x3cd   :  { %12017 = vrot.lane.b32.xlu1 %v12001_v48, %s12642_s10  ;;  %v11800_v48 = vunpack.i.h.bf16 %v11798_v10  ;;  %v11799_v44 = vunpack.i.l.bf16 %v11798_v10  ;;  %v17120_v13 = vpop.f32.mrf.mxu3  ;;  %v4614_v0 = vsel %vm4406_vm5, 0.0, %v17117_v36  ;;  %v4013_v26 = vadd.f32 %v4012_v11, %v3844_v30  ;;  %v10504_v10 = vld [vmem:[#allocation2 + $0x244] sm:$0xf] }
 0x3ce   :  { %10394 = vmatmul.msk.bf16.gmra.mxu0 %vm1402_vm0, %v10153_v3  ;;  %v17122_v56 = vld [vmem:[#allocation3 + $0x16a] sm:$0xff]  ;;  %v6184_v43 = vsel %vm1467_vm1, %v6120_v49, %v11795_v33  ;;  %4709 = vst.msk [vmem:[#allocation3 + $0x180] sm:$0xff] %vm1402_vm0, %v4614_v0  ;;  %v6183_v32 = vsel %vm1467_vm1, %v6119_v15, %v11794_v61  ;;  %v5025_v11 = vld [vmem:[#allocation3 + $0x81] sm:$0xff]  ;;  %v19501_v15 = vunpack.i.h.bf16 %v17014_v8 }
 0x3cf   :  { %v5172_v40 = vld [vmem:[#allocation3 + $0x170] sm:$0xff]  ;;  %v7539_v3 = vpack.c.bf16 %v17122_v56, %v17122_v56  ;;  %v6248_v47 = vsel %vm1532_vm2, %v6184_v43, %v11830_v23  ;;  %v6246_v31 = vsel %vm1532_vm2, %v6182_v27, %v11800_v48  ;;  %v6247_v42 = vsel %vm1532_vm2, %v6183_v32, %v11829_v1  ;;  %8378 = vmatmul.bf16.gmra.mxu3 %v10061_v52  ;;  %v5171_v33 = vld [vmem:[#allocation3 + $0x168] sm:$0xff]  ;;  %v19502_v32 = vld [vmem:[#allocation58_spill] sm:$0xff] }
 0x3d0   :  { %v17128_v45 = vld [vmem:[#allocation3 + $0x172] sm:$0xff]  ;;  %v6312_v30 = vpack.c.bf16 %v6248_v47, %v6248_v47  ;;  %v6310_v49 = vpack.c.bf16 %v6246_v31, %v6246_v31  ;;  %v6311_v0 = vpack.c.bf16 %v6247_v42, %v6247_v42  ;;  %v6245_v61 = vsel %vm1532_vm2, %v6181_v54, %v11799_v44 }
 0x3d1   :  { %v7540_v34 = vpack.c.bf16 %v17128_v45, %v17128_v45  ;;  %7603 = vst.msk [vmem:[#allocation2 + $0x140] sm:$0xf] %vm2877_vm3, %v7539_v3  ;;  %v4182_v23 = vadd.f32 %v17096_v17, %v4013_v26  ;;  %v17142_v27 = vpack.i.bf16 %v5172_v40, %v5171_v33  ;;  %v9802_v48 = vld [vmem:[#allocation2 + $0x24c] sm:$0xf0]  ;;  %v7202_v1 = vsel %vm1402_vm0, %v5025_v11, %v19501_v15  ;;  %v4184_v3 = vpop.f32.mrf.mxu2  ;;  %v17161_v33 = vpop.f32.mrf.mxu0 }
 0x3d2   :  { %v7203_v52 = vsel %vm1402_vm0, %v5026_v41, %v11784_v55  ;;  %v6309_v43 = vpack.c.bf16 %v6245_v61, %v6245_v61  ;;  %12012 = vrot.lane.b32.xlu0 %v12021_v39, %s12641_s22  ;;  %v3847_v54 = vadd.f32 %v17033_v51, %v19502_v32  ;;  %v11780_v17 = vunpack.i.h.bf16 %v16973_v22  ;;  %6375 = vst [vmem:[#allocation2 + $0xa8] sm:$0xf] %v6311_v0 }
 0x3d3   :  { %7604 = vst.msk [vmem:[#allocation2 + $0x14c] sm:$0xf] %vm2877_vm3, %v7540_v34  ;;  %v11809_v44 = vunpack.i.l.bf16 %v17010_v63  ;;  %v4295_v26 = vmax.f32 %v4182_v23, 0.0  ;;  %12022 = vrot.lane.b32.xlu2 %v12021_v39, %s12642_s10  ;;  %v17157_v8 = vpop.permute.xlu2 %11852  ;;  %v11803_v55 = vpop.permute.xlu0 %11802  ;;  %v9805_v42 = vor.u32 %v10504_v10, %v9802_v48  ;;  %v11785_v0 = vunpack.i.h.bf16 %v17045_v57 }
 0x3d4   :  { %6376 = vst [vmem:[#allocation2 + $0xb4] sm:$0xf] %v6312_v30  ;;  %v11805_v40 = vunpack.i.h.bf16 %v11803_v55  ;;  %v11804_v47 = vunpack.i.l.bf16 %v11803_v55  ;;  %v17159_v31 = vpop.permute.xlu1 %11812  ;;  %v4015_v34 = vpop.f32.mrf.mxu1  ;;  %v7266_v11 = vsel %vm1467_vm1, %v7202_v1, %v11780_v17  ;;  %v12036_v32 = vpack.i.bf16 %v17128_v45, %v17122_v56  ;;  %v5027_v17 = vld [vmem:[#allocation3 + $0x99] sm:$0xff] }
 0x3d5   :  { %12042 = vrot.lane.b32.xlu1 %v17142_v27, %s12641_s22  ;;  %6374 = vst [vmem:[#allocation2 + $0x9c] sm:$0xf] %v6310_v49  ;;  %v4453_v22 = vrot.slane %v4295_v26, 7  ;;  %v7267_v39 = vsel %vm1467_vm1, %v7203_v52, %v11809_v44  ;;  %v4016_v41 = vadd.f32 %v4015_v34, %v3847_v54  ;;  %v11814_v23 = vunpack.i.l.bf16 %v17159_v31  ;;  %v17172_v1 = vpop.f32.mrf.mxu3  ;;  %v19504_v55 = vld [vmem:[#allocation7_spill] sm:$0xff] }
 0x3d6   :  { %19503 = vst [vmem:[#allocation61_spill] sm:$0xff] %v17161_v33  ;;  %v7330_v30 = vsel %vm1532_vm2, %v7266_v11, %v11804_v47  ;;  %v7331_v61 = vsel %vm1532_vm2, %v7267_v39, %v11805_v40  ;;  %4054 = vmatmul.bf16.gmra.mxu1 %v9805_v42  ;;  %v7204_v40 = vsel %vm1402_vm0, %v5027_v17, %v11785_v0  ;;  %v11839_v47 = vunpack.i.l.bf16 %v17112_v9  ;;  %v5240_v0 = vld [vmem:[#allocation3 + $0x1a1] sm:$0xff]  ;;  %v4778_v33 = vld [vmem:[#allocation3 + $0xd8] sm:$0xff] }
 0x3d7   :  { %6373 = vst [vmem:[#allocation2 + $0x90] sm:$0xf] %v6309_v43  ;;  %v4454_v49 = vsel %vm4406_vm5, %v17117_v36, %v4453_v22  ;;  %v4646_v10 = vsel %vm4406_vm5, %v4453_v22, 0.0  ;;  %v7394_v48 = vpack.c.bf16 %v7330_v30, %v7330_v30  ;;  %v7395_v15 = vpack.c.bf16 %v7331_v61, %v7331_v61  ;;  %v5028_v43 = vld [vmem:[#allocation3 + $0xa9] sm:$0xff] }
 0x3d8   :  { %4710 = vst.msk [vmem:[#allocation3 + $0x188] sm:$0xff] %vm1402_vm0, %v4454_v49  ;;  %v4185_v52 = vadd.f32 %v4184_v3, %v4016_v41  ;;  %v10164_v57 = vld [vmem:[#allocation2 + $0x140] sm:$0xf]  ;;  %v7205_v36 = vsel %vm1402_vm0, %v5028_v43, %v11814_v23  ;;  %v3849_v3 = vadd.f32 %v17033_v51, %v19504_v55  ;;  %v11810_v34 = vunpack.i.h.bf16 %v17010_v63 }
 0x3d9   :  { %4711 = vst.msk [vmem:[#allocation3 + $0x190] sm:$0x3] %vm4330_vm4, %v4646_v10  ;;  %v5239_v41 = vld [vmem:[#allocation3 + $0x199] sm:$0xff]  ;;  %v7269_v30 = vsel %vm1467_vm1, %v7205_v36, %v11839_v47  ;;  %v4186_v10 = vpop.f32.mrf.mxu2 }
 0x3da   :  { %v10569_v54 = vld [vmem:[#allocation2 + $0x148] sm:$0xf0]  ;;  %7458 = vst [vmem:[#allocation2 + $0x70] sm:$0xf] %v7394_v48  ;;  %v4296_v44 = vmax.f32 %v4185_v52, 0.0  ;;  %12027 = vrot.lane.b32.xlu0 %v17061_v46, %s12640_s27  ;;  %v7268_v52 = vsel %vm1467_vm1, %v7204_v40, %v11810_v34 }
 0x3db   :  { %v10165_v26 = vor.u32 %v10569_v54, %v10164_v57  ;;  %7459 = vst [vmem:[#allocation2 + $0x7c] sm:$0xf] %v7395_v15  ;;  %12037 = vrot.lane.b32.xlu2 %v12036_v32, %s12641_s22  ;;  %v17187_v56 = vpop.permute.xlu2 %11867  ;;  %v11833_v45 = vpop.permute.xlu0 %11832  ;;  %v5235_v48 = vld [vmem:[#allocation3 + $0x169] sm:$0xff]  ;;  %v5236_v15 = vld [vmem:[#allocation3 + $0x171] sm:$0xff] }
 0x3dc   :  { %v4455_v42 = vrot.slane %v4296_v44, 7  ;;  %v11835_v46 = vunpack.i.h.bf16 %v11833_v45  ;;  %v17190_v22 = vpop.permute.xlu1 %11822  ;;  %v10547_v11 = vld [vmem:[#allocation2 + $0x98] sm:$0xf0]  ;;  %v4017_v39 = vpop.f32.mrf.mxu1  ;;  %v11834_v61 = vunpack.i.l.bf16 %v11833_v45  ;;  %v12076_v44 = vpack.i.bf16 %v5240_v0, %v5239_v41  ;;  %v9814_v41 = vld [vmem:[#allocation2 + $0x264] sm:$0xf0]  ;;  %v19506_v0 = vld [vmem:[#allocation35_spill] sm:$0xff] }
 0x3dd   :  { %12057 = vrot.lane.b32.xlu1 %v12036_v32, %s12640_s27  ;;  %v4018_v49 = vadd.f32 %v4017_v39, %v3849_v3  ;;  %v17200_v54 = vpop.f32.mrf.mxu0  ;;  %v12046_v47 = vpack.i.bf16 %v5236_v15, %v5235_v48  ;;  %v17209_v34 = vpop.f32.mrf.mxu3  ;;  %v10507_v39 = vld [vmem:[#allocation2 + $0x25c] sm:$0xf] }
 0x3de   :  { %10395 = vmatmul.msk.bf16.gmra.mxu0 %vm1402_vm0, %v10165_v26  ;;  %v10072_v23 = vld [vmem:[#allocation2 + $0x90] sm:$0xf]  ;;  %v4615_v63 = vsel %vm4406_vm5, 0.0, %v4455_v42  ;;  %v7333_v57 = vsel %vm1532_vm2, %v7269_v30, %v11835_v46  ;;  %19505 = vst [vmem:[#allocation73_spill] sm:$0xff] %v17200_v54  ;;  %v7332_v17 = vsel %vm1532_vm2, %v7268_v52, %v11834_v61  ;;  %v3852_v30 = vadd.f32 %v17033_v51, %v19506_v0  ;;  %v19509_v54 = vld [vmem:[#allocation67_spill] sm:$0xff] }
 0x3df   :  { %v10073_v43 = vor.u32 %v10547_v11, %v10072_v23  ;;  %v17197_v32 = vld [vmem:[#allocation3 + $0x182] sm:$0xff]  ;;  %4712 = vst.msk [vmem:[#allocation3 + $0x1c8] sm:$0xff] %vm1402_vm0, %v4615_v63  ;;  %v7397_v36 = vpack.c.bf16 %v7333_v57, %v7333_v57  ;;  %v7396_v3 = vpack.c.bf16 %v7332_v17, %v7332_v17  ;;  %v4187_v40 = vadd.f32 %v4186_v10, %v4018_v49 }
 0x3e0   :  { %v17203_v26 = vld [vmem:[#allocation3 + $0x18a] sm:$0xff]  ;;  %v7541_v55 = vpack.c.bf16 %v17197_v32, %v17197_v32  ;;  %v9817_v52 = vor.u32 %v10507_v39, %v9814_v41  ;;  %v10550_v41 = vld [vmem:[#allocation2 + $0xb0] sm:$0xf0] }
 0x3e1   :  { %8383 = vmatmul.bf16.gmra.mxu3 %v10073_v43  ;;  %v7542_v45 = vpack.c.bf16 %v17203_v26, %v17203_v26  ;;  %7461 = vst [vmem:[#allocation2 + $0x94] sm:$0xf] %v7397_v36  ;;  %v4297_v46 = vmax.f32 %v4187_v40, 0.0  ;;  %v5174_v57 = vld [vmem:[#allocation3 + $0x188] sm:$0xff]  ;;  %v11820_v43 = vunpack.i.h.bf16 %v17041_v25  ;;  %v5173_v36 = vld [vmem:[#allocation3 + $0x180] sm:$0xff] }
 0x3e2   :  { %7605 = vst.msk [vmem:[#allocation2 + $0x158] sm:$0xf] %vm2877_vm3, %v7541_v55  ;;  %12032 = vrot.lane.b32.xlu0 %v12046_v47, %s12640_s27  ;;  %v10084_v40 = vld [vmem:[#allocation2 + $0xa8] sm:$0xf] }
 0x3e3   :  { %7606 = vst.msk [vmem:[#allocation2 + $0x164] sm:$0xf] %vm2877_vm3, %v7542_v45  ;;  %12047 = vrot.lane.b32.xlu2 %v12046_v47, %s12642_s10  ;;  %v17216_v11 = vpop.permute.xlu2 %11897  ;;  %v4456_v61 = vrot.slane %v4297_v46, 7  ;;  %v11825_v47 = vunpack.i.h.bf16 %v17190_v22  ;;  %v11824_v45 = vunpack.i.l.bf16 %v17190_v22 }
 0x3e4   :  { %7460 = vst [vmem:[#allocation2 + $0x88] sm:$0xf] %v7396_v3  ;;  %v17220_v23 = vpop.permute.xlu0 %11847  ;;  %v17222_v49 = vpop.permute.xlu1 %11842 }
 0x3e5   :  { %12077 = vrot.lane.b32.xlu1 %v12076_v44, %s12642_s10  ;;  %v4020_v10 = vpop.f32.mrf.mxu1  ;;  %v4457_v48 = vsel %vm4406_vm5, %v4455_v42, %v4456_v61  ;;  %v4647_v15 = vsel %vm4406_vm5, %v4456_v61, 0.0  ;;  %v11819_v44 = vunpack.i.l.bf16 %v17041_v25  ;;  %v17231_v55 = vpop.f32.mrf.mxu0  ;;  %v12061_v42 = vpack.i.bf16 %v5174_v57, %v5173_v36 }
 0x3e6   :  { %v4021_v63 = vadd.f32 %v4020_v10, %v3852_v30  ;;  %4713 = vst.msk [vmem:[#allocation3 + $0x1d0] sm:$0xff] %vm1402_vm0, %v4457_v48  ;;  %4059 = vmatmul.bf16.gmra.mxu1 %v9817_v52  ;;  %v17239_v0 = vpop.f32.mrf.mxu3  ;;  %v19508_v30 = vld [vmem:[#allocation8_spill] sm:$0xff]  ;;  %v4776_v10 = vld [vmem:[#allocation3 + $0xc0] sm:$0xff]  ;;  %v10085_v36 = vor.u32 %v10550_v41, %v10084_v40 }
 0x3e7   :  { %4714 = vst.msk [vmem:[#allocation3 + $0x1d8] sm:$0x3] %vm4330_vm4, %v4647_v15  ;;  %v3854_v61 = vadd.f32 %v17033_v51, %v19508_v30 }
 0x3e8   :  { %v4190_v17 = vadd.f32 %v16325_v5, %v4021_v63  ;;  %19507 = vst [vmem:[#allocation33_spill] sm:$0xff] %v17231_v55  ;;  %v4777_v5 = vld [vmem:[#allocation3 + $0xc8] sm:$0xff]  ;;  %v6121_v63 = vsel %vm1402_vm0, %v4776_v10, %v11819_v44  ;;  %v11815_v44 = vunpack.i.h.bf16 %v17159_v31  ;;  %v12086_v31 = vpack.i.bf16 %v17203_v26, %v17197_v32  ;;  %v5175_v32 = vld [vmem:[#allocation3 + $0x198] sm:$0xff] }
 0x3e9   :  { %v10176_v3 = vld [vmem:[#allocation2 + $0x158] sm:$0xf]  ;;  %v6122_v22 = vsel %vm1402_vm0, %v4777_v5, %v11820_v43  ;;  %v6185_v43 = vsel %vm1467_vm1, %v6121_v63, %v11824_v45  ;;  %v11840_v26 = vunpack.i.h.bf16 %v17112_v9 }
 0x3ea   :  { %v4298_v46 = vmax.f32 %v4190_v17, 0.0  ;;  %12052 = vrot.lane.b32.xlu0 %v17142_v27, %s12642_s10  ;;  %v10572_v39 = vld [vmem:[#allocation2 + $0x160] sm:$0xf0]  ;;  %v6186_v30 = vsel %vm1467_vm1, %v6122_v22, %v11825_v47  ;;  %v9826_v47 = vld [vmem:[#allocation2 + $0x27c] sm:$0xf0] }
 0x3eb   :  { %12062 = vrot.lane.b32.xlu2 %v12061_v42, %s12641_s22  ;;  %v10177_v25 = vor.u32 %v10572_v39, %v10176_v3  ;;  %v5237_v3 = vld [vmem:[#allocation3 + $0x181] sm:$0xff]  ;;  %v5238_v39 = vld [vmem:[#allocation3 + $0x189] sm:$0xff] }
 0x3ec   :  { %v17244_v48 = vrot.slane %v4298_v46, 7  ;;  %v11858_v15 = vpop.permute.xlu0 %11857  ;;  %v17246_v27 = vpop.permute.xlu1 %11872  ;;  %v12066_v63 = vpack.i.bf16 %v5238_v39, %v5237_v3  ;;  %v11850_v39 = vunpack.i.h.bf16 %v17220_v23 }
 0x3ed   :  { %12082 = vrot.lane.b32.xlu1 %v12061_v42, %s12642_s10  ;;  %v17250_v52 = vpop.permute.xlu2 %11907  ;;  %v11860_v57 = vunpack.i.h.bf16 %v11858_v15  ;;  %v11859_v17 = vunpack.i.l.bf16 %v11858_v15  ;;  %v4022_v42 = vpop.f32.mrf.mxu1  ;;  %v4922_v55 = vld [vmem:[#allocation3 + $0x1ca] sm:$0xff]  ;;  %v10510_v15 = vld [vmem:[#allocation2 + $0x274] sm:$0xf] }
 0x3ee   :  { %10396 = vmatmul.msk.bf16.gmra.mxu0 %vm1402_vm0, %v10177_v25  ;;  %v4616_v46 = vsel %vm4406_vm5, 0.0, %v17244_v48  ;;  %v4023_v5 = vadd.f32 %v4022_v42, %v3854_v61  ;;  %v11844_v25 = vunpack.i.l.bf16 %v17222_v49  ;;  %v4923_v10 = vld [vmem:[#allocation3 + $0x1d2] sm:$0xff]  ;;  %v17271_v3 = vpop.f32.mrf.mxu0 }
 0x3ef   :  { %4715 = vst.msk [vmem:[#allocation3 + $0x1e0] sm:$0xff] %vm1402_vm0, %v4616_v46  ;;  %v6249_v40 = vsel %vm1532_vm2, %v6185_v43, %v11859_v17  ;;  %v6250_v41 = vsel %vm1532_vm2, %v6186_v30, %v11860_v57  ;;  %v17264_v42 = vpack.i.bf16 %v4923_v10, %v4922_v55  ;;  %v3857_v46 = vadd.f32 %v17033_v51, %v19509_v54  ;;  %v5029_v17 = vld [vmem:[#allocation3 + $0xb1] sm:$0xff]  ;;  %v5030_v43 = vld [vmem:[#allocation3 + $0xc1] sm:$0xff] }
 0x3f0   :  { %v6313_v22 = vpack.c.bf16 %v6249_v40, %v6249_v40  ;;  %v6314_v45 = vpack.c.bf16 %v6250_v41, %v6250_v41  ;;  %v4192_v61 = vadd.f32 %v16350_v6, %v4023_v5  ;;  %v9829_v57 = vor.u32 %v10510_v15, %v9826_v47  ;;  %19510 = vst [vmem:[#allocation27_spill] sm:$0xff] %v17271_v3  ;;  %v5176_v54 = vld [vmem:[#allocation3 + $0x1a0] sm:$0xff]  ;;  %v10575_v3 = vld [vmem:[#allocation2 + $0x178] sm:$0xf0] }
 0x3f1   :  { %8388 = vmatmul.bf16.gmra.mxu3 %v10085_v36  ;;  %v7206_v30 = vsel %vm1402_vm0, %v5029_v17, %v11815_v44  ;;  %v7207_v36 = vsel %vm1402_vm0, %v5030_v43, %v11844_v25  ;;  %v11869_v55 = vunpack.i.l.bf16 %v17187_v56  ;;  %v11849_v5 = vunpack.i.l.bf16 %v17220_v23  ;;  %v4858_v23 = vld [vmem:[#allocation3 + $0x1c9] sm:$0xff]  ;;  %v4859_v17 = vld [vmem:[#allocation3 + $0x1d1] sm:$0xff] }
 0x3f2   :  { %6377 = vst [vmem:[#allocation2 + $0xc0] sm:$0xf] %v6313_v22  ;;  %12067 = vrot.lane.b32.xlu0 %v12066_v63, %s12642_s10  ;;  %v4299_v6 = vmax.f32 %v4192_v61, 0.0  ;;  %v11855_v40 = vunpack.i.h.bf16 %v17157_v8  ;;  %v7270_v9 = vsel %vm1467_vm1, %v7206_v30, %v11840_v26  ;;  %v12071_v43 = vpack.i.bf16 %v5176_v54, %v5175_v32 }
 0x3f3   :  { %6378 = vst [vmem:[#allocation2 + $0xcc] sm:$0xf] %v6314_v45  ;;  %12087 = vrot.lane.b32.xlu2 %v12086_v31, %s12640_s27  ;;  %v10188_v45 = vld [vmem:[#allocation2 + $0x170] sm:$0xf]  ;;  %v7271_v63 = vsel %vm1467_vm1, %v7207_v36, %v11869_v55  ;;  %v17287_v31 = vpop.f32.mrf.mxu3  ;;  %v6124_v36 = vsel %vm1402_vm0, %v4779_v35, %v11850_v39  ;;  %v11854_v54 = vunpack.i.l.bf16 %v17157_v8  ;;  %v12091_v55 = vpack.i.bf16 %v4859_v17, %v4858_v23  ;;  %v4781_v23 = vld [vmem:[#allocation3 + $0xf8] sm:$0xff] }
 0x3f4   :  { %v11863_v44 = vpop.permute.xlu0 %11862  ;;  %v17280_v25 = vpop.permute.xlu1 %11877  ;;  %v4459_v41 = vrot.slane %v4299_v6, 7  ;;  %v11845_v8 = vunpack.i.h.bf16 %v17222_v49 }
 0x3f5   :  { %12097 = vrot.lane.b32.xlu1 %v17264_v42, %s12641_s22  ;;  %v17283_v10 = vpop.permute.xlu2 %11917  ;;  %v11865_v15 = vunpack.i.h.bf16 %v11863_v44  ;;  %v11864_v47 = vunpack.i.l.bf16 %v11863_v44  ;;  %v4025_v22 = vpop.f32.mrf.mxu1  ;;  %v11880_v35 = vunpack.i.h.bf16 %v17280_v25 }
 0x3f6   :  { %v4026_v61 = vadd.f32 %v4025_v22, %v3857_v46  ;;  %v4460_v6 = vsel %vm4406_vm5, %v17244_v48, %v4459_v41  ;;  %v4648_v44 = vsel %vm4406_vm5, %v4459_v41, 0.0  ;;  %v6123_v46 = vsel %vm1402_vm0, %v4778_v33, %v11849_v5  ;;  %4064 = vmatmul.bf16.gmra.mxu1 %v9829_v57  ;;  %v19511_v22 = vld [vmem:[#allocation76_spill] sm:$0xff] }
 0x3f7   :  { %v7334_v14 = vsel %vm1532_vm2, %v7270_v9, %v11864_v47  ;;  %v7335_v30 = vsel %vm1532_vm2, %v7271_v63, %v11865_v15  ;;  %4716 = vst.msk [vmem:[#allocation3 + $0x1e8] sm:$0xff] %vm1402_vm0, %v4460_v6  ;;  %v10189_v41 = vor.u32 %v10575_v3, %v10188_v45  ;;  %v3859_v15 = vadd.f32 %v17033_v51, %v19511_v22  ;;  %v4984_v22 = vld [vmem:[#allocation3 + $0x1c8] sm:$0xff] }
 0x3f8   :  { %v7398_v26 = vpack.c.bf16 %v7334_v14, %v7334_v14  ;;  %v7399_v32 = vpack.c.bf16 %v7335_v30, %v7335_v30  ;;  %4717 = vst.msk [vmem:[#allocation3 + $0x1f0] sm:$0x3] %vm4330_vm4, %v4648_v44  ;;  %v4195_v48 = vadd.f32 %v16378_v37, %v4026_v61  ;;  %v11879_v33 = vunpack.i.l.bf16 %v17280_v25  ;;  %v4780_v61 = vld [vmem:[#allocation3 + $0xf0] sm:$0xff] }
 0x3f9   :  { %v10096_v47 = vld [vmem:[#allocation2 + $0xc0] sm:$0xf]  ;;  %v6187_v37 = vsel %vm1467_vm1, %v6123_v46, %v11854_v54  ;;  %v6188_v57 = vsel %vm1467_vm1, %v6124_v36, %v11855_v40  ;;  %v11874_v3 = vunpack.i.l.bf16 %v17246_v27  ;;  %v11920_v5 = vunpack.i.h.bf16 %v17283_v10  ;;  %v4985_v30 = vld [vmem:[#allocation3 + $0x1d0] sm:$0xff]  ;;  %v17321_v54 = vpop.f32.mrf.mxu0 }
 0x3fa   :  { %7462 = vst [vmem:[#allocation2 + $0xa0] sm:$0xf] %v7398_v26  ;;  %12072 = vrot.lane.b32.xlu0 %v12071_v43, %s12641_s22  ;;  %v10553_v14 = vld [vmem:[#allocation2 + $0xc8] sm:$0xf0]  ;;  %v4300_v39 = vmax.f32 %v4195_v48, 0.0  ;;  %v11919_v45 = vunpack.i.l.bf16 %v17283_v10  ;;  %v6126_v36 = vsel %vm1402_vm0, %v4781_v23, %v11880_v35  ;;  %v6125_v10 = vsel %vm1402_vm0, %v4780_v61, %v11879_v33 }
 0x3fb   :  { %7463 = vst [vmem:[#allocation2 + $0xac] sm:$0xf] %v7399_v32  ;;  %12092 = vrot.lane.b32.xlu2 %v12091_v55, %s12640_s27  ;;  %v10097_v63 = vor.u32 %v10553_v14, %v10096_v47  ;;  %v5031_v61 = vld [vmem:[#allocation3 + $0xc9] sm:$0xff] }
 0x3fc   :  { %v11883_v25 = vpop.permute.xlu0 %11882  ;;  %v11888_v9 = vpop.permute.xlu1 %11887  ;;  %v17312_v49 = vrot.slane %v4300_v39, 7  ;;  %19512 = vst [vmem:[#allocation36_spill] sm:$0xff] %v17321_v54 }
 0x3fd   :  { %v17315_v17 = vpop.permute.xlu2 %11927  ;;  %v11885_v43 = vunpack.i.h.bf16 %v11883_v25  ;;  %v11884_v6 = vunpack.i.l.bf16 %v11883_v25  ;;  %v11890_v40 = vunpack.i.h.bf16 %v11888_v9  ;;  %v4027_v44 = vpop.f32.mrf.mxu1  ;;  %v11889_v46 = vunpack.i.l.bf16 %v11888_v9 }
 0x3fe   :  { %10397 = vmatmul.msk.bf16.gmra.mxu0 %vm1402_vm0, %v10189_v41  ;;  %v4028_v26 = vadd.f32 %v4027_v44, %v3859_v15  ;;  %v17319_v32 = vld [vmem:[#allocation3 + $0x1e2] sm:$0xff]  ;;  %v4617_v48 = vsel %vm4406_vm5, 0.0, %v17312_v49  ;;  %v12101_v25 = vpack.i.bf16 %v4985_v30, %v4984_v22  ;;  %v7208_v44 = vsel %vm1402_vm0, %v5031_v61, %v11845_v8 }
 0x3ff   :  { %v6189_v55 = vsel %vm1467_vm1, %v6125_v10, %v11884_v6  ;;  %v6190_v41 = vsel %vm1467_vm1, %v6126_v36, %v11885_v43  ;;  %v6252_v47 = vsel %vm1532_vm2, %v6188_v57, %v11890_v40  ;;  %v17328_v14 = vld [vmem:[#allocation3 + $0x1ea] sm:$0xff]  ;;  %v7545_v35 = vpack.c.bf16 %v17319_v32, %v17319_v32  ;;  %4718 = vst.msk [vmem:[#allocation3 + $0x1f8] sm:$0xff] %vm1402_vm0, %v4617_v48  ;;  %v5032_v36 = vld [vmem:[#allocation3 + $0xd9] sm:$0xff] }
 0x400   :  { %v6253_v15 = vsel %vm1532_vm2, %v6189_v55, %v11919_v45  ;;  %v6254_v33 = vsel %vm1532_vm2, %v6190_v41, %v11920_v5  ;;  %v17335_v39 = vpop.f32.mrf.mxu3  ;;  %v5178_v9 = vld [vmem:[#allocation3 + $0x1e8] sm:$0xff]  ;;  %v7546_v57 = vpack.c.bf16 %v17328_v14, %v17328_v14  ;;  %v6251_v6 = vsel %vm1532_vm2, %v6187_v37, %v11889_v46  ;;  %v5177_v30 = vld [vmem:[#allocation3 + $0x1e0] sm:$0xff]  ;;  %v9838_v10 = vld [vmem:[#allocation2 + $0x294] sm:$0xf0] }
 0x401   :  { %v6317_v23 = vpack.c.bf16 %v6253_v15, %v6253_v15  ;;  %v6318_v43 = vpack.c.bf16 %v6254_v33, %v6254_v33  ;;  %8393 = vmatmul.bf16.gmra.mxu3 %v10097_v63  ;;  %v10513_v40 = vld [vmem:[#allocation2 + $0x28c] sm:$0xf]  ;;  %7609 = vst.msk [vmem:[#allocation2 + $0x188] sm:$0xf] %vm2877_vm3, %v7545_v35  ;;  %v6316_v5 = vpack.c.bf16 %v6252_v47, %v6252_v47  ;;  %v11870_v48 = vunpack.i.h.bf16 %v17187_v56  ;;  %v19513_v63 = vld [vmem:[#allocation82_spill] sm:$0xff]  ;;  %v4860_v56 = vld [vmem:[#allocation3 + $0x1e1] sm:$0xff] }
 0x402   :  { %v4197_v45 = vadd.f32 %v16406_v16, %v4028_v26  ;;  %12107 = vrot.lane.b32.xlu0 %v17264_v42, %s12640_s27  ;;  %v7209_v55 = vsel %vm1402_vm0, %v5032_v36, %v11874_v3  ;;  %7610 = vst.msk [vmem:[#allocation2 + $0x194] sm:$0xf] %vm2877_vm3, %v7546_v57  ;;  %v6315_v37 = vpack.c.bf16 %v6251_v6, %v6251_v6  ;;  %v11899_v16 = vunpack.i.l.bf16 %v17216_v11  ;;  %v4861_v47 = vld [vmem:[#allocation3 + $0x1e9] sm:$0xff] }
 0x403   :  { %12102 = vrot.lane.b32.xlu2 %v12101_v25, %s12642_s10  ;;  %v17349_v8 = vpack.i.bf16 %v5178_v9, %v5177_v30  ;;  %v3862_v46 = vadd.f32 %v17033_v51, %v19513_v63  ;;  %6381 = vst [vmem:[#allocation2 + $0xf0] sm:$0xf] %v6317_v23  ;;  %v7272_v15 = vsel %vm1467_vm1, %v7208_v44, %v11870_v48  ;;  %v11875_v9 = vunpack.i.h.bf16 %v17246_v27  ;;  %v5033_v63 = vld [vmem:[#allocation3 + $0xe1] sm:$0xff] }
 0x404   :  { %v4301_v42 = vmax.f32 %v4197_v45, 0.0  ;;  %v11893_v26 = vpop.permute.xlu0 %11892  ;;  %v17354_v41 = vpop.permute.xlu1 %11902  ;;  %6382 = vst [vmem:[#allocation2 + $0xfc] sm:$0xf] %v6318_v43  ;;  %v9841_v25 = vor.u32 %v10513_v40, %v9838_v10  ;;  %v7273_v57 = vsel %vm1467_vm1, %v7209_v55, %v11899_v16  ;;  %v17366_v45 = vpack.i.bf16 %v4861_v47, %v4860_v56  ;;  %v19515_v56 = vld [vmem:[#allocation85_spill] sm:$0xff] }
 0x405   :  { %12122 = vrot.lane.b32.xlu1 %v17349_v8, %s12641_s22  ;;  %v17358_v3 = vpop.permute.xlu2 %11942  ;;  %v11895_v22 = vunpack.i.h.bf16 %v11893_v26  ;;  %v11894_v35 = vunpack.i.l.bf16 %v11893_v26  ;;  %v4030_v33 = vpop.f32.mrf.mxu1  ;;  %6380 = vst [vmem:[#allocation2 + $0xe4] sm:$0xf] %v6316_v5  ;;  %v11904_v36 = vunpack.i.l.bf16 %v17354_v41  ;;  %v12116_v55 = vpack.i.bf16 %v17328_v14, %v17319_v32 }
 0x406   :  { %v4462_v61 = vrot.slane %v4301_v42, 7  ;;  %v4031_v23 = vadd.f32 %v4030_v33, %v3862_v46  ;;  %6379 = vst [vmem:[#allocation2 + $0xd8] sm:$0xf] %v6315_v37  ;;  %v17373_v10 = vpop.f32.mrf.mxu0  ;;  %4069 = vmatmul.bf16.gmra.mxu1 %v9841_v25  ;;  %v7210_v16 = vsel %vm1402_vm0, %v5033_v63, %v11875_v9  ;;  %v3864_v32 = vadd.f32 %v17033_v51, %v19515_v56 }
 0x407   :  { %v7336_v43 = vsel %vm1532_vm2, %v7272_v15, %v11894_v35  ;;  %v7337_v6 = vsel %vm1532_vm2, %v7273_v57, %v11895_v22  ;;  %19514 = vst [vmem:[#allocation15_spill] sm:$0xff] %v17373_v10  ;;  %v11900_v14 = vunpack.i.h.bf16 %v17216_v11  ;;  %v11929_v47 = vunpack.i.l.bf16 %v17315_v17 }
 0x408   :  { %v4463_v44 = vsel %vm4406_vm5, %v17312_v49, %v4462_v61  ;;  %v4649_v40 = vsel %vm4406_vm5, %v4462_v61, 0.0  ;;  %v7400_v27 = vpack.c.bf16 %v7336_v43, %v7336_v43  ;;  %v7401_v5 = vpack.c.bf16 %v7337_v6, %v7337_v6  ;;  %v17371_v30 = vpop.f32.mrf.mxu3  ;;  %v10200_v37 = vld [vmem:[#allocation2 + $0x188] sm:$0xf]  ;;  %v5034_v49 = vld [vmem:[#allocation3 + $0xf1] sm:$0xff] }
 0x409   :  { %4719 = vst.msk [vmem:[#allocation3 + $0x200] sm:$0xff] %vm1402_vm0, %v4463_v44  ;;  %v4200_v48 = vadd.f32 %v16435_v2, %v4031_v23  ;;  %v10578_v46 = vld [vmem:[#allocation2 + $0x190] sm:$0xf0]  ;;  %v7211_v42 = vsel %vm1402_vm0, %v5034_v49, %v11904_v36  ;;  %v7274_v11 = vsel %vm1467_vm1, %v7210_v16, %v11900_v14  ;;  %v11639_v6 = vunpack.i.l.bf16 %v16727_v18  ;;  %v10516_v14 = vld [vmem:[#allocation2 + $0x2a4] sm:$0xf] }
 0x40a   :  { %4720 = vst.msk [vmem:[#allocation3 + $0x208] sm:$0x3] %vm4330_vm4, %v4649_v40  ;;  %12112 = vrot.lane.b32.xlu0 %v17366_v45, %s12640_s27  ;;  %v10201_v2 = vor.u32 %v10578_v46, %v10200_v37  ;;  %v7275_v57 = vsel %vm1467_vm1, %v7211_v42, %v11929_v47  ;;  %v11909_v63 = vunpack.i.l.bf16 %v17250_v52 }
 0x40b   :  { %7464 = vst [vmem:[#allocation2 + $0xb8] sm:$0xf] %v7400_v27  ;;  %v4302_v26 = vmax.f32 %v4200_v48, 0.0  ;;  %12117 = vrot.lane.b32.xlu2 %v12116_v55, %s12641_s22 }
 0x40c   :  { %7465 = vst [vmem:[#allocation2 + $0xc4] sm:$0xf] %v7401_v5  ;;  %v11923_v22 = vpop.permute.xlu0 %11922  ;;  %v17389_v35 = vpop.permute.xlu1 %11912  ;;  %v10556_v61 = vld [vmem:[#allocation2 + $0xe0] sm:$0xf0] }
 0x40d   :  { %v17391_v15 = vrot.slane %v4302_v26, 7  ;;  %12137 = vrot.lane.b32.xlu1 %v12116_v55, %s12640_s27  ;;  %v17395_v33 = vpop.permute.xlu2 %11957  ;;  %v11925_v25 = vunpack.i.h.bf16 %v11923_v22  ;;  %v11924_v9 = vunpack.i.l.bf16 %v11923_v22  ;;  %v4032_v51 = vpop.f32.mrf.mxu1  ;;  %v10108_v23 = vld [vmem:[#allocation2 + $0xd8] sm:$0xf]  ;;  %v11914_v56 = vunpack.i.l.bf16 %v17389_v35 }
 0x40e   :  { %10398 = vmatmul.msk.bf16.gmra.mxu0 %vm1402_vm0, %v10201_v2  ;;  %v4033_v43 = vadd.f32 %v4032_v51, %v3864_v32  ;;  %v10109_v48 = vor.u32 %v10556_v61, %v10108_v23  ;;  %v5016_v26 = vld [vmem:[#allocation3 + $0x19] sm:$0xff]  ;;  %v17416_v22 = vpop.f32.mrf.mxu0  ;;  %v11659_v51 = vunpack.i.l.bf16 %v16702_v58 }
 0x40f   :  { %v4618_v36 = vsel %vm4406_vm5, 0.0, %v17391_v15  ;;  %v7338_v44 = vsel %vm1532_vm2, %v7274_v11, %v11924_v9  ;;  %v7339_v40 = vsel %vm1532_vm2, %v7275_v57, %v11925_v25  ;;  %v7193_v47 = vsel %vm1402_vm0, %v5016_v26, %v11639_v6  ;;  %19516 = vst [vmem:[#allocation39_spill] sm:$0xff] %v17416_v22  ;;  %v9850_v25 = vld [vmem:[#allocation2 + $0x2ac] sm:$0xf0]  ;;  %v17423_v9 = vld [vmem:[%s18980_s3] ss:$0 sm:$0xff] }
 0x410   :  { %v5307_v27 = vld [vmem:[#allocation3 + $0x1fa] sm:$0xff]  ;;  %4721 = vst.msk [vmem:[#allocation3 + $0x210] sm:$0xff] %vm1402_vm0, %v4618_v36  ;;  %v7402_v5 = vpack.c.bf16 %v7338_v44, %v7338_v44  ;;  %v17405_v55 = vpop.f32.mrf.mxu3  ;;  %v7403_v18 = vpack.c.bf16 %v7339_v40, %v7339_v40  ;;  %v4202_v16 = vadd.f32 %v16465_v59, %v4033_v43  ;;  %v4782_v11 = vld [vmem:[#allocation3 + $0x108] sm:$0xff] }
 0x411   :  { %v4862_v37 = vld [vmem:[#allocation3 + $0x1f9] sm:$0xff]  ;;  %v5308_v49 = vld [vmem:[#allocation3 + $0x202] sm:$0xff]  ;;  %v7547_v46 = vpack.c.bf16 %v5307_v27, %v5307_v27  ;;  %8398 = vmatmul.bf16.gmra.mxu3 %v10109_v48  ;;  %v6127_v43 = vsel %vm1402_vm0, %v4782_v11, %v11909_v63 }
 0x412   :  { %v4863_v42 = vld [vmem:[#allocation3 + $0x201] sm:$0xff]  ;;  %v7548_v2 = vpack.c.bf16 %v5308_v49, %v5308_v49  ;;  %7466 = vst [vmem:[#allocation2 + $0xd0] sm:$0xf] %v7402_v5  ;;  %12132 = vrot.lane.b32.xlu0 %v17349_v8, %s12642_s10  ;;  %v4303_v59 = vmax.f32 %v4202_v16, 0.0  ;;  %v19517_v8 = vld [vmem:[#allocation25_spill] sm:$0xff]  ;;  %v6191_v58 = vsel %vm1467_vm1, %v6127_v43, %v11914_v56  ;;  %v7257_v5 = vsel %vm1467_vm1, %v7193_v47, %v11659_v51  ;;  %v19518_v51 = vld [vmem:[#allocation38_spill] sm:$0xff] }
 0x413   :  { %v17412_v32 = vpack.i.bf16 %v4863_v42, %v4862_v37  ;;  %7611 = vst.msk [vmem:[#allocation2 + $0x1a0] sm:$0xf] %vm2877_vm3, %v7547_v46  ;;  %12127 = vrot.lane.b32.xlu2 %v17366_v45, %s12642_s10  ;;  %v3867_v61 = vadd.f32 %v17423_v9, %v19517_v8  ;;  %v9853_v37 = vor.u32 %v10516_v14, %v9850_v25  ;;  %v5180_v46 = vld [vmem:[#allocation3 + $0x200] sm:$0xff] }
 0x414   :  { %7612 = vst.msk [vmem:[#allocation2 + $0x1ac] sm:$0xf] %vm2877_vm3, %v7548_v2  ;;  %v11933_v57 = vpop.permute.xlu0 %11932  ;;  %v17429_v23 = vpop.permute.xlu1 %11952  ;;  %v4465_v45 = vrot.slane %v4303_v59, 7  ;;  %v5179_v59 = vld [vmem:[#allocation3 + $0x1f8] sm:$0xff]  ;;  %v12146_v56 = vpack.i.bf16 %v5308_v49, %v5307_v27  ;;  %v3869_v27 = vadd.f32 %v17423_v9, %v19518_v51 }
 0x415   :  { %7467 = vst [vmem:[#allocation2 + $0xdc] sm:$0xf] %v7403_v18  ;;  %12142 = vrot.lane.b32.xlu1 %v17412_v32, %s12640_s27  ;;  %v17434_v6 = vpop.permute.xlu2 %11982  ;;  %v11935_v36 = vunpack.i.h.bf16 %v11933_v57  ;;  %v11934_v44 = vunpack.i.l.bf16 %v11933_v57  ;;  %v4035_v40 = vpop.f32.mrf.mxu1  ;;  %v12151_v47 = vpack.i.bf16 %v5180_v46, %v5179_v59  ;;  %v5036_v59 = vld [vmem:[#allocation3 + $0x109] sm:$0xff] }
 0x416   :  { %v4036_v48 = vadd.f32 %v4035_v40, %v3867_v61  ;;  %v4466_v63 = vsel %vm4406_vm5, %v17391_v15, %v4465_v45  ;;  %v4650_v18 = vsel %vm4406_vm5, %v4465_v45, 0.0  ;;  %4074 = vmatmul.bf16.gmra.mxu1 %v9853_v37  ;;  %v10120_v45 = vld [vmem:[#allocation2 + $0xf0] sm:$0xf]  ;;  %v17459_v40 = vpop.f32.mrf.mxu0  ;;  %v11954_v37 = vunpack.i.l.bf16 %v17429_v23 }
 0x417   :  { %v6255_v16 = vsel %vm1532_vm2, %v6191_v58, %v11934_v44  ;;  %v7321_v42 = vsel %vm1532_vm2, %v7257_v5, %v11935_v36  ;;  %4722 = vst.msk [vmem:[#allocation3 + $0x218] sm:$0xff] %vm1402_vm0, %v4466_v63  ;;  %v10559_v36 = vld [vmem:[#allocation2 + $0xf8] sm:$0xf0]  ;;  %v11905_v5 = vunpack.i.h.bf16 %v17354_v41 }
 0x418   :  { %v6319_v26 = vpack.c.bf16 %v6255_v16, %v6255_v16  ;;  %v7385_v2 = vpack.c.bf16 %v7321_v42, %v7321_v42  ;;  %4723 = vst.msk [vmem:[#allocation3 + $0x220] sm:$0x3] %vm4330_vm4, %v4650_v18  ;;  %v4205_v14 = vadd.f32 %v16490_v19, %v4036_v48  ;;  %v17446_v15 = vpop.f32.mrf.mxu3  ;;  %v10121_v16 = vor.u32 %v10559_v36, %v10120_v45  ;;  %v17466_v42 = vld [vmem:[#allocation2 + $0x2c4] sm:$0xf0]  ;;  %v10519_v41 = vld [vmem:[#allocation2 + $0x2bc] sm:$0xf] }
 0x419   :  { %19519 = vst [vmem:[#allocation32_spill] sm:$0xff] %v17459_v40  ;;  %v7213_v51 = vsel %vm1402_vm0, %v5036_v59, %v11954_v37  ;;  %v11930_v36 = vunpack.i.h.bf16 %v17315_v17 }
 0x41a   :  { %6383 = vst [vmem:[#allocation2 + $0x108] sm:$0xf] %v6319_v26  ;;  %12147 = vrot.lane.b32.xlu0 %v12146_v56, %s12641_s22  ;;  %v10212_v25 = vld [vmem:[#allocation2 + $0x1a0] sm:$0xf]  ;;  %v4304_v8 = vmax.f32 %v4205_v14, 0.0 }
 0x41b   :  { %7449 = vst [vmem:[#allocation2 + $0x4] sm:$0xf] %v7385_v2  ;;  %12152 = vrot.lane.b32.xlu2 %v12151_v47, %s12641_s22  ;;  %v10581_v61 = vld [vmem:[#allocation2 + $0x1a8] sm:$0xf0]  ;;  %v5035_v26 = vld [vmem:[#allocation3 + $0xf9] sm:$0xff] }
 0x41c   :  { %v10213_v49 = vor.u32 %v10581_v61, %v10212_v25  ;;  %v17452_v11 = vpop.permute.xlu0 %11937  ;;  %v17454_v19 = vpop.permute.xlu1 %11967  ;;  %v4467_v57 = vrot.slane %v4304_v8, 7  ;;  %v10002_v8 = vld [vmem:[#allocation2 + $0xc] sm:$0xf0]  ;;  %v7212_v61 = vsel %vm1402_vm0, %v5035_v26, %v11905_v5  ;;  %v9865_v5 = vor.u32 %v10519_v41, %v17466_v42 }
 0x41d   :  { %12162 = vrot.lane.b32.xlu1 %v12151_v47, %s12642_s10  ;;  %v17457_v43 = vpop.permute.xlu2 %11997  ;;  %v4037_v44 = vpop.f32.mrf.mxu1  ;;  %v11940_v26 = vunpack.i.h.bf16 %v17452_v11  ;;  %v7276_v42 = vsel %vm1467_vm1, %v7212_v61, %v11930_v36 }
 0x41e   :  { %10399 = vmatmul.msk.bf16.gmra.mxu0 %vm1402_vm0, %v10213_v49  ;;  %v4038_v58 = vadd.f32 %v4037_v44, %v3869_v27  ;;  %v5309_v48 = vld [vmem:[#allocation3 + $0x212] sm:$0xff]  ;;  %v4619_v46 = vsel %vm4406_vm5, 0.0, %v4467_v57  ;;  %v19520_v49 = vld [vmem:[#allocation44_spill] sm:$0xff]  ;;  %v11959_v44 = vunpack.i.l.bf16 %v17395_v33 }
 0x41f   :  { %v5310_v63 = vld [vmem:[#allocation3 + $0x21a] sm:$0xff]  ;;  %v7549_v18 = vpack.c.bf16 %v5309_v48, %v5309_v48  ;;  %4724 = vst.msk [vmem:[#allocation3 + $0x228] sm:$0xff] %vm1402_vm0, %v4619_v46  ;;  %v3872_v45 = vadd.f32 %v17423_v9, %v19520_v49  ;;  %v4864_v59 = vld [vmem:[#allocation3 + $0x211] sm:$0xff]  ;;  %v17501_v49 = vpop.f32.mrf.mxu0 }
 0x420   :  { %v7550_v2 = vpack.c.bf16 %v5310_v63, %v5310_v63  ;;  %v4207_v14 = vadd.f32 %v16520_v62, %v4038_v58  ;;  %v17469_v47 = vpack.i.bf16 %v5310_v63, %v5309_v48  ;;  %v11910_v48 = vunpack.i.h.bf16 %v17250_v52  ;;  %v5182_v17 = vld [vmem:[#allocation3 + $0x218] sm:$0xff]  ;;  %19521 = vst [vmem:[#allocation86_spill] sm:$0xff] %v17501_v49 }
 0x421   :  { %7613 = vst.msk [vmem:[#allocation2 + $0x1b8] sm:$0xf] %vm2877_vm3, %v7549_v18  ;;  %8403 = vmatmul.bf16.gmra.mxu3 %v10121_v16  ;;  %v11955_v16 = vunpack.i.h.bf16 %v17429_v23  ;;  %v7277_v52 = vsel %vm1467_vm1, %v7213_v51, %v11959_v44  ;;  %v11915_v23 = vunpack.i.h.bf16 %v17389_v35  ;;  %v4783_v44 = vld [vmem:[#allocation3 + $0x110] sm:$0xff]  ;;  %v3874_v35 = vadd.f32 %v17423_v9, %v15657_v24 }
 0x422   :  { %12157 = vrot.lane.b32.xlu0 %v17412_v32, %s12642_s10  ;;  %v10528_v25 = vld [vmem:[#allocation2 + $0x4] sm:$0xf]  ;;  %7614 = vst.msk [vmem:[#allocation2 + $0x1c4] sm:$0xf] %vm2877_vm3, %v7550_v2  ;;  %v4305_v27 = vmax.f32 %v4207_v14, 0.0  ;;  %v17482_v32 = vpop.f32.mrf.mxu3  ;;  %v4865_v14 = vld [vmem:[#allocation3 + $0x219] sm:$0xff]  ;;  %v11945_v24 = vunpack.i.h.bf16 %v17358_v3 }
 0x423   :  { %12167 = vrot.lane.b32.xlu2 %v12146_v56, %s12640_s27  ;;  %v10005_v62 = vor.u32 %v10528_v25, %v10002_v8 }
 0x424   :  { %v11948_v58 = vpop.permute.xlu0 %11947  ;;  %v4468_v46 = vrot.slane %v4305_v27, 7 }
 0x425   :  { %12177 = vrot.lane.b32.xlu1 %v17469_v47, %s12641_s22  ;;  %v17488_v56 = vpop.permute.xlu2 %12002  ;;  %v11950_v37 = vunpack.i.h.bf16 %v11948_v58  ;;  %v11949_v63 = vunpack.i.l.bf16 %v11948_v58  ;;  %8522 = vmatmul.bf16.vlgmr.msrb.gmra.mxu2 %v10005_v62  ;;  %v4040_v2 = vpop.f32.mrf.mxu1  ;;  %v5181_v62 = vld [vmem:[#allocation3 + $0x210] sm:$0xff] }
 0x426   :  { %v4469_v41 = vsel %vm4406_vm5, %v4467_v57, %v4468_v46  ;;  %v4651_v25 = vsel %vm4406_vm5, %v4468_v46, 0.0  ;;  %v17504_v36 = vpack.i.bf16 %v5182_v17, %v5181_v62  ;;  %v5037_v58 = vld [vmem:[#allocation3 + $0x111] sm:$0xff]  ;;  %v11939_v57 = vunpack.i.l.bf16 %v17452_v11  ;;  %4079 = vmatmul.bf16.gmra.mxu1 %v9865_v5 }
 0x427   :  { %v17490_v18 = vpop.permute.xlu1 %11972  ;;  %v7340_v8 = vsel %vm1532_vm2, %v7276_v42, %v11949_v63  ;;  %v7341_v27 = vsel %vm1532_vm2, %v7277_v52, %v11950_v37  ;;  %4725 = vst.msk [vmem:[#allocation3 + $0x230] sm:$0xff] %vm1402_vm0, %v4469_v41  ;;  %v4041_v46 = vadd.f32 %v4040_v2, %v3872_v45  ;;  %v12171_v63 = vpack.i.bf16 %v4865_v14, %v4864_v59  ;;  %v4785_v41 = vld [vmem:[#allocation3 + $0x128] sm:$0xff]  ;;  %v4784_v59 = vld [vmem:[#allocation3 + $0x120] sm:$0xff] }
 0x428   :  { %v7404_v61 = vpack.c.bf16 %v7340_v8, %v7340_v8  ;;  %v7405_v51 = vpack.c.bf16 %v7341_v27, %v7341_v27  ;;  %4726 = vst.msk [vmem:[#allocation3 + $0x238] sm:$0x3] %vm4330_vm4, %v4651_v25  ;;  %v10224_v37 = vld [vmem:[#allocation2 + $0x1b8] sm:$0xf]  ;;  %v6128_v42 = vsel %vm1402_vm0, %v4783_v44, %v11910_v48  ;;  %v7214_v52 = vsel %vm1402_vm0, %v5037_v58, %v11955_v16 }
 0x429   :  { %v10584_v17 = vld [vmem:[#allocation2 + $0x1c0] sm:$0xf0]  ;;  %v6130_v11 = vsel %vm1402_vm0, %v4785_v41, %v11940_v26  ;;  %v4210_v45 = vadd.f32 %v16549_v38, %v4041_v46  ;;  %v11944_v48 = vunpack.i.l.bf16 %v17358_v3  ;;  %v11960_v16 = vunpack.i.h.bf16 %v17395_v33 }
 0x42a   :  { %7468 = vst [vmem:[#allocation2 + $0xe8] sm:$0xf] %v7404_v61  ;;  %12182 = vrot.lane.b32.xlu0 %v17504_v36, %s12641_s22  ;;  %v10225_v2 = vor.u32 %v10584_v17, %v10224_v37  ;;  %v6192_v5 = vsel %vm1467_vm1, %v6128_v42, %v11915_v23  ;;  %v6129_v25 = vsel %vm1402_vm0, %v4784_v59, %v11939_v57  ;;  %v17525_v61 = vpop.f32.mrf.mxu3  ;;  %v11975_v17 = vunpack.i.h.bf16 %v17490_v18  ;;  %v5183_v59 = vld [vmem:[#allocation3 + $0x228] sm:$0xff] }
 0x42b   :  { %7469 = vst [vmem:[#allocation2 + $0xf4] sm:$0xf] %v7405_v51  ;;  %12172 = vrot.lane.b32.xlu2 %v12171_v63, %s12640_s27  ;;  %v4306_v8 = vmax.f32 %v4210_v45, 0.0  ;;  %v7278_v3 = vsel %vm1467_vm1, %v7214_v52, %v11960_v16  ;;  %v6194_v33 = vsel %vm1467_vm1, %v6130_v11, %v11945_v24  ;;  %v6193_v11 = vsel %vm1467_vm1, %v6129_v25, %v11944_v48 }
 0x42c   :  { %v11963_v14 = vpop.permute.xlu0 %11962  ;;  %v11974_v48 = vunpack.i.l.bf16 %v17490_v18  ;;  %v11970_v18 = vunpack.i.h.bf16 %v17454_v19 }
 0x42d   :  { %12187 = vrot.lane.b32.xlu1 %v12171_v63, %s12642_s10  ;;  %v17523_v26 = vpop.permute.xlu2 %12022  ;;  %v11965_v38 = vunpack.i.h.bf16 %v11963_v14  ;;  %v11964_v27 = vunpack.i.l.bf16 %v11963_v14  ;;  %v4042_v44 = vpop.f32.mrf.mxu1  ;;  %v17532_v57 = vrot.slane %v4306_v8, 7  ;;  %v10522_v14 = vld [vmem:[#allocation2 + $0x2d4] sm:$0xf]  ;;  %v9874_v8 = vld [vmem:[#allocation2 + $0x2dc] sm:$0xf0] }
 0x42e   :  { %10400 = vmatmul.msk.bf16.gmra.mxu0 %vm1402_vm0, %v10225_v2  ;;  %v17530_v58 = vld [vmem:[#allocation3 + $0x22a] sm:$0xff]  ;;  %v4043_v37 = vadd.f32 %v4042_v44, %v3874_v35  ;;  %v4787_v44 = vld [vmem:[#allocation3 + $0x140] sm:$0xff] }
 0x42f   :  { %v11993_v62 = vpop.permute.xlu1 %11992  ;;  %v6256_v46 = vsel %vm1532_vm2, %v6192_v5, %v11965_v38  ;;  %v7342_v63 = vsel %vm1532_vm2, %v7278_v3, %v11964_v27  ;;  %v5184_v42 = vld [vmem:[#allocation3 + $0x230] sm:$0xff]  ;;  %v7551_v52 = vpack.c.bf16 %v17530_v58, %v17530_v58  ;;  %v10014_v2 = vld [vmem:[#allocation2 + $0x24] sm:$0xf0]  ;;  %v4620_v16 = vsel %vm4406_vm5, 0.0, %v17532_v57  ;;  %v17548_v38 = vpop.f32.mrf.mxu0  ;;  %v10531_v3 = vld [vmem:[#allocation2 + $0x1c] sm:$0xf] }
 0x430   :  { %v11995_v23 = vunpack.i.h.bf16 %v11993_v62  ;;  %v11994_v51 = vunpack.i.l.bf16 %v11993_v62  ;;  %v17536_v41 = vld [vmem:[#allocation3 + $0x232] sm:$0xff]  ;;  %v6320_v35 = vpack.c.bf16 %v6256_v46, %v6256_v46  ;;  %19522 = vst [vmem:[#allocation87_spill] sm:$0xff] %v17548_v38  ;;  %v7406_v25 = vpack.c.bf16 %v7342_v63, %v7342_v63 }
 0x431   :  { %v7552_v24 = vpack.c.bf16 %v17536_v41, %v17536_v41  ;;  %7615 = vst.msk [vmem:[#allocation2 + $0x1d0] sm:$0xf] %vm2877_vm3, %v7551_v52  ;;  %v4212_v27 = vadd.f32 %v16570_v53, %v4043_v37  ;;  %v17555_v62 = vpack.i.bf16 %v5184_v42, %v5183_v59  ;;  %v9877_v63 = vor.u32 %v10522_v14, %v9874_v8  ;;  %v4866_v37 = vld [vmem:[#allocation3 + $0x229] sm:$0xff]  ;;  %v4867_v42 = vld [vmem:[#allocation3 + $0x231] sm:$0xff] }
 0x432   :  { %v6258_v45 = vsel %vm1532_vm2, %v6194_v33, %v11995_v23  ;;  %v6257_v5 = vsel %vm1532_vm2, %v6193_v11, %v11994_v51  ;;  %12197 = vrot.lane.b32.xlu0 %v17469_v47, %s12640_s27  ;;  %v3877_v33 = vadd.f32 %v17423_v9, %v15701_v20  ;;  %v10017_v51 = vor.u32 %v10531_v3, %v10014_v2  ;;  %v4786_v52 = vld [vmem:[#allocation3 + $0x138] sm:$0xff] }
 0x433   :  { %7616 = vst.msk [vmem:[#allocation2 + $0x1dc] sm:$0xf] %vm2877_vm3, %v7552_v24  ;;  %v6322_v23 = vpack.c.bf16 %v6258_v45, %v6258_v45  ;;  %12192 = vrot.lane.b32.xlu2 %v17504_v36, %s12642_s10  ;;  %v6321_v53 = vpack.c.bf16 %v6257_v5, %v6257_v5  ;;  %v4307_v47 = vmax.f32 %v4212_v27, 0.0  ;;  %v11969_v20 = vunpack.i.l.bf16 %v17454_v19 }
 0x434   :  { %4727 = vst.msk [vmem:[#allocation3 + $0x240] sm:$0xff] %vm1402_vm0, %v4620_v16  ;;  %v11978_v46 = vpop.permute.xlu0 %11977  ;;  %v6132_v11 = vsel %vm1402_vm0, %v4787_v44, %v11975_v17  ;;  %v6131_v16 = vsel %vm1402_vm0, %v4786_v52, %v11974_v48  ;;  %v12025_v5 = vunpack.i.h.bf16 %v17523_v26  ;;  %v12024_v19 = vunpack.i.l.bf16 %v17523_v26 }
 0x435   :  { %6384 = vst [vmem:[#allocation2 + $0x114] sm:$0xf] %v6320_v35  ;;  %12212 = vrot.lane.b32.xlu1 %v17555_v62, %s12641_s22  ;;  %v17568_v36 = vpop.permute.xlu2 %12037  ;;  %v11980_v45 = vunpack.i.h.bf16 %v11978_v46  ;;  %v11979_v2 = vunpack.i.l.bf16 %v11978_v46  ;;  %8527 = vmatmul.bf16.gmra.mxu2 %v10017_v51  ;;  %v4471_v59 = vrot.slane %v4307_v47, 7  ;;  %v4045_v17 = vpop.f32.mrf.mxu1  ;;  %v17577_v27 = vpack.i.bf16 %v4867_v42, %v4866_v37  ;;  %v5039_v46 = vld [vmem:[#allocation3 + $0x129] sm:$0xff] }
 0x436   :  { %7470 = vst [vmem:[#allocation2 + $0x100] sm:$0xf] %v7406_v25  ;;  %v4046_v8 = vadd.f32 %v4045_v17, %v3877_v33  ;;  %v17582_v51 = vpop.f32.mrf.mxu3  ;;  %v12206_v33 = vpack.i.bf16 %v17536_v41, %v17530_v58  ;;  %4084 = vmatmul.bf16.gmra.mxu1 %v9877_v63  ;;  %v7216_v42 = vsel %vm1402_vm0, %v5039_v46, %v11970_v18  ;;  %v10132_v41 = vld [vmem:[#allocation2 + $0x108] sm:$0xf]  ;;  %v12040_v22 = vunpack.i.h.bf16 %v17568_v36 }
 0x437   :  { %v17570_v24 = vpop.permute.xlu1 %12007  ;;  %6386 = vst [vmem:[#allocation2 + $0x12c] sm:$0xf] %v6322_v23  ;;  %v6195_v35 = vsel %vm1467_vm1, %v6131_v16, %v11979_v2  ;;  %v6196_v14 = vsel %vm1467_vm1, %v6132_v11, %v11980_v45  ;;  %v4472_v3 = vsel %vm4406_vm5, %v17532_v57, %v4471_v59  ;;  %v4652_v48 = vsel %vm4406_vm5, %v4471_v59, 0.0  ;;  %v17598_v2 = vpop.f32.mrf.mxu0 }
 0x438   :  { %6385 = vst [vmem:[#allocation2 + $0x120] sm:$0xf] %v6321_v53  ;;  %v6259_v26 = vsel %vm1532_vm2, %v6195_v35, %v12024_v19  ;;  %v6260_v25 = vsel %vm1532_vm2, %v6196_v14, %v12025_v5  ;;  %v10236_v47 = vld [vmem:[#allocation2 + $0x1d0] sm:$0xf]  ;;  %v5038_v53 = vld [vmem:[#allocation3 + $0x121] sm:$0xff]  ;;  %v4215_v57 = vadd.f32 %v16596_v60, %v4046_v8  ;;  %v11985_v11 = vunpack.i.h.bf16 %v17434_v6 }
 0x439   :  { %4728 = vst.msk [vmem:[#allocation3 + $0x248] sm:$0xff] %vm1402_vm0, %v4472_v3  ;;  %v6323_v23 = vpack.c.bf16 %v6259_v26, %v6259_v26  ;;  %v6324_v44 = vpack.c.bf16 %v6260_v25, %v6260_v25  ;;  %v7215_v52 = vsel %vm1402_vm0, %v5038_v53, %v11969_v20  ;;  %v11984_v45 = vunpack.i.l.bf16 %v17434_v6  ;;  %v19524_v5 = vld [vmem:[#allocation31_spill] sm:$0xff] }
 0x43a   :  { %4729 = vst.msk [vmem:[#allocation3 + $0x250] sm:$0x3] %vm4330_vm4, %v4652_v48  ;;  %12202 = vrot.lane.b32.xlu0 %v17577_v27, %s12640_s27  ;;  %v10587_v37 = vld [vmem:[#allocation2 + $0x1d8] sm:$0xf0]  ;;  %v4308_v60 = vmax.f32 %v4215_v57, 0.0  ;;  %v3879_v18 = vadd.f32 %v17423_v9, %v19524_v5  ;;  %v7280_v8 = vsel %vm1467_vm1, %v7216_v42, %v11985_v11  ;;  %v12000_v11 = vunpack.i.h.bf16 %v17457_v43 }
 0x43b   :  { %6387 = vst [vmem:[#allocation2 + $0x138] sm:$0xf] %v6323_v23  ;;  %12207 = vrot.lane.b32.xlu2 %v12206_v33, %s12641_s22  ;;  %v10237_v58 = vor.u32 %v10587_v37, %v10236_v47  ;;  %v7279_v6 = vsel %vm1467_vm1, %v7215_v52, %v11984_v45  ;;  %v10026_v53 = vld [vmem:[#allocation2 + $0x3c] sm:$0xf0]  ;;  %v19525_v52 = vld [vmem:[#allocation24_spill] sm:$0xff]  ;;  %v11999_v45 = vunpack.i.l.bf16 %v17457_v43  ;;  %v12039_v10 = vunpack.i.l.bf16 %v17568_v36 }
 0x43c   :  { %19523 = vst [vmem:[#allocation69_spill] sm:$0xff] %v17598_v2  ;;  %v11988_v63 = vpop.permute.xlu0 %11987  ;;  %v10562_v16 = vld [vmem:[#allocation2 + $0x110] sm:$0xf0]  ;;  %v4473_v14 = vrot.slane %v4308_v60, 7 }
 0x43d   :  { %6388 = vst [vmem:[#allocation2 + $0x144] sm:$0xf] %v6324_v44  ;;  %12227 = vrot.lane.b32.xlu1 %v12206_v33, %s12640_s27  ;;  %v17603_v20 = vpop.permute.xlu2 %12047  ;;  %v11990_v19 = vunpack.i.h.bf16 %v11988_v63  ;;  %v11989_v59 = vunpack.i.l.bf16 %v11988_v63  ;;  %v10133_v35 = vor.u32 %v10562_v16, %v10132_v41  ;;  %v4047_v3 = vpop.f32.mrf.mxu1  ;;  %v10525_v41 = vld [vmem:[#allocation2 + $0x2ec] sm:$0xf]  ;;  %v10534_v5 = vld [vmem:[#allocation2 + $0x34] sm:$0xf] }
 0x43e   :  { %10401 = vmatmul.msk.bf16.gmra.mxu0 %vm1402_vm0, %v10237_v58  ;;  %v4048_v25 = vadd.f32 %v4047_v3, %v3879_v18  ;;  %v4621_v44 = vsel %vm4406_vm5, 0.0, %v4473_v14  ;;  %v17617_v63 = vpop.f32.mrf.mxu3  ;;  %v9886_v18 = vld [vmem:[#allocation2 + $0x2f4] sm:$0xf0]  ;;  %v5041_v3 = vld [vmem:[#allocation3 + $0x141] sm:$0xff] }
 0x43f   :  { %v17605_v17 = vpop.permute.xlu1 %12017  ;;  %v7343_v48 = vsel %vm1532_vm2, %v7279_v6, %v11989_v59  ;;  %v7344_v26 = vsel %vm1532_vm2, %v7280_v8, %v11990_v19  ;;  %8408 = vmatmul.bf16.gmra.mxu3 %v10133_v35  ;;  %4730 = vst.msk [vmem:[#allocation3 + $0x258] sm:$0xff] %vm1402_vm0, %v4621_v44  ;;  %v10029_v59 = vor.u32 %v10534_v5, %v10026_v53  ;;  %v19526_v35 = vld [vmem:[#allocation65_spill] sm:$0xff]  ;;  %v5040_v8 = vld [vmem:[#allocation3 + $0x139] sm:$0xff]  ;;  %v17637_v53 = vpop.f32.mrf.mxu0 }
 0x440   :  { %v5313_v23 = vld [vmem:[#allocation3 + $0x242] sm:$0xff]  ;;  %v7407_v33 = vpack.c.bf16 %v7343_v48, %v7343_v48  ;;  %v7408_v37 = vpack.c.bf16 %v7344_v26, %v7344_v26  ;;  %v4217_v42 = vadd.f32 %v19525_v52, %v4048_v25  ;;  %v3882_v43 = vadd.f32 %v17423_v9, %v19526_v35  ;;  %19527 = vst [vmem:[#allocation40_spill] sm:$0xff] %v17637_v53  ;;  %v19528_v35 = vld [vmem:[#allocation10_spill] sm:$0xff] }
 0x441   :  { %v4868_v47 = vld [vmem:[#allocation3 + $0x241] sm:$0xff]  ;;  %v5314_v46 = vld [vmem:[#allocation3 + $0x24a] sm:$0xff]  ;;  %v7553_v57 = vpack.c.bf16 %v5313_v23, %v5313_v23 }
 0x442   :  { %v4869_v58 = vld [vmem:[#allocation3 + $0x249] sm:$0xff]  ;;  %v7554_v60 = vpack.c.bf16 %v5314_v46, %v5314_v46  ;;  %7471 = vst [vmem:[#allocation2 + $0x10c] sm:$0xf] %v7407_v33  ;;  %12222 = vrot.lane.b32.xlu0 %v17555_v62, %s12642_s10  ;;  %v4309_v19 = vmax.f32 %v4217_v42, 0.0  ;;  %v7218_v33 = vsel %vm1402_vm0, %v5041_v3, %v12000_v11 }
 0x443   :  { %v17621_v16 = vpack.i.bf16 %v4869_v58, %v4868_v47  ;;  %7617 = vst.msk [vmem:[#allocation2 + $0x1e8] sm:$0xf] %vm2877_vm3, %v7553_v57  ;;  %12217 = vrot.lane.b32.xlu2 %v17577_v27, %s12642_s10  ;;  %v9889_v27 = vor.u32 %v10525_v41, %v9886_v18  ;;  %v7217_v47 = vsel %vm1402_vm0, %v5040_v8, %v11999_v45  ;;  %v12020_v57 = vunpack.i.h.bf16 %v17605_v17  ;;  %v5186_v42 = vld [vmem:[#allocation3 + $0x248] sm:$0xff] }
 0x444   :  { %7618 = vst.msk [vmem:[#allocation2 + $0x1f4] sm:$0xf] %vm2877_vm3, %v7554_v60  ;;  %v12013_v6 = vpop.permute.xlu0 %12012  ;;  %v4474_v62 = vrot.slane %v4309_v19, 7  ;;  %v5185_v19 = vld [vmem:[#allocation3 + $0x240] sm:$0xff] }
 0x445   :  { %7472 = vst [vmem:[#allocation2 + $0x118] sm:$0xf] %v7408_v37  ;;  %12232 = vrot.lane.b32.xlu1 %v17621_v16, %s12640_s27  ;;  %v17631_v48 = vpop.permute.xlu2 %12062  ;;  %v12015_v26 = vunpack.i.h.bf16 %v12013_v6  ;;  %v12014_v25 = vunpack.i.l.bf16 %v12013_v6  ;;  %8532 = vmatmul.bf16.gmra.mxu2 %v10029_v59  ;;  %v12019_v37 = vunpack.i.l.bf16 %v17605_v17  ;;  %v4050_v52 = vpop.f32.mrf.mxu1  ;;  %v17648_v59 = vpack.i.bf16 %v5314_v46, %v5313_v23  ;;  %v4793_v17 = vld [vmem:[#allocation3 + $0x1b8] sm:$0xff]  ;;  %v10565_v23 = vld [vmem:[#allocation2 + $0x128] sm:$0xf0]  ;;  %v4792_v46 = vld [vmem:[#allocation3 + $0x1b0] sm:$0xff] }
 0x446   :  { %v4475_v58 = vsel %vm4406_vm5, %v4473_v14, %v4474_v62  ;;  %v4653_v60 = vsel %vm4406_vm5, %v4474_v62, 0.0  ;;  %v4051_v18 = vadd.f32 %v4050_v52, %v3882_v43  ;;  %v11610_v6 = vunpack.i.h.bf16 %v19528_v35  ;;  %4089 = vmatmul.bf16.gmra.mxu1 %v9889_v27  ;;  %v17659_v52 = vpop.f32.mrf.mxu3  ;;  %v10568_v40 = vld [vmem:[#allocation2 + $0x140] sm:$0xf0] }
 0x447   :  { %v17633_v44 = vpop.permute.xlu1 %12042  ;;  %v7282_v5 = vsel %vm1467_vm1, %v7218_v33, %v12015_v26  ;;  %v7281_v41 = vsel %vm1467_vm1, %v7217_v47, %v12014_v25  ;;  %4731 = vst.msk [vmem:[#allocation3 + $0x260] sm:$0xff] %vm1402_vm0, %v4475_v58  ;;  %v12241_v3 = vpack.i.bf16 %v5186_v42, %v5185_v19  ;;  %v11609_v62 = vunpack.i.l.bf16 %v19528_v35  ;;  %v19529_v26 = vld [vmem:[#allocation11_spill] sm:$0xff] }
 0x448   :  { %v7345_v11 = vsel %vm1532_vm2, %v7281_v41, %v12019_v37  ;;  %v7346_v45 = vsel %vm1532_vm2, %v7282_v5, %v12020_v57  ;;  %4732 = vst.msk [vmem:[#allocation3 + $0x268] sm:$0x3] %vm4330_vm4, %v4653_v60  ;;  %v4220_v25 = vadd.f32 %v19529_v26, %v4051_v18  ;;  %v10144_v33 = vld [vmem:[#allocation2 + $0x120] sm:$0xf]  ;;  %v19530_v57 = vld [vmem:[#allocation57_spill] sm:$0xff]  ;;  %v6138_v60 = vsel %vm1402_vm0, %v4793_v17, %v11610_v6 }
 0x449   :  { %v7409_v14 = vpack.c.bf16 %v7345_v11, %v7345_v11  ;;  %v7410_v8 = vpack.c.bf16 %v7346_v45, %v7346_v45  ;;  %v3884_v37 = vadd.f32 %v17423_v9, %v19530_v57  ;;  %v10145_v18 = vor.u32 %v10565_v23, %v10144_v33  ;;  %v19531_v35 = vld [vmem:[#allocation23_spill] sm:$0xff]  ;;  %v5042_v17 = vld [vmem:[#allocation3 + $0x151] sm:$0xff] }
 0x44a   :  { %12237 = vrot.lane.b32.xlu0 %v17648_v59, %s12641_s22  ;;  %v10248_v43 = vld [vmem:[#allocation2 + $0x1e8] sm:$0xf]  ;;  %v4310_v42 = vmax.f32 %v4220_v25, 0.0  ;;  %v6137_v19 = vsel %vm1402_vm0, %v4792_v46, %v11609_v62  ;;  %v5043_v6 = vld [vmem:[#allocation3 + $0x159] sm:$0xff]  ;;  %v17676_v46 = vpop.f32.mrf.mxu0  ;;  %v12050_v57 = vunpack.i.h.bf16 %v17603_v20 }
 0x44b   :  { %7473 = vst [vmem:[#allocation2 + $0x124] sm:$0xf] %v7409_v14  ;;  %12242 = vrot.lane.b32.xlu2 %v12241_v3, %s12641_s22  ;;  %v10590_v47 = vld [vmem:[#allocation2 + $0x1f0] sm:$0xf0]  ;;  %v11620_v14 = vunpack.i.h.bf16 %v19531_v35  ;;  %v10038_v23 = vld [vmem:[#allocation2 + $0x54] sm:$0xf0] }
 0x44c   :  { %7474 = vst [vmem:[#allocation2 + $0x130] sm:$0xf] %v7410_v8  ;;  %v10249_v58 = vor.u32 %v10590_v47, %v10248_v43  ;;  %v12028_v27 = vpop.permute.xlu0 %12027  ;;  %v12045_v8 = vunpack.i.h.bf16 %v17633_v44  ;;  %v17670_v26 = vrot.slane %v4310_v42, 7  ;;  %v12044_v43 = vunpack.i.l.bf16 %v17633_v44 }
 0x44d   :  { %12252 = vrot.lane.b32.xlu1 %v12241_v3, %s12642_s10  ;;  %v17663_v5 = vpop.permute.xlu2 %12087  ;;  %v12030_v41 = vunpack.i.h.bf16 %v12028_v27  ;;  %v12029_v11 = vunpack.i.l.bf16 %v12028_v27  ;;  %v4052_v3 = vpop.f32.mrf.mxu1  ;;  %19532 = vst [vmem:[#allocation81_spill] sm:$0xff] %v17676_v46  ;;  %v12049_v42 = vunpack.i.l.bf16 %v17603_v20  ;;  %v11619_v44 = vunpack.i.l.bf16 %v19531_v35 }
 0x44e   :  { %10402 = vmatmul.msk.bf16.gmra.mxu0 %vm1402_vm0, %v10249_v58  ;;  %v5315_v25 = vld [vmem:[#allocation3 + $0x25a] sm:$0xff]  ;;  %v4053_v62 = vadd.f32 %v4052_v3, %v3884_v37  ;;  %v4622_v53 = vsel %vm4406_vm5, 0.0, %v17670_v26 }
 0x44f   :  { %v17665_v45 = vpop.permute.xlu1 %12057  ;;  %v7220_v47 = vsel %vm1402_vm0, %v5043_v6, %v12030_v41  ;;  %v7219_v33 = vsel %vm1402_vm0, %v5042_v17, %v12029_v11  ;;  %8413 = vmatmul.bf16.gmra.mxu3 %v10145_v18  ;;  %v5316_v58 = vld [vmem:[#allocation3 + $0x262] sm:$0xff]  ;;  %v7555_v27 = vpack.c.bf16 %v5315_v25, %v5315_v25  ;;  %4733 = vst.msk [vmem:[#allocation3 + $0x270] sm:$0xff] %vm1402_vm0, %v4622_v53  ;;  %v10537_v11 = vld [vmem:[#allocation2 + $0x4c] sm:$0xf] }
 0x450   :  { %v7556_v2 = vpack.c.bf16 %v5316_v58, %v5316_v58  ;;  %v7283_v41 = vsel %vm1467_vm1, %v7219_v33, %v12044_v43  ;;  %v7284_v37 = vsel %vm1467_vm1, %v7220_v47, %v12045_v8  ;;  %v19533_v17 = vld [vmem:[#allocation71_spill] sm:$0xff]  ;;  %v10041_v3 = vor.u32 %v10537_v11, %v10038_v23  ;;  %v17699_v47 = vld [vmem:[#allocation2 + $0x6c] sm:$0xf0]  ;;  %v19535_v23 = vld [vmem:[#allocation18_spill] sm:$0xff] }
 0x451   :  { %7619 = vst.msk [vmem:[#allocation2 + $0x200] sm:$0xf] %vm2877_vm3, %v7555_v27  ;;  %v7347_v18 = vsel %vm1532_vm2, %v7283_v41, %v12049_v42  ;;  %v7348_v20 = vsel %vm1532_vm2, %v7284_v37, %v12050_v57  ;;  %v4222_v6 = vadd.f32 %v19533_v17, %v4053_v62  ;;  %v17695_v53 = vpack.i.bf16 %v5316_v58, %v5315_v25  ;;  %v19534_v33 = vld [vmem:[#allocation13_spill] sm:$0xff]  ;;  %v17716_v25 = vld [vmem:[#allocation2 + $0x64] sm:$0xf]  ;;  %v4870_v37 = vld [vmem:[#allocation3 + $0x259] sm:$0xff] }
 0x452   :  { %7620 = vst.msk [vmem:[#allocation2 + $0x20c] sm:$0xf] %vm2877_vm3, %v7556_v2  ;;  %v7411_v35 = vpack.c.bf16 %v7347_v18, %v7347_v18  ;;  %v7412_v46 = vpack.c.bf16 %v7348_v20, %v7348_v20  ;;  %12247 = vrot.lane.b32.xlu0 %v17621_v16, %s12642_s10  ;;  %v3887_v62 = vadd.f32 %v17423_v9, %v19534_v33  ;;  %v12005_v58 = vunpack.i.h.bf16 %v17488_v56  ;;  %v4871_v11 = vld [vmem:[#allocation3 + $0x261] sm:$0xff]  ;;  %v10156_v33 = vld [vmem:[#allocation2 + $0x138] sm:$0xf]  ;;  %v17743_v54 = vpop.f32.mrf.mxu0 }
 0x453   :  { %12257 = vrot.lane.b32.xlu2 %v17648_v59, %s12640_s27  ;;  %v4311_v8 = vmax.f32 %v4222_v6, 0.0  ;;  %v17705_v2 = vadd.f32 %v17423_v9, %v19535_v23  ;;  %v17708_v57 = vsel %vm1467_vm1, %v6138_v60, %v11620_v14  ;;  %v17719_v42 = vsel %vm1467_vm1, %v6137_v19, %v11619_v44  ;;  %v17723_v60 = vpop.f32.mrf.mxu3  ;;  %v5188_v18 = vld [vmem:[#allocation3 + $0x260] sm:$0xff]  ;;  %v4788_v44 = vld [vmem:[#allocation3 + $0x150] sm:$0xff]  ;;  %v4789_v23 = vld [vmem:[#allocation3 + $0x158] sm:$0xff] }
 0x454   :  { %v17697_v43 = vpop.permute.xlu0 %12032  ;;  %7475 = vst [vmem:[#allocation2 + $0x13c] sm:$0xf] %v7411_v35  ;;  %v12004_v27 = vunpack.i.l.bf16 %v17488_v56  ;;  %v12010_v20 = vunpack.i.h.bf16 %v17570_v24  ;;  %v12009_v17 = vunpack.i.l.bf16 %v17570_v24  ;;  %v12261_v19 = vpack.i.bf16 %v4871_v11, %v4870_v37  ;;  %v5045_v11 = vld [vmem:[#allocation3 + $0x171] sm:$0xff] }
 0x455   :  { %12267 = vrot.lane.b32.xlu1 %v17695_v53, %s12641_s22  ;;  %v17712_v16 = vpop.permute.xlu2 %12092  ;;  %8537 = vmatmul.bf16.gmra.mxu2 %v10041_v3  ;;  %7476 = vst [vmem:[#allocation2 + $0x148] sm:$0xf] %v7412_v46  ;;  %v4477_v14 = vrot.slane %v4311_v8, 7  ;;  %v4055_v41 = vpop.f32.mrf.mxu1  ;;  %v12060_v3 = vunpack.i.h.bf16 %v17665_v45  ;;  %v12035_v35 = vunpack.i.h.bf16 %v17697_v43  ;;  %v5187_v8 = vld [vmem:[#allocation3 + $0x258] sm:$0xff]  ;;  %v12034_v24 = vunpack.i.l.bf16 %v17697_v43 }
 0x456   :  { %v4056_v6 = vadd.f32 %v4055_v41, %v3887_v62  ;;  %v19536_v62 = vld [vmem:[#allocation53_spill] sm:$0xff]  ;;  %v17737_v38 = vpack.i.bf16 %v5188_v18, %v5187_v8  ;;  %v10157_v8 = vor.u32 %v10568_v40, %v10156_v33 }
 0x457   :  { %v17714_v59 = vpop.permute.xlu1 %12077  ;;  %v4478_v56 = vsel %vm4406_vm5, %v17670_v26, %v4477_v14  ;;  %v4654_v46 = vsel %vm4406_vm5, %v4477_v14, 0.0  ;;  %v6134_v26 = vsel %vm1402_vm0, %v4789_v23, %v12005_v58  ;;  %v6133_v14 = vsel %vm1402_vm0, %v4788_v44, %v12004_v27  ;;  %v4791_v18 = vld [vmem:[#allocation3 + $0x170] sm:$0xff]  ;;  %v4790_v44 = vld [vmem:[#allocation3 + $0x168] sm:$0xff] }
 0x458   :  { %4734 = vst.msk [vmem:[#allocation3 + $0x278] sm:$0xff] %vm1402_vm0, %v4478_v56  ;;  %v4225_v41 = vadd.f32 %v19536_v62, %v4056_v6  ;;  %v10260_v49 = vld [vmem:[#allocation2 + $0x200] sm:$0xf]  ;;  %v6198_v6 = vsel %vm1467_vm1, %v6134_v26, %v12010_v20  ;;  %v6197_v37 = vsel %vm1467_vm1, %v6133_v14, %v12009_v17  ;;  %v17752_v36 = vsel %vm1402_vm0, %v5045_v11, %v12060_v3 }
 0x459   :  { %4735 = vst.msk [vmem:[#allocation3 + $0x280] sm:$0x3] %vm4330_vm4, %v4654_v46  ;;  %v10593_v43 = vld [vmem:[#allocation2 + $0x208] sm:$0xf0]  ;;  %v12059_v27 = vunpack.i.l.bf16 %v17665_v45  ;;  %v6136_v46 = vsel %vm1402_vm0, %v4791_v18, %v12035_v35  ;;  %v6135_v17 = vsel %vm1402_vm0, %v4790_v44, %v12034_v24 }
 0x45a   :  { %v4312_v56 = vmax.f32 %v4225_v41, 0.0  ;;  %12272 = vrot.lane.b32.xlu0 %v17737_v38, %s12641_s22  ;;  %v10261_v58 = vor.u32 %v10593_v43, %v10260_v49  ;;  %v6200_v33 = vsel %vm1467_vm1, %v6136_v46, %v12040_v22 }
 0x45b   :  { %12262 = vrot.lane.b32.xlu2 %v12261_v19, %s12640_s27  ;;  %v17766_v18 = vpop.f32.mrf.mxu3 }
 0x45c   :  { %v12053_v20 = vpop.permute.xlu0 %12052  ;;  %v17757_v23 = vrot.slane %v4312_v56, 7 }
 0x45d   :  { %12277 = vrot.lane.b32.xlu1 %v12261_v19, %s12642_s10  ;;  %v12103_v62 = vpop.permute.xlu2 %12102  ;;  %v12055_v41 = vunpack.i.h.bf16 %v12053_v20  ;;  %v12054_v26 = vunpack.i.l.bf16 %v12053_v20  ;;  %v4057_v11 = vpop.f32.mrf.mxu1 }
 0x45e   :  { %10403 = vmatmul.msk.bf16.gmra.mxu0 %vm1402_vm0, %v10261_v58  ;;  %v12105_v3 = vunpack.i.h.bf16 %v12103_v62  ;;  %v12104_v14 = vunpack.i.l.bf16 %v12103_v62  ;;  %v4623_v40 = vsel %vm4406_vm5, 0.0, %v17757_v23  ;;  %v4058_v19 = vadd.f32 %v4057_v11, %v17705_v2 }
 0x45f   :  { %v12083_v49 = vpop.permute.xlu1 %12082  ;;  %v6261_v35 = vsel %vm1532_vm2, %v6197_v37, %v12054_v26  ;;  %8418 = vmatmul.bf16.gmra.mxu3 %v10157_v8  ;;  %v5317_v24 = vld [vmem:[#allocation3 + $0x272] sm:$0xff]  ;;  %4736 = vst.msk [vmem:[#allocation3 + $0x288] sm:$0xff] %vm1402_vm0, %v4623_v40  ;;  %v6262_v44 = vsel %vm1532_vm2, %v6198_v6, %v12055_v41  ;;  %v6199_v2 = vsel %vm1467_vm1, %v6135_v17, %v12039_v10  ;;  %v5044_v26 = vld [vmem:[#allocation3 + $0x169] sm:$0xff]  ;;  %v17786_v17 = vpop.f32.mrf.mxu0 }
 0x460   :  { %v12085_v45 = vunpack.i.h.bf16 %v12083_v49  ;;  %v12084_v43 = vunpack.i.l.bf16 %v12083_v49  ;;  %v6266_v56 = vsel %vm1532_vm2, %v17708_v57, %v12105_v3  ;;  %v6265_v58 = vsel %vm1532_vm2, %v17719_v42, %v12104_v14  ;;  %v5190_v37 = vld [vmem:[#allocation3 + $0x278] sm:$0xff]  ;;  %v19537_v3 = vld [vmem:[#allocation56_spill] sm:$0xff]  ;;  %v5189_v42 = vld [vmem:[#allocation3 + $0x270] sm:$0xff]  ;;  %19538 = vst [vmem:[#allocation16_spill] sm:$0xff] %v17786_v17 }
 0x461   :  { %v6325_v20 = vpack.c.bf16 %v6261_v35, %v6261_v35  ;;  %v5318_v62 = vld [vmem:[#allocation3 + $0x27a] sm:$0xff]  ;;  %v7557_v22 = vpack.c.bf16 %v5317_v24, %v5317_v24  ;;  %v6330_v46 = vpack.c.bf16 %v6266_v56, %v6266_v56  ;;  %v6329_v11 = vpack.c.bf16 %v6265_v58, %v6265_v58 }
 0x462   :  { %v6264_v8 = vsel %vm1532_vm2, %v6200_v33, %v12085_v45  ;;  %v7558_v49 = vpack.c.bf16 %v5318_v62, %v5318_v62  ;;  %v6263_v57 = vsel %vm1532_vm2, %v6199_v2, %v12084_v43  ;;  %v4227_v40 = vadd.f32 %v19537_v3, %v4058_v19  ;;  %12287 = vrot.lane.b32.xlu0 %v17695_v53, %s12640_s27  ;;  %v19539_v33 = vld [vmem:[#allocation28_spill] sm:$0xff] }
 0x463   :  { %6389 = vst [vmem:[#allocation2 + $0x150] sm:$0xf] %v6325_v20  ;;  %v7221_v6 = vsel %vm1402_vm0, %v5044_v26, %v12059_v27  ;;  %v6326_v41 = vpack.c.bf16 %v6262_v44, %v6262_v44  ;;  %12282 = vrot.lane.b32.xlu2 %v17737_v38, %s12642_s10  ;;  %v17784_v10 = vpack.i.bf16 %v5190_v37, %v5189_v42  ;;  %v12065_v14 = vunpack.i.h.bf16 %v17631_v48 }
 0x464   :  { %7621 = vst.msk [vmem:[#allocation2 + $0x218] sm:$0xf] %vm2877_vm3, %v7557_v22  ;;  %v12064_v45 = vunpack.i.l.bf16 %v17631_v48  ;;  %v6328_v27 = vpack.c.bf16 %v6264_v8, %v6264_v8  ;;  %v4313_v43 = vmax.f32 %v4227_v40, 0.0  ;;  %v12068_v35 = vpop.permute.xlu0 %12067  ;;  %v3892_v19 = vadd.f32 %v17423_v9, %v19539_v33  ;;  %v4872_v22 = vld [vmem:[#allocation3 + $0x271] sm:$0xff]  ;;  %v5047_v33 = vld [vmem:[#allocation3 + $0x189] sm:$0xff] }
 0x465   :  { %7622 = vst.msk [vmem:[#allocation2 + $0x224] sm:$0xf] %vm2877_vm3, %v7558_v49  ;;  %v6327_v38 = vpack.c.bf16 %v6263_v57, %v6263_v57  ;;  %12302 = vrot.lane.b32.xlu1 %v17784_v10, %s12641_s22  ;;  %v17795_v53 = vpop.permute.xlu2 %12117  ;;  %v12070_v56 = vunpack.i.h.bf16 %v12068_v35  ;;  %v12069_v58 = vunpack.i.l.bf16 %v12068_v35  ;;  %v19540_v48 = vor.u32 %v17716_v25, %v17699_v47  ;;  %v4060_v37 = vpop.f32.mrf.mxu1  ;;  %v19541_v57 = vld [vmem:[#allocation62_spill] sm:$0xff]  ;;  %v5046_v35 = vld [vmem:[#allocation3 + $0x181] sm:$0xff] }
 0x466   :  { %6394 = vst [vmem:[#allocation2 + $0x18c] sm:$0xf] %v6330_v46  ;;  %v4480_v44 = vrot.slane %v4313_v43, 7  ;;  %v7285_v20 = vsel %vm1467_vm1, %v7221_v6, %v12064_v45  ;;  %v7286_v9 = vsel %vm1467_vm1, %v17752_v36, %v12065_v14  ;;  %v4873_v46 = vld [vmem:[#allocation3 + $0x279] sm:$0xff]  ;;  %v4061_v26 = vadd.f32 %v4060_v37, %v3892_v19 }
 0x467   :  { %8542 = vmatmul.bf16.gmra.mxu2 %v19540_v48  ;;  %6393 = vst [vmem:[#allocation2 + $0x180] sm:$0xf] %v6329_v11  ;;  %v7349_v2 = vsel %vm1532_vm2, %v7285_v20, %v12069_v58  ;;  %v7350_v8 = vsel %vm1532_vm2, %v7286_v9, %v12070_v56  ;;  %v12296_v3 = vpack.i.bf16 %v5318_v62, %v5317_v24  ;;  %v12090_v42 = vunpack.i.h.bf16 %v17663_v5  ;;  %v17827_v48 = vld [vmem:[%s18980_s3] ss:$0 sm:$0xff]  ;;  %v17831_v20 = vpop.f32.mrf.mxu0 }
 0x468   :  { %6390 = vst [vmem:[#allocation2 + $0x15c] sm:$0xf] %v6326_v41  ;;  %v4481_v47 = vsel %vm4406_vm5, %v17757_v23, %v4480_v44  ;;  %v4655_v25 = vsel %vm4406_vm5, %v4480_v44, 0.0  ;;  %v7413_v49 = vpack.c.bf16 %v7349_v2, %v7349_v2  ;;  %v7414_v11 = vpack.c.bf16 %v7350_v8, %v7350_v8  ;;  %v17811_v41 = vpop.f32.mrf.mxu3  ;;  %v17836_v2 = vpop.permute.xlu1 %12097 }
 0x469   :  { %6392 = vst [vmem:[#allocation2 + $0x174] sm:$0xf] %v6328_v27  ;;  %v4230_v36 = vadd.f32 %v19541_v57, %v4061_v26  ;;  %v12291_v40 = vpack.i.bf16 %v4873_v46, %v4872_v22  ;;  %v12089_v6 = vunpack.i.l.bf16 %v17663_v5  ;;  %v12080_v24 = vunpack.i.h.bf16 %v17714_v59 }
 0x46a   :  { %6391 = vst [vmem:[#allocation2 + $0x168] sm:$0xf] %v6327_v38  ;;  %v12079_v62 = vunpack.i.l.bf16 %v17714_v59  ;;  %v10168_v43 = vld [vmem:[#allocation2 + $0x150] sm:$0xf]  ;;  %v19542_v59 = vld [vmem:[#allocation55_spill] sm:$0xff]  ;;  %v7224_v9 = vsel %vm1402_vm0, %v5047_v33, %v12090_v42  ;;  %v12120_v17 = vunpack.i.h.bf16 %v17795_v53 }
 0x46b   :  { %4737 = vst.msk [vmem:[#allocation3 + $0x290] sm:$0xff] %vm1402_vm0, %v4481_v47  ;;  %v10272_v14 = vld [vmem:[#allocation2 + $0x218] sm:$0xf]  ;;  %v4314_v23 = vmax.f32 %v4230_v36, 0.0  ;;  %12297 = vrot.lane.b32.xlu2 %v12296_v3, %s12641_s22  ;;  %12292 = vrot.lane.b32.xlu0 %v12291_v40, %s12640_s27  ;;  %v3894_v44 = vadd.f32 %v17827_v48, %v19542_v59  ;;  %v7223_v37 = vsel %vm1402_vm0, %v5046_v35, %v12089_v6  ;;  %v10062_v36 = vld [vmem:[#allocation2 + $0x84] sm:$0xf0] }
 0x46c   :  { %4738 = vst.msk [vmem:[#allocation3 + $0x298] sm:$0x3] %vm4330_vm4, %v4655_v25  ;;  %v10596_v45 = vld [vmem:[#allocation2 + $0x220] sm:$0xf0]  ;;  %v12073_v5 = vpop.permute.xlu0 %12072  ;;  %v10543_v33 = vld [vmem:[#allocation2 + $0x7c] sm:$0xf] }
 0x46d   :  { %7477 = vst [vmem:[#allocation2 + $0x154] sm:$0xf] %v7413_v49  ;;  %v10273_v27 = vor.u32 %v10596_v45, %v10272_v14  ;;  %v17819_v19 = vrot.slane %v4314_v23, 7  ;;  %12317 = vrot.lane.b32.xlu1 %v12296_v3, %s12640_s27  ;;  %v17822_v38 = vpop.permute.xlu2 %12127  ;;  %v12075_v56 = vunpack.i.h.bf16 %v12073_v5  ;;  %v12074_v58 = vunpack.i.l.bf16 %v12073_v5  ;;  %v4062_v46 = vpop.f32.mrf.mxu1 }
 0x46e   :  { %7478 = vst [vmem:[#allocation2 + $0x160] sm:$0xf] %v7414_v11  ;;  %v4063_v57 = vadd.f32 %v4062_v46, %v3894_v44  ;;  %v19545_v44 = vld [vmem:[#allocation43_spill] sm:$0xff]  ;;  %v5048_v46 = vld [vmem:[#allocation3 + $0x1c9] sm:$0xff] }
 0x46f   :  { %19543 = vst [vmem:[#allocation42_spill] sm:$0xff] %v17831_v20  ;;  %10404 = vmatmul.msk.bf16.gmra.mxu0 %vm1402_vm0, %v10273_v27  ;;  %v10571_v22 = vld [vmem:[#allocation2 + $0x158] sm:$0xf0]  ;;  %v4624_v8 = vsel %vm4406_vm5, 0.0, %v17819_v19  ;;  %v7288_v26 = vsel %vm1467_vm1, %v7224_v9, %v12075_v56  ;;  %v7287_v47 = vsel %vm1467_vm1, %v7223_v37, %v12074_v58  ;;  %v3897_v9 = vadd.f32 %v17827_v48, %v19545_v44 }
 0x470   :  { %v10169_v25 = vor.u32 %v10571_v22, %v10168_v43  ;;  %4739 = vst.msk [vmem:[#allocation3 + $0x2a0] sm:$0xff] %vm1402_vm0, %v4624_v8  ;;  %v7351_v49 = vsel %vm1532_vm2, %v7287_v47, %v12079_v62  ;;  %v7352_v11 = vsel %vm1532_vm2, %v7288_v26, %v12080_v24  ;;  %v19544_v27 = vld [vmem:[#allocation74_spill] sm:$0xff]  ;;  %v10065_v62 = vor.u32 %v10543_v33, %v10062_v36  ;;  %v17852_v56 = vpop.f32.mrf.mxu3  ;;  %v19547_v33 = vld [vmem:[#allocation51_spill] sm:$0xff] }
 0x471   :  { %v7415_v42 = vpack.c.bf16 %v7351_v49, %v7351_v49  ;;  %v7416_v45 = vpack.c.bf16 %v7352_v11, %v7352_v11  ;;  %v4232_v5 = vadd.f32 %v19544_v27, %v4063_v57  ;;  %v5049_v8 = vld [vmem:[#allocation3 + $0x1d1] sm:$0xff] }
 0x472   :  { %v5319_v3 = vld [vmem:[#allocation3 + $0x28a] sm:$0xff]  ;;  %8423 = vmatmul.bf16.gmra.mxu3 %v10169_v25  ;;  %v12130_v25 = vunpack.i.h.bf16 %v17822_v38 }
 0x473   :  { %v4874_v6 = vld [vmem:[#allocation3 + $0x289] sm:$0xff]  ;;  %v5320_v14 = vld [vmem:[#allocation3 + $0x292] sm:$0xff]  ;;  %v7559_v23 = vpack.c.bf16 %v5319_v3, %v5319_v3  ;;  %7479 = vst [vmem:[#allocation2 + $0x16c] sm:$0xf] %v7415_v42  ;;  %12307 = vrot.lane.b32.xlu2 %v12291_v40, %s12642_s10  ;;  %12312 = vrot.lane.b32.xlu0 %v17784_v10, %s12642_s10  ;;  %v4315_v58 = vmax.f32 %v4232_v5, 0.0  ;;  %v17864_v42 = vpop.f32.mrf.mxu0 }
 0x474   :  { %v4875_v35 = vld [vmem:[#allocation3 + $0x291] sm:$0xff]  ;;  %v7560_v43 = vpack.c.bf16 %v5320_v14, %v5320_v14  ;;  %v12108_v59 = vpop.permute.xlu0 %12107  ;;  %7480 = vst [vmem:[#allocation2 + $0x178] sm:$0xf] %v7416_v45  ;;  %v5191_v5 = vld [vmem:[#allocation3 + $0x288] sm:$0xff] }
 0x475   :  { %v17849_v24 = vpack.i.bf16 %v4875_v35, %v4874_v6  ;;  %7623 = vst.msk [vmem:[#allocation2 + $0x230] sm:$0xf] %vm2877_vm3, %v7559_v23  ;;  %v17859_v40 = vpop.permute.xlu2 %12152  ;;  %v12110_v10 = vunpack.i.h.bf16 %v12108_v59  ;;  %v12109_v37 = vunpack.i.l.bf16 %v12108_v59  ;;  %v4483_v22 = vrot.slane %v4315_v58, 7  ;;  %v4065_v26 = vpop.f32.mrf.mxu1  ;;  %v5192_v47 = vld [vmem:[#allocation3 + $0x290] sm:$0xff] }
 0x476   :  { %7624 = vst.msk [vmem:[#allocation2 + $0x23c] sm:$0xf] %vm2877_vm3, %v7560_v43  ;;  %v4066_v36 = vadd.f32 %v4065_v26, %v3897_v9  ;;  %v12129_v35 = vunpack.i.l.bf16 %v17822_v38  ;;  %v12326_v58 = vpack.i.bf16 %v5320_v14, %v5319_v3  ;;  %v10180_v14 = vld [vmem:[#allocation2 + $0x168] sm:$0xf]  ;;  %v19548_v26 = vld [vmem:[#allocation46_spill] sm:$0xff] }
 0x477   :  { %12322 = vrot.lane.b32.xlu1 %v17849_v24, %s12640_s27  ;;  %8547 = vmatmul.bf16.gmra.mxu2 %v10065_v62  ;;  %v7226_v49 = vsel %vm1402_vm0, %v5049_v8, %v12110_v10  ;;  %v7225_v11 = vsel %vm1402_vm0, %v5048_v46, %v12109_v37  ;;  %v12123_v57 = vpop.permute.xlu1 %12122  ;;  %19546 = vst [vmem:[#allocation88_spill] sm:$0xff] %v17864_v42  ;;  %v4656_v23 = vsel %vm4406_vm5, %v4483_v22, 0.0  ;;  %v10574_v8 = vld [vmem:[#allocation2 + $0x170] sm:$0xf0]  ;;  %v12119_v42 = vunpack.i.l.bf16 %v17795_v53 }
 0x478   :  { %v4484_v6 = vsel %vm4406_vm5, %v17819_v19, %v4483_v22  ;;  %v12125_v45 = vunpack.i.h.bf16 %v12123_v57  ;;  %v12124_v27 = vunpack.i.l.bf16 %v12123_v57  ;;  %v4235_v43 = vadd.f32 %v19547_v33, %v4066_v36  ;;  %4741 = vst.msk [vmem:[#allocation3 + $0x2b0] sm:$0x3] %vm4330_vm4, %v4656_v23  ;;  %v17886_v57 = vpop.f32.mrf.mxu3 }
 0x479   :  { %4740 = vst.msk [vmem:[#allocation3 + $0x2a8] sm:$0xff] %vm1402_vm0, %v4484_v6  ;;  %v12331_v62 = vpack.i.bf16 %v5192_v47, %v5191_v5  ;;  %v3899_v47 = vadd.f32 %v17827_v48, %v19548_v26  ;;  %v12095_v5 = vunpack.i.h.bf16 %v17712_v16 }
 0x47a   :  { %v7290_v59 = vsel %vm1467_vm1, %v7226_v49, %v12125_v45  ;;  %v7289_v44 = vsel %vm1467_vm1, %v7225_v11, %v12124_v27  ;;  %v4316_v10 = vmax.f32 %v4235_v43, 0.0  ;;  %v10181_v45 = vor.u32 %v10574_v8, %v10180_v14  ;;  %v10074_v43 = vld [vmem:[#allocation2 + $0x9c] sm:$0xf0] }
 0x47b   :  { %v7354_v19 = vsel %vm1532_vm2, %v7290_v59, %v12130_v25  ;;  %v7353_v9 = vsel %vm1532_vm2, %v7289_v44, %v12129_v35  ;;  %12332 = vrot.lane.b32.xlu2 %v12331_v62, %s12641_s22  ;;  %12327 = vrot.lane.b32.xlu0 %v12326_v58, %s12641_s22  ;;  %v12094_v35 = vunpack.i.l.bf16 %v17712_v16  ;;  %v4794_v16 = vld [vmem:[#allocation3 + $0x1c8] sm:$0xff] }
 0x47c   :  { %v10284_v38 = vld [vmem:[#allocation2 + $0x230] sm:$0xf]  ;;  %v7418_v37 = vpack.c.bf16 %v7354_v19, %v7354_v19  ;;  %v7417_v22 = vpack.c.bf16 %v7353_v9, %v7353_v9  ;;  %v17879_v3 = vpop.permute.xlu0 %12112  ;;  %v4485_v49 = vrot.slane %v4316_v10, 7  ;;  %v17896_v19 = vpop.f32.mrf.mxu0  ;;  %v12100_v9 = vunpack.i.h.bf16 %v17836_v2 }
 0x47d   :  { %v10599_v46 = vld [vmem:[#allocation2 + $0x238] sm:$0xf0]  ;;  %v17884_v11 = vpop.permute.xlu2 %12167  ;;  %v4067_v36 = vpop.f32.mrf.mxu1  ;;  %19549 = vst [vmem:[#allocation89_spill] sm:$0xff] %v17896_v19  ;;  %v12099_v10 = vunpack.i.l.bf16 %v17836_v2  ;;  %v6139_v26 = vsel %vm1402_vm0, %v4794_v16, %v12094_v35  ;;  %v10577_v19 = vld [vmem:[#allocation2 + $0x188] sm:$0xf0] }
 0x47e   :  { %v10285_v25 = vor.u32 %v10599_v46, %v10284_v38  ;;  %7482 = vst [vmem:[#allocation2 + $0x190] sm:$0xf] %v7418_v37  ;;  %v4625_v6 = vsel %vm4406_vm5, 0.0, %v4485_v49  ;;  %v4068_v27 = vadd.f32 %v4067_v36, %v3899_v47  ;;  %v4795_v46 = vld [vmem:[#allocation3 + $0x1d0] sm:$0xff]  ;;  %v12114_v47 = vunpack.i.l.bf16 %v17879_v3 }
 0x47f   :  { %12342 = vrot.lane.b32.xlu1 %v12331_v62, %s12642_s10  ;;  %7481 = vst [vmem:[#allocation2 + $0x184] sm:$0xf] %v7417_v22  ;;  %v17890_v23 = vpop.permute.xlu1 %12137  ;;  %v10546_v22 = vld [vmem:[#allocation2 + $0x94] sm:$0xf]  ;;  %v6140_v8 = vsel %vm1402_vm0, %v4795_v46, %v12095_v5  ;;  %v6203_v35 = vsel %vm1467_vm1, %v6139_v26, %v12099_v10 }
 0x480   :  { %10405 = vmatmul.msk.bf16.gmra.mxu0 %vm1402_vm0, %v10285_v25  ;;  %v5321_v33 = vld [vmem:[#allocation3 + $0x2a2] sm:$0xff]  ;;  %4742 = vst.msk [vmem:[#allocation3 + $0x2b8] sm:$0xff] %vm1402_vm0, %v4625_v6  ;;  %v5322_v62 = vld [vmem:[#allocation3 + $0x2aa] sm:$0xff]  ;;  %v4237_v44 = vadd.f32 %v16855_v29, %v4068_v27  ;;  %v10077_v29 = vor.u32 %v10546_v22, %v10074_v43  ;;  %v6204_v5 = vsel %vm1467_vm1, %v6140_v8, %v12100_v9 }
 0x481   :  { %v7561_v59 = vpack.c.bf16 %v5321_v33, %v5321_v33  ;;  %v7562_v38 = vpack.c.bf16 %v5322_v62, %v5322_v62  ;;  %v17900_v37 = vpack.i.bf16 %v5322_v62, %v5321_v33  ;;  %v12115_v33 = vunpack.i.h.bf16 %v17879_v3  ;;  %v4876_v62 = vld [vmem:[#allocation3 + $0x2a1] sm:$0xff]  ;;  %v17929_v3 = vpop.f32.mrf.mxu3 }
 0x482   :  { %8428 = vmatmul.bf16.gmra.mxu3 %v10181_v45  ;;  %v4317_v14 = vmax.f32 %v4237_v44, 0.0  ;;  %v19550_v45 = vld [vmem:[#allocation47_spill] sm:$0xff]  ;;  %v5194_v44 = vld [vmem:[#allocation3 + $0x2a8] sm:$0xff] }
 0x483   :  { %7625 = vst.msk [vmem:[#allocation2 + $0x248] sm:$0xf] %vm2877_vm3, %v7561_v59  ;;  %12347 = vrot.lane.b32.xlu2 %v12326_v58, %s12640_s27  ;;  %12337 = vrot.lane.b32.xlu0 %v17849_v24, %s12642_s10  ;;  %v17914_v24 = vld [vmem:[#allocation2 + $0xb4] sm:$0xf0]  ;;  %v3902_v27 = vadd.f32 %v17827_v48, %v19550_v45  ;;  %v4877_v59 = vld [vmem:[#allocation3 + $0x2a9] sm:$0xff]  ;;  %v5193_v45 = vld [vmem:[#allocation3 + $0x2a0] sm:$0xff] }
 0x484   :  { %7626 = vst.msk [vmem:[#allocation2 + $0x254] sm:$0xf] %vm2877_vm3, %v7562_v38  ;;  %v12133_v2 = vpop.permute.xlu0 %12132  ;;  %v4486_v25 = vrot.slane %v4317_v14, 7  ;;  %v4796_v38 = vld [vmem:[#allocation3 + $0x1e0] sm:$0xff]  ;;  %v19551_v9 = vld [vmem:[#allocation48_spill] sm:$0xff] }
 0x485   :  { %v17912_v36 = vpop.permute.xlu2 %12172  ;;  %v12135_v58 = vunpack.i.h.bf16 %v12133_v2  ;;  %v12134_v6 = vunpack.i.l.bf16 %v12133_v2  ;;  %v4070_v43 = vpop.f32.mrf.mxu1  ;;  %v17925_v2 = vld [vmem:[#allocation2 + $0xac] sm:$0xf]  ;;  %v3904_v10 = vadd.f32 %v17827_v48, %v19551_v9  ;;  %v17936_v9 = vpack.i.bf16 %v5194_v44, %v5193_v45 }
 0x486   :  { %v4487_v22 = vsel %vm4406_vm5, %v4485_v49, %v4486_v25  ;;  %v4657_v16 = vsel %vm4406_vm5, %v4486_v25, 0.0  ;;  %v10192_v49 = vld [vmem:[#allocation2 + $0x180] sm:$0xf] }
 0x487   :  { %12357 = vrot.lane.b32.xlu1 %v17900_v37, %s12641_s22  ;;  %8552 = vmatmul.bf16.gmra.mxu2 %v10077_v29  ;;  %v6267_v46 = vsel %vm1532_vm2, %v6203_v35, %v12134_v6  ;;  %v6268_v14 = vsel %vm1532_vm2, %v6204_v5, %v12135_v58  ;;  %v12143_v29 = vpop.permute.xlu1 %12142  ;;  %4743 = vst.msk [vmem:[#allocation3 + $0x2c0] sm:$0xff] %vm1402_vm0, %v4487_v22  ;;  %v4797_v6 = vld [vmem:[#allocation3 + $0x1e8] sm:$0xff] }
 0x488   :  { %v6331_v8 = vpack.c.bf16 %v6267_v46, %v6267_v46  ;;  %v6332_v26 = vpack.c.bf16 %v6268_v14, %v6268_v14  ;;  %v6141_v58 = vsel %vm1402_vm0, %v4796_v38, %v12114_v47  ;;  %4744 = vst.msk [vmem:[#allocation3 + $0x2c8] sm:$0x3] %vm4330_vm4, %v4657_v16  ;;  %v4071_v5 = vadd.f32 %v4070_v43, %v3902_v27  ;;  %v17945_v43 = vpop.f32.mrf.mxu0  ;;  %v4798_v38 = vld [vmem:[#allocation3 + $0x1f8] sm:$0xff]  ;;  %v4799_v16 = vld [vmem:[#allocation3 + $0x200] sm:$0xff] }
 0x489   :  { %v12351_v35 = vpack.i.bf16 %v4877_v59, %v4876_v62  ;;  %v6142_v22 = vsel %vm1402_vm0, %v4797_v6, %v12115_v33  ;;  %v12145_v46 = vunpack.i.h.bf16 %v12143_v29  ;;  %v12144_v14 = vunpack.i.l.bf16 %v12143_v29 }
 0x48a   :  { %6395 = vst [vmem:[#allocation2 + $0x198] sm:$0xf] %v6331_v8  ;;  %v10296_v20 = vld [vmem:[#allocation2 + $0x248] sm:$0xf]  ;;  %v4240_v25 = vadd.f32 %v16903_v4, %v4071_v5  ;;  %v10193_v27 = vor.u32 %v10577_v19, %v10192_v49  ;;  %v12140_v33 = vunpack.i.h.bf16 %v17890_v23  ;;  %v12139_v62 = vunpack.i.l.bf16 %v17890_v23 }
 0x48b   :  { %6396 = vst [vmem:[#allocation2 + $0x1a4] sm:$0xf] %v6332_v26  ;;  %12352 = vrot.lane.b32.xlu2 %v12351_v35, %s12640_s27  ;;  %12362 = vrot.lane.b32.xlu0 %v17936_v9, %s12641_s22  ;;  %v10602_v47 = vld [vmem:[#allocation2 + $0x250] sm:$0xf0]  ;;  %v6205_v53 = vsel %vm1467_vm1, %v6141_v58, %v12119_v42  ;;  %v6206_v19 = vsel %vm1467_vm1, %v6142_v22, %v12120_v17 }
 0x48c   :  { %v10297_v59 = vor.u32 %v10602_v47, %v10296_v20  ;;  %v12148_v44 = vpop.permute.xlu0 %12147  ;;  %v4318_v4 = vmax.f32 %v4240_v25, 0.0  ;;  %v6144_v45 = vsel %vm1402_vm0, %v4799_v16, %v12145_v46  ;;  %v6143_v49 = vsel %vm1402_vm0, %v4798_v38, %v12144_v14 }
 0x48d   :  { %v12193_v29 = vpop.permute.xlu2 %12192  ;;  %v12150_v8 = vunpack.i.h.bf16 %v12148_v44  ;;  %v12149_v26 = vunpack.i.l.bf16 %v12148_v44  ;;  %v4072_v20 = vpop.f32.mrf.mxu1 }
 0x48e   :  { %v12195_v6 = vunpack.i.h.bf16 %v12193_v29  ;;  %v12194_v23 = vunpack.i.l.bf16 %v12193_v29  ;;  %v17954_v5 = vld [vmem:[#allocation3 + $0x2ba] sm:$0xff]  ;;  %v4488_v42 = vrot.slane %v4318_v4, 7  ;;  %v4073_v47 = vadd.f32 %v4072_v20, %v3904_v10 }
 0x48f   :  { %12367 = vrot.lane.b32.xlu1 %v12351_v35, %s12642_s10  ;;  %v6207_v25 = vsel %vm1467_vm1, %v6143_v49, %v12149_v26  ;;  %v6208_v58 = vsel %vm1467_vm1, %v6144_v45, %v12150_v8  ;;  %v12163_v35 = vpop.permute.xlu1 %12162  ;;  %v5196_v44 = vld [vmem:[#allocation3 + $0x2c0] sm:$0xff]  ;;  %v7563_v22 = vpack.c.bf16 %v17954_v5, %v17954_v5  ;;  %v5195_v26 = vld [vmem:[#allocation3 + $0x2b8] sm:$0xff]  ;;  %v17964_v8 = vpop.f32.mrf.mxu3  ;;  %v5051_v45 = vld [vmem:[#allocation3 + $0x1e9] sm:$0xff] }
 0x490   :  { %10406 = vmatmul.msk.bf16.gmra.mxu0 %vm1402_vm0, %v10297_v59  ;;  %v5324_v17 = vld [vmem:[#allocation3 + $0x2c2] sm:$0xff]  ;;  %v6271_v46 = vsel %vm1532_vm2, %v6207_v25, %v12194_v23  ;;  %v6272_v14 = vsel %vm1532_vm2, %v6208_v58, %v12195_v6  ;;  %v12165_v38 = vunpack.i.h.bf16 %v12163_v35  ;;  %v4626_v4 = vsel %vm4406_vm5, 0.0, %v4488_v42 }
 0x491   :  { %v7564_v16 = vpack.c.bf16 %v5324_v17, %v5324_v17  ;;  %v6335_v59 = vpack.c.bf16 %v6271_v46, %v6271_v46  ;;  %v6336_v29 = vpack.c.bf16 %v6272_v14, %v6272_v14  ;;  %v5050_v10 = vld [vmem:[#allocation3 + $0x1e1] sm:$0xff]  ;;  %7627 = vst.msk [vmem:[#allocation2 + $0x260] sm:$0xf] %vm2877_vm3, %v7563_v22  ;;  %v12164_v20 = vunpack.i.l.bf16 %v12163_v35  ;;  %v17991_v14 = vpop.f32.mrf.mxu0 }
 0x492   :  { %8433 = vmatmul.bf16.gmra.mxu3 %v10193_v27  ;;  %v6270_v49 = vsel %vm1532_vm2, %v6206_v19, %v12165_v38  ;;  %v4242_v23 = vadd.f32 %v16948_v50, %v4073_v47  ;;  %v17969_v6 = vpack.i.bf16 %v5196_v44, %v5195_v26  ;;  %v7228_v25 = vsel %vm1402_vm0, %v5051_v45, %v12140_v33  ;;  %v4879_v26 = vld [vmem:[#allocation3 + $0x2c1] sm:$0xff] }
 0x493   :  { %v7227_v58 = vsel %vm1402_vm0, %v5050_v10, %v12139_v62  ;;  %7628 = vst.msk [vmem:[#allocation2 + $0x26c] sm:$0xf] %vm2877_vm3, %v7564_v16  ;;  %v6334_v27 = vpack.c.bf16 %v6270_v49, %v6270_v49  ;;  %12372 = vrot.lane.b32.xlu2 %v17936_v9, %s12642_s10  ;;  %12377 = vrot.lane.b32.xlu0 %v17900_v37, %s12640_s27  ;;  %v12155_v19 = vunpack.i.h.bf16 %v17859_v40  ;;  %v12154_v35 = vunpack.i.l.bf16 %v17859_v40  ;;  %v19552_v62 = vld [vmem:[#allocation45_spill] sm:$0xff] }
 0x494   :  { %4745 = vst.msk [vmem:[#allocation3 + $0x2d0] sm:$0xff] %vm1402_vm0, %v4626_v4  ;;  %v6269_v50 = vsel %vm1532_vm2, %v6205_v53, %v12164_v20  ;;  %v4319_v33 = vmax.f32 %v4242_v23, 0.0  ;;  %v12158_v47 = vpop.permute.xlu0 %12157  ;;  %v3907_v44 = vadd.f32 %v17827_v48, %v19552_v62  ;;  %v19553_v40 = vor.u32 %v17925_v2, %v17914_v24  ;;  %v10580_v62 = vld [vmem:[#allocation2 + $0x1a0] sm:$0xf0] }
 0x495   :  { %6399 = vst [vmem:[#allocation2 + $0x1c8] sm:$0xf] %v6335_v59  ;;  %v6333_v22 = vpack.c.bf16 %v6269_v50, %v6269_v50  ;;  %v17986_v9 = vpop.permute.xlu2 %12207  ;;  %v12160_v37 = vunpack.i.h.bf16 %v12158_v47  ;;  %v12159_v46 = vunpack.i.l.bf16 %v12158_v47  ;;  %v7291_v38 = vsel %vm1467_vm1, %v7227_v58, %v12154_v35  ;;  %v4075_v4 = vpop.f32.mrf.mxu1  ;;  %v4878_v59 = vld [vmem:[#allocation3 + $0x2b9] sm:$0xff] }
 0x496   :  { %19554 = vst [vmem:[#allocation50_spill] sm:$0xff] %v17991_v14  ;;  %v4489_v53 = vrot.slane %v4319_v33, 7  ;;  %v7292_v16 = vsel %vm1467_vm1, %v7228_v25, %v12155_v19  ;;  %v4076_v24 = vadd.f32 %v4075_v4, %v3907_v44  ;;  %v12386_v58 = vpack.i.bf16 %v5324_v17, %v17954_v5  ;;  %v19555_v44 = vld [vmem:[#allocation9_spill] sm:$0xff] }
 0x497   :  { %12392 = vrot.lane.b32.xlu1 %v17969_v6, %s12641_s22  ;;  %8557 = vmatmul.bf16.gmra.mxu2 %v19553_v40  ;;  %6400 = vst [vmem:[#allocation2 + $0x1d4] sm:$0xf] %v6336_v29  ;;  %v7355_v10 = vsel %vm1532_vm2, %v7291_v38, %v12159_v46  ;;  %v7356_v45 = vsel %vm1532_vm2, %v7292_v16, %v12160_v37  ;;  %v17997_v49 = vpop.permute.xlu1 %12177  ;;  %v12170_v35 = vunpack.i.h.bf16 %v17884_v11  ;;  %v12169_v50 = vunpack.i.l.bf16 %v17884_v11  ;;  %v5052_v11 = vld [vmem:[#allocation3 + $0x1f9] sm:$0xff]  ;;  %v5053_v37 = vld [vmem:[#allocation3 + $0x201] sm:$0xff] }
 0x498   :  { %6398 = vst [vmem:[#allocation2 + $0x1bc] sm:$0xf] %v6334_v27  ;;  %v4490_v2 = vsel %vm4406_vm5, %v4488_v42, %v4489_v53  ;;  %v4658_v29 = vsel %vm4406_vm5, %v4489_v53, 0.0  ;;  %v7419_v20 = vpack.c.bf16 %v7355_v10, %v7355_v10  ;;  %v7420_v23 = vpack.c.bf16 %v7356_v45, %v7356_v45  ;;  %v10308_v19 = vld [vmem:[#allocation2 + $0x260] sm:$0xf] }
 0x499   :  { %6397 = vst [vmem:[#allocation2 + $0x1b0] sm:$0xf] %v6333_v22  ;;  %v4245_v25 = vadd.f32 %v16983_v28, %v4076_v24  ;;  %v12381_v27 = vpack.i.bf16 %v4879_v26, %v4878_v59  ;;  %v10204_v42 = vld [vmem:[#allocation2 + $0x198] sm:$0xf]  ;;  %v18009_v28 = vpop.f32.mrf.mxu3  ;;  %v3909_v22 = vadd.f32 %v17827_v48, %v19555_v44  ;;  %v7230_v16 = vsel %vm1402_vm0, %v5053_v37, %v12170_v35  ;;  %v10098_v10 = vld [vmem:[#allocation2 + $0xcc] sm:$0xf0] }
 0x49a   :  { %4746 = vst.msk [vmem:[#allocation3 + $0x2d8] sm:$0xff] %vm1402_vm0, %v4490_v2  ;;  %v10605_v33 = vld [vmem:[#allocation2 + $0x268] sm:$0xf0]  ;;  %v7229_v4 = vsel %vm1402_vm0, %v5052_v11, %v12169_v50  ;;  %v10205_v59 = vor.u32 %v10580_v62, %v10204_v42  ;;  %v10552_v50 = vld [vmem:[#allocation2 + $0xc4] sm:$0xf] }
 0x49b   :  { %4747 = vst.msk [vmem:[#allocation3 + $0x2e0] sm:$0x3] %vm4330_vm4, %v4658_v29  ;;  %v4320_v47 = vmax.f32 %v4245_v25, 0.0  ;;  %12387 = vrot.lane.b32.xlu2 %v12386_v58, %s12641_s22  ;;  %12382 = vrot.lane.b32.xlu0 %v12381_v27, %s12640_s27  ;;  %v10309_v5 = vor.u32 %v10605_v33, %v10308_v19 }
 0x49c   :  { %7483 = vst [vmem:[#allocation2 + $0x19c] sm:$0xf] %v7419_v20  ;;  %v12183_v17 = vpop.permute.xlu0 %12182 }
 0x49d   :  { %7484 = vst [vmem:[#allocation2 + $0x1a8] sm:$0xf] %v7420_v23  ;;  %v4491_v46 = vrot.slane %v4320_v47, 7  ;;  %v18014_v40 = vpop.permute.xlu2 %12217  ;;  %v12185_v53 = vunpack.i.h.bf16 %v12183_v17  ;;  %v12184_v38 = vunpack.i.l.bf16 %v12183_v17  ;;  %v4077_v26 = vpop.f32.mrf.mxu1 }
 0x49e   :  { %v4078_v20 = vadd.f32 %v4077_v26, %v3909_v22  ;;  %v18022_v23 = vpop.f32.mrf.mxu0 }
 0x49f   :  { %12407 = vrot.lane.b32.xlu1 %v12386_v58, %s12640_s27  ;;  %v4627_v45 = vsel %vm4406_vm5, 0.0, %v4491_v46  ;;  %v7294_v24 = vsel %vm1467_vm1, %v7230_v16, %v12185_v53  ;;  %v7293_v2 = vsel %vm1467_vm1, %v7229_v4, %v12184_v38  ;;  %v12188_v29 = vpop.permute.xlu1 %12187  ;;  %19556 = vst [vmem:[#allocation84_spill] sm:$0xff] %v18022_v23 }
 0x4a0   :  { %10407 = vmatmul.msk.bf16.gmra.mxu0 %vm1402_vm0, %v10309_v5  ;;  %4748 = vst.msk [vmem:[#allocation3 + $0x2e8] sm:$0xff] %vm1402_vm0, %v4627_v45  ;;  %v12190_v58 = vunpack.i.h.bf16 %v12188_v29  ;;  %v12189_v19 = vunpack.i.l.bf16 %v12188_v29  ;;  %v4247_v47 = vadd.f32 %v17025_v21, %v4078_v20  ;;  %v10101_v5 = vor.u32 %v10552_v50, %v10098_v10  ;;  %v19557_v10 = vld [vmem:[#allocation12_spill] sm:$0xff] }
 0x4a1   :  { %v5325_v25 = vld [vmem:[#allocation3 + $0x2d2] sm:$0xff]  ;;  %v3912_v45 = vadd.f32 %v17827_v48, %v19557_v10 }
 0x4a2   :  { %v4880_v35 = vld [vmem:[#allocation3 + $0x2d1] sm:$0xff]  ;;  %v5326_v33 = vld [vmem:[#allocation3 + $0x2da] sm:$0xff]  ;;  %v7565_v42 = vpack.c.bf16 %v5325_v25, %v5325_v25  ;;  %8438 = vmatmul.bf16.gmra.mxu3 %v10205_v59  ;;  %v7358_v44 = vsel %vm1532_vm2, %v7294_v24, %v12190_v58  ;;  %v7357_v22 = vsel %vm1532_vm2, %v7293_v2, %v12189_v19  ;;  %v4321_v38 = vmax.f32 %v4247_v47, 0.0 }
 0x4a3   :  { %v4881_v62 = vld [vmem:[#allocation3 + $0x2d9] sm:$0xff]  ;;  %v7566_v17 = vpack.c.bf16 %v5326_v33, %v5326_v33  ;;  %v7422_v37 = vpack.c.bf16 %v7358_v44, %v7358_v44  ;;  %v7421_v53 = vpack.c.bf16 %v7357_v22, %v7357_v22  ;;  %12397 = vrot.lane.b32.xlu2 %v12381_v27, %s12642_s10  ;;  %12402 = vrot.lane.b32.xlu0 %v17969_v6, %s12642_s10  ;;  %v18043_v6 = vpop.f32.mrf.mxu3  ;;  %v5054_v24 = vld [vmem:[#allocation3 + $0x211] sm:$0xff]  ;;  %v12220_v47 = vunpack.i.h.bf16 %v18014_v40 }
 0x4a4   :  { %v18028_v11 = vpack.i.bf16 %v4881_v62, %v4880_v35  ;;  %7629 = vst.msk [vmem:[#allocation2 + $0x278] sm:$0xf] %vm2877_vm3, %v7565_v42  ;;  %v12198_v21 = vpop.permute.xlu0 %12197  ;;  %v4492_v16 = vrot.slane %v4321_v38, 7  ;;  %v8355_v27 = vadd.f32 %v17827_v48, %v17335_v39  ;;  %v5055_v2 = vld [vmem:[#allocation3 + $0x219] sm:$0xff]  ;;  %v5197_v44 = vld [vmem:[#allocation3 + $0x2d0] sm:$0xff]  ;;  %v12219_v22 = vunpack.i.l.bf16 %v18014_v40 }
 0x4a5   :  { %7630 = vst.msk [vmem:[#allocation2 + $0x284] sm:$0xf] %vm2877_vm3, %v7566_v17  ;;  %v18037_v4 = vpop.permute.xlu2 %12242  ;;  %v12200_v59 = vunpack.i.h.bf16 %v12198_v21  ;;  %v12199_v26 = vunpack.i.l.bf16 %v12198_v21  ;;  %v5198_v29 = vld [vmem:[#allocation3 + $0x2d8] sm:$0xff]  ;;  %v4080_v42 = vpop.f32.mrf.mxu1 }
 0x4a6   :  { %7486 = vst [vmem:[#allocation2 + $0x1c0] sm:$0xf] %v7422_v37  ;;  %v4493_v20 = vsel %vm4406_vm5, %v4491_v46, %v4492_v16  ;;  %v4659_v58 = vsel %vm4406_vm5, %v4492_v16, 0.0  ;;  %v12421_v37 = vpack.i.bf16 %v5198_v29, %v5197_v44  ;;  %v18053_v38 = vpop.f32.mrf.mxu0 }
 0x4a7   :  { %12412 = vrot.lane.b32.xlu1 %v18028_v11, %s12640_s27  ;;  %8562 = vmatmul.bf16.gmra.mxu2 %v10101_v5  ;;  %7485 = vst [vmem:[#allocation2 + $0x1b4] sm:$0xf] %v7421_v53  ;;  %v7232_v19 = vsel %vm1402_vm0, %v5055_v2, %v12200_v59  ;;  %v7231_v35 = vsel %vm1402_vm0, %v5054_v24, %v12199_v26  ;;  %v12213_v50 = vpop.permute.xlu1 %12212  ;;  %v19559_v24 = vld [vmem:[#allocation49_spill] sm:$0xff] }
 0x4a8   :  { %4749 = vst.msk [vmem:[#allocation3 + $0x2f0] sm:$0xff] %vm1402_vm0, %v4493_v20  ;;  %v12215_v39 = vunpack.i.h.bf16 %v12213_v50  ;;  %v12214_v62 = vunpack.i.l.bf16 %v12213_v50  ;;  %v4081_v5 = vadd.f32 %v4080_v42, %v3912_v45  ;;  %v8523_v17 = vpop.f32.mrf.mxu2  ;;  %v12416_v53 = vpack.i.bf16 %v5326_v33, %v5325_v25  ;;  %v19560_v42 = vld [vmem:[#allocation68_spill] sm:$0xff] }
 0x4a9   :  { %4750 = vst.msk [vmem:[#allocation3 + $0x2f8] sm:$0x3] %vm4330_vm4, %v4659_v58  ;;  %v8524_v46 = vadd.f32 %v8523_v17, %v8355_v27  ;;  %v10216_v58 = vld [vmem:[#allocation2 + $0x1b0] sm:$0xf] }
 0x4aa   :  { %19558 = vst [vmem:[#allocation37_spill] sm:$0xff] %v18053_v38  ;;  %v7296_v21 = vsel %vm1467_vm1, %v7232_v19, %v12215_v39  ;;  %v7295_v16 = vsel %vm1467_vm1, %v7231_v35, %v12214_v62  ;;  %v4250_v59 = vadd.f32 %v17067_v7, %v4081_v5  ;;  %v10583_v7 = vld [vmem:[#allocation2 + $0x1b8] sm:$0xf0]  ;;  %v8916_v35 = vld [vmem:[%s18978_s1] sm:$0xff] }
 0x4ab   :  { %v10320_v26 = vld [vmem:[#allocation2 + $0x278] sm:$0xf]  ;;  %v7360_v10 = vsel %vm1532_vm2, %v7296_v21, %v12220_v47  ;;  %v7359_v45 = vsel %vm1532_vm2, %v7295_v16, %v12219_v22  ;;  %v8693_v40 = vadd.f32 %v19559_v24, %v8524_v46  ;;  %12422 = vrot.lane.b32.xlu2 %v12421_v37, %s12641_s22  ;;  %12417 = vrot.lane.b32.xlu0 %v12416_v53, %s12641_s22  ;;  %v19563_v22 = vld [vmem:[#allocation64_spill] sm:$0xff]  ;;  %v12175_v21 = vunpack.i.h.bf16 %v17912_v36  ;;  %v18094_v24 = vpop.f32.mrf.mxu3 }
 0x4ac   :  { %v10608_v25 = vld [vmem:[#allocation2 + $0x280] sm:$0xf0]  ;;  %v7424_v33 = vpack.c.bf16 %v7360_v10, %v7360_v10  ;;  %v7423_v27 = vpack.c.bf16 %v7359_v45, %v7359_v45  ;;  %v4322_v2 = vmax.f32 %v4250_v59, 0.0  ;;  %v18063_v20 = vpop.permute.xlu0 %12202  ;;  %v3914_v47 = vadd.f32 %v17827_v48, %v19560_v42  ;;  %v19561_v39 = vld [vmem:[#allocation66_spill] sm:$0xff]  ;;  %v10110_v42 = vld [vmem:[#allocation2 + $0xe4] sm:$0xf0] }
 0x4ad   :  { %v10321_v29 = vor.u32 %v10608_v25, %v10320_v26  ;;  %v8852_v19 = vmax.f32 %v8693_v40, 0.0  ;;  %v18069_v50 = vpop.permute.xlu2 %12257  ;;  %v18075_v62 = vadd.f32 %v17827_v48, %v19561_v39  ;;  %v19562_v5 = vld [vmem:[#allocation70_spill] sm:$0xff]  ;;  %v18085_v46 = vadd.f32 %v17827_v48, %v19563_v22  ;;  %v4082_v10 = vpop.f32.mrf.mxu1  ;;  %v4800_v22 = vld [vmem:[#allocation3 + $0x210] sm:$0xff] }
 0x4ae   :  { %v18079_v17 = vadd.f32 %v17827_v48, %v19562_v5  ;;  %7488 = vst [vmem:[#allocation2 + $0x1d8] sm:$0xf] %v7424_v33  ;;  %v18081_v44 = vrot.slane %v4322_v2, 7  ;;  %v10217_v26 = vor.u32 %v10583_v7, %v10216_v58  ;;  %v12174_v45 = vunpack.i.l.bf16 %v17912_v36  ;;  %v18103_v36 = vld [vmem:[#allocation2 + $0xfc] sm:$0xf0] }
 0x4af   :  { %12432 = vrot.lane.b32.xlu1 %v12421_v37, %s12642_s10  ;;  %v8357_v37 = vadd.f32 %v17827_v48, %v17371_v30  ;;  %v5327_v16 = vld [vmem:[#allocation3 + $0x2ea] sm:$0xff]  ;;  %7487 = vst [vmem:[#allocation2 + $0x1cc] sm:$0xf] %v7423_v27  ;;  %v18091_v59 = vpop.permute.xlu1 %12227  ;;  %v8980_v30 = vadd.f32 %v8916_v35, %v8852_v19  ;;  %v18100_v27 = vadd.f32 %v17827_v48, %v17405_v55  ;;  %v12180_v7 = vunpack.i.h.bf16 %v17997_v49  ;;  %v10555_v5 = vld [vmem:[#allocation2 + $0xdc] sm:$0xf] }
 0x4b0   :  { %10408 = vmatmul.msk.bf16.gmra.mxu0 %vm1402_vm0, %v10321_v29  ;;  %v5328_v40 = vld [vmem:[#allocation3 + $0x2f2] sm:$0xff]  ;;  %v7567_v25 = vpack.c.bf16 %v5327_v16, %v5327_v16  ;;  %v4628_v33 = vsel %vm4406_vm5, 0.0, %v18081_v44  ;;  %v8525_v2 = vpop.f32.mrf.mxu2  ;;  %v4083_v58 = vadd.f32 %v4082_v10, %v3914_v47  ;;  %v12179_v39 = vunpack.i.l.bf16 %v17997_v49 }
 0x4b1   :  { %v7568_v29 = vpack.c.bf16 %v5328_v40, %v5328_v40  ;;  %4751 = vst.msk [vmem:[#allocation3 + $0x300] sm:$0xff] %vm1402_vm0, %v4628_v33  ;;  %v8526_v19 = vadd.f32 %v8525_v2, %v8357_v37  ;;  %v18108_v35 = vpack.i.bf16 %v5328_v40, %v5327_v16  ;;  %v18112_v55 = vadd.f32 %v17827_v48, %v17446_v15  ;;  %v4801_v33 = vld [vmem:[#allocation3 + $0x218] sm:$0xff]  ;;  %v18119_v37 = vld [vmem:[#allocation2 + $0xf4] sm:$0xf]  ;;  %v18121_v16 = vpop.f32.mrf.mxu0  ;;  %v19565_v48 = vld [vmem:[#allocation60_spill] sm:$0xff] }
 0x4b2   :  { %8443 = vmatmul.bf16.gmra.mxu3 %v10217_v26  ;;  %7631 = vst.msk [vmem:[#allocation2 + $0x290] sm:$0xf] %vm2877_vm3, %v7567_v25  ;;  %v4252_v47 = vadd.f32 %v17120_v13, %v4083_v58  ;;  %v10113_v49 = vor.u32 %v10555_v5, %v10110_v42  ;;  %v6146_v26 = vsel %vm1402_vm0, %v4801_v33, %v12175_v21  ;;  %v8917_v13 = vld [vmem:[%s18978_s1 + $0x8] sm:$0xff]  ;;  %v4883_v42 = vld [vmem:[#allocation3 + $0x2f1] sm:$0xff]  ;;  %v12205_v33 = vunpack.i.h.bf16 %v18063_v20 }
 0x4b3   :  { %7632 = vst.msk [vmem:[#allocation2 + $0x29c] sm:$0xf] %vm2877_vm3, %v7568_v29  ;;  %12437 = vrot.lane.b32.xlu2 %v12416_v53, %s12640_s27  ;;  %12427 = vrot.lane.b32.xlu0 %v18028_v11, %s12642_s10  ;;  %v6145_v15 = vsel %vm1402_vm0, %v4800_v22, %v12174_v45  ;;  %v8695_v10 = vadd.f32 %v19565_v48, %v8526_v19  ;;  %v4882_v2 = vld [vmem:[#allocation3 + $0x2e9] sm:$0xff] }
 0x4b4   :  { %19564 = vst [vmem:[#allocation14_spill] sm:$0xff] %v18121_v16  ;;  %v12223_v53 = vpop.permute.xlu0 %12222  ;;  %v4323_v25 = vmax.f32 %v4252_v47, 0.0  ;;  %v5200_v29 = vld [vmem:[#allocation3 + $0x2f0] sm:$0xff]  ;;  %v6210_v19 = vsel %vm1467_vm1, %v6146_v26, %v12180_v7  ;;  %v6209_v5 = vsel %vm1467_vm1, %v6145_v15, %v12179_v39  ;;  %v12204_v16 = vunpack.i.l.bf16 %v18063_v20  ;;  %v10228_v7 = vld [vmem:[#allocation2 + $0x1c8] sm:$0xf] }
 0x4b5   :  { %9044 = vst.msk [vmem:[#allocation4] sm:$0xff] %vm1402_vm0, %v8980_v30  ;;  %v18135_v21 = vpop.permute.xlu2 %12262  ;;  %v12225_v45 = vunpack.i.h.bf16 %v12223_v53  ;;  %v12224_v30 = vunpack.i.l.bf16 %v12223_v53  ;;  %v8853_v22 = vmax.f32 %v8695_v10, 0.0  ;;  %v4085_v53 = vpop.f32.mrf.mxu1  ;;  %v12441_v58 = vpack.i.bf16 %v4883_v42, %v4882_v2  ;;  %v10586_v39 = vld [vmem:[#allocation2 + $0x1d0] sm:$0xf0] }
 0x4b6   :  { %v4495_v47 = vrot.slane %v4323_v25, 7  ;;  %v4086_v2 = vadd.f32 %v4085_v53, %v18075_v62  ;;  %v4805_v62 = vld [vmem:[#allocation3 + $0x248] sm:$0xff] }
 0x4b7   :  { %12447 = vrot.lane.b32.xlu1 %v18108_v35, %s12641_s22  ;;  %8567 = vmatmul.bf16.gmra.mxu2 %v10113_v49  ;;  %v6273_v48 = vsel %vm1532_vm2, %v6209_v5, %v12224_v30  ;;  %v6274_v11 = vsel %vm1532_vm2, %v6210_v19, %v12225_v45  ;;  %v12233_v40 = vpop.permute.xlu1 %12232  ;;  %v5199_v49 = vld [vmem:[#allocation3 + $0x2e8] sm:$0xff]  ;;  %v8981_v38 = vadd.f32 %v8917_v13, %v8853_v22  ;;  %v18149_v30 = vpop.f32.mrf.mxu3  ;;  %v4803_v19 = vld [vmem:[#allocation3 + $0x230] sm:$0xff] }
 0x4b8   :  { %v8528_v23 = vpop.f32.mrf.mxu2  ;;  %v18144_v14 = vpack.i.bf16 %v5200_v29, %v5199_v49  ;;  %v4496_v26 = vsel %vm4406_vm5, %v18081_v44, %v4495_v47  ;;  %v4660_v15 = vsel %vm4406_vm5, %v4495_v47, 0.0  ;;  %v6337_v10 = vpack.c.bf16 %v6273_v48, %v6273_v48  ;;  %v4802_v5 = vld [vmem:[#allocation3 + $0x228] sm:$0xff] }
 0x4b9   :  { %v12235_v25 = vunpack.i.h.bf16 %v12233_v40  ;;  %v10332_v45 = vld [vmem:[#allocation2 + $0x290] sm:$0xf]  ;;  %4752 = vst.msk [vmem:[#allocation3 + $0x308] sm:$0xff] %vm1402_vm0, %v4496_v26  ;;  %v6338_v20 = vpack.c.bf16 %v6274_v11, %v6274_v11  ;;  %v12234_v13 = vunpack.i.l.bf16 %v12233_v40  ;;  %v8529_v42 = vadd.f32 %v8528_v23, %v18100_v27  ;;  %v4804_v23 = vld [vmem:[#allocation3 + $0x240] sm:$0xff] }
 0x4ba   :  { %v10611_v29 = vld [vmem:[#allocation2 + $0x298] sm:$0xf0]  ;;  %v6148_v44 = vsel %vm1402_vm0, %v4803_v19, %v12205_v33  ;;  %4753 = vst.msk [vmem:[#allocation3 + $0x310] sm:$0x3] %vm4330_vm4, %v4660_v15  ;;  %v10229_v47 = vor.u32 %v10586_v39, %v10228_v7  ;;  %v6147_v11 = vsel %vm1402_vm0, %v4802_v5, %v12204_v16  ;;  %v12230_v40 = vunpack.i.h.bf16 %v18091_v59  ;;  %v19566_v33 = vld [vmem:[#allocation80_spill] sm:$0xff]  ;;  %v8918_v16 = vld [vmem:[%s18978_s1 + $0x10] sm:$0xff]  ;;  %v18170_v15 = vpop.f32.mrf.mxu0 }
 0x4bb   :  { %12442 = vrot.lane.b32.xlu2 %v12441_v58, %s12640_s27  ;;  %12452 = vrot.lane.b32.xlu0 %v18144_v14, %s12641_s22  ;;  %v10333_v22 = vor.u32 %v10611_v29, %v10332_v45  ;;  %9045 = vst.msk [vmem:[#allocation4 + $0x8] sm:$0xff] %vm1402_vm0, %v8981_v38  ;;  %v4255_v27 = vadd.f32 %v17172_v1, %v4086_v2 }
 0x4bc   :  { %v8698_v48 = vadd.f32 %v19566_v33, %v8529_v42  ;;  %v12238_v53 = vpop.permute.xlu0 %12237  ;;  %6401 = vst [vmem:[#allocation2 + $0x1e0] sm:$0xf] %v6337_v10  ;;  %v6150_v49 = vsel %vm1402_vm0, %v4805_v62, %v12235_v25  ;;  %v6149_v26 = vsel %vm1402_vm0, %v4804_v23, %v12234_v13  ;;  %v12229_v25 = vunpack.i.l.bf16 %v18091_v59 }
 0x4bd   :  { %v12283_v7 = vpop.permute.xlu2 %12282  ;;  %v12240_v38 = vunpack.i.h.bf16 %v12238_v53  ;;  %v12239_v39 = vunpack.i.l.bf16 %v12238_v53  ;;  %6402 = vst [vmem:[#allocation2 + $0x1ec] sm:$0xf] %v6338_v20  ;;  %v4324_v1 = vmax.f32 %v4255_v27, 0.0  ;;  %v4087_v5 = vpop.f32.mrf.mxu1 }
 0x4be   :  { %v8854_v45 = vmax.f32 %v8698_v48, 0.0  ;;  %v12285_v19 = vunpack.i.h.bf16 %v12283_v7  ;;  %v12284_v10 = vunpack.i.l.bf16 %v12283_v7  ;;  %v19568_v48 = vunpack.i.h.bf16 %v17986_v9 }
 0x4bf   :  { %12457 = vrot.lane.b32.xlu1 %v12441_v58, %s12642_s10  ;;  %v6213_v13 = vsel %vm1467_vm1, %v6149_v26, %v12239_v39  ;;  %v6214_v2 = vsel %vm1467_vm1, %v6150_v49, %v12240_v38  ;;  %v19567_v58 = vunpack.i.l.bf16 %v17986_v9  ;;  %v12253_v29 = vpop.permute.xlu1 %12252  ;;  %v18179_v23 = vrot.slane %v4324_v1, 7  ;;  %v5057_v1 = vld [vmem:[#allocation3 + $0x231] sm:$0xff] }
 0x4c0   :  { %10409 = vmatmul.msk.bf16.gmra.mxu0 %vm1402_vm0, %v10333_v22  ;;  %v8982_v20 = vadd.f32 %v8918_v16, %v8854_v45  ;;  %v6277_v62 = vsel %vm1532_vm2, %v6213_v13, %v12284_v10  ;;  %v6278_v27 = vsel %vm1532_vm2, %v6214_v2, %v12285_v19  ;;  %v8530_v59 = vpop.f32.mrf.mxu2  ;;  %v18183_v33 = vld [vmem:[#allocation3 + $0x302] sm:$0xff]  ;;  %v6212_v53 = vsel %vm1467_vm1, %v6148_v44, %v19568_v48  ;;  %v18202_v10 = vpop.f32.mrf.mxu3 }
 0x4c1   :  { %v6211_v42 = vsel %vm1467_vm1, %v6147_v11, %v19567_v58  ;;  %v6341_v22 = vpack.c.bf16 %v6277_v62, %v6277_v62  ;;  %v12255_v49 = vunpack.i.h.bf16 %v12253_v29  ;;  %v12254_v26 = vunpack.i.l.bf16 %v12253_v29  ;;  %v18188_v11 = vld [vmem:[#allocation3 + $0x30a] sm:$0xff]  ;;  %v5201_v29 = vld [vmem:[#allocation3 + $0x300] sm:$0xff] }
 0x4c2   :  { %8448 = vmatmul.bf16.gmra.mxu3 %v10229_v47  ;;  %v7569_v16 = vpack.c.bf16 %v18183_v33, %v18183_v33  ;;  %v4629_v7 = vsel %vm4406_vm5, 0.0, %v18179_v23  ;;  %9046 = vst.msk [vmem:[#allocation4 + $0x10] sm:$0xff] %vm1402_vm0, %v8982_v20  ;;  %v4088_v38 = vadd.f32 %v4087_v5, %v18079_v17  ;;  %v8531_v39 = vadd.f32 %v8530_v59, %v18112_v55  ;;  %v5202_v9 = vld [vmem:[#allocation3 + $0x308] sm:$0xff] }
 0x4c3   :  { %v7570_v44 = vpack.c.bf16 %v18188_v11, %v18188_v11  ;;  %4754 = vst.msk [vmem:[#allocation3 + $0x318] sm:$0xff] %vm1402_vm0, %v4629_v7  ;;  %v6342_v47 = vpack.c.bf16 %v6278_v27, %v6278_v27  ;;  %v6276_v45 = vsel %vm1532_vm2, %v6212_v53, %v12255_v49  ;;  %v6275_v19 = vsel %vm1532_vm2, %v6211_v42, %v12254_v26  ;;  %v5056_v13 = vld [vmem:[#allocation3 + $0x229] sm:$0xff]  ;;  %v8919_v42 = vld [vmem:[%s18978_s1 + $0x18] sm:$0xff] }
 0x4c4   :  { %v7234_v2 = vsel %vm1402_vm0, %v5057_v1, %v12230_v40  ;;  %7633 = vst.msk [vmem:[#allocation2 + $0x2a8] sm:$0xf] %vm2877_vm3, %v7569_v16  ;;  %v6340_v17 = vpack.c.bf16 %v6276_v45, %v6276_v45  ;;  %v4257_v55 = vadd.f32 %v17209_v34, %v4088_v38  ;;  %v8700_v58 = vadd.f32 %v16919_v12, %v8531_v39  ;;  %v12248_v12 = vpop.permute.xlu0 %12247  ;;  %v4884_v39 = vld [vmem:[#allocation3 + $0x301] sm:$0xff] }
 0x4c5   :  { %v7233_v5 = vsel %vm1402_vm0, %v5056_v13, %v12229_v25  ;;  %7634 = vst.msk [vmem:[#allocation2 + $0x2b4] sm:$0xf] %vm2877_vm3, %v7570_v44  ;;  %v6339_v20 = vpack.c.bf16 %v6275_v19, %v6275_v19  ;;  %12462 = vrot.lane.b32.xlu2 %v18144_v14, %s12642_s10  ;;  %12467 = vrot.lane.b32.xlu0 %v18108_v35, %s12640_s27  ;;  %v18219_v34 = vpop.permute.xlu2 %12297  ;;  %v12245_v25 = vunpack.i.h.bf16 %v18037_v4  ;;  %v12244_v62 = vunpack.i.l.bf16 %v18037_v4  ;;  %v18229_v14 = vld [vmem:[%s18980_s3] ss:$0 sm:$0xff] }
 0x4c6   :  { %v18217_v40 = vpack.i.bf16 %v5202_v9, %v5201_v29  ;;  %6405 = vst [vmem:[#allocation2 + $0x210] sm:$0xf] %v6341_v22  ;;  %v4325_v27 = vmax.f32 %v4257_v55, 0.0  ;;  %v8855_v59 = vmax.f32 %v8700_v58, 0.0  ;;  %v19569_v48 = vor.u32 %v18119_v37, %v18103_v36  ;;  %v4090_v36 = vpop.f32.mrf.mxu1  ;;  %v18238_v37 = vpop.f32.mrf.mxu0  ;;  %v4885_v9 = vld [vmem:[#allocation3 + $0x309] sm:$0xff] }
 0x4c7   :  { %v8365_v35 = vadd.f32 %v18229_v14, %v17482_v32  ;;  %v12260_v53 = vunpack.i.h.bf16 %v18069_v50  ;;  %6406 = vst [vmem:[#allocation2 + $0x21c] sm:$0xf] %v6342_v47  ;;  %v12250_v4 = vunpack.i.h.bf16 %v12248_v12  ;;  %v12249_v22 = vunpack.i.l.bf16 %v12248_v12  ;;  %v18236_v49 = vpop.permute.xlu1 %12267 }
 0x4c8   :  { %8572 = vmatmul.bf16.gmra.mxu2 %v19569_v48  ;;  %12482 = vrot.lane.b32.xlu1 %v18217_v40, %s12641_s22  ;;  %6404 = vst [vmem:[#allocation2 + $0x204] sm:$0xf] %v6340_v17  ;;  %v4498_v26 = vrot.slane %v4325_v27, 7  ;;  %v8983_v16 = vadd.f32 %v8919_v42, %v8855_v59  ;;  %v7297_v7 = vsel %vm1467_vm1, %v7233_v5, %v12244_v62  ;;  %v8533_v38 = vpop.f32.mrf.mxu2  ;;  %v12259_v55 = vunpack.i.l.bf16 %v18069_v50  ;;  %v19571_v62 = vld [vmem:[#allocation19_spill] sm:$0xff]  ;;  %v5059_v27 = vld [vmem:[#allocation3 + $0x249] sm:$0xff] }
 0x4c9   :  { %v7298_v32 = vsel %vm1467_vm1, %v7234_v2, %v12245_v25  ;;  %6403 = vst [vmem:[#allocation2 + $0x1f8] sm:$0xf] %v6339_v20  ;;  %v7361_v1 = vsel %vm1532_vm2, %v7297_v7, %v12249_v22  ;;  %v4091_v47 = vadd.f32 %v4090_v36, %v18085_v46  ;;  %v8534_v45 = vadd.f32 %v8533_v38, %v8365_v35  ;;  %v10240_v20 = vld [vmem:[#allocation2 + $0x1e0] sm:$0xf]  ;;  %v10589_v25 = vld [vmem:[#allocation2 + $0x1e8] sm:$0xf0] }
 0x4ca   :  { %v7362_v44 = vsel %vm1532_vm2, %v7298_v32, %v12250_v4  ;;  %v4499_v19 = vsel %vm4406_vm5, %v18179_v23, %v4498_v26  ;;  %v4661_v13 = vsel %vm4406_vm5, %v4498_v26, 0.0  ;;  %9047 = vst.msk [vmem:[#allocation4 + $0x18] sm:$0xff] %vm1402_vm0, %v8983_v16  ;;  %v7425_v17 = vpack.c.bf16 %v7361_v1, %v7361_v1  ;;  %v19570_v23 = vld [vmem:[#allocation54_spill] sm:$0xff]  ;;  %v18270_v4 = vpop.f32.mrf.mxu3  ;;  %v5058_v22 = vld [vmem:[#allocation3 + $0x241] sm:$0xff] }
 0x4cb   :  { %v7426_v2 = vpack.c.bf16 %v7362_v44, %v7362_v44  ;;  %4755 = vst.msk [vmem:[#allocation3 + $0x320] sm:$0xff] %vm1402_vm0, %v4499_v19  ;;  %v4260_v58 = vadd.f32 %v17239_v0, %v4091_v47  ;;  %v12476_v29 = vpack.i.bf16 %v18188_v11, %v18183_v33  ;;  %v18254_v46 = vpack.i.bf16 %v4885_v9, %v4884_v39  ;;  %v10344_v5 = vld [vmem:[#allocation2 + $0x2a8] sm:$0xf]  ;;  %v8920_v0 = vld [vmem:[%s18978_s1 + $0x20] sm:$0xff]  ;;  %v10561_v19 = vld [vmem:[#allocation2 + $0x10c] sm:$0xf] }
 0x4cc   :  { %4756 = vst.msk [vmem:[#allocation3 + $0x328] sm:$0x3] %vm4330_vm4, %v4661_v13  ;;  %v8703_v42 = vadd.f32 %v19570_v23, %v8534_v45  ;;  %v10614_v12 = vld [vmem:[#allocation2 + $0x2b0] sm:$0xf0]  ;;  %v3924_v50 = vadd.f32 %v18229_v14, %v19571_v62  ;;  %v12273_v48 = vpop.permute.xlu0 %12272  ;;  %v8367_v35 = vadd.f32 %v18229_v14, %v17525_v61  ;;  %v7236_v36 = vsel %vm1402_vm0, %v5059_v27, %v12260_v53  ;;  %v10134_v13 = vld [vmem:[#allocation2 + $0x114] sm:$0xf0] }
 0x4cd   :  { %7489 = vst [vmem:[#allocation2 + $0x1e4] sm:$0xf] %v7425_v17  ;;  %v4326_v59 = vmax.f32 %v4260_v58, 0.0  ;;  %12477 = vrot.lane.b32.xlu2 %v12476_v29, %s12641_s22  ;;  %12472 = vrot.lane.b32.xlu0 %v18254_v46, %s12640_s27  ;;  %v10345_v33 = vor.u32 %v10614_v12, %v10344_v5  ;;  %v18266_v11 = vpop.permute.xlu2 %12307  ;;  %v12275_v16 = vunpack.i.h.bf16 %v12273_v48  ;;  %v7235_v7 = vsel %vm1402_vm0, %v5058_v22, %v12259_v55 }
 0x4ce   :  { %7490 = vst [vmem:[#allocation2 + $0x1f0] sm:$0xf] %v7426_v2  ;;  %v8856_v26 = vmax.f32 %v8703_v42, 0.0  ;;  %v12274_v38 = vunpack.i.l.bf16 %v12273_v48  ;;  %v10241_v9 = vor.u32 %v10589_v25, %v10240_v20  ;;  %v4092_v61 = vpop.f32.mrf.mxu1  ;;  %v19572_v48 = vld [vmem:[#allocation26_spill] sm:$0xff] }
 0x4cf   :  { %v18274_v32 = vrot.slane %v4326_v59, 7  ;;  %v12278_v39 = vpop.permute.xlu1 %12277  ;;  %v7300_v44 = vsel %vm1467_vm1, %v7236_v36, %v12275_v16  ;;  %v4093_v55 = vadd.f32 %v4092_v61, %v3924_v50  ;;  %v10137_v50 = vor.u32 %v10561_v19, %v10134_v13 }
 0x4d0   :  { %12497 = vrot.lane.b32.xlu1 %v12476_v29, %s12640_s27  ;;  %10410 = vmatmul.msk.bf16.gmra.mxu0 %vm1402_vm0, %v10345_v33  ;;  %v8984_v1 = vadd.f32 %v8920_v0, %v8856_v26  ;;  %v12280_v47 = vunpack.i.h.bf16 %v12278_v39  ;;  %v12279_v53 = vunpack.i.l.bf16 %v12278_v39  ;;  %v8535_v45 = vpop.f32.mrf.mxu2  ;;  %v7299_v2 = vsel %vm1467_vm1, %v7235_v7, %v12274_v38  ;;  %v18282_v29 = vpop.f32.mrf.mxu0  ;;  %v8921_v26 = vld [vmem:[%s18978_s1 + $0x28] sm:$0xff] }
 0x4d1   :  { %v4630_v17 = vsel %vm4406_vm5, 0.0, %v18274_v32  ;;  %v8536_v58 = vadd.f32 %v8535_v45, %v8367_v35  ;;  %v4262_v27 = vadd.f32 %v17287_v31, %v4093_v55  ;;  %v8370_v7 = vadd.f32 %v18229_v14, %v17582_v51  ;;  %v5060_v45 = vld [vmem:[#allocation3 + $0x259] sm:$0xff] }
 0x4d2   :  { %8453 = vmatmul.bf16.gmra.mxu3 %v10241_v9  ;;  %v5331_v5 = vld [vmem:[#allocation3 + $0x31a] sm:$0xff]  ;;  %4757 = vst.msk [vmem:[#allocation3 + $0x330] sm:$0xff] %vm1402_vm0, %v4630_v17  ;;  %v7364_v20 = vsel %vm1532_vm2, %v7300_v44, %v12280_v47  ;;  %v7363_v23 = vsel %vm1532_vm2, %v7299_v2, %v12279_v53  ;;  %v18305_v38 = vpop.f32.mrf.mxu3  ;;  %v12310_v61 = vunpack.i.h.bf16 %v18266_v11 }
 0x4d3   :  { %v4886_v42 = vld [vmem:[#allocation3 + $0x319] sm:$0xff]  ;;  %v5332_v12 = vld [vmem:[#allocation3 + $0x322] sm:$0xff]  ;;  %v7571_v25 = vpack.c.bf16 %v5331_v5, %v5331_v5  ;;  %9048 = vst.msk [vmem:[#allocation4 + $0x20] sm:$0xff] %vm1402_vm0, %v8984_v1  ;;  %v7428_v62 = vpack.c.bf16 %v7364_v20, %v7364_v20  ;;  %v7427_v33 = vpack.c.bf16 %v7363_v23, %v7363_v23  ;;  %v8705_v35 = vadd.f32 %v19572_v48, %v8536_v58 }
 0x4d4   :  { %v4887_v59 = vld [vmem:[#allocation3 + $0x321] sm:$0xff]  ;;  %v7572_v0 = vpack.c.bf16 %v5332_v12, %v5332_v12  ;;  %v4327_v36 = vmax.f32 %v4262_v27, 0.0  ;;  %v12288_v16 = vpop.permute.xlu0 %12287  ;;  %v5203_v23 = vld [vmem:[#allocation3 + $0x318] sm:$0xff] }
 0x4d5   :  { %v18290_v22 = vpack.i.bf16 %v4887_v59, %v4886_v42  ;;  %7635 = vst.msk [vmem:[#allocation2 + $0x2c0] sm:$0xf] %vm2877_vm3, %v7571_v25  ;;  %12487 = vrot.lane.b32.xlu2 %v18254_v46, %s12642_s10  ;;  %12492 = vrot.lane.b32.xlu0 %v18217_v40, %s12642_s10  ;;  %v18300_v31 = vpop.permute.xlu2 %12332  ;;  %v8857_v39 = vmax.f32 %v8705_v35, 0.0  ;;  %v12290_v9 = vunpack.i.h.bf16 %v12288_v16  ;;  %v12309_v46 = vunpack.i.l.bf16 %v18266_v11  ;;  %v5061_v40 = vld [vmem:[#allocation3 + $0x261] sm:$0xff] }
 0x4d6   :  { %7636 = vst.msk [vmem:[#allocation2 + $0x2cc] sm:$0xf] %vm2877_vm3, %v7572_v0  ;;  %v4501_v1 = vrot.slane %v4327_v36, 7  ;;  %v12289_v44 = vunpack.i.l.bf16 %v12288_v16  ;;  %v5204_v51 = vld [vmem:[#allocation3 + $0x320] sm:$0xff]  ;;  %v12506_v0 = vpack.i.bf16 %v5332_v12, %v5331_v5 }
 0x4d7   :  { %7492 = vst [vmem:[#allocation2 + $0x208] sm:$0xf] %v7428_v62  ;;  %v12303_v47 = vpop.permute.xlu1 %12302  ;;  %v8985_v53 = vadd.f32 %v8921_v26, %v8857_v39  ;;  %v7238_v19 = vsel %vm1402_vm0, %v5061_v40, %v12290_v9  ;;  %v12511_v62 = vpack.i.bf16 %v5204_v51, %v5203_v23  ;;  %v8922_v26 = vld [vmem:[%s18978_s1 + $0x30] sm:$0xff]  ;;  %v12269_v23 = vunpack.i.l.bf16 %v18236_v49 }
 0x4d8   :  { %8577 = vmatmul.bf16.gmra.mxu2 %v10137_v50  ;;  %12502 = vrot.lane.b32.xlu1 %v18290_v22, %s12640_s27  ;;  %7491 = vst [vmem:[#allocation2 + $0x1fc] sm:$0xf] %v7427_v33  ;;  %v12305_v13 = vunpack.i.h.bf16 %v12303_v47  ;;  %v12304_v17 = vunpack.i.l.bf16 %v12303_v47  ;;  %v8538_v2 = vpop.f32.mrf.mxu2  ;;  %v4502_v11 = vsel %vm4406_vm5, %v18274_v32, %v4501_v1  ;;  %v4662_v55 = vsel %vm4406_vm5, %v4501_v1, 0.0  ;;  %v19573_v32 = vld [vmem:[#allocation59_spill] sm:$0xff]  ;;  %v18323_v48 = vpop.f32.mrf.mxu0 }
 0x4d9   :  { %v7237_v58 = vsel %vm1402_vm0, %v5060_v45, %v12289_v44  ;;  %v8539_v20 = vadd.f32 %v8538_v2, %v8370_v7  ;;  %4758 = vst.msk [vmem:[#allocation3 + $0x338] sm:$0xff] %vm1402_vm0, %v4502_v11  ;;  %v10592_v33 = vld [vmem:[#allocation2 + $0x200] sm:$0xf0]  ;;  %v10252_v7 = vld [vmem:[#allocation2 + $0x1f8] sm:$0xf]  ;;  %v12265_v45 = vunpack.i.h.bf16 %v18135_v21  ;;  %v12264_v2 = vunpack.i.l.bf16 %v18135_v21 }
 0x4da   :  { %v7302_v42 = vsel %vm1467_vm1, %v7238_v19, %v12305_v13  ;;  %v7301_v25 = vsel %vm1467_vm1, %v7237_v58, %v12304_v17  ;;  %4759 = vst.msk [vmem:[#allocation3 + $0x340] sm:$0x3] %vm4330_vm4, %v4662_v55  ;;  %v10253_v44 = vor.u32 %v10592_v33, %v10252_v7  ;;  %v18340_v47 = vpop.f32.mrf.mxu3  ;;  %v10146_v17 = vld [vmem:[#allocation2 + $0x12c] sm:$0xf0]  ;;  %v8923_v21 = vld [vmem:[%s18978_s1 + $0x38] sm:$0xff] }
 0x4db   :  { %v7366_v27 = vsel %vm1532_vm2, %v7302_v42, %v12310_v61  ;;  %v7365_v59 = vsel %vm1532_vm2, %v7301_v25, %v12309_v46  ;;  %v8708_v50 = vadd.f32 %v19573_v32, %v8539_v20  ;;  %9049 = vst.msk [vmem:[#allocation4 + $0x28] sm:$0xff] %vm1402_vm0, %v8985_v53  ;;  %v8372_v46 = vadd.f32 %v18229_v14, %v17617_v63  ;;  %v10564_v53 = vld [vmem:[#allocation2 + $0x124] sm:$0xf]  ;;  %v19574_v25 = vld [vmem:[#allocation78_spill] sm:$0xff] }
 0x4dc   :  { %v7430_v35 = vpack.c.bf16 %v7366_v27, %v7366_v27  ;;  %v7429_v36 = vpack.c.bf16 %v7365_v59, %v7365_v59  ;;  %v10356_v16 = vld [vmem:[#allocation2 + $0x2c0] sm:$0xf]  ;;  %v12270_v20 = vunpack.i.h.bf16 %v18236_v49  ;;  %v10149_v32 = vor.u32 %v10564_v53, %v10146_v17  ;;  %v5208_v17 = vld [vmem:[#allocation3 + $0x350] sm:$0xff] }
 0x4dd   :  { %v8858_v39 = vmax.f32 %v8708_v50, 0.0  ;;  %12512 = vrot.lane.b32.xlu2 %v12511_v62, %s12641_s22  ;;  %12507 = vrot.lane.b32.xlu0 %v12506_v0, %s12641_s22  ;;  %v10617_v9 = vld [vmem:[#allocation2 + $0x2c8] sm:$0xf0]  ;;  %v18331_v5 = vpop.permute.xlu2 %12347  ;;  %v18333_v12 = vpop.permute.xlu0 %12292  ;;  %v4807_v27 = vld [vmem:[#allocation3 + $0x260] sm:$0xff]  ;;  %v4806_v50 = vld [vmem:[#allocation3 + $0x258] sm:$0xff] }
 0x4de   :  { %7494 = vst [vmem:[#allocation2 + $0x220] sm:$0xf] %v7430_v35  ;;  %v10357_v61 = vor.u32 %v10617_v9, %v10356_v16  ;;  %v6152_v33 = vsel %vm1402_vm0, %v4807_v27, %v12265_v45  ;;  %v6151_v16 = vsel %vm1402_vm0, %v4806_v50, %v12264_v2  ;;  %v12295_v7 = vunpack.i.h.bf16 %v18333_v12  ;;  %v4809_v2 = vld [vmem:[#allocation3 + $0x278] sm:$0xff]  ;;  %v5014_v27 = vld [vmem:[#allocation3 + $0x330] sm:$0xff] }
 0x4df   :  { %7493 = vst [vmem:[#allocation2 + $0x214] sm:$0xf] %v7429_v36  ;;  %v8986_v1 = vadd.f32 %v8922_v26, %v8858_v39  ;;  %v18338_v40 = vpop.permute.xlu1 %12317 }
 0x4e0   :  { %12522 = vrot.lane.b32.xlu1 %v12511_v62, %s12642_s10  ;;  %10411 = vmatmul.msk.bf16.gmra.mxu0 %vm1402_vm0, %v10357_v61  ;;  %v8540_v51 = vpop.f32.mrf.mxu2  ;;  %v18344_v19 = vld [vmem:[#allocation3 + $0x332] sm:$0xff]  ;;  %v18368_v26 = vpop.f32.mrf.mxu0  ;;  %v6216_v61 = vsel %vm1467_vm1, %v6152_v33, %v12270_v20 }
 0x4e1   :  { %9050 = vst.msk [vmem:[#allocation4 + $0x30] sm:$0xff] %vm1402_vm0, %v8986_v1  ;;  %v8541_v63 = vadd.f32 %v8540_v51, %v8372_v46  ;;  %v5269_v13 = vld [vmem:[#allocation3 + $0x331] sm:$0xff]  ;;  %v18348_v11 = vld [vmem:[#allocation3 + $0x33a] sm:$0xff]  ;;  %v7573_v55 = vpack.c.bf16 %v18344_v19, %v18344_v19  ;;  %v6215_v46 = vsel %vm1467_vm1, %v6151_v16, %v12269_v23  ;;  %v8375_v1 = vadd.f32 %v18229_v14, %v17659_v52 }
 0x4e2   :  { %8458 = vmatmul.bf16.gmra.mxu3 %v10253_v44  ;;  %v5270_v58 = vld [vmem:[#allocation3 + $0x339] sm:$0xff]  ;;  %v7574_v42 = vpack.c.bf16 %v18348_v11, %v18348_v11  ;;  %v12294_v44 = vunpack.i.l.bf16 %v18333_v12  ;;  %v10264_v20 = vld [vmem:[#allocation2 + $0x210] sm:$0xf]  ;;  %v8377_v52 = vadd.f32 %v18229_v14, %v17723_v60  ;;  %v12300_v12 = vunpack.i.h.bf16 %v18219_v34 }
 0x4e3   :  { %v8710_v62 = vadd.f32 %v19574_v25, %v8541_v63  ;;  %7637 = vst.msk [vmem:[#allocation2 + $0x2d8] sm:$0xf] %vm2877_vm3, %v7573_v55  ;;  %v12536_v59 = vpack.i.bf16 %v5270_v58, %v5269_v13  ;;  %v5015_v63 = vld [vmem:[#allocation3 + $0x338] sm:$0xff]  ;;  %v5207_v13 = vld [vmem:[#allocation3 + $0x348] sm:$0xff]  ;;  %v6154_v25 = vsel %vm1402_vm0, %v4809_v2, %v12295_v7  ;;  %v19575_v60 = vld [vmem:[#allocation77_spill] sm:$0xff]  ;;  %v12320_v7 = vunpack.i.h.bf16 %v18338_v40 }
 0x4e4   :  { %7638 = vst.msk [vmem:[#allocation2 + $0x2e4] sm:$0xf] %vm2877_vm3, %v7574_v42  ;;  %v10595_v23 = vld [vmem:[#allocation2 + $0x218] sm:$0xf0]  ;;  %v18384_v42 = vpop.f32.mrf.mxu3  ;;  %v12541_v50 = vpack.i.bf16 %v5015_v63, %v5014_v27 }
 0x4e5   :  { %v8859_v49 = vmax.f32 %v8710_v62, 0.0  ;;  %12527 = vrot.lane.b32.xlu2 %v12506_v0, %s12640_s27  ;;  %12517 = vrot.lane.b32.xlu0 %v18290_v22, %s12642_s10  ;;  %v18366_v35 = vpop.permute.xlu2 %12352  ;;  %v12313_v36 = vpop.permute.xlu0 %12312 }
 0x4e6   :  { %v12315_v39 = vunpack.i.h.bf16 %v12313_v36  ;;  %v12314_v9 = vunpack.i.l.bf16 %v12313_v36  ;;  %v12299_v36 = vunpack.i.l.bf16 %v18219_v34 }
 0x4e7   :  { %v8987_v0 = vadd.f32 %v8923_v21, %v8859_v49  ;;  %v4808_v21 = vld [vmem:[#allocation3 + $0x270] sm:$0xff]  ;;  %v12551_v49 = vpack.i.bf16 %v5208_v17, %v5207_v13 }
 0x4e8   :  { %8582 = vmatmul.bf16.gmra.mxu2 %v10149_v32  ;;  %12537 = vrot.lane.b32.xlu1 %v12536_v59, %s12642_s10  ;;  %v6279_v51 = vsel %vm1532_vm2, %v6215_v46, %v12314_v9  ;;  %v6280_v53 = vsel %vm1532_vm2, %v6216_v61, %v12315_v39  ;;  %v6153_v16 = vsel %vm1402_vm0, %v4808_v21, %v12294_v44  ;;  %v12319_v46 = vunpack.i.l.bf16 %v18338_v40 }
 0x4e9   :  { %v12323_v22 = vpop.permute.xlu1 %12322  ;;  %9051 = vst.msk [vmem:[#allocation4 + $0x38] sm:$0xff] %vm1402_vm0, %v8987_v0  ;;  %v6343_v55 = vpack.c.bf16 %v6279_v51, %v6279_v51  ;;  %v6344_v58 = vpack.c.bf16 %v6280_v53, %v6280_v53  ;;  %v10265_v61 = vor.u32 %v10595_v23, %v10264_v20  ;;  %v8924_v0 = vld [vmem:[%s18978_s1 + $0x40] sm:$0xff]  ;;  %v6218_v44 = vsel %vm1467_vm1, %v6154_v25, %v12300_v12  ;;  %v4810_v51 = vld [vmem:[#allocation3 + $0x288] sm:$0xff]  ;;  %v4811_v53 = vld [vmem:[#allocation3 + $0x290] sm:$0xff]  ;;  %v18402_v23 = vpop.f32.mrf.mxu0 }
 0x4ea   :  { %v8543_v45 = vpop.f32.mrf.mxu2  ;;  %v12325_v59 = vunpack.i.h.bf16 %v12323_v22  ;;  %v12324_v32 = vunpack.i.l.bf16 %v12323_v22  ;;  %v10368_v33 = vld [vmem:[#allocation2 + $0x2d8] sm:$0xf] }
 0x4eb   :  { %v8544_v62 = vadd.f32 %v8543_v45, %v8375_v1  ;;  %6407 = vst [vmem:[#allocation2 + $0x228] sm:$0xf] %v6343_v55  ;;  %v10620_v9 = vld [vmem:[#allocation2 + $0x2e0] sm:$0xf0] }
 0x4ec   :  { %6408 = vst [vmem:[#allocation2 + $0x234] sm:$0xf] %v6344_v58  ;;  %v10369_v34 = vor.u32 %v10620_v9, %v10368_v33  ;;  %v6156_v40 = vsel %vm1402_vm0, %v4811_v53, %v12325_v59  ;;  %v6155_v2 = vsel %vm1402_vm0, %v4810_v51, %v12324_v32  ;;  %v6217_v58 = vsel %vm1467_vm1, %v6153_v16, %v12299_v36  ;;  %v10158_v36 = vld [vmem:[#allocation2 + $0x144] sm:$0xf0]  ;;  %v19576_v53 = vld [vmem:[#allocation61_spill] sm:$0xff] }
 0x4ed   :  { %v8713_v39 = vadd.f32 %v19575_v60, %v8544_v62  ;;  %12542 = vrot.lane.b32.xlu2 %v12541_v50, %s12642_s10  ;;  %12532 = vrot.lane.b32.xlu0 %v12541_v50, %s12641_s22  ;;  %v12373_v22 = vpop.permute.xlu2 %12372  ;;  %v12328_v1 = vpop.permute.xlu0 %12327  ;;  %v10567_v50 = vld [vmem:[#allocation2 + $0x13c] sm:$0xf]  ;;  %v5271_v16 = vld [vmem:[#allocation3 + $0x349] sm:$0xff]  ;;  %v5272_v60 = vld [vmem:[#allocation3 + $0x351] sm:$0xff] }
 0x4ee   :  { %v12375_v63 = vunpack.i.h.bf16 %v12373_v22  ;;  %v12374_v13 = vunpack.i.l.bf16 %v12373_v22  ;;  %v12330_v17 = vunpack.i.h.bf16 %v12328_v1  ;;  %v12329_v55 = vunpack.i.l.bf16 %v12328_v1  ;;  %v5062_v22 = vld [vmem:[#allocation3 + $0x271] sm:$0xff]  ;;  %v5063_v1 = vld [vmem:[#allocation3 + $0x279] sm:$0xff] }
 0x4ef   :  { %v8860_v45 = vmax.f32 %v8713_v39, 0.0 }
 0x4f0   :  { %12552 = vrot.lane.b32.xlu1 %v12551_v49, %s12641_s22  ;;  %10412 = vmatmul.msk.bf16.gmra.mxu0 %vm1402_vm0, %v10369_v34  ;;  %v6220_v12 = vsel %vm1467_vm1, %v6156_v40, %v12330_v17  ;;  %v6219_v59 = vsel %vm1467_vm1, %v6155_v2, %v12329_v55  ;;  %v12546_v49 = vpack.i.bf16 %v18348_v11, %v18344_v19  ;;  %v18415_v19 = vpop.f32.mrf.mxu3  ;;  %v12335_v40 = vunpack.i.h.bf16 %v18300_v31 }
 0x4f1   :  { %v12343_v20 = vpop.permute.xlu1 %12342  ;;  %v8988_v62 = vadd.f32 %v8924_v0, %v8860_v45  ;;  %v6284_v32 = vsel %vm1532_vm2, %v6220_v12, %v12375_v63  ;;  %v6283_v39 = vsel %vm1532_vm2, %v6219_v59, %v12374_v13  ;;  %v7240_v11 = vsel %vm1402_vm0, %v5063_v1, %v12320_v7 }
 0x4f2   :  { %v12345_v25 = vunpack.i.h.bf16 %v12343_v20  ;;  %v12344_v27 = vunpack.i.l.bf16 %v12343_v20  ;;  %v8545_v21 = vpop.f32.mrf.mxu2  ;;  %8463 = vmatmul.bf16.gmra.mxu3 %v10265_v61  ;;  %v6348_v9 = vpack.c.bf16 %v6284_v32, %v6284_v32  ;;  %v6347_v51 = vpack.c.bf16 %v6283_v39, %v6283_v39  ;;  %v8926_v39 = vld [vmem:[%s18978_s1 + $0x50] sm:$0xff] }
 0x4f3   :  { %v8546_v33 = vadd.f32 %v8545_v21, %v8377_v52  ;;  %9052 = vst.msk [vmem:[#allocation4 + $0x40] sm:$0xff] %vm1402_vm0, %v8988_v62  ;;  %v7239_v63 = vsel %vm1402_vm0, %v5062_v22, %v12319_v46  ;;  %v10161_v13 = vor.u32 %v10567_v50, %v10158_v36  ;;  %v12556_v17 = vpack.i.bf16 %v5272_v60, %v5271_v16  ;;  %v19577_v16 = vld [vmem:[#allocation73_spill] sm:$0xff] }
 0x4f4   :  { %v6282_v0 = vsel %vm1532_vm2, %v6218_v44, %v12345_v25  ;;  %v6281_v34 = vsel %vm1532_vm2, %v6217_v58, %v12344_v27  ;;  %6412 = vst [vmem:[#allocation2 + $0x264] sm:$0xf] %v6348_v9  ;;  %v8925_v44 = vld [vmem:[%s18978_s1 + $0x48] sm:$0xff]  ;;  %v12334_v2 = vunpack.i.l.bf16 %v18300_v31  ;;  %v8380_v62 = vadd.f32 %v18229_v14, %v17766_v18 }
 0x4f5   :  { %v6346_v61 = vpack.c.bf16 %v6282_v0, %v6282_v0  ;;  %v6345_v52 = vpack.c.bf16 %v6281_v34, %v6281_v34  ;;  %v8715_v45 = vadd.f32 %v19576_v53, %v8546_v33  ;;  %6411 = vst [vmem:[#allocation2 + $0x258] sm:$0xf] %v6347_v51  ;;  %12547 = vrot.lane.b32.xlu0 %v12546_v49, %s12640_s27  ;;  %v18425_v58 = vpop.permute.xlu2 %12387  ;;  %v12338_v7 = vpop.permute.xlu0 %12337  ;;  %v12350_v18 = vunpack.i.h.bf16 %v18331_v5  ;;  %v10276_v9 = vld [vmem:[#allocation2 + $0x228] sm:$0xf]  ;;  %v10598_v0 = vld [vmem:[#allocation2 + $0x230] sm:$0xf0] }
 0x4f6   :  { %v12340_v46 = vunpack.i.h.bf16 %v12338_v7  ;;  %v12339_v20 = vunpack.i.l.bf16 %v12338_v7  ;;  %12557 = vrot.lane.b32.xlu2 %v12556_v17, %s12642_s10  ;;  %v7303_v31 = vsel %vm1467_vm1, %v7239_v63, %v12334_v2  ;;  %v7304_v25 = vsel %vm1467_vm1, %v7240_v11, %v12335_v40  ;;  %s9114_s27 = sshll.u32 %s18981_s4, 4  ;;  %s9115_s27 = int_to_ptr.hbm [resolvable:$true] %s9114_s27 }
 0x4f7   :  { %v8861_v55 = vmax.f32 %v8715_v45, 0.0  ;;  %6410 = vst [vmem:[#allocation2 + $0x24c] sm:$0xf] %v6346_v61  ;;  %v12349_v36 = vunpack.i.l.bf16 %v18331_v5  ;;  %v8382_v51 = vadd.f32 %v18229_v14, %v17811_v41  ;;  %v5064_v61 = vld [vmem:[#allocation3 + $0x289] sm:$0xff]  ;;  %v10277_v17 = vor.u32 %v10598_v0, %v10276_v9  ;;  %v5066_v0 = vld [vmem:[#allocation3 + $0x2a1] sm:$0xff] }
 0x4f8   :  { %8587 = vmatmul.bf16.gmra.mxu2 %v10161_v13  ;;  %6409 = vst [vmem:[#allocation2 + $0x240] sm:$0xf] %v6345_v52  ;;  %v7367_v21 = vsel %vm1532_vm2, %v7303_v31, %v12339_v20  ;;  %v7368_v50 = vsel %vm1532_vm2, %v7304_v25, %v12340_v46  ;;  %v5065_v52 = vld [vmem:[#allocation3 + $0x291] sm:$0xff]  ;;  %v18445_v53 = vpop.f32.mrf.mxu3 }
 0x4f9   :  { %v8989_v12 = vadd.f32 %v8925_v44, %v8861_v55  ;;  %v18432_v27 = vpop.permute.xlu1 %12357  ;;  %v7431_v32 = vpack.c.bf16 %v7367_v21, %v7367_v21  ;;  %v7432_v33 = vpack.c.bf16 %v7368_v50, %v7368_v50  ;;  %v7242_v11 = vsel %vm1402_vm0, %v5065_v52, %v12350_v18  ;;  %v10570_v20 = vld [vmem:[#allocation2 + $0x154] sm:$0xf] }
 0x4fa   :  { %v8548_v59 = vpop.f32.mrf.mxu2  ;;  %v7241_v63 = vsel %vm1402_vm0, %v5064_v61, %v12349_v36  ;;  %v19578_v50 = vld [vmem:[#allocation33_spill] sm:$0xff] }
 0x4fb   :  { %9053 = vst.msk [vmem:[#allocation4 + $0x48] sm:$0xff] %vm1402_vm0, %v8989_v12  ;;  %v8549_v49 = vadd.f32 %v8548_v59, %v8380_v62  ;;  %v10170_v62 = vld [vmem:[#allocation2 + $0x15c] sm:$0xf0] }
 0x4fc   :  { %7495 = vst [vmem:[#allocation2 + $0x22c] sm:$0xf] %v7431_v32  ;;  %v8927_v32 = vld [vmem:[%s18978_s1 + $0x58] sm:$0xff] }
 0x4fd   :  { %v8718_v60 = vadd.f32 %v19577_v16, %v8549_v49  ;;  %7496 = vst [vmem:[#allocation2 + $0x238] sm:$0xf] %v7432_v33  ;;  %v12398_v22 = vpop.permute.xlu2 %12397  ;;  %v12363_v1 = vpop.permute.xlu0 %12362  ;;  %v10173_v33 = vor.u32 %v10570_v20, %v10170_v62  ;;  %v8928_v20 = vld [vmem:[%s18978_s1 + $0x60] sm:$0xff] }
 0x4fe   :  { %v12365_v5 = vunpack.i.h.bf16 %v12363_v1  ;;  %v12364_v45 = vunpack.i.l.bf16 %v12363_v1  ;;  %v10601_v62 = vld [vmem:[#allocation2 + $0x248] sm:$0xf0] }
 0x4ff   :  { %v8862_v34 = vmax.f32 %v8718_v60, 0.0 }
 0x500   :  { %v7306_v40 = vsel %vm1467_vm1, %v7242_v11, %v12365_v5  ;;  %v7305_v2 = vsel %vm1467_vm1, %v7241_v63, %v12364_v45  ;;  %v12400_v63 = vunpack.i.h.bf16 %v12398_v22 }
 0x501   :  { %v8990_v44 = vadd.f32 %v8926_v39, %v8862_v34  ;;  %v12368_v13 = vpop.permute.xlu1 %12367  ;;  %v8385_v39 = vadd.f32 %v18229_v14, %v17852_v56  ;;  %v5067_v34 = vld [vmem:[#allocation3 + $0x2a9] sm:$0xff] }
 0x502   :  { %v12370_v55 = vunpack.i.h.bf16 %v12368_v13  ;;  %v12369_v7 = vunpack.i.l.bf16 %v12368_v13  ;;  %v8550_v41 = vpop.f32.mrf.mxu2  ;;  %8468 = vmatmul.bf16.gmra.mxu3 %v10277_v17 }
 0x503   :  { %9054 = vst.msk [vmem:[#allocation4 + $0x50] sm:$0xff] %vm1402_vm0, %v8990_v44  ;;  %v8551_v46 = vadd.f32 %v8550_v41, %v8382_v51  ;;  %v18462_v51 = vpop.f32.mrf.mxu3  ;;  %v12399_v44 = vunpack.i.l.bf16 %v12398_v22  ;;  %v10288_v22 = vld [vmem:[#allocation2 + $0x240] sm:$0xf] }
 0x504   :  { %v7370_v12 = vsel %vm1532_vm2, %v7306_v40, %v12370_v55  ;;  %v7369_v31 = vsel %vm1532_vm2, %v7305_v2, %v12369_v7  ;;  %v19579_v55 = vld [vmem:[#allocation27_spill] sm:$0xff] }
 0x505   :  { %v7434_v25 = vpack.c.bf16 %v7370_v12, %v7370_v12  ;;  %v7433_v21 = vpack.c.bf16 %v7369_v31, %v7369_v31  ;;  %v8720_v59 = vadd.f32 %v19578_v50, %v8551_v46  ;;  %v18458_v18 = vpop.permute.xlu2 %12422  ;;  %v12378_v36 = vpop.permute.xlu0 %12377 }
 0x506   :  { %v12380_v16 = vunpack.i.h.bf16 %v12378_v36  ;;  %v12379_v60 = vunpack.i.l.bf16 %v12378_v36  ;;  %v10573_v36 = vld [vmem:[#allocation2 + $0x16c] sm:$0xf] }
 0x507   :  { %7498 = vst [vmem:[#allocation2 + $0x250] sm:$0xf] %v7434_v25  ;;  %v8863_v49 = vmax.f32 %v8720_v59, 0.0 }
 0x508   :  { %7497 = vst [vmem:[#allocation2 + $0x244] sm:$0xf] %v7433_v21  ;;  %8592 = vmatmul.bf16.gmra.mxu2 %v10173_v33  ;;  %v7244_v61 = vsel %vm1402_vm0, %v5067_v34, %v12380_v16  ;;  %v7243_v52 = vsel %vm1402_vm0, %v5066_v0, %v12379_v60  ;;  %v8387_v21 = vadd.f32 %v18229_v14, %v17886_v57  ;;  %v10182_v16 = vld [vmem:[#allocation2 + $0x174] sm:$0xf0]  ;;  %v12355_v60 = vunpack.i.h.bf16 %v18366_v35  ;;  %v19580_v34 = vld [vmem:[#allocation36_spill] sm:$0xff] }
 0x509   :  { %v8991_v9 = vadd.f32 %v8927_v32, %v8863_v49  ;;  %v12393_v1 = vpop.permute.xlu1 %12392  ;;  %v10289_v32 = vor.u32 %v10601_v62, %v10288_v22  ;;  %v12360_v57 = vunpack.i.h.bf16 %v18432_v27  ;;  %v12359_v0 = vunpack.i.l.bf16 %v18432_v27 }
 0x50a   :  { %v12395_v5 = vunpack.i.h.bf16 %v12393_v1  ;;  %v12394_v45 = vunpack.i.l.bf16 %v12393_v1  ;;  %v8553_v11 = vpop.f32.mrf.mxu2 }
 0x50b   :  { %9055 = vst.msk [vmem:[#allocation4 + $0x58] sm:$0xff] %vm1402_vm0, %v8991_v9  ;;  %v8554_v13 = vadd.f32 %v8553_v11, %v8385_v39  ;;  %v12354_v39 = vunpack.i.l.bf16 %v18366_v35  ;;  %v18486_v9 = vpop.f32.mrf.mxu3 }
 0x50c   :  { %v7308_v56 = vsel %vm1467_vm1, %v7244_v61, %v12395_v5  ;;  %v7307_v17 = vsel %vm1467_vm1, %v7243_v52, %v12394_v45  ;;  %v8929_v61 = vld [vmem:[%s18978_s1 + $0x68] sm:$0xff]  ;;  %v10185_v52 = vor.u32 %v10573_v36, %v10182_v16  ;;  %v4812_v5 = vld [vmem:[#allocation3 + $0x2a0] sm:$0xff] }
 0x50d   :  { %v7372_v40 = vsel %vm1532_vm2, %v7308_v56, %v12400_v63  ;;  %v7371_v2 = vsel %vm1532_vm2, %v7307_v17, %v12399_v44  ;;  %v8723_v7 = vadd.f32 %v19579_v55, %v8554_v13  ;;  %v18475_v31 = vpop.permute.xlu2 %12437  ;;  %v18477_v25 = vpop.permute.xlu0 %12382  ;;  %v4813_v45 = vld [vmem:[#allocation3 + $0x2a8] sm:$0xff]  ;;  %v6157_v13 = vsel %vm1402_vm0, %v4812_v5, %v12354_v39 }
 0x50e   :  { %v7436_v41 = vpack.c.bf16 %v7372_v40, %v7372_v40  ;;  %v7435_v46 = vpack.c.bf16 %v7371_v2, %v7371_v2  ;;  %v6158_v35 = vsel %vm1402_vm0, %v4813_v45, %v12355_v60  ;;  %v6221_v40 = vsel %vm1467_vm1, %v6157_v13, %v12359_v0  ;;  %v19581_v0 = vld [vmem:[#allocation15_spill] sm:$0xff]  ;;  %v4817_v13 = vld [vmem:[#allocation3 + $0x2d8] sm:$0xff] }
 0x50f   :  { %v8864_v12 = vmax.f32 %v8723_v7, 0.0  ;;  %v6222_v27 = vsel %vm1467_vm1, %v6158_v35, %v12360_v57  ;;  %v8390_v7 = vadd.f32 %v18229_v14, %v17929_v3  ;;  %v12385_v22 = vunpack.i.h.bf16 %v18477_v25  ;;  %v10604_v3 = vld [vmem:[#allocation2 + $0x260] sm:$0xf0]  ;;  %v4816_v35 = vld [vmem:[#allocation3 + $0x2d0] sm:$0xff] }
 0x510   :  { %7500 = vst [vmem:[#allocation2 + $0x268] sm:$0xf] %v7436_v41  ;;  %v8392_v60 = vadd.f32 %v18229_v14, %v17964_v8  ;;  %v4815_v57 = vld [vmem:[#allocation3 + $0x2c0] sm:$0xff]  ;;  %v8930_v8 = vld [vmem:[%s18978_s1 + $0x70] sm:$0xff] }
 0x511   :  { %7499 = vst [vmem:[#allocation2 + $0x25c] sm:$0xf] %v7435_v46  ;;  %v8992_v50 = vadd.f32 %v8928_v20, %v8864_v12  ;;  %v18481_v59 = vpop.permute.xlu1 %12407  ;;  %v6160_v5 = vsel %vm1402_vm0, %v4815_v57, %v12385_v22 }
 0x512   :  { %v8555_v33 = vpop.f32.mrf.mxu2  ;;  %8473 = vmatmul.bf16.gmra.mxu3 %v10289_v32  ;;  %v12384_v32 = vunpack.i.l.bf16 %v18477_v25  ;;  %v12390_v25 = vunpack.i.h.bf16 %v18425_v58 }
 0x513   :  { %9056 = vst.msk [vmem:[#allocation4 + $0x60] sm:$0xff] %vm1402_vm0, %v8992_v50  ;;  %v8556_v49 = vadd.f32 %v8555_v33, %v8387_v21  ;;  %v18506_v21 = vld [vmem:[#allocation2 + $0x184] sm:$0xf]  ;;  %v18508_v50 = vld [vmem:[#allocation2 + $0x18c] sm:$0xf0]  ;;  %v18513_v39 = vpop.f32.mrf.mxu3 }
 0x515   :  { %v8725_v1 = vadd.f32 %v19580_v34, %v8556_v49  ;;  %v18494_v63 = vpop.permute.xlu2 %12442  ;;  %v12403_v44 = vpop.permute.xlu0 %12402  ;;  %v10300_v49 = vld [vmem:[#allocation2 + $0x258] sm:$0xf] }
 0x516   :  { %v12405_v56 = vunpack.i.h.bf16 %v12403_v44  ;;  %v12404_v17 = vunpack.i.l.bf16 %v12403_v44 }
 0x517   :  { %v8865_v11 = vmax.f32 %v8725_v1, 0.0  ;;  %v10197_v1 = vor.u32 %v18506_v21, %v18508_v50 }
 0x518   :  { %8597 = vmatmul.bf16.gmra.mxu2 %v10185_v52  ;;  %v6285_v41 = vsel %vm1532_vm2, %v6221_v40, %v12404_v17  ;;  %v6286_v46 = vsel %vm1532_vm2, %v6222_v27, %v12405_v56  ;;  %v4814_v52 = vld [vmem:[#allocation3 + $0x2b8] sm:$0xff]  ;;  %v12410_v40 = vunpack.i.h.bf16 %v18481_v59 }
 0x519   :  { %v8993_v2 = vadd.f32 %v8929_v61, %v8865_v11  ;;  %v12413_v55 = vpop.permute.xlu1 %12412  ;;  %v6349_v62 = vpack.c.bf16 %v6285_v41, %v6285_v41  ;;  %v6350_v12 = vpack.c.bf16 %v6286_v46, %v6286_v46  ;;  %v12389_v61 = vunpack.i.l.bf16 %v18425_v58 }
 0x51a   :  { %v8558_v20 = vpop.f32.mrf.mxu2  ;;  %v12415_v36 = vunpack.i.h.bf16 %v12413_v55  ;;  %v12414_v16 = vunpack.i.l.bf16 %v12413_v55  ;;  %v10301_v11 = vor.u32 %v10604_v3, %v10300_v49  ;;  %v6159_v44 = vsel %vm1402_vm0, %v4814_v52, %v12384_v32 }
 0x51b   :  { %9057 = vst.msk [vmem:[#allocation4 + $0x68] sm:$0xff] %vm1402_vm0, %v8993_v2  ;;  %v8559_v33 = vadd.f32 %v8558_v20, %v8390_v7  ;;  %v12409_v58 = vunpack.i.l.bf16 %v18481_v59  ;;  %v6223_v3 = vsel %vm1467_vm1, %v6159_v44, %v12389_v61  ;;  %v18545_v44 = vpop.f32.mrf.mxu3 }
 0x51c   :  { %6413 = vst [vmem:[#allocation2 + $0x270] sm:$0xf] %v6349_v62  ;;  %v6162_v2 = vsel %vm1402_vm0, %v4817_v13, %v12415_v36  ;;  %v6161_v55 = vsel %vm1402_vm0, %v4816_v35, %v12414_v16  ;;  %v6224_v36 = vsel %vm1467_vm1, %v6160_v5, %v12390_v25  ;;  %v5068_v16 = vld [vmem:[#allocation3 + $0x2b9] sm:$0xff] }
 0x51d   :  { %6414 = vst [vmem:[#allocation2 + $0x27c] sm:$0xf] %v6350_v12  ;;  %v8728_v34 = vadd.f32 %v19581_v0, %v8559_v33  ;;  %v12418_v45 = vpop.permute.xlu0 %12417  ;;  %v19582_v35 = vld [vmem:[#allocation39_spill] sm:$0xff]  ;;  %v8931_v25 = vld [vmem:[%s18978_s1 + $0x78] sm:$0xff] }
 0x51e   :  { %v12420_v17 = vunpack.i.h.bf16 %v12418_v45  ;;  %v12419_v27 = vunpack.i.l.bf16 %v12418_v45 }
 0x51f   :  { %v8866_v56 = vmax.f32 %v8728_v34, 0.0  ;;  %v12463_v7 = vpop.permute.xlu2 %12462 }
 0x520   :  { %v12465_v20 = vunpack.i.h.bf16 %v12463_v7  ;;  %v12464_v22 = vunpack.i.l.bf16 %v12463_v7  ;;  %v6225_v62 = vsel %vm1467_vm1, %v6161_v55, %v12419_v27  ;;  %v6226_v21 = vsel %vm1467_vm1, %v6162_v2, %v12420_v17 }
 0x521   :  { %v12433_v41 = vpop.permute.xlu1 %12432  ;;  %v8994_v46 = vadd.f32 %v8930_v8, %v8866_v56  ;;  %v5069_v8 = vld [vmem:[#allocation3 + $0x2c1] sm:$0xff]  ;;  %v12424_v56 = vunpack.i.l.bf16 %v18458_v18  ;;  %v12425_v17 = vunpack.i.h.bf16 %v18458_v18 }
 0x522   :  { %v8560_v12 = vpop.f32.mrf.mxu2  ;;  %v12435_v50 = vunpack.i.h.bf16 %v12433_v41  ;;  %v12434_v32 = vunpack.i.l.bf16 %v12433_v41  ;;  %8478 = vmatmul.bf16.gmra.mxu3 %v10301_v11  ;;  %v6289_v59 = vsel %vm1532_vm2, %v6225_v62, %v12464_v22  ;;  %v6290_v49 = vsel %vm1532_vm2, %v6226_v21, %v12465_v20 }
 0x523   :  { %v8561_v33 = vadd.f32 %v8560_v12, %v8392_v60  ;;  %9058 = vst.msk [vmem:[#allocation4 + $0x70] sm:$0xff] %vm1402_vm0, %v8994_v46  ;;  %v6353_v57 = vpack.c.bf16 %v6289_v59, %v6289_v59  ;;  %v6354_v0 = vpack.c.bf16 %v6290_v49, %v6290_v49  ;;  %v7245_v60 = vsel %vm1402_vm0, %v5068_v16, %v12409_v58  ;;  %v8932_v49 = vld [vmem:[%s18978_s1 + $0x80] sm:$0xff] }
 0x524   :  { %v6288_v34 = vsel %vm1532_vm2, %v6224_v36, %v12435_v50  ;;  %v6287_v52 = vsel %vm1532_vm2, %v6223_v3, %v12434_v32  ;;  %v7246_v61 = vsel %vm1402_vm0, %v5069_v8, %v12410_v40  ;;  %v7309_v40 = vsel %vm1467_vm1, %v7245_v60, %v12424_v56  ;;  %v10607_v59 = vld [vmem:[#allocation2 + $0x278] sm:$0xf0] }
 0x525   :  { %v6352_v45 = vpack.c.bf16 %v6288_v34, %v6288_v34  ;;  %v6351_v11 = vpack.c.bf16 %v6287_v52, %v6287_v52  ;;  %v8730_v13 = vadd.f32 %v19582_v35, %v8561_v33  ;;  %6417 = vst [vmem:[#allocation2 + $0x2a0] sm:$0xf] %v6353_v57  ;;  %v12428_v5 = vpop.permute.xlu0 %12427  ;;  %v8395_v41 = vadd.f32 %v18229_v14, %v18009_v28  ;;  %v19583_v28 = vld [vmem:[#allocation32_spill] sm:$0xff]  ;;  %v10312_v33 = vld [vmem:[#allocation2 + $0x270] sm:$0xf]  ;;  %v5071_v36 = vld [vmem:[#allocation3 + $0x2d9] sm:$0xff] }
 0x526   :  { %6418 = vst [vmem:[#allocation2 + $0x2ac] sm:$0xf] %v6354_v0  ;;  %v12430_v58 = vunpack.i.h.bf16 %v12428_v5  ;;  %v12429_v2 = vunpack.i.l.bf16 %v12428_v5  ;;  %v7310_v20 = vsel %vm1467_vm1, %v7246_v61, %v12425_v17  ;;  %v12440_v50 = vunpack.i.h.bf16 %v18475_v31  ;;  %v18568_v34 = vld [vmem:[%s18980_s3] ss:$0 sm:$0xff]  ;;  %v5070_v52 = vld [vmem:[#allocation3 + $0x2d1] sm:$0xff] }
 0x527   :  { %v8867_v27 = vmax.f32 %v8730_v13, 0.0  ;;  %6416 = vst [vmem:[#allocation2 + $0x294] sm:$0xf] %v6352_v45  ;;  %v18548_v55 = vpop.permute.xlu2 %12477  ;;  %v12439_v32 = vunpack.i.l.bf16 %v18475_v31  ;;  %v8397_v31 = vadd.f32 %v18568_v34, %v18043_v6 }
 0x528   :  { %8602 = vmatmul.bf16.gmra.mxu2 %v10197_v1  ;;  %6415 = vst [vmem:[#allocation2 + $0x288] sm:$0xf] %v6351_v11  ;;  %v7373_v18 = vsel %vm1532_vm2, %v7309_v40, %v12429_v2  ;;  %v7374_v62 = vsel %vm1532_vm2, %v7310_v20, %v12430_v58  ;;  %v7248_v8 = vsel %vm1402_vm0, %v5071_v36, %v12440_v50  ;;  %v10579_v58 = vld [vmem:[#allocation2 + $0x19c] sm:$0xf]  ;;  %v10206_v2 = vld [vmem:[#allocation2 + $0x1a4] sm:$0xf0] }
 0x529   :  { %v18551_v7 = vpop.permute.xlu1 %12447  ;;  %v8995_v46 = vadd.f32 %v8931_v25, %v8867_v27  ;;  %v7437_v1 = vpack.c.bf16 %v7373_v18, %v7373_v18  ;;  %v7438_v12 = vpack.c.bf16 %v7374_v62, %v7374_v62  ;;  %v10313_v11 = vor.u32 %v10607_v59, %v10312_v33  ;;  %v18575_v25 = vpop.f32.mrf.mxu3  ;;  %v8933_v62 = vld [vmem:[%s18978_s1 + $0x88] sm:$0xff] }
 0x52a   :  { %v8563_v22 = vpop.f32.mrf.mxu2  ;;  %v7247_v35 = vsel %vm1402_vm0, %v5070_v52, %v12439_v32 }
 0x52b   :  { %9059 = vst.msk [vmem:[#allocation4 + $0x78] sm:$0xff] %vm1402_vm0, %v8995_v46  ;;  %v8564_v21 = vadd.f32 %v8563_v22, %v8395_v41  ;;  %v19584_v46 = vld [vmem:[#allocation86_spill] sm:$0xff] }
 0x52c   :  { %7501 = vst [vmem:[#allocation2 + $0x274] sm:$0xf] %v7437_v1  ;;  %v10209_v1 = vor.u32 %v10579_v58, %v10206_v2 }
 0x52d   :  { %7502 = vst [vmem:[#allocation2 + $0x280] sm:$0xf] %v7438_v12  ;;  %v8733_v14 = vadd.f32 %v19583_v28, %v8564_v21  ;;  %v12453_v3 = vpop.permute.xlu0 %12452  ;;  %v8400_v21 = vadd.f32 %v18568_v34, %v18094_v24 }
 0x52e   :  { %v12455_v57 = vunpack.i.h.bf16 %v12453_v3  ;;  %v12454_v0 = vunpack.i.l.bf16 %v12453_v3  ;;  %v5073_v3 = vld [vmem:[#allocation3 + $0x2f1] sm:$0xff] }
 0x52f   :  { %v8868_v16 = vmax.f32 %v8733_v14, 0.0  ;;  %v12488_v60 = vpop.permute.xlu2 %12487 }
 0x530   :  { %v7312_v56 = vsel %vm1467_vm1, %v7248_v8, %v12455_v57  ;;  %v7311_v5 = vsel %vm1467_vm1, %v7247_v35, %v12454_v0  ;;  %v12490_v8 = vunpack.i.h.bf16 %v12488_v60 }
 0x531   :  { %v12458_v45 = vpop.permute.xlu1 %12457  ;;  %v8996_v13 = vadd.f32 %v8932_v49, %v8868_v16  ;;  %v5072_v49 = vld [vmem:[#allocation3 + $0x2e9] sm:$0xff]  ;;  %v18592_v52 = vpop.f32.mrf.mxu3 }
 0x532   :  { %v8565_v61 = vpop.f32.mrf.mxu2  ;;  %v12460_v17 = vunpack.i.h.bf16 %v12458_v45  ;;  %v12459_v27 = vunpack.i.l.bf16 %v12458_v45  ;;  %8483 = vmatmul.bf16.gmra.mxu3 %v10313_v11  ;;  %v12489_v45 = vunpack.i.l.bf16 %v12488_v60  ;;  %v19585_v11 = vld [vmem:[#allocation87_spill] sm:$0xff]  ;;  %v8402_v60 = vadd.f32 %v18568_v34, %v18149_v30 }
 0x533   :  { %v8566_v6 = vadd.f32 %v8565_v61, %v8397_v31  ;;  %9060 = vst.msk [vmem:[#allocation4 + $0x80] sm:$0xff] %vm1402_vm0, %v8996_v13  ;;  %v8934_v61 = vld [vmem:[%s18978_s1 + $0x90] sm:$0xff]  ;;  %v12445_v30 = vunpack.i.h.bf16 %v18494_v63 }
 0x534   :  { %v7376_v40 = vsel %vm1532_vm2, %v7312_v56, %v12460_v17  ;;  %v7375_v41 = vsel %vm1532_vm2, %v7311_v5, %v12459_v27  ;;  %v10324_v5 = vld [vmem:[#allocation2 + $0x288] sm:$0xf]  ;;  %v10610_v17 = vld [vmem:[#allocation2 + $0x290] sm:$0xf0] }
 0x535   :  { %v8735_v20 = vadd.f32 %v19584_v46, %v8566_v6  ;;  %v7440_v18 = vpack.c.bf16 %v7376_v40, %v7376_v40  ;;  %v7439_v22 = vpack.c.bf16 %v7375_v41, %v7375_v41 }
 0x537   :  { %v8869_v12 = vmax.f32 %v8735_v20, 0.0  ;;  %7504 = vst [vmem:[#allocation2 + $0x298] sm:$0xf] %v7440_v18  ;;  %v12468_v32 = vpop.permute.xlu0 %12467  ;;  %v18588_v59 = vpop.permute.xlu2 %12512  ;;  %v10325_v20 = vor.u32 %v10610_v17, %v10324_v5 }
 0x538   :  { %8607 = vmatmul.bf16.gmra.mxu2 %v10209_v1  ;;  %7503 = vst [vmem:[#allocation2 + $0x28c] sm:$0xf] %v7439_v22  ;;  %v12470_v28 = vunpack.i.h.bf16 %v12468_v32  ;;  %v12469_v14 = vunpack.i.l.bf16 %v12468_v32  ;;  %v10582_v1 = vld [vmem:[#allocation2 + $0x1b4] sm:$0xf] }
 0x539   :  { %v8997_v50 = vadd.f32 %v8933_v62, %v8869_v12  ;;  %v10218_v12 = vld [vmem:[#allocation2 + $0x1bc] sm:$0xf0] }
 0x53a   :  { %v8568_v33 = vpop.f32.mrf.mxu2  ;;  %v12483_v36 = vpop.permute.xlu1 %12482  ;;  %v7250_v57 = vsel %vm1402_vm0, %v5073_v3, %v12470_v28  ;;  %v7249_v0 = vsel %vm1402_vm0, %v5072_v49, %v12469_v14  ;;  %v12444_v28 = vunpack.i.l.bf16 %v18494_v63  ;;  %v8935_v14 = vld [vmem:[%s18978_s1 + $0x98] sm:$0xff]  ;;  %v12450_v3 = vunpack.i.h.bf16 %v18551_v7 }
 0x53b   :  { %9061 = vst.msk [vmem:[#allocation4 + $0x88] sm:$0xff] %vm1402_vm0, %v8997_v50  ;;  %v8569_v16 = vadd.f32 %v8568_v33, %v8400_v21  ;;  %v12485_v31 = vunpack.i.h.bf16 %v12483_v36  ;;  %v12484_v24 = vunpack.i.l.bf16 %v12483_v36  ;;  %v19586_v50 = vld [vmem:[#allocation69_spill] sm:$0xff]  ;;  %v10221_v33 = vor.u32 %v10582_v1, %v10218_v12  ;;  %v18617_v49 = vpop.f32.mrf.mxu3 }
 0x53c   :  { %v12449_v36 = vunpack.i.l.bf16 %v18551_v7 }
 0x53d   :  { %v8738_v35 = vadd.f32 %v19585_v11, %v8569_v16  ;;  %v7314_v13 = vsel %vm1467_vm1, %v7250_v57, %v12485_v31  ;;  %v7313_v56 = vsel %vm1467_vm1, %v7249_v0, %v12484_v24  ;;  %v4818_v57 = vld [vmem:[#allocation3 + $0x2e8] sm:$0xff]  ;;  %v4819_v0 = vld [vmem:[#allocation3 + $0x2f0] sm:$0xff] }
 0x53e   :  { %v7378_v27 = vsel %vm1532_vm2, %v7314_v13, %v12490_v8  ;;  %v7377_v6 = vsel %vm1532_vm2, %v7313_v56, %v12489_v45  ;;  %v6164_v8 = vsel %vm1402_vm0, %v4819_v0, %v12445_v30  ;;  %v6163_v63 = vsel %vm1402_vm0, %v4818_v57, %v12444_v28  ;;  %v19587_v30 = vld [vmem:[#allocation40_spill] sm:$0xff] }
 0x53f   :  { %v8870_v58 = vmax.f32 %v8738_v35, 0.0  ;;  %v7442_v2 = vpack.c.bf16 %v7378_v27, %v7378_v27  ;;  %v7441_v40 = vpack.c.bf16 %v7377_v6, %v7377_v6  ;;  %v18604_v46 = vpop.permute.xlu0 %12472  ;;  %v18609_v21 = vpop.permute.xlu2 %12527  ;;  %v8405_v35 = vadd.f32 %v18568_v34, %v18202_v10  ;;  %v18631_v6 = vld [vmem:[#allocation2 + $0x1d4] sm:$0xf0] }
 0x540   :  { %v6228_v13 = vsel %vm1467_vm1, %v6164_v8, %v12450_v3  ;;  %v6227_v56 = vsel %vm1467_vm1, %v6163_v63, %v12449_v36  ;;  %v12474_v7 = vunpack.i.l.bf16 %v18604_v46  ;;  %v8936_v3 = vld [vmem:[%s18978_s1 + $0xa0] sm:$0xff]  ;;  %v4822_v63 = vld [vmem:[#allocation3 + $0x318] sm:$0xff] }
 0x541   :  { %v8998_v41 = vadd.f32 %v8934_v61, %v8870_v58  ;;  %7506 = vst [vmem:[#allocation2 + $0x2b0] sm:$0xf] %v7442_v2  ;;  %v12475_v58 = vunpack.i.h.bf16 %v18604_v46  ;;  %v12480_v46 = vunpack.i.h.bf16 %v18548_v55 }
 0x542   :  { %v8570_v18 = vpop.f32.mrf.mxu2  ;;  %7505 = vst [vmem:[#allocation2 + $0x2a4] sm:$0xf] %v7441_v40  ;;  %v18606_v22 = vpop.permute.xlu1 %12497  ;;  %8488 = vmatmul.bf16.gmra.mxu3 %v10325_v20  ;;  %v10585_v20 = vld [vmem:[#allocation2 + $0x1cc] sm:$0xf] }
 0x543   :  { %v8571_v62 = vadd.f32 %v8570_v18, %v8402_v60  ;;  %9062 = vst.msk [vmem:[#allocation4 + $0x90] sm:$0xff] %vm1402_vm0, %v8998_v41  ;;  %v10336_v60 = vld [vmem:[#allocation2 + $0x2a0] sm:$0xf]  ;;  %v10613_v41 = vld [vmem:[#allocation2 + $0x2a8] sm:$0xf0]  ;;  %v8407_v18 = vadd.f32 %v18568_v34, %v18270_v4  ;;  %v10233_v36 = vor.u32 %v10585_v20, %v18631_v6  ;;  %v12500_v0 = vunpack.i.h.bf16 %v18606_v22 }
 0x544   :  { %v10337_v4 = vor.u32 %v10613_v41, %v10336_v60 }
 0x545   :  { %v8740_v32 = vadd.f32 %v19586_v50, %v8571_v62  ;;  %v4820_v62 = vld [vmem:[#allocation3 + $0x300] sm:$0xff] }
 0x546   :  { %v6165_v1 = vsel %vm1402_vm0, %v4820_v62, %v12474_v7 }
 0x547   :  { %v8871_v16 = vmax.f32 %v8740_v32, 0.0  ;;  %v12493_v24 = vpop.permute.xlu0 %12492  ;;  %v12543_v12 = vpop.permute.xlu2 %12542 }
 0x548   :  { %8612 = vmatmul.bf16.gmra.mxu2 %v10221_v33  ;;  %v12495_v45 = vunpack.i.h.bf16 %v12493_v24  ;;  %v12494_v11 = vunpack.i.l.bf16 %v12493_v24  ;;  %v4821_v33 = vld [vmem:[#allocation3 + $0x308] sm:$0xff] }
 0x549   :  { %v8999_v31 = vadd.f32 %v8935_v14, %v8871_v16  ;;  %v12479_v14 = vunpack.i.l.bf16 %v18548_v55  ;;  %v18644_v16 = vpop.f32.mrf.mxu3  ;;  %v6166_v57 = vsel %vm1402_vm0, %v4821_v33, %v12475_v58  ;;  %v12545_v55 = vunpack.i.h.bf16 %v12543_v12 }
 0x54a   :  { %v12503_v61 = vpop.permute.xlu1 %12502  ;;  %v6291_v17 = vsel %vm1532_vm2, %v6227_v56, %v12494_v11  ;;  %v6292_v27 = vsel %vm1532_vm2, %v6228_v13, %v12495_v45  ;;  %v4823_v45 = vld [vmem:[#allocation3 + $0x320] sm:$0xff]  ;;  %v12544_v56 = vunpack.i.l.bf16 %v12543_v12  ;;  %v6230_v60 = vsel %vm1467_vm1, %v6166_v57, %v12480_v46 }
 0x54b   :  { %9063 = vst.msk [vmem:[#allocation4 + $0x98] sm:$0xff] %vm1402_vm0, %v8999_v31  ;;  %v8573_v5 = vpop.f32.mrf.mxu2  ;;  %v6355_v2 = vpack.c.bf16 %v6291_v17, %v6291_v17  ;;  %v6356_v10 = vpack.c.bf16 %v6292_v27, %v6292_v27  ;;  %v12505_v50 = vunpack.i.h.bf16 %v12503_v61  ;;  %v12504_v32 = vunpack.i.l.bf16 %v12503_v61 }
 0x54c   :  { %v8574_v40 = vadd.f32 %v8573_v5, %v8405_v35  ;;  %v12499_v31 = vunpack.i.l.bf16 %v18606_v22  ;;  %v6229_v13 = vsel %vm1467_vm1, %v6165_v1, %v12479_v14  ;;  %v19588_v14 = vld [vmem:[#allocation81_spill] sm:$0xff]  ;;  %v12515_v46 = vunpack.i.h.bf16 %v18588_v59 }
 0x54d   :  { %6419 = vst [vmem:[#allocation2 + $0x2b8] sm:$0xf] %v6355_v2  ;;  %v6168_v7 = vsel %vm1402_vm0, %v4823_v45, %v12505_v50  ;;  %v6167_v61 = vsel %vm1402_vm0, %v4822_v63, %v12504_v32  ;;  %v5074_v50 = vld [vmem:[#allocation3 + $0x301] sm:$0xff]  ;;  %v5075_v32 = vld [vmem:[#allocation3 + $0x309] sm:$0xff]  ;;  %v12514_v57 = vunpack.i.l.bf16 %v18588_v59 }
 0x54e   :  { %v8743_v28 = vadd.f32 %v19587_v30, %v8574_v40  ;;  %6420 = vst [vmem:[#allocation2 + $0x2c4] sm:$0xf] %v6356_v10 }
 0x54f   :  { %v12508_v8 = vpop.permute.xlu0 %12507 }
 0x550   :  { %v8872_v24 = vmax.f32 %v8743_v28, 0.0  ;;  %v12510_v11 = vunpack.i.h.bf16 %v12508_v8  ;;  %v12509_v35 = vunpack.i.l.bf16 %v12508_v8 }
 0x552   :  { %v9000_v5 = vadd.f32 %v8936_v3, %v8872_v24  ;;  %v12523_v17 = vpop.permute.xlu1 %12522  ;;  %8493 = vmatmul.bf16.gmra.mxu3 %v10337_v4  ;;  %v6231_v22 = vsel %vm1467_vm1, %v6167_v61, %v12509_v35  ;;  %v6232_v6 = vsel %vm1467_vm1, %v6168_v7, %v12510_v11  ;;  %v7252_v3 = vsel %vm1402_vm0, %v5075_v32, %v12500_v0 }
 0x553   :  { %v8575_v27 = vpop.f32.mrf.mxu2  ;;  %v12525_v58 = vunpack.i.h.bf16 %v12523_v17  ;;  %v12524_v2 = vunpack.i.l.bf16 %v12523_v17  ;;  %v6295_v10 = vsel %vm1532_vm2, %v6231_v22, %v12544_v56  ;;  %v6296_v40 = vsel %vm1532_vm2, %v6232_v6, %v12545_v55 }
 0x554   :  { %9064 = vst.msk [vmem:[#allocation4 + $0xa0] sm:$0xff] %vm1402_vm0, %v9000_v5  ;;  %v8576_v41 = vadd.f32 %v8575_v27, %v8407_v18  ;;  %v6359_v20 = vpack.c.bf16 %v6295_v10, %v6295_v10  ;;  %v6360_v62 = vpack.c.bf16 %v6296_v40, %v6296_v40  ;;  %v7251_v4 = vsel %vm1402_vm0, %v5074_v50, %v12499_v31  ;;  %v8937_v18 = vld [vmem:[%s18978_s1 + $0xa8] sm:$0xff]  ;;  %v18670_v31 = vpop.f32.mrf.mxu3  ;;  %v10348_v17 = vld [vmem:[#allocation2 + $0x2b8] sm:$0xf] }
 0x555   :  { %v6294_v1 = vsel %vm1532_vm2, %v6230_v60, %v12525_v58  ;;  %v6293_v12 = vsel %vm1532_vm2, %v6229_v13, %v12524_v2  ;;  %v8410_v0 = vadd.f32 %v18568_v34, %v18305_v38  ;;  %v7315_v11 = vsel %vm1467_vm1, %v7251_v4, %v12514_v57  ;;  %v10616_v27 = vld [vmem:[#allocation2 + $0x2c0] sm:$0xf0]  ;;  %v8938_v58 = vld [vmem:[%s18978_s1 + $0xb0] sm:$0xff] }
 0x556   :  { %v6358_v30 = vpack.c.bf16 %v6294_v1, %v6294_v1  ;;  %v6357_v28 = vpack.c.bf16 %v6293_v12, %v6293_v12  ;;  %v8745_v33 = vadd.f32 %v19588_v14, %v8576_v41  ;;  %6423 = vst [vmem:[#allocation2 + $0x2e8] sm:$0xf] %v6359_v20  ;;  %v12530_v38 = vunpack.i.h.bf16 %v18609_v21  ;;  %v12611_v41 = vld [vmem:[#allocation3 + $0x321] sm:$0xff]  ;;  %v10242_v14 = vld [vmem:[#allocation2 + $0x1ec] sm:$0xf0] }
 0x557   :  { %6424 = vst [vmem:[#allocation2 + $0x2f4] sm:$0xf] %v6360_v62  ;;  %v12518_v8 = vpop.permute.xlu0 %12517  ;;  %v12529_v22 = vunpack.i.l.bf16 %v18609_v21  ;;  %v10349_v40 = vor.u32 %v10616_v27, %v10348_v17  ;;  %v8412_v60 = vadd.f32 %v18568_v34, %v18340_v47  ;;  %v12612_v21 = vld [vmem:[#allocation3 + $0x319] sm:$0xff]  ;;  %v5078_v27 = vld [vmem:[#allocation3 + $0x331] sm:$0xff] }
 0x558   :  { %8617 = vmatmul.bf16.gmra.mxu2 %v10233_v36  ;;  %v8873_v24 = vmax.f32 %v8745_v33, 0.0  ;;  %6422 = vst [vmem:[#allocation2 + $0x2dc] sm:$0xf] %v6358_v30  ;;  %v12520_v55 = vunpack.i.h.bf16 %v12518_v8  ;;  %v12519_v63 = vunpack.i.l.bf16 %v12518_v8  ;;  %v7316_v36 = vsel %vm1467_vm1, %v7252_v3, %v12515_v46  ;;  %v19589_v8 = vld [vmem:[#allocation16_spill] sm:$0xff] }
 0x559   :  { %6421 = vst [vmem:[#allocation2 + $0x2d0] sm:$0xf] %v6357_v28  ;;  %v7254_v20 = vsel %vm1402_vm0, %v12611_v41, %v12530_v38  ;;  %v7253_v12 = vsel %vm1402_vm0, %v12612_v21, %v12529_v22  ;;  %v10588_v28 = vld [vmem:[#allocation2 + $0x1e4] sm:$0xf]  ;;  %v5079_v22 = vld [vmem:[#allocation3 + $0x339] sm:$0xff] }
 0x55a   :  { %v9001_v45 = vadd.f32 %v8937_v18, %v8873_v24  ;;  %v7379_v59 = vsel %vm1532_vm2, %v7315_v11, %v12519_v63  ;;  %v7380_v13 = vsel %vm1532_vm2, %v7316_v36, %v12520_v55  ;;  %v12538_v5 = vpop.permute.xlu1 %12537  ;;  %v10245_v63 = vor.u32 %v10588_v28, %v10242_v14  ;;  %v8939_v11 = vld [vmem:[%s18978_s1 + $0xb8] sm:$0xff] }
 0x55b   :  { %v8578_v35 = vpop.f32.mrf.mxu2  ;;  %v7443_v56 = vpack.c.bf16 %v7379_v59, %v7379_v59  ;;  %v7444_v7 = vpack.c.bf16 %v7380_v13, %v7380_v13  ;;  %v12539_v50 = vunpack.i.l.bf16 %v12538_v5  ;;  %v8417_v14 = vadd.f32 %v18568_v34, %v18415_v19 }
 0x55c   :  { %9065 = vst.msk [vmem:[#allocation4 + $0xa8] sm:$0xff] %vm1402_vm0, %v9001_v45  ;;  %v8579_v61 = vadd.f32 %v8578_v35, %v8410_v0  ;;  %v18689_v4 = vpop.f32.mrf.mxu3  ;;  %v12558_v45 = vpop.permute.xlu2 %12557  ;;  %v8415_v35 = vadd.f32 %v18568_v34, %v18384_v42  ;;  %v8420_v19 = vadd.f32 %v18568_v34, %v18445_v53 }
 0x55d   :  { %7507 = vst [vmem:[#allocation2 + $0x2bc] sm:$0xf] %v7443_v56  ;;  %v12559_v17 = vunpack.i.l.bf16 %v12558_v45 }
 0x55e   :  { %v8748_v6 = vadd.f32 %v17743_v54, %v8579_v61  ;;  %7508 = vst [vmem:[#allocation2 + $0x2c8] sm:$0xf] %v7444_v7  ;;  %v12540_v54 = vunpack.i.h.bf16 %v12538_v5  ;;  %v12560_v7 = vunpack.i.h.bf16 %v12558_v45 }
 0x55f   :  { %v12533_v10 = vpop.permute.xlu0 %12532  ;;  %v10619_v21 = vld [vmem:[#allocation2 + $0x2d8] sm:$0xf0] }
 0x560   :  { %v8874_v2 = vmax.f32 %v8748_v6, 0.0  ;;  %v12535_v62 = vunpack.i.h.bf16 %v12533_v10  ;;  %v12534_v1 = vunpack.i.l.bf16 %v12533_v10 }
 0x562   :  { %v9002_v32 = vadd.f32 %v8938_v58, %v8874_v2  ;;  %8498 = vmatmul.bf16.gmra.mxu3 %v10349_v40  ;;  %v7318_v33 = vsel %vm1467_vm1, %v7254_v20, %v12535_v62  ;;  %v7317_v3 = vsel %vm1467_vm1, %v7253_v12, %v12534_v1  ;;  %v12553_v0 = vpop.permute.xlu1 %12552  ;;  %v19590_v20 = vld [vmem:[#allocation42_spill] sm:$0xff]  ;;  %v10360_v1 = vld [vmem:[#allocation2 + $0x2d0] sm:$0xf] }
 0x563   :  { %v8580_v30 = vpop.f32.mrf.mxu2  ;;  %v7381_v18 = vsel %vm1532_vm2, %v7317_v3, %v12539_v50  ;;  %v7382_v46 = vsel %vm1532_vm2, %v7318_v33, %v12540_v54  ;;  %v12555_v13 = vunpack.i.h.bf16 %v12553_v0  ;;  %v12554_v56 = vunpack.i.l.bf16 %v12553_v0 }
 0x564   :  { %v8581_v47 = vadd.f32 %v8580_v30, %v8412_v60  ;;  %9066 = vst.msk [vmem:[#allocation4 + $0xb0] sm:$0xff] %vm1402_vm0, %v9002_v32  ;;  %v7445_v57 = vpack.c.bf16 %v7381_v18, %v7381_v18  ;;  %v7446_v24 = vpack.c.bf16 %v7382_v46, %v7382_v46  ;;  %v18708_v12 = vpop.f32.mrf.mxu3  ;;  %v8940_v32 = vld [vmem:[%s18978_s1 + $0xc0] sm:$0xff]  ;;  %v10361_v28 = vor.u32 %v10619_v21, %v10360_v1  ;;  %v10254_v18 = vld [vmem:[#allocation2 + $0x204] sm:$0xf0] }
 0x566   :  { %v8750_v55 = vadd.f32 %v19589_v8, %v8581_v47  ;;  %7509 = vst [vmem:[#allocation2 + $0x2d4] sm:$0xf] %v7445_v57  ;;  %v10591_v47 = vld [vmem:[#allocation2 + $0x1fc] sm:$0xf]  ;;  %v19591_v57 = vld [vmem:[#allocation88_spill] sm:$0xff] }
 0x567   :  { %7510 = vst [vmem:[#allocation2 + $0x2e0] sm:$0xf] %v7446_v24  ;;  %v12548_v59 = vpop.permute.xlu0 %12547  ;;  %v10257_v8 = vor.u32 %v10591_v47, %v10254_v18  ;;  %v8945_v47 = vld [vmem:[%s18978_s1 + $0xe8] sm:$0xff] }
 0x568   :  { %v8875_v36 = vmax.f32 %v8750_v55, 0.0  ;;  %8622 = vmatmul.bf16.gmra.mxu2 %v10245_v63  ;;  %v12550_v38 = vunpack.i.h.bf16 %v12548_v59  ;;  %v12549_v5 = vunpack.i.l.bf16 %v12548_v59  ;;  %v8941_v55 = vld [vmem:[%s18978_s1 + $0xc8] sm:$0xff] }
 0x56a   :  { %v9003_v61 = vadd.f32 %v8939_v11, %v8875_v36  ;;  %v7256_v58 = vsel %vm1402_vm0, %v5079_v22, %v12550_v38  ;;  %v7255_v2 = vsel %vm1402_vm0, %v5078_v27, %v12549_v5  ;;  %v8422_v5 = vadd.f32 %v18568_v34, %v18462_v51  ;;  %v10594_v22 = vld [vmem:[#allocation2 + $0x214] sm:$0xf] }
 0x56b   :  { %v8583_v6 = vpop.f32.mrf.mxu2  ;;  %v7320_v42 = vsel %vm1467_vm1, %v7256_v58, %v12555_v13  ;;  %v7319_v40 = vsel %vm1467_vm1, %v7255_v2, %v12554_v56  ;;  %v10372_v13 = vld [vmem:[#allocation2 + $0x2e8] sm:$0xf]  ;;  %v10622_v56 = vld [vmem:[#allocation2 + $0x2f0] sm:$0xf0]  ;;  %v8425_v51 = vadd.f32 %v18568_v34, %v18486_v9 }
 0x56c   :  { %9067 = vst.msk [vmem:[#allocation4 + $0xb8] sm:$0xff] %vm1402_vm0, %v9003_v61  ;;  %v8584_v10 = vadd.f32 %v8583_v6, %v8415_v35  ;;  %v7383_v60 = vsel %vm1532_vm2, %v7319_v40, %v12559_v17  ;;  %v7384_v41 = vsel %vm1532_vm2, %v7320_v42, %v12560_v7  ;;  %v18720_v0 = vpop.f32.mrf.mxu3  ;;  %v19592_v35 = vld [vmem:[#allocation89_spill] sm:$0xff]  ;;  %v10373_v38 = vor.u32 %v10622_v56, %v10372_v13  ;;  %v10266_v6 = vld [vmem:[#allocation2 + $0x21c] sm:$0xf0]  ;;  %v8943_v42 = vld [vmem:[%s18978_s1 + $0xd8] sm:$0xff] }
 0x56d   :  { %v7447_v54 = vpack.c.bf16 %v7383_v60, %v7383_v60  ;;  %v7448_v50 = vpack.c.bf16 %v7384_v41, %v7384_v41  ;;  %v8942_v7 = vld [vmem:[%s18978_s1 + $0xd0] sm:$0xff]  ;;  %v19596_v13 = vld [vmem:[#allocation14_spill] sm:$0xff] }
 0x56e   :  { %v8753_v62 = vadd.f32 %v19590_v20, %v8584_v10  ;;  %v10269_v10 = vor.u32 %v10594_v22, %v10266_v6  ;;  %v18769_v22 = vpop.f32.mrf.mxu0 }
 0x56f   :  { %7511 = vst [vmem:[#allocation2 + $0x2ec] sm:$0xf] %v7447_v54  ;;  %v8427_v54 = vadd.f32 %v18568_v34, %v18513_v39 }
 0x570   :  { %v8876_v30 = vmax.f32 %v8753_v62, 0.0  ;;  %7512 = vst [vmem:[#allocation2 + $0x2f8] sm:$0xf] %v7448_v50  ;;  %v19593_v62 = vld [vmem:[#allocation50_spill] sm:$0xff] }
 0x572   :  { %v9004_v33 = vadd.f32 %v8940_v32, %v8876_v30  ;;  %8503 = vmatmul.bf16.gmra.mxu3 %v10361_v28  ;;  %v10597_v30 = vld [vmem:[#allocation2 + $0x22c] sm:$0xf]  ;;  %v10278_v28 = vld [vmem:[#allocation2 + $0x234] sm:$0xf0] }
 0x573   :  { %v8585_v3 = vpop.f32.mrf.mxu2 }
 0x574   :  { %9068 = vst.msk [vmem:[#allocation4 + $0xc0] sm:$0xff] %vm1402_vm0, %v9004_v33  ;;  %v8586_v46 = vadd.f32 %v8585_v3, %v8417_v14  ;;  %v18731_v53 = vpop.f32.mrf.mxu3  ;;  %v19594_v14 = vld [vmem:[#allocation84_spill] sm:$0xff]  ;;  %v10281_v3 = vor.u32 %v10597_v30, %v10278_v28 }
 0x576   :  { %v8755_v24 = vadd.f32 %v19591_v57, %v8586_v46  ;;  %v8430_v46 = vadd.f32 %v18568_v34, %v18545_v44 }
 0x578   :  { %v8877_v63 = vmax.f32 %v8755_v24, 0.0  ;;  %8627 = vmatmul.bf16.gmra.mxu2 %v10257_v8  ;;  %v19595_v8 = vld [vmem:[#allocation37_spill] sm:$0xff] }
 0x57a   :  { %v9005_v45 = vadd.f32 %v8941_v55, %v8877_v63  ;;  %v8946_v63 = vld [vmem:[%s18978_s1 + $0xf0] sm:$0xff] }
 0x57b   :  { %v8588_v11 = vpop.f32.mrf.mxu2 }
 0x57c   :  { %9069 = vst.msk [vmem:[#allocation4 + $0xc8] sm:$0xff] %vm1402_vm0, %v9005_v45  ;;  %v8589_v36 = vadd.f32 %v8588_v11, %v8420_v19  ;;  %v8432_v45 = vadd.f32 %v18568_v34, %v18575_v25 }
 0x57e   :  { %v8758_v59 = vadd.f32 %v19592_v35, %v8589_v36  ;;  %v10600_v35 = vld [vmem:[#allocation2 + $0x244] sm:$0xf] }
 0x580   :  { %v8878_v61 = vmax.f32 %v8758_v59, 0.0  ;;  %v10290_v59 = vld [vmem:[#allocation2 + $0x24c] sm:$0xf0] }
 0x582   :  { %v9006_v17 = vadd.f32 %v8942_v7, %v8878_v61  ;;  %8508 = vmatmul.bf16.gmra.mxu3 %v10373_v38  ;;  %v10293_v7 = vor.u32 %v10600_v35, %v10290_v59  ;;  %v8947_v61 = vld [vmem:[%s18978_s1 + $0xf8] sm:$0xff]  ;;  %v10609_v59 = vld [vmem:[#allocation2 + $0x28c] sm:$0xf] }
 0x583   :  { %v8590_v27 = vpop.f32.mrf.mxu2 }
 0x584   :  { %9070 = vst.msk [vmem:[#allocation4 + $0xd0] sm:$0xff] %vm1402_vm0, %v9006_v17  ;;  %v8591_v58 = vadd.f32 %v8590_v27, %v8422_v5  ;;  %v8435_v5 = vadd.f32 %v18568_v34, %v18592_v52  ;;  %v10603_v52 = vld [vmem:[#allocation2 + $0x25c] sm:$0xf] }
 0x586   :  { %v8760_v2 = vadd.f32 %v17945_v43, %v8591_v58  ;;  %v8944_v43 = vld [vmem:[%s18978_s1 + $0xe0] sm:$0xff] }
 0x587   :  { %v8948_v58 = vld [vmem:[%s18978_s1 + $0x100] sm:$0xff] }
 0x588   :  { %v8879_v40 = vmax.f32 %v8760_v2, 0.0  ;;  %8632 = vmatmul.bf16.gmra.mxu2 %v10269_v10  ;;  %v8437_v10 = vadd.f32 %v18568_v34, %v18617_v49  ;;  %v8440_v49 = vadd.f32 %v18568_v34, %v18644_v16 }
 0x58a   :  { %v9007_v60 = vadd.f32 %v8943_v42, %v8879_v40 }
 0x58b   :  { %v8593_v41 = vpop.f32.mrf.mxu2 }
 0x58c   :  { %9071 = vst.msk [vmem:[#allocation4 + $0xd8] sm:$0xff] %vm1402_vm0, %v9007_v60  ;;  %v8594_v20 = vadd.f32 %v8593_v41, %v8425_v51  ;;  %v10302_v51 = vld [vmem:[#allocation2 + $0x264] sm:$0xf0] }
 0x58e   :  { %v8763_v1 = vadd.f32 %v19593_v62, %v8594_v20  ;;  %v10305_v20 = vor.u32 %v10603_v52, %v10302_v51  ;;  %v18779_v62 = vpop.f32.mrf.mxu0  ;;  %v10612_v52 = vld [vmem:[#allocation2 + $0x2a4] sm:$0xf]  ;;  %v10338_v51 = vld [vmem:[#allocation2 + $0x2ac] sm:$0xf0] }
 0x590   :  { %v8880_v21 = vmax.f32 %v8763_v1, 0.0 }
 0x592   :  { %v9008_v50 = vadd.f32 %v8944_v43, %v8880_v21  ;;  %v18784_v43 = vpop.f32.mrf.mxu3 }
 0x593   :  { %v8595_v32 = vpop.f32.mrf.mxu2 }
 0x594   :  { %9072 = vst.msk [vmem:[#allocation4 + $0xe0] sm:$0xff] %vm1402_vm0, %v9008_v50  ;;  %v8596_v9 = vadd.f32 %v8595_v32, %v8427_v54  ;;  %v8950_v32 = vld [vmem:[%s18978_s1 + $0x110] sm:$0xff] }
 0x596   :  { %v8765_v33 = vadd.f32 %v19594_v14, %v8596_v9  ;;  %v18793_v28 = vpop.f32.mrf.mxu0  ;;  %v8442_v9 = vadd.f32 %v18568_v34, %v18670_v31  ;;  %v8445_v31 = vadd.f32 %v18568_v34, %v18689_v4 }
 0x598   :  { %v8881_v18 = vmax.f32 %v8765_v33, 0.0  ;;  %8637 = vmatmul.bf16.gmra.mxu2 %v10281_v3  ;;  %v10606_v3 = vld [vmem:[#allocation2 + $0x274] sm:$0xf] }
 0x59a   :  { %v9009_v39 = vadd.f32 %v8945_v47, %v8881_v18  ;;  %v18797_v33 = vpop.f32.mrf.mxu3  ;;  %v10314_v47 = vld [vmem:[#allocation2 + $0x27c] sm:$0xf0] }
 0x59b   :  { %v8598_v57 = vpop.f32.mrf.mxu2 }
 0x59c   :  { %9073 = vst.msk [vmem:[#allocation4 + $0xe8] sm:$0xff] %vm1402_vm0, %v9009_v39  ;;  %v8599_v24 = vadd.f32 %v8598_v57, %v8430_v46  ;;  %v10317_v46 = vor.u32 %v10606_v3, %v10314_v47  ;;  %v8951_v39 = vld [vmem:[%s18978_s1 + $0x118] sm:$0xff]  ;;  %v10350_v3 = vld [vmem:[#allocation2 + $0x2c4] sm:$0xf0] }
 0x59e   :  { %v8768_v55 = vadd.f32 %v19595_v8, %v8599_v24  ;;  %v18806_v8 = vpop.f32.mrf.mxu0 }
 0x5a0   :  { %v8882_v19 = vmax.f32 %v8768_v55, 0.0 }
 0x5a2   :  { %v9010_v11 = vadd.f32 %v8946_v63, %v8882_v19  ;;  %v18809_v19 = vpop.f32.mrf.mxu3 }
 0x5a3   :  { %v8600_v36 = vpop.f32.mrf.mxu2 }
 0x5a4   :  { %9074 = vst.msk [vmem:[#allocation4 + $0xf0] sm:$0xff] %vm1402_vm0, %v9010_v11  ;;  %v8601_v44 = vadd.f32 %v8600_v36, %v8432_v45  ;;  %v8952_v45 = vld [vmem:[%s18978_s1 + $0x120] sm:$0xff]  ;;  %v8447_v36 = vadd.f32 %v18568_v34, %v18708_v12  ;;  %v8450_v12 = vadd.f32 %v18568_v34, %v18720_v0 }
 0x5a6   :  { %v8770_v56 = vadd.f32 %v19596_v13, %v8601_v44  ;;  %v10326_v44 = vld [vmem:[#allocation2 + $0x294] sm:$0xf0] }
 0x5a8   :  { %v8883_v38 = vmax.f32 %v8770_v56, 0.0  ;;  %8642 = vmatmul.bf16.gmra.mxu2 %v10293_v7  ;;  %v8797_v56 = vpop.f32.mrf.mxu0 }
 0x5aa   :  { %v9011_v25 = vadd.f32 %v8947_v61, %v8883_v38  ;;  %v10329_v61 = vor.u32 %v10609_v59, %v10326_v44  ;;  %v8953_v38 = vld [vmem:[%s18978_s1 + $0x128] sm:$0xff]  ;;  %v10618_v44 = vld [vmem:[#allocation2 + $0x2d4] sm:$0xf] }
 0x5ab   :  { %v8603_v17 = vpop.f32.mrf.mxu2 }
 0x5ac   :  { %9075 = vst.msk [vmem:[#allocation4 + $0xf8] sm:$0xff] %vm1402_vm0, %v9011_v25  ;;  %v8604_v27 = vadd.f32 %v8603_v17, %v8435_v5 }
 0x5ae   :  { %v8773_v6 = vadd.f32 %v18170_v15, %v8604_v27  ;;  %v8949_v15 = vld [vmem:[%s18978_s1 + $0x108] sm:$0xff] }
 0x5b0   :  { %v8884_v2 = vmax.f32 %v8773_v6, 0.0 }
 0x5b2   :  { %v9012_v42 = vadd.f32 %v8948_v58, %v8884_v2  ;;  %v8954_v58 = vld [vmem:[%s18978_s1 + $0x130] sm:$0xff] }
 0x5b3   :  { %v8605_v40 = vpop.f32.mrf.mxu2 }
 0x5b4   :  { %9076 = vst.msk [vmem:[#allocation4 + $0x100] sm:$0xff] %vm1402_vm0, %v9012_v42  ;;  %v8606_v60 = vadd.f32 %v8605_v40, %v8437_v10  ;;  %v8452_v42 = vadd.f32 %v18568_v34, %v18731_v53  ;;  %v8455_v53 = vadd.f32 %v18568_v34, %v18784_v43  ;;  %v10615_v43 = vld [vmem:[#allocation2 + $0x2bc] sm:$0xf] }
 0x5b6   :  { %v8775_v41 = vadd.f32 %v18238_v37, %v8606_v60 }
 0x5b8   :  { %v8885_v1 = vmax.f32 %v8775_v41, 0.0  ;;  %8647 = vmatmul.bf16.gmra.mxu2 %v10305_v20  ;;  %v10341_v41 = vor.u32 %v10612_v52, %v10338_v51  ;;  %v8955_v20 = vld [vmem:[%s18978_s1 + $0x138] sm:$0xff] }
 0x5ba   :  { %v9013_v21 = vadd.f32 %v8949_v15, %v8885_v1 }
 0x5bb   :  { %v8608_v54 = vpop.f32.mrf.mxu2 }
 0x5bc   :  { %9077 = vst.msk [vmem:[#allocation4 + $0x108] sm:$0xff] %vm1402_vm0, %v9013_v21  ;;  %v8609_v50 = vadd.f32 %v8608_v54, %v8440_v49 }
 0x5be   :  { %v8778_v37 = vadd.f32 %v18282_v29, %v8609_v50 }
 0x5c0   :  { %v8886_v30 = vmax.f32 %v8778_v37, 0.0 }
 0x5c2   :  { %v9014_v14 = vadd.f32 %v8950_v32, %v8886_v30  ;;  %v8457_v30 = vadd.f32 %v18568_v34, %v18797_v33  ;;  %v8460_v33 = vadd.f32 %v18568_v34, %v18809_v19 }
 0x5c3   :  { %v8610_v16 = vpop.f32.mrf.mxu2 }
 0x5c4   :  { %9078 = vst.msk [vmem:[#allocation4 + $0x110] sm:$0xff] %vm1402_vm0, %v9014_v14  ;;  %v8611_v18 = vadd.f32 %v8610_v16, %v8442_v9 }
 0x5c6   :  { %v8780_v29 = vadd.f32 %v18323_v48, %v8611_v18 }
 0x5c8   :  { %v8887_v57 = vmax.f32 %v8780_v29, 0.0  ;;  %8652 = vmatmul.bf16.gmra.mxu2 %v10317_v46  ;;  %v8957_v46 = vld [vmem:[%s18978_s1 + $0x148] sm:$0xff] }
 0x5ca   :  { %v9015_v24 = vadd.f32 %v8951_v39, %v8887_v57 }
 0x5cb   :  { %v8613_v55 = vpop.f32.mrf.mxu2 }
 0x5cc   :  { %9079 = vst.msk [vmem:[#allocation4 + $0x118] sm:$0xff] %vm1402_vm0, %v9015_v24  ;;  %v8614_v63 = vadd.f32 %v8613_v55, %v8445_v31  ;;  %v10380_v55 = vld [vmem:[#allocation2 + $0x2f0] sm:$0xf] }
 0x5ce   :  { %v8783_v48 = vadd.f32 %v18368_v26, %v8614_v63  ;;  %v18819_v26 = vpop.f32.mrf.mxu3  ;;  %v10623_v63 = vld [vmem:[#allocation2 + $0x2f8] sm:$0xf0] }
 0x5cf   :  { %v8462_v19 = vadd.f32 %v18568_v34, %v18819_v26 }
 0x5d0   :  { %v8888_v11 = vmax.f32 %v8783_v48, 0.0 }
 0x5d2   :  { %v9016_v4 = vadd.f32 %v8952_v45, %v8888_v11  ;;  %v10381_v45 = vor.u32 %v10623_v63, %v10380_v55  ;;  %v8964_v55 = vld [vmem:[%s18978_s1 + $0x180] sm:$0xff] }
 0x5d3   :  { %v8615_v35 = vpop.f32.mrf.mxu2 }
 0x5d4   :  { %9080 = vst.msk [vmem:[#allocation4 + $0x120] sm:$0xff] %vm1402_vm0, %v9016_v4  ;;  %v8616_v13 = vadd.f32 %v8615_v35, %v8447_v36  ;;  %v8958_v36 = vld [vmem:[%s18978_s1 + $0x150] sm:$0xff]  ;;  %10413 = vmatmul.msk.bf16.gmra.mxu0 %vm1402_vm0, %v10381_v45 }
 0x5d6   :  { %v8785_v7 = vadd.f32 %v18402_v23, %v8616_v13  ;;  %v8799_v23 = vpop.f32.mrf.mxu0  ;;  %v18831_v10 = vpop.f32.mrf.mxu3  ;;  %v10362_v13 = vld [vmem:[#allocation2 + $0x2dc] sm:$0xf0] }
 0x5d7   :  { %v8465_v26 = vadd.f32 %v18568_v34, %v18831_v10 }
 0x5d8   :  { %v8889_v5 = vmax.f32 %v8785_v7, 0.0  ;;  %8657 = vmatmul.bf16.gmra.mxu2 %v10329_v61 }
 0x5da   :  { %v9017_v25 = vadd.f32 %v8953_v38, %v8889_v5  ;;  %v8959_v5 = vld [vmem:[%s18978_s1 + $0x158] sm:$0xff] }
 0x5db   :  { %v8618_v17 = vpop.f32.mrf.mxu2 }
 0x5dc   :  { %9081 = vst.msk [vmem:[#allocation4 + $0x128] sm:$0xff] %vm1402_vm0, %v9017_v25  ;;  %v8619_v27 = vadd.f32 %v8618_v17, %v8450_v12 }
 0x5de   :  { %v8788_v6 = vadd.f32 %v18769_v22, %v8619_v27  ;;  %v8802_v1 = vpop.f32.mrf.mxu0  ;;  %v8466_v21 = vpop.f32.mrf.mxu3 }
 0x5e0   :  { %v8890_v2 = vmax.f32 %v8788_v6, 0.0 }
 0x5e2   :  { %v9018_v40 = vadd.f32 %v8954_v58, %v8890_v2 }
 0x5e3   :  { %v8620_v0 = vpop.f32.mrf.mxu2 }
 0x5e4   :  { %9082 = vst.msk [vmem:[#allocation4 + $0x130] sm:$0xff] %vm1402_vm0, %v9018_v40  ;;  %v8621_v60 = vadd.f32 %v8620_v0, %v8452_v42  ;;  %v8467_v40 = vadd.f32 %v18568_v34, %v8466_v21 }
 0x5e6   :  { %v8790_v22 = vadd.f32 %v18779_v62, %v8621_v60  ;;  %v8956_v62 = vld [vmem:[%s18978_s1 + $0x140] sm:$0xff]  ;;  %v8804_v14 = vpop.f32.mrf.mxu0  ;;  %v8469_v18 = vpop.f32.mrf.mxu3  ;;  %v10621_v60 = vld [vmem:[#allocation2 + $0x2ec] sm:$0xf] }
 0x5e8   :  { %v8891_v15 = vmax.f32 %v8790_v22, 0.0  ;;  %8662 = vmatmul.bf16.gmra.mxu2 %v10341_v41  ;;  %v10374_v22 = vld [vmem:[#allocation2 + $0x2f4] sm:$0xf0] }
 0x5ea   :  { %v9019_v49 = vadd.f32 %v8955_v20, %v8891_v15  ;;  %v10377_v20 = vor.u32 %v10621_v60, %v10374_v22  ;;  %v8961_v15 = vld [vmem:[%s18978_s1 + $0x168] sm:$0xff] }
 0x5eb   :  { %v8623_v54 = vpop.f32.mrf.mxu2 }
 0x5ec   :  { %9083 = vst.msk [vmem:[#allocation4 + $0x138] sm:$0xff] %vm1402_vm0, %v9019_v49  ;;  %v8624_v50 = vadd.f32 %v8623_v54, %v8455_v53  ;;  %v8470_v53 = vadd.f32 %v18568_v34, %v8469_v18 }
 0x5ee   :  { %v8793_v37 = vadd.f32 %v18793_v28, %v8624_v50  ;;  %v10353_v28 = vor.u32 %v10615_v43, %v10350_v3  ;;  %v8807_v48 = vpop.f32.mrf.mxu0  ;;  %v8471_v11 = vpop.f32.mrf.mxu3 }
 0x5f0   :  { %v8892_v32 = vmax.f32 %v8793_v37, 0.0 }
 0x5f2   :  { %v9020_v9 = vadd.f32 %v8956_v62, %v8892_v32  ;;  %v8962_v32 = vld [vmem:[%s18978_s1 + $0x170] sm:$0xff] }
 0x5f3   :  { %v8625_v16 = vpop.f32.mrf.mxu2 }
 0x5f4   :  { %9084 = vst.msk [vmem:[#allocation4 + $0x140] sm:$0xff] %vm1402_vm0, %v9020_v9  ;;  %v8626_v47 = vadd.f32 %v8625_v16, %v8457_v30  ;;  %v18886_v9 = vld [vmem:[%s18980_s3] ss:$0 sm:$0xff] }
 0x5f5   :  { %v8472_v34 = vadd.f32 %v18886_v9, %v8471_v11 }
 0x5f6   :  { %v8795_v29 = vadd.f32 %v18806_v8, %v8626_v47  ;;  %v8809_v38 = vpop.f32.mrf.mxu0  ;;  %v8474_v25 = vpop.f32.mrf.mxu3 }
 0x5f8   :  { %v8893_v39 = vmax.f32 %v8795_v29, 0.0  ;;  %8667 = vmatmul.bf16.gmra.mxu2 %v10353_v28  ;;  %v8963_v29 = vld [vmem:[%s18978_s1 + $0x178] sm:$0xff] }
 0x5fa   :  { %v9021_v57 = vadd.f32 %v8957_v46, %v8893_v39  ;;  %v8475_v46 = vadd.f32 %v18886_v9, %v8474_v25 }
 0x5fb   :  { %v8628_v31 = vpop.f32.mrf.mxu2 }
 0x5fc   :  { %9085 = vst.msk [vmem:[#allocation4 + $0x148] sm:$0xff] %vm1402_vm0, %v9021_v57  ;;  %v8629_v24 = vadd.f32 %v8628_v31, %v8460_v33 }
 0x5fe   :  { %v8798_v8 = vadd.f32 %v8797_v56, %v8629_v24  ;;  %v10365_v56 = vor.u32 %v10618_v44, %v10362_v13  ;;  %v8812_v42 = vpop.f32.mrf.mxu0  ;;  %v8476_v52 = vpop.f32.mrf.mxu3 }
 0x5ff   :  { %v8477_v45 = vadd.f32 %v18886_v9, %v8476_v52 }
 0x600   :  { %v8894_v4 = vmax.f32 %v8798_v8, 0.0 }
 0x602   :  { %v9022_v35 = vadd.f32 %v8958_v36, %v8894_v4 }
 0x603   :  { %v8630_v59 = vpop.f32.mrf.mxu2 }
 0x604   :  { %9086 = vst.msk [vmem:[#allocation4 + $0x150] sm:$0xff] %vm1402_vm0, %v9022_v35  ;;  %v8631_v7 = vadd.f32 %v8630_v59, %v8462_v19  ;;  %v8965_v19 = vld [vmem:[%s18978_s1 + $0x188] sm:$0xff] }
 0x606   :  { %v8800_v61 = vadd.f32 %v8799_v23, %v8631_v7  ;;  %v8960_v23 = vld [vmem:[%s18978_s1 + $0x160] sm:$0xff]  ;;  %v8814_v21 = vpop.f32.mrf.mxu0  ;;  %v8479_v37 = vpop.f32.mrf.mxu3 }
 0x607   :  { %v8480_v44 = vadd.f32 %v18886_v9, %v8479_v37 }
 0x608   :  { %v8895_v12 = vmax.f32 %v8800_v61, 0.0  ;;  %8672 = vmatmul.bf16.gmra.mxu2 %v10365_v56 }
 0x60a   :  { %v9023_v17 = vadd.f32 %v8959_v5, %v8895_v12  ;;  %v8966_v5 = vld [vmem:[%s18978_s1 + $0x190] sm:$0xff] }
 0x60b   :  { %v8633_v27 = vpop.f32.mrf.mxu2 }
 0x60c   :  { %9087 = vst.msk [vmem:[#allocation4 + $0x158] sm:$0xff] %vm1402_vm0, %v9023_v17  ;;  %v8634_v6 = vadd.f32 %v8633_v27, %v8465_v26 }
 0x60e   :  { %v8803_v58 = vadd.f32 %v8802_v1, %v8634_v6  ;;  %v8817_v3 = vpop.f32.mrf.mxu0  ;;  %v8481_v18 = vpop.f32.mrf.mxu3 }
 0x60f   :  { %v8482_v25 = vadd.f32 %v18886_v9, %v8481_v18 }
 0x610   :  { %v8896_v2 = vmax.f32 %v8803_v58, 0.0 }
 0x612   :  { %v9024_v0 = vadd.f32 %v8960_v23, %v8896_v2  ;;  %v8967_v2 = vld [vmem:[%s18978_s1 + $0x198] sm:$0xff] }
 0x613   :  { %v8635_v51 = vpop.f32.mrf.mxu2 }
 0x614   :  { %9088 = vst.msk [vmem:[#allocation4 + $0x160] sm:$0xff] %vm1402_vm0, %v9024_v0  ;;  %v8636_v10 = vadd.f32 %v8635_v51, %v8467_v40 }
 0x616   :  { %v8805_v41 = vadd.f32 %v8804_v14, %v8636_v10  ;;  %v8819_v24 = vpop.f32.mrf.mxu0 }
 0x618   :  { %v8897_v1 = vmax.f32 %v8805_v41, 0.0  ;;  %8677 = vmatmul.bf16.gmra.mxu2 %v10377_v20  ;;  %v8968_v41 = vld [vmem:[%s18978_s1 + $0x1a0] sm:$0xff] }
 0x61a   :  { %v9025_v49 = vadd.f32 %v8961_v15, %v8897_v1 }
 0x61b   :  { %v8638_v54 = vpop.f32.mrf.mxu2 }
 0x61c   :  { %9089 = vst.msk [vmem:[#allocation4 + $0x168] sm:$0xff] %vm1402_vm0, %v9025_v49  ;;  %v8639_v50 = vadd.f32 %v8638_v54, %v8470_v53 }
 0x61e   :  { %v8808_v62 = vadd.f32 %v8807_v48, %v8639_v50  ;;  %v8484_v48 = vpop.f32.mrf.mxu3  ;;  %v8822_v59 = vpop.f32.mrf.mxu0  ;;  %v8969_v50 = vld [vmem:[%s18978_s1 + $0x1a8] sm:$0xff] }
 0x61f   :  { %v8485_v40 = vadd.f32 %v18886_v9, %v8484_v48 }
 0x620   :  { %v8898_v30 = vmax.f32 %v8808_v62, 0.0 }
 0x622   :  { %v9026_v14 = vadd.f32 %v8962_v32, %v8898_v30 }
 0x623   :  { %v8640_v16 = vpop.f32.mrf.mxu2 }
 0x624   :  { %9090 = vst.msk [vmem:[#allocation4 + $0x170] sm:$0xff] %vm1402_vm0, %v9026_v14  ;;  %v8641_v43 = vadd.f32 %v8640_v16, %v8472_v34 }
 0x626   :  { %v8810_v47 = vadd.f32 %v8809_v38, %v8641_v43  ;;  %v8486_v7 = vpop.f32.mrf.mxu3  ;;  %v8824_v17 = vpop.f32.mrf.mxu0  ;;  %v8970_v43 = vld [vmem:[%s18978_s1 + $0x1b0] sm:$0xff] }
 0x627   :  { %v8487_v15 = vadd.f32 %v18886_v9, %v8486_v7 }
 0x628   :  { %v8899_v28 = vmax.f32 %v8810_v47, 0.0 }
 0x62a   :  { %v9027_v39 = vadd.f32 %v8963_v29, %v8899_v28 }
 0x62b   :  { %v8643_v33 = vpop.f32.mrf.mxu2 }
 0x62c   :  { %9091 = vst.msk [vmem:[#allocation4 + $0x178] sm:$0xff] %vm1402_vm0, %v9027_v39  ;;  %v8644_v57 = vadd.f32 %v8643_v33, %v8475_v46 }
 0x62e   :  { %v8813_v31 = vadd.f32 %v8812_v42, %v8644_v57  ;;  %v8489_v58 = vpop.f32.mrf.mxu3  ;;  %v8827_v60 = vpop.f32.mrf.mxu0  ;;  %v8971_v57 = vld [vmem:[%s18978_s1 + $0x1b8] sm:$0xff] }
 0x62f   :  { %v8490_v32 = vadd.f32 %v18886_v9, %v8489_v58 }
 0x630   :  { %v8900_v63 = vmax.f32 %v8813_v31, 0.0 }
 0x632   :  { %v9028_v8 = vadd.f32 %v8964_v55, %v8900_v63 }
 0x633   :  { %v8645_v11 = vpop.f32.mrf.mxu2 }
 0x634   :  { %9092 = vst.msk [vmem:[#allocation4 + $0x180] sm:$0xff] %vm1402_vm0, %v9028_v8  ;;  %v8646_v36 = vadd.f32 %v8645_v11, %v8477_v45 }
 0x636   :  { %v8815_v4 = vadd.f32 %v8814_v21, %v8646_v36  ;;  %v8491_v10 = vpop.f32.mrf.mxu3  ;;  %v8829_v54 = vpop.f32.mrf.mxu0  ;;  %v8972_v36 = vld [vmem:[%s18978_s1 + $0x1c0] sm:$0xff] }
 0x637   :  { %v8492_v18 = vadd.f32 %v18886_v9, %v8491_v10 }
 0x638   :  { %v8901_v35 = vmax.f32 %v8815_v4, 0.0 }
 0x63a   :  { %v9029_v13 = vadd.f32 %v8965_v19, %v8901_v35 }
 0x63b   :  { %v8648_v61 = vpop.f32.mrf.mxu2 }
 0x63c   :  { %9093 = vst.msk [vmem:[#allocation4 + $0x188] sm:$0xff] %vm1402_vm0, %v9029_v13  ;;  %v8649_v56 = vadd.f32 %v8648_v61, %v8480_v44 }
 0x63e   :  { %v8818_v38 = vadd.f32 %v8817_v3, %v8649_v56  ;;  %v8494_v62 = vpop.f32.mrf.mxu3  ;;  %v8832_v47 = vpop.f32.mrf.mxu0  ;;  %v8973_v56 = vld [vmem:[%s18978_s1 + $0x1c8] sm:$0xff] }
 0x640   :  { %v8902_v12 = vmax.f32 %v8818_v38, 0.0 }
 0x642   :  { %v9030_v26 = vadd.f32 %v8966_v5, %v8902_v12 }
 0x643   :  { %v8650_v27 = vpop.f32.mrf.mxu2 }
 0x644   :  { %9094 = vst.msk [vmem:[#allocation4 + $0x190] sm:$0xff] %vm1402_vm0, %v9030_v26  ;;  %v8651_v6 = vadd.f32 %v8650_v27, %v8482_v25 }
 0x646   :  { %v8820_v23 = vadd.f32 %v8819_v24, %v8651_v6  ;;  %v8496_v28 = vpop.f32.mrf.mxu3  ;;  %v8495_v24 = vadd.f32 %v18886_v9, %v8494_v62  ;;  %v8834_v63 = vpop.f32.mrf.mxu0  ;;  %v8974_v6 = vld [vmem:[%s18978_s1 + $0x1d0] sm:$0xff] }
 0x647   :  { %v8497_v19 = vadd.f32 %v18886_v9, %v8496_v28 }
 0x648   :  { %v8903_v42 = vmax.f32 %v8820_v23, 0.0 }
 0x64a   :  { %v9031_v0 = vadd.f32 %v8967_v2, %v8903_v42 }
 0x64b   :  { %v8653_v52 = vpop.f32.mrf.mxu2 }
 0x64c   :  { %9095 = vst.msk [vmem:[#allocation4 + $0x198] sm:$0xff] %vm1402_vm0, %v9031_v0  ;;  %v8654_v51 = vadd.f32 %v8653_v52, %v8485_v40 }
 0x64e   :  { %v8823_v22 = vadd.f32 %v8822_v59, %v8654_v51  ;;  %v8499_v8 = vpop.f32.mrf.mxu3  ;;  %v8837_v13 = vpop.f32.mrf.mxu0  ;;  %v8975_v51 = vld [vmem:[%s18978_s1 + $0x1d8] sm:$0xff] }
 0x64f   :  { %v8500_v5 = vadd.f32 %v18886_v9, %v8499_v8 }
 0x650   :  { %v8904_v20 = vmax.f32 %v8823_v22, 0.0 }
 0x652   :  { %v9032_v1 = vadd.f32 %v8968_v41, %v8904_v20 }
 0x653   :  { %v8655_v53 = vpop.f32.mrf.mxu2 }
 0x654   :  { %9096 = vst.msk [vmem:[#allocation4 + $0x1a0] sm:$0xff] %vm1402_vm0, %v9032_v1  ;;  %v8656_v49 = vadd.f32 %v8655_v53, %v8487_v15 }
 0x656   :  { %v8825_v21 = vadd.f32 %v8824_v17, %v8656_v49  ;;  %v8501_v61 = vpop.f32.mrf.mxu3  ;;  %v8839_v27 = vpop.f32.mrf.mxu0  ;;  %v8976_v49 = vld [vmem:[%s18978_s1 + $0x1e0] sm:$0xff] }
 0x657   :  { %v8502_v2 = vadd.f32 %v18886_v9, %v8501_v61 }
 0x658   :  { %v8905_v37 = vmax.f32 %v8825_v21, 0.0 }
 0x65a   :  { %v9033_v30 = vadd.f32 %v8969_v50, %v8905_v37 }
 0x65b   :  { %v8658_v34 = vpop.f32.mrf.mxu2 }
 0x65c   :  { %9097 = vst.msk [vmem:[#allocation4 + $0x1a8] sm:$0xff] %vm1402_vm0, %v9033_v30  ;;  %v8659_v14 = vadd.f32 %v8658_v34, %v8490_v32 }
 0x65e   :  { %v8828_v16 = vadd.f32 %v8827_v60, %v8659_v14  ;;  %v8504_v23 = vpop.f32.mrf.mxu3  ;;  %v8842_v22 = vpop.f32.mrf.mxu0  ;;  %v8977_v14 = vld [vmem:[%s18978_s1 + $0x1e8] sm:$0xff] }
 0x65f   :  { %v8505_v10 = vadd.f32 %v18886_v9, %v8504_v23 }
 0x660   :  { %v8906_v3 = vmax.f32 %v8828_v16, 0.0 }
 0x662   :  { %v9034_v29 = vadd.f32 %v8970_v43, %v8906_v3 }
 0x663   :  { %v8660_v46 = vpop.f32.mrf.mxu2 }
 0x664   :  { %9098 = vst.msk [vmem:[#allocation4 + $0x1b0] sm:$0xff] %vm1402_vm0, %v9034_v29  ;;  %v8661_v39 = vadd.f32 %v8660_v46, %v8492_v18 }
 0x666   :  { %v8830_v33 = vadd.f32 %v8829_v54, %v8661_v39  ;;  %v8506_v20 = vpop.f32.mrf.mxu3  ;;  %v8844_v37 = vpop.f32.mrf.mxu0  ;;  %v8978_v39 = vld [vmem:[%s18978_s1 + $0x1f0] sm:$0xff] }
 0x667   :  { %v8507_v54 = vadd.f32 %v18886_v9, %v8506_v20 }
 0x668   :  { %v8907_v31 = vmax.f32 %v8830_v33, 0.0 }
 0x66a   :  { %v9035_v55 = vadd.f32 %v8971_v57, %v8907_v31 }
 0x66b   :  { %v8663_v48 = vpop.f32.mrf.mxu2 }
 0x66c   :  { %9099 = vst.msk [vmem:[#allocation4 + $0x1b8] sm:$0xff] %vm1402_vm0, %v9035_v55  ;;  %v8664_v45 = vadd.f32 %v8663_v48, %v8495_v24 }
 0x66e   :  { %v8833_v11 = vadd.f32 %v8832_v47, %v8664_v45  ;;  %v8509_v30 = vpop.f32.mrf.mxu3  ;;  %v8847_v47 = vpop.f32.mrf.mxu0  ;;  %v8979_v45 = vld [vmem:[%s18978_s1 + $0x1f8] sm:$0xff] }
 0x66f   :  { %v8510_v43 = vadd.f32 %v18886_v9, %v8509_v30 }
 0x670   :  { %v8908_v4 = vmax.f32 %v8833_v11, 0.0 }
 0x672   :  { %v9036_v35 = vadd.f32 %v8972_v36, %v8908_v4 }
 0x673   :  { %v8665_v59 = vpop.f32.mrf.mxu2 }
 0x674   :  { %9100 = vst.msk [vmem:[#allocation4 + $0x1c0] sm:$0xff] %vm1402_vm0, %v9036_v35  ;;  %v8666_v44 = vadd.f32 %v8665_v59, %v8497_v19 }
 0x676   :  { %v8835_v7 = vadd.f32 %v8834_v63, %v8666_v44  ;;  %v8511_v46 = vpop.f32.mrf.mxu3  ;;  %v8849_v63 = vpop.f32.mrf.mxu0 }
 0x677   :  { %v8512_v57 = vadd.f32 %v18886_v9, %v8511_v46 }
 0x678   :  { %v8909_v38 = vmax.f32 %v8835_v7, 0.0 }
 0x67a   :  { %v9037_v12 = vadd.f32 %v8973_v56, %v8909_v38 }
 0x67b   :  { %v8668_v25 = vpop.f32.mrf.mxu2 }
 0x67c   :  { %9101 = vst.msk [vmem:[#allocation4 + $0x1c8] sm:$0xff] %vm1402_vm0, %v9037_v12  ;;  %v8669_v26 = vadd.f32 %v8668_v25, %v8500_v5 }
 0x67e   :  { %v8838_v17 = vadd.f32 %v8837_v13, %v8669_v26 }
 0x680   :  { %v8910_v58 = vmax.f32 %v8838_v17, 0.0 }
 0x682   :  { %v9038_v42 = vadd.f32 %v8974_v6, %v8910_v58 }
 0x683   :  { %v8670_v40 = vpop.f32.mrf.mxu2 }
 0x684   :  { %9102 = vst.msk [vmem:[#allocation4 + $0x1d0] sm:$0xff] %vm1402_vm0, %v9038_v42  ;;  %v8671_v0 = vadd.f32 %v8670_v40, %v8502_v2 }
 0x686   :  { %v8840_v52 = vadd.f32 %v8839_v27, %v8671_v0 }
 0x688   :  { %v8911_v60 = vmax.f32 %v8840_v52, 0.0 }
 0x68a   :  { %v9039_v41 = vadd.f32 %v8975_v51, %v8911_v60 }
 0x68b   :  { %v8673_v15 = vpop.f32.mrf.mxu2 }
 0x68c   :  { %9103 = vst.msk [vmem:[#allocation4 + $0x1d8] sm:$0xff] %vm1402_vm0, %v9039_v41  ;;  %v8674_v1 = vadd.f32 %v8673_v15, %v8505_v10 }
 0x68e   :  { %v8843_v53 = vadd.f32 %v8842_v22, %v8674_v1 }
 0x690   :  { %v8912_v21 = vmax.f32 %v8843_v53, 0.0 }
 0x692   :  { %v9040_v50 = vadd.f32 %v8976_v49, %v8912_v21 }
 0x693   :  { %v8675_v62 = vpop.f32.mrf.mxu2 }
 0x694   :  { %9104 = vst.msk [vmem:[#allocation4 + $0x1e0] sm:$0xff] %vm1402_vm0, %v9040_v50  ;;  %v8676_v32 = vadd.f32 %v8675_v62, %v8507_v54 }
 0x696   :  { %v8845_v34 = vadd.f32 %v8844_v37, %v8676_v32 }
 0x698   :  { %v8913_v16 = vmax.f32 %v8845_v34, 0.0 }
 0x69a   :  { %v9041_v3 = vadd.f32 %v8977_v14, %v8913_v16 }
 0x69b   :  { %v8678_v18 = vpop.f32.mrf.mxu2 }
 0x69c   :  { %9105 = vst.msk [vmem:[#allocation4 + $0x1e8] sm:$0xff] %vm1402_vm0, %v9041_v3  ;;  %v8679_v29 = vadd.f32 %v8678_v18, %v8510_v43 }
 0x69e   :  { %v8848_v28 = vadd.f32 %v8847_v47, %v8679_v29 }
 0x6a0   :  { %v8914_v33 = vmax.f32 %v8848_v28, 0.0 }
 0x6a2   :  { %v9042_v31 = vadd.f32 %v8978_v39, %v8914_v33 }
 0x6a3   :  { %v8680_v24 = vpop.f32.mrf.mxu2 }
 0x6a4   :  { %9106 = vst.msk [vmem:[#allocation4 + $0x1f0] sm:$0xff] %vm1402_vm0, %v9042_v31  ;;  %v8681_v55 = vadd.f32 %v8680_v24, %v8512_v57 }
 0x6a6   :  { %v8850_v48 = vadd.f32 %v8849_v63, %v8681_v55 }
 0x6a8   :  { %v8915_v8 = vmax.f32 %v8850_v48, 0.0 }
 0x6aa   :  { %v9043_v9 = vadd.f32 %v8979_v45, %v8915_v8 }
 0x6ac   :  { %9107 = vst.msk [vmem:[#allocation4 + $0x1f8] sm:$0xff] %vm1402_vm0, %v9043_v9 }
 0x6ad   :  { %9120 = dma.vmem_to_hbm [thread:$0]  %s9113_s9, 8192, %s9115_s27, [#allocation5], %s12645_s13, %s12645_s13, %s12646_s14  }
 0x6ae   :  { %12638 = dma.done.wait [#allocation5], 8192  }
 0x6af   :  { %12639 = vsyncadd [#allocation5], 4294959104 }
 0x6b0   :  { %9125 = vsyncpa [#allocation5], 1 }

</bundles_post_ra>
